<compile_context>
chip_gen: v7x
topology: tpu7x:2x2x1
jax: 0.10.0
libtpu: 0.0.40
codegen_flags: <defaults>
</compile_context>

<pallas_src>
import functools

import jax
import jax.numpy as jnp
from jax import lax
from jax.experimental import pallas as pl
from jax.experimental.pallas import tpu as pltpu


# ----------------------------------------------------------------------------
# Fused kernel
# ----------------------------------------------------------------------------
def _net_kernel(p_ref, w1_ref, b1_ref, w2_ref, b2_ref, w3_hbm, b3_ref,
                wd2_hbm, bd2_ref, wd3_ref, bd3_ref,
                o_ref,
                h1_ref, h2_ref, h3_ref, slab_ref, w3_vmem, wd2_vmem, sem,
                *, batch):
    f32 = jnp.float32
    bf16 = jnp.bfloat16
    p1 = 56 * batch          # rows per pool1-parity block (8-aligned pitch)
    rows2 = 56 * batch       # rows computed per conv2/conv3 tap slice

    # ---- prefetch the two big weights; DMA overlaps conv1/conv2 compute ----
    cp_w3 = pltpu.make_async_copy(w3_hbm, w3_vmem, sem.at[0])
    cp_wd2 = pltpu.make_async_copy(wd2_hbm, wd2_vmem, sem.at[1])
    cp_w3.start()
    cp_wd2.start()

    # ---- conv1 + 2x2 maxpool + ReLU -----------------------------------------
    # p_ref rows: (r, s, b, i2, j2) on an 8-pitch j2 grid; lanes: 4 pool-window
    # phases x 9 taps.  w1_ref is block-diagonal, so one matmul evaluates all 4
    # pool phases; pooling is then a max over four aligned 32-lane groups.
    # Chunked over the 4 parity blocks to bound live f32 vregs (review item).
    w1 = w1_ref[...]
    b1 = b1_ref[...]
    for g in range(4):
        y = jnp.dot(p_ref[g * p1:(g + 1) * p1, :], w1,
                    preferred_element_type=f32)                  # (p1, 128)
        pooled = jnp.maximum(jnp.maximum(y[:, 0:32], y[:, 32:64]),
                             jnp.maximum(y[:, 64:96], y[:, 96:128]))
        h1_ref[g * p1:(g + 1) * p1, :] = jnp.maximum(pooled + b1, 0.0)
    # minimal tail fill so border (garbage) conv2 taps read finite zeros
    h1_ref[4 * p1:h1_ref.shape[0], :] = jnp.zeros(
        (h1_ref.shape[0] - 4 * p1, 32), f32)

    # ---- conv2 (9 taps, in-register accumulation) + 2x2 maxpool + ReLU ------
    # Pool-phase max is accumulated directly into the h2 VMEM scratch
    # (max(relu(a0), a1, ...) == relu(max(a0, a1, ...))).
    b2 = b2_ref[...]
    for e in range(2):
        for f in range(2):
            acc = None
            for dh in range(3):
                for dw in range(3):
                    rh, qh = (e + dh) % 2, (e + dh) // 2
                    rw, qw = (f + dw) % 2, (f + dw) // 2
                    off = (2 * rh + rw) * p1 + 8 * qh + qw
                    patch = h1_ref[off:off + rows2, :].astype(bf16)
                    d = jnp.dot(patch, w2_ref[3 * dh + dw],
                                preferred_element_type=f32)      # (rows2, 64)
                    acc = d if acc is None else acc + d
            acc = acc + b2
            if e == 0 and f == 0:
                h2_ref[0:rows2, :] = jnp.maximum(acc, 0.0)
            else:
                h2_ref[0:rows2, :] = jnp.maximum(h2_ref[0:rows2, :], acc)
    h2_ref[rows2:h2_ref.shape[0], :] = jnp.zeros(
        (h2_ref.shape[0] - rows2, 64), f32)

    # ---- conv3 (9 taps) + ReLU ----------------------------------------------
    cp_w3.wait()
    b3 = b3_ref[...]
    acc3 = None
    for dh in range(3):
        for dw in range(3):
            off = 8 * dh + dw
            patch = h2_ref[off:off + rows2, :].astype(bf16)
            d = jnp.dot(patch, w3_vmem[3 * dh + dw],
                        preferred_element_type=f32)
            acc3 = d if acc3 is None else acc3 + d
    h3_ref[...] = jnp.maximum(acc3 + b3, 0.0)                    # (rows2, 64)

    # ---- gather the 16 valid 4x4 pixels into a lane-dense (B, 1024) slab ----
    for b in range(batch):
        for hh in range(4):
            for ww in range(4):
                row = b * 56 + 8 * hh + ww
                lane = 64 * (4 * hh + ww)
                slab_ref[b:b + 1, lane:lane + 64] = h3_ref[row:row + 1, :]

    # ---- dense2 + dense3 (flatten folded into the HWC-permuted wd2) ---------
    cp_wd2.wait()
    y2 = jnp.dot(slab_ref[...].astype(bf16), wd2_vmem[...],
                 preferred_element_type=f32) + bd2_ref[...]      # (B, 64)
    o_ref[...] = jnp.dot(y2.astype(bf16), wd3_ref[...],
                         preferred_element_type=f32) + bd3_ref[...]


# ----------------------------------------------------------------------------
# Wrapper
# ----------------------------------------------------------------------------
def _full_spec(shape):
    nd = len(shape)
    return pl.BlockSpec(shape, lambda *_: (0,) * nd)


def prepare_params(params):
    """One-time weight repacking (run OUTSIDE the jitted per-call path)."""
    bf16 = jnp.bfloat16
    w1 = params["w1"].reshape(9, 32)
    # Block-diagonal conv1 weight: the 4 pool-window phases share w1, each
    # mapped to its own 32-lane output group -> one matmul per row chunk.
    w1blk = jnp.zeros((36, 128), jnp.float32)
    for ph in range(4):
        w1blk = w1blk.at[9 * ph:9 * ph + 9, 32 * ph:32 * ph + 32].set(w1)
    return {
        "w1blk": w1blk.astype(bf16),
        "b1": params["b1"],
        "w2": params["w2"].reshape(9, 32, 64).astype(bf16),
        "b2": params["b2"],
        "w3": params["w3"].reshape(9, 64, 64).astype(bf16),
        "b3": params["b3"],
        # dense2 weight permuted from NCHW-flatten row order (c*16 + h*4 + w)
        # to (h, w, c) so the kernel never materialises the NCHW flatten.
        "wd2": (params["w_d2"].reshape(64, 4, 4, 64).transpose(1, 2, 0, 3)
                .reshape(1024, 64).astype(bf16)),
        "b_d2": params["b_d2"],
        "wd3": params["w_d3"].astype(bf16),
        "b_d3": params["b_d3"],
    }


def net_forward(x_nchw, prep):
    x = x_nchw.astype(jnp.float32)
    batch, cin, hin, win = x.shape
    assert (cin, hin, win) == (1, 30, 30), x.shape
    xs = x[:, 0]                                           # (B, 30, 30)

    # Phase/parity-grouped im2col for conv1 (one small fused XLA transpose):
    # rows (r, s, b, i2, j2) with j2 padded 7->8; lanes (a, c, tap) = 36.
    taps = [xs[:, dh:dh + 28, dw:dw + 28] for dh in range(3) for dw in range(3)]
    p = jnp.stack(taps, axis=-1)                           # (B, 28, 28, 9)
    p = p.reshape(batch, 7, 2, 2, 7, 2, 2, 9)              # (b,i2,r,a,j2,s,c,t)
    p = p.transpose(2, 5, 0, 1, 4, 3, 6, 7)                # (r,s,b,i2,j2,a,c,t)
    p = jnp.pad(p, ((0, 0),) * 4 + ((0, 1),) + ((0, 0),) * 3)   # j2: 7 -> 8
    patches = p.reshape(4 * batch * 56, 36).astype(jnp.bfloat16)

    p1 = 56 * batch
    rows2 = 56 * batch
    h1_rows = 4 * p1 + 16          # last conv2 tap row read is 4*p1 + 8
    h2_rows = rows2 + 24           # last conv3 tap row read is rows2 + 17

    kernel = functools.partial(_net_kernel, batch=batch)

    ins = (patches, prep["w1blk"], prep["b1"], prep["w2"], prep["b2"],
           prep["w3"], prep["b3"], prep["wd2"], prep["b_d2"],
           prep["wd3"], prep["b_d3"])
    in_specs = [
        _full_spec(patches.shape),
        _full_spec(prep["w1blk"].shape),
        _full_spec(prep["b1"].shape),
        _full_spec(prep["w2"].shape),
        _full_spec(prep["b2"].shape),
        pl.BlockSpec(memory_space=pl.ANY),        # w3: manual async prefetch
        _full_spec(prep["b3"].shape),
        pl.BlockSpec(memory_space=pl.ANY),        # wd2: manual async prefetch
        _full_spec(prep["b_d2"].shape),
        _full_spec(prep["wd3"].shape),
        _full_spec(prep["b_d3"].shape),
    ]

    return pl.pallas_call(
        kernel,
        grid=(1,),
        in_specs=in_specs,
        out_specs=pl.BlockSpec((batch, 10), lambda i: (0, 0)),
        out_shape=jax.ShapeDtypeStruct((batch, 10), jnp.float32),
        scratch_shapes=[
            pltpu.VMEM((h1_rows, 32), jnp.float32),    # pooled1
            pltpu.VMEM((h2_rows, 64), jnp.float32),    # pooled2
            pltpu.VMEM((rows2, 64), jnp.float32),      # conv3 out
            pltpu.VMEM((batch, 1024), jnp.float32),    # dense2 LHS slab
            pltpu.VMEM((9, 64, 64), jnp.bfloat16),     # w3 (prefetched)
            pltpu.VMEM((1024, 64), jnp.bfloat16),      # wd2 (prefetched)
            pltpu.SemaphoreType.DMA((2,)),
        ],
        compiler_params=pltpu.CompilerParams(
            dimension_semantics=("arbitrary",)),
    )(*ins)


# ----------------------------------------------------------------------------
# Params + pure-JAX references (used only for the correctness checks)
# ----------------------------------------------------------------------------
def init_params(key):
    ks = jax.random.split(key, 10)

    def w_init(k, shape, fan_in):
        return jax.random.normal(k, shape, jnp.float32) / jnp.sqrt(fan_in)

    return {
        "w1": w_init(ks[0], (3, 3, 1, 32), 9 * 1),
        "b1": w_init(ks[1], (1, 32), 9 * 1),
        "w2": w_init(ks[2], (3, 3, 32, 64), 9 * 32),
        "b2": w_init(ks[3], (1, 64), 9 * 32),
        "w3": w_init(ks[4], (3, 3, 64, 64), 9 * 64),
        "b3": w_init(ks[5], (1, 64), 9 * 64),
        "w_d2": w_init(ks[6], (1024, 64), 1024),   # rows: c*16 + 4h + w (NCHW)
        "b_d2": w_init(ks[7], (1, 64), 1024),
        "w_d3": w_init(ks[8], (64, 10), 64),
        "b_d3": w_init(ks[9], (1, 10), 64),
    }


def reference_forward(x_nchw, params, *, bf16_matmul=False):
    dn = ("NHWC", "HWIO", "NHWC")
    f32 = jnp.float32
    prec = None if bf16_matmul else lax.Precision.HIGHEST

    def cast(a):
        return a.astype(jnp.bfloat16) if bf16_matmul else a

    def conv(z, w, b):
        out = lax.conv_general_dilated(cast(z), cast(w), (1, 1), "VALID",
                                       dimension_numbers=dn, precision=prec,
                                       preferred_element_type=f32)
        return out + b.reshape(1, 1, 1, -1)

    def pool2x2(z):
        return lax.reduce_window(z, -jnp.inf, lax.max,
                                 (1, 2, 2, 1), (1, 2, 2, 1), "VALID")

    y = jnp.transpose(x_nchw, (0, 2, 3, 1)).astype(f32)
    y = jax.nn.relu(pool2x2(conv(y, params["w1"], params["b1"])))
    y = jax.nn.relu(pool2x2(conv(y, params["w2"], params["b2"])))
    y = jax.nn.relu(conv(y, params["w3"], params["b3"]))
    flat = jnp.transpose(y, (0, 3, 1, 2)).reshape(y.shape[0], -1)  # NCHW flat
    y = jnp.dot(cast(flat), cast(params["w_d2"]), precision=prec,
                preferred_element_type=f32) + params["b_d2"]
    y = jnp.dot(cast(y), cast(params["w_d3"]), precision=prec,
                preferred_element_type=f32) + params["b_d3"]
    return y


# ----------------------------------------------------------------------------
if __name__ == "__main__":
    key = jax.random.PRNGKey(0)
    k_params, k_x = jax.random.split(key)
    params = init_params(k_params)
    prep = prepare_params(params)        # one-time, outside the jitted path

    # 30x30 single-channel input -> conv/pool stack yields (B, 64, 4, 4), so
    # 64*4*4 == 1024 matches torch.reshape(-1, 1024) / dense2 exactly.
    x = jax.random.normal(k_x, (2, 1, 30, 30), jnp.float32)

    out = jax.block_until_ready(jax.jit(net_forward)(x, prep))

    assert out.shape == (2, 10), out.shape
    assert bool(jnp.all(jnp.isfinite(out)))

    # Tight check vs. a reference using the same bf16-operand / f32-accum
    # matmul semantics (remaining differences are f32 summation order plus the
    # occasional 1-ulp bf16 boundary flip).
    ref_bf16 = reference_forward(x, params, bf16_matmul=True)
    err_bf16 = float(jnp.max(jnp.abs(out - ref_bf16)))
    assert err_bf16 < 1e-2, f"mismatch vs bf16-matmul reference: {err_bf16}"

    # Loose sanity check vs. the exact f32 semantics of the PyTorch module
    # (bf16 MXU operands cost ~1% relative error through 5 matmul layers).
    ref_f32 = reference_forward(x, params, bf16_matmul=False)
    err_f32 = float(jnp.max(jnp.abs(out - ref_f32)))
    assert err_f32 < 1.5e-1, f"mismatch vs f32 reference: {err_f32}"

    print("KERNEL_OK")
</pallas_src>

<mosaic_0001>
module attributes {stable_mosaic.version = 11 : i64} {
  func.func @_net_kernel(%arg0: i32, %arg1: memref<448x36xbf16, #tpu.memory_space<vmem>>, %arg2: memref<36x128xbf16, #tpu.memory_space<vmem>>, %arg3: memref<1x32xf32, #tpu.memory_space<vmem>>, %arg4: memref<9x32x64xbf16, #tpu.memory_space<vmem>>, %arg5: memref<1x64xf32, #tpu.memory_space<vmem>>, %arg6: memref<9x64x64xbf16, #tpu.memory_space<any>>, %arg7: memref<1x64xf32, #tpu.memory_space<vmem>>, %arg8: memref<1024x64xbf16, #tpu.memory_space<any>>, %arg9: memref<1x64xf32, #tpu.memory_space<vmem>>, %arg10: memref<64x10xbf16, #tpu.memory_space<vmem>>, %arg11: memref<1x10xf32, #tpu.memory_space<vmem>>, %arg12: memref<2x10xf32, #tpu.memory_space<vmem>>, %arg13: memref<464x32xf32, #tpu.memory_space<vmem>>, %arg14: memref<136x64xf32, #tpu.memory_space<vmem>>, %arg15: memref<112x64xf32, #tpu.memory_space<vmem>>, %arg16: memref<2x1024xf32, #tpu.memory_space<vmem>>, %arg17: memref<9x64x64xbf16, #tpu.memory_space<vmem>>, %arg18: memref<1024x64xbf16, #tpu.memory_space<vmem>>, %arg19: memref<2x!tpu.dma_semaphore, #tpu.memory_space<semaphore_mem>>) attributes {dimension_semantics = [#tpu.dimension_semantics<arbitrary>], iteration_bounds = array<i64: 1>, scalar_prefetch = 0 : i64, scratch_operands = 7 : i64, tpu.core_type = #tpu.core_type<tc>, window_params = [{pipeline_mode = #tpu.pipeline_mode<synchronous>, transform_indices = @transform_0, window_bounds = array<i64: 448, 36>}, {pipeline_mode = #tpu.pipeline_mode<synchronous>, transform_indices = @transform_1, window_bounds = array<i64: 36, 128>}, {pipeline_mode = #tpu.pipeline_mode<synchronous>, transform_indices = @transform_2, window_bounds = array<i64: 1, 32>}, {pipeline_mode = #tpu.pipeline_mode<synchronous>, transform_indices = @transform_3, window_bounds = array<i64: 9, 32, 64>}, {pipeline_mode = #tpu.pipeline_mode<synchronous>, transform_indices = @transform_4, window_bounds = array<i64: 1, 64>}, {}, {pipeline_mode = #tpu.pipeline_mode<synchronous>, transform_indices = @transform_6, window_bounds = array<i64: 1, 64>}, {}, {pipeline_mode = #tpu.pipeline_mode<synchronous>, transform_indices = @transform_8, window_bounds = array<i64: 1, 64>}, {pipeline_mode = #tpu.pipeline_mode<synchronous>, transform_indices = @transform_9, window_bounds = array<i64: 64, 10>}, {pipeline_mode = #tpu.pipeline_mode<synchronous>, transform_indices = @transform_10, window_bounds = array<i64: 1, 10>}, {pipeline_mode = #tpu.pipeline_mode<synchronous>, transform_indices = @transform_11, window_bounds = array<i64: 2, 10>}]} {
    %c0_i32 = arith.constant 0 : i32
    %0 = tpu.memref_slice %arg19[%c0_i32] : memref<2x!tpu.dma_semaphore, #tpu.memory_space<semaphore_mem>> -> memref<1x!tpu.dma_semaphore, #tpu.memory_space<semaphore_mem>>
    %1 = tpu.memref_squeeze %0 : memref<1x!tpu.dma_semaphore, #tpu.memory_space<semaphore_mem>> -> memref<!tpu.dma_semaphore, #tpu.memory_space<semaphore_mem>>
    tpu.enqueue_dma source(%arg6 : memref<9x64x64xbf16, #tpu.memory_space<any>>) target(%arg17 : memref<9x64x64xbf16, #tpu.memory_space<vmem>>) target_semaphore(%1 : memref<!tpu.dma_semaphore, #tpu.memory_space<semaphore_mem>>)
    %c1_i32 = arith.constant 1 : i32
    %2 = tpu.memref_slice %arg19[%c1_i32] : memref<2x!tpu.dma_semaphore, #tpu.memory_space<semaphore_mem>> -> memref<1x!tpu.dma_semaphore, #tpu.memory_space<semaphore_mem>>
    %3 = tpu.memref_squeeze %2 : memref<1x!tpu.dma_semaphore, #tpu.memory_space<semaphore_mem>> -> memref<!tpu.dma_semaphore, #tpu.memory_space<semaphore_mem>>
    tpu.enqueue_dma source(%arg8 : memref<1024x64xbf16, #tpu.memory_space<any>>) target(%arg18 : memref<1024x64xbf16, #tpu.memory_space<vmem>>) target_semaphore(%3 : memref<!tpu.dma_semaphore, #tpu.memory_space<semaphore_mem>>)
    %c0 = arith.constant 0 : index
    %c0_0 = arith.constant 0 : index
    %4 = vector.load %arg2[%c0, %c0_0] : memref<36x128xbf16, #tpu.memory_space<vmem>>, vector<36x128xbf16>
    %c0_1 = arith.constant 0 : index
    %c0_2 = arith.constant 0 : index
    %5 = vector.load %arg3[%c0_1, %c0_2] : memref<1x32xf32, #tpu.memory_space<vmem>>, vector<1x32xf32>
    %c0_3 = arith.constant 0 : index
    %c0_4 = arith.constant 0 : index
    %6 = vector.load %arg1[%c0_3, %c0_4] : memref<448x36xbf16, #tpu.memory_space<vmem>>, vector<112x36xbf16>
    %cst = arith.constant dense<0.000000e+00> : vector<112x128xf32>
    %7 = tpu.matmul %6, %4, %cst {dimension_numbers = #tpu.dot_dimension_numbers<[1], [0], [0], [1], [0, 0, 1, 1], [], []>} : vector<112x36xbf16>, vector<36x128xbf16>, vector<112x128xf32> -> vector<112x128xf32>
    %8 = vector.extract_strided_slice %7 {offsets = [0, 0], sizes = [112, 32], strides = [1, 1]} : vector<112x128xf32> to vector<112x32xf32>
    %9 = vector.extract_strided_slice %7 {offsets = [0, 32], sizes = [112, 32], strides = [1, 1]} : vector<112x128xf32> to vector<112x32xf32>
    %10 = arith.maximumf %8, %9 : vector<112x32xf32>
    %11 = vector.extract_strided_slice %7 {offsets = [0, 64], sizes = [112, 32], strides = [1, 1]} : vector<112x128xf32> to vector<112x32xf32>
    %12 = vector.extract_strided_slice %7 {offsets = [0, 96], sizes = [112, 32], strides = [1, 1]} : vector<112x128xf32> to vector<112x32xf32>
    %13 = arith.maximumf %11, %12 : vector<112x32xf32>
    %14 = arith.maximumf %10, %13 : vector<112x32xf32>
    %15 = vector.broadcast %5 : vector<1x32xf32> to vector<112x32xf32>
    %16 = arith.addf %14, %15 : vector<112x32xf32>
    %cst_5 = arith.constant 0.000000e+00 : f32
    %17 = vector.broadcast %cst_5 : f32 to vector<112x32xf32>
    %18 = arith.maximumf %16, %17 : vector<112x32xf32>
    %c0_6 = arith.constant 0 : index
    %c0_7 = arith.constant 0 : index
    %19 = vector.load %arg13[%c0_6, %c0_7] : memref<464x32xf32, #tpu.memory_space<vmem>>, vector<112x32xf32>
    tpu.vector_store %arg13[%c0_6, %c0_7], %18 {strides = array<i32>} : memref<464x32xf32, #tpu.memory_space<vmem>>, vector<112x32xf32>,
    %c112 = arith.constant 112 : index
    %c0_8 = arith.constant 0 : index
    %20 = vector.load %arg1[%c112, %c0_8] : memref<448x36xbf16, #tpu.memory_space<vmem>>, vector<112x36xbf16>
    %cst_9 = arith.constant dense<0.000000e+00> : vector<112x128xf32>
    %21 = tpu.matmul %20, %4, %cst_9 {dimension_numbers = #tpu.dot_dimension_numbers<[1], [0], [0], [1], [0, 0, 1, 1], [], []>} : vector<112x36xbf16>, vector<36x128xbf16>, vector<112x128xf32> -> vector<112x128xf32>
    %22 = vector.extract_strided_slice %21 {offsets = [0, 0], sizes = [112, 32], strides = [1, 1]} : vector<112x128xf32> to vector<112x32xf32>
    %23 = vector.extract_strided_slice %21 {offsets = [0, 32], sizes = [112, 32], strides = [1, 1]} : vector<112x128xf32> to vector<112x32xf32>
    %24 = arith.maximumf %22, %23 : vector<112x32xf32>
    %25 = vector.extract_strided_slice %21 {offsets = [0, 64], sizes = [112, 32], strides = [1, 1]} : vector<112x128xf32> to vector<112x32xf32>
    %26 = vector.extract_strided_slice %21 {offsets = [0, 96], sizes = [112, 32], strides = [1, 1]} : vector<112x128xf32> to vector<112x32xf32>
    %27 = arith.maximumf %25, %26 : vector<112x32xf32>
    %28 = arith.maximumf %24, %27 : vector<112x32xf32>
    %29 = vector.broadcast %5 : vector<1x32xf32> to vector<112x32xf32>
    %30 = arith.addf %28, %29 : vector<112x32xf32>
    %cst_10 = arith.constant 0.000000e+00 : f32
    %31 = vector.broadcast %cst_10 : f32 to vector<112x32xf32>
    %32 = arith.maximumf %30, %31 : vector<112x32xf32>
    %c112_11 = arith.constant 112 : index
    %c0_12 = arith.constant 0 : index
    %33 = vector.load %arg13[%c112_11, %c0_12] : memref<464x32xf32, #tpu.memory_space<vmem>>, vector<112x32xf32>
    tpu.vector_store %arg13[%c112_11, %c0_12], %32 {strides = array<i32>} : memref<464x32xf32, #tpu.memory_space<vmem>>, vector<112x32xf32>,
    %c224 = arith.constant 224 : index
    %c0_13 = arith.constant 0 : index
    %34 = vector.load %arg1[%c224, %c0_13] : memref<448x36xbf16, #tpu.memory_space<vmem>>, vector<112x36xbf16>
    %cst_14 = arith.constant dense<0.000000e+00> : vector<112x128xf32>
    %35 = tpu.matmul %34, %4, %cst_14 {dimension_numbers = #tpu.dot_dimension_numbers<[1], [0], [0], [1], [0, 0, 1, 1], [], []>} : vector<112x36xbf16>, vector<36x128xbf16>, vector<112x128xf32> -> vector<112x128xf32>
    %36 = vector.extract_strided_slice %35 {offsets = [0, 0], sizes = [112, 32], strides = [1, 1]} : vector<112x128xf32> to vector<112x32xf32>
    %37 = vector.extract_strided_slice %35 {offsets = [0, 32], sizes = [112, 32], strides = [1, 1]} : vector<112x128xf32> to vector<112x32xf32>
    %38 = arith.maximumf %36, %37 : vector<112x32xf32>
    %39 = vector.extract_strided_slice %35 {offsets = [0, 64], sizes = [112, 32], strides = [1, 1]} : vector<112x128xf32> to vector<112x32xf32>
    %40 = vector.extract_strided_slice %35 {offsets = [0, 96], sizes = [112, 32], strides = [1, 1]} : vector<112x128xf32> to vector<112x32xf32>
    %41 = arith.maximumf %39, %40 : vector<112x32xf32>
    %42 = arith.maximumf %38, %41 : vector<112x32xf32>
    %43 = vector.broadcast %5 : vector<1x32xf32> to vector<112x32xf32>
    %44 = arith.addf %42, %43 : vector<112x32xf32>
    %cst_15 = arith.constant 0.000000e+00 : f32
    %45 = vector.broadcast %cst_15 : f32 to vector<112x32xf32>
    %46 = arith.maximumf %44, %45 : vector<112x32xf32>
    %c224_16 = arith.constant 224 : index
    %c0_17 = arith.constant 0 : index
    %47 = vector.load %arg13[%c224_16, %c0_17] : memref<464x32xf32, #tpu.memory_space<vmem>>, vector<112x32xf32>
    tpu.vector_store %arg13[%c224_16, %c0_17], %46 {strides = array<i32>} : memref<464x32xf32, #tpu.memory_space<vmem>>, vector<112x32xf32>,
    %c336 = arith.constant 336 : index
    %c0_18 = arith.constant 0 : index
    %48 = vector.load %arg1[%c336, %c0_18] : memref<448x36xbf16, #tpu.memory_space<vmem>>, vector<112x36xbf16>
    %cst_19 = arith.constant dense<0.000000e+00> : vector<112x128xf32>
    %49 = tpu.matmul %48, %4, %cst_19 {dimension_numbers = #tpu.dot_dimension_numbers<[1], [0], [0], [1], [0, 0, 1, 1], [], []>} : vector<112x36xbf16>, vector<36x128xbf16>, vector<112x128xf32> -> vector<112x128xf32>
    %50 = vector.extract_strided_slice %49 {offsets = [0, 0], sizes = [112, 32], strides = [1, 1]} : vector<112x128xf32> to vector<112x32xf32>
    %51 = vector.extract_strided_slice %49 {offsets = [0, 32], sizes = [112, 32], strides = [1, 1]} : vector<112x128xf32> to vector<112x32xf32>
    %52 = arith.maximumf %50, %51 : vector<112x32xf32>
    %53 = vector.extract_strided_slice %49 {offsets = [0, 64], sizes = [112, 32], strides = [1, 1]} : vector<112x128xf32> to vector<112x32xf32>
    %54 = vector.extract_strided_slice %49 {offsets = [0, 96], sizes = [112, 32], strides = [1, 1]} : vector<112x128xf32> to vector<112x32xf32>
    %55 = arith.maximumf %53, %54 : vector<112x32xf32>
    %56 = arith.maximumf %52, %55 : vector<112x32xf32>
    %57 = vector.broadcast %5 : vector<1x32xf32> to vector<112x32xf32>
    %58 = arith.addf %56, %57 : vector<112x32xf32>
    %cst_20 = arith.constant 0.000000e+00 : f32
    %59 = vector.broadcast %cst_20 : f32 to vector<112x32xf32>
    %60 = arith.maximumf %58, %59 : vector<112x32xf32>
    %c336_21 = arith.constant 336 : index
    %c0_22 = arith.constant 0 : index
    %61 = vector.load %arg13[%c336_21, %c0_22] : memref<464x32xf32, #tpu.memory_space<vmem>>, vector<112x32xf32>
    tpu.vector_store %arg13[%c336_21, %c0_22], %60 {strides = array<i32>} : memref<464x32xf32, #tpu.memory_space<vmem>>, vector<112x32xf32>,
    %cst_23 = arith.constant 0.000000e+00 : f32
    %62 = vector.broadcast %cst_23 : f32 to vector<16x32xf32>
    %c448 = arith.constant 448 : index
    %c0_24 = arith.constant 0 : index
    %63 = vector.load %arg13[%c448, %c0_24] : memref<464x32xf32, #tpu.memory_space<vmem>>, vector<16x32xf32>
    tpu.vector_store %arg13[%c448, %c0_24], %62 {strides = array<i32>} : memref<464x32xf32, #tpu.memory_space<vmem>>, vector<16x32xf32>,
    %c0_25 = arith.constant 0 : index
    %c0_26 = arith.constant 0 : index
    %64 = vector.load %arg5[%c0_25, %c0_26] : memref<1x64xf32, #tpu.memory_space<vmem>>, vector<1x64xf32>
    %c0_27 = arith.constant 0 : index
    %c0_28 = arith.constant 0 : index
    %65 = vector.load %arg13[%c0_27, %c0_28] : memref<464x32xf32, #tpu.memory_space<vmem>>, vector<112x32xf32>
    %66 = arith.truncf %65 : vector<112x32xf32> to vector<112x32xbf16>
    %c0_29 = arith.constant 0 : index
    %c0_30 = arith.constant 0 : index
    %c0_31 = arith.constant 0 : index
    %67 = vector.load %arg4[%c0_29, %c0_30, %c0_31] : memref<9x32x64xbf16, #tpu.memory_space<vmem>>, vector<1x32x64xbf16>
    %68 = vector.shape_cast %67 : vector<1x32x64xbf16> to vector<32x64xbf16>
    %cst_32 = arith.constant dense<0.000000e+00> : vector<112x64xf32>
    %69 = tpu.matmul %66, %68, %cst_32 {dimension_numbers = #tpu.dot_dimension_numbers<[1], [0], [0], [1], [0, 0, 1, 1], [], []>} : vector<112x32xbf16>, vector<32x64xbf16>, vector<112x64xf32> -> vector<112x64xf32>
    %c112_33 = arith.constant 112 : index
    %c0_34 = arith.constant 0 : index
    %70 = vector.load %arg13[%c112_33, %c0_34] : memref<464x32xf32, #tpu.memory_space<vmem>>, vector<112x32xf32>
    %71 = arith.truncf %70 : vector<112x32xf32> to vector<112x32xbf16>
    %c1 = arith.constant 1 : index
    %c0_35 = arith.constant 0 : index
    %c0_36 = arith.constant 0 : index
    %72 = vector.load %arg4[%c1, %c0_35, %c0_36] : memref<9x32x64xbf16, #tpu.memory_space<vmem>>, vector<1x32x64xbf16>
    %73 = vector.shape_cast %72 : vector<1x32x64xbf16> to vector<32x64xbf16>
    %cst_37 = arith.constant dense<0.000000e+00> : vector<112x64xf32>
    %74 = tpu.matmul %71, %73, %cst_37 {dimension_numbers = #tpu.dot_dimension_numbers<[1], [0], [0], [1], [0, 0, 1, 1], [], []>} : vector<112x32xbf16>, vector<32x64xbf16>, vector<112x64xf32> -> vector<112x64xf32>
    %75 = arith.addf %69, %74 : vector<112x64xf32>
    %c1_38 = arith.constant 1 : index
    %c0_39 = arith.constant 0 : index
    %76 = vector.load %arg13[%c1_38, %c0_39] : memref<464x32xf32, #tpu.memory_space<vmem>>, vector<112x32xf32>
    %77 = arith.truncf %76 : vector<112x32xf32> to vector<112x32xbf16>
    %c2 = arith.constant 2 : index
    %c0_40 = arith.constant 0 : index
    %c0_41 = arith.constant 0 : index
    %78 = vector.load %arg4[%c2, %c0_40, %c0_41] : memref<9x32x64xbf16, #tpu.memory_space<vmem>>, vector<1x32x64xbf16>
    %79 = vector.shape_cast %78 : vector<1x32x64xbf16> to vector<32x64xbf16>
    %cst_42 = arith.constant dense<0.000000e+00> : vector<112x64xf32>
    %80 = tpu.matmul %77, %79, %cst_42 {dimension_numbers = #tpu.dot_dimension_numbers<[1], [0], [0], [1], [0, 0, 1, 1], [], []>} : vector<112x32xbf16>, vector<32x64xbf16>, vector<112x64xf32> -> vector<112x64xf32>
    %81 = arith.addf %75, %80 : vector<112x64xf32>
    %c224_43 = arith.constant 224 : index
    %c0_44 = arith.constant 0 : index
    %82 = vector.load %arg13[%c224_43, %c0_44] : memref<464x32xf32, #tpu.memory_space<vmem>>, vector<112x32xf32>
    %83 = arith.truncf %82 : vector<112x32xf32> to vector<112x32xbf16>
    %c3 = arith.constant 3 : index
    %c0_45 = arith.constant 0 : index
    %c0_46 = arith.constant 0 : index
    %84 = vector.load %arg4[%c3, %c0_45, %c0_46] : memref<9x32x64xbf16, #tpu.memory_space<vmem>>, vector<1x32x64xbf16>
    %85 = vector.shape_cast %84 : vector<1x32x64xbf16> to vector<32x64xbf16>
    %cst_47 = arith.constant dense<0.000000e+00> : vector<112x64xf32>
    %86 = tpu.matmul %83, %85, %cst_47 {dimension_numbers = #tpu.dot_dimension_numbers<[1], [0], [0], [1], [0, 0, 1, 1], [], []>} : vector<112x32xbf16>, vector<32x64xbf16>, vector<112x64xf32> -> vector<112x64xf32>
    %87 = arith.addf %81, %86 : vector<112x64xf32>
    %c336_48 = arith.constant 336 : index
    %c0_49 = arith.constant 0 : index
    %88 = vector.load %arg13[%c336_48, %c0_49] : memref<464x32xf32, #tpu.memory_space<vmem>>, vector<112x32xf32>
    %89 = arith.truncf %88 : vector<112x32xf32> to vector<112x32xbf16>
    %c4 = arith.constant 4 : index
    %c0_50 = arith.constant 0 : index
    %c0_51 = arith.constant 0 : index
    %90 = vector.load %arg4[%c4, %c0_50, %c0_51] : memref<9x32x64xbf16, #tpu.memory_space<vmem>>, vector<1x32x64xbf16>
    %91 = vector.shape_cast %90 : vector<1x32x64xbf16> to vector<32x64xbf16>
    %cst_52 = arith.constant dense<0.000000e+00> : vector<112x64xf32>
    %92 = tpu.matmul %89, %91, %cst_52 {dimension_numbers = #tpu.dot_dimension_numbers<[1], [0], [0], [1], [0, 0, 1, 1], [], []>} : vector<112x32xbf16>, vector<32x64xbf16>, vector<112x64xf32> -> vector<112x64xf32>
    %93 = arith.addf %87, %92 : vector<112x64xf32>
    %c225 = arith.constant 225 : index
    %c0_53 = arith.constant 0 : index
    %94 = vector.load %arg13[%c225, %c0_53] : memref<464x32xf32, #tpu.memory_space<vmem>>, vector<112x32xf32>
    %95 = arith.truncf %94 : vector<112x32xf32> to vector<112x32xbf16>
    %c5 = arith.constant 5 : index
    %c0_54 = arith.constant 0 : index
    %c0_55 = arith.constant 0 : index
    %96 = vector.load %arg4[%c5, %c0_54, %c0_55] : memref<9x32x64xbf16, #tpu.memory_space<vmem>>, vector<1x32x64xbf16>
    %97 = vector.shape_cast %96 : vector<1x32x64xbf16> to vector<32x64xbf16>
    %cst_56 = arith.constant dense<0.000000e+00> : vector<112x64xf32>
    %98 = tpu.matmul %95, %97, %cst_56 {dimension_numbers = #tpu.dot_dimension_numbers<[1], [0], [0], [1], [0, 0, 1, 1], [], []>} : vector<112x32xbf16>, vector<32x64xbf16>, vector<112x64xf32> -> vector<112x64xf32>
    %99 = arith.addf %93, %98 : vector<112x64xf32>
    %c8 = arith.constant 8 : index
    %c0_57 = arith.constant 0 : index
    %100 = vector.load %arg13[%c8, %c0_57] : memref<464x32xf32, #tpu.memory_space<vmem>>, vector<112x32xf32>
    %101 = arith.truncf %100 : vector<112x32xf32> to vector<112x32xbf16>
    %c6 = arith.constant 6 : index
    %c0_58 = arith.constant 0 : index
    %c0_59 = arith.constant 0 : index
    %102 = vector.load %arg4[%c6, %c0_58, %c0_59] : memref<9x32x64xbf16, #tpu.memory_space<vmem>>, vector<1x32x64xbf16>
    %103 = vector.shape_cast %102 : vector<1x32x64xbf16> to vector<32x64xbf16>
    %cst_60 = arith.constant dense<0.000000e+00> : vector<112x64xf32>
    %104 = tpu.matmul %101, %103, %cst_60 {dimension_numbers = #tpu.dot_dimension_numbers<[1], [0], [0], [1], [0, 0, 1, 1], [], []>} : vector<112x32xbf16>, vector<32x64xbf16>, vector<112x64xf32> -> vector<112x64xf32>
    %105 = arith.addf %99, %104 : vector<112x64xf32>
    %c120 = arith.constant 120 : index
    %c0_61 = arith.constant 0 : index
    %106 = vector.load %arg13[%c120, %c0_61] : memref<464x32xf32, #tpu.memory_space<vmem>>, vector<112x32xf32>
    %107 = arith.truncf %106 : vector<112x32xf32> to vector<112x32xbf16>
    %c7 = arith.constant 7 : index
    %c0_62 = arith.constant 0 : index
    %c0_63 = arith.constant 0 : index
    %108 = vector.load %arg4[%c7, %c0_62, %c0_63] : memref<9x32x64xbf16, #tpu.memory_space<vmem>>, vector<1x32x64xbf16>
    %109 = vector.shape_cast %108 : vector<1x32x64xbf16> to vector<32x64xbf16>
    %cst_64 = arith.constant dense<0.000000e+00> : vector<112x64xf32>
    %110 = tpu.matmul %107, %109, %cst_64 {dimension_numbers = #tpu.dot_dimension_numbers<[1], [0], [0], [1], [0, 0, 1, 1], [], []>} : vector<112x32xbf16>, vector<32x64xbf16>, vector<112x64xf32> -> vector<112x64xf32>
    %111 = arith.addf %105, %110 : vector<112x64xf32>
    %c9 = arith.constant 9 : index
    %c0_65 = arith.constant 0 : index
    %112 = vector.load %arg13[%c9, %c0_65] : memref<464x32xf32, #tpu.memory_space<vmem>>, vector<112x32xf32>
    %113 = arith.truncf %112 : vector<112x32xf32> to vector<112x32xbf16>
    %c8_66 = arith.constant 8 : index
    %c0_67 = arith.constant 0 : index
    %c0_68 = arith.constant 0 : index
    %114 = vector.load %arg4[%c8_66, %c0_67, %c0_68] : memref<9x32x64xbf16, #tpu.memory_space<vmem>>, vector<1x32x64xbf16>
    %115 = vector.shape_cast %114 : vector<1x32x64xbf16> to vector<32x64xbf16>
    %cst_69 = arith.constant dense<0.000000e+00> : vector<112x64xf32>
    %116 = tpu.matmul %113, %115, %cst_69 {dimension_numbers = #tpu.dot_dimension_numbers<[1], [0], [0], [1], [0, 0, 1, 1], [], []>} : vector<112x32xbf16>, vector<32x64xbf16>, vector<112x64xf32> -> vector<112x64xf32>
    %117 = arith.addf %111, %116 : vector<112x64xf32>
    %118 = vector.broadcast %64 : vector<1x64xf32> to vector<112x64xf32>
    %119 = arith.addf %117, %118 : vector<112x64xf32>
    %cst_70 = arith.constant 0.000000e+00 : f32
    %120 = vector.broadcast %cst_70 : f32 to vector<112x64xf32>
    %121 = arith.maximumf %119, %120 : vector<112x64xf32>
    %c0_71 = arith.constant 0 : index
    %c0_72 = arith.constant 0 : index
    %122 = vector.load %arg14[%c0_71, %c0_72] : memref<136x64xf32, #tpu.memory_space<vmem>>, vector<112x64xf32>
    tpu.vector_store %arg14[%c0_71, %c0_72], %121 {strides = array<i32>} : memref<136x64xf32, #tpu.memory_space<vmem>>, vector<112x64xf32>,
    %c112_73 = arith.constant 112 : index
    %c0_74 = arith.constant 0 : index
    %123 = vector.load %arg13[%c112_73, %c0_74] : memref<464x32xf32, #tpu.memory_space<vmem>>, vector<112x32xf32>
    %124 = arith.truncf %123 : vector<112x32xf32> to vector<112x32xbf16>
    %c0_75 = arith.constant 0 : index
    %c0_76 = arith.constant 0 : index
    %c0_77 = arith.constant 0 : index
    %125 = vector.load %arg4[%c0_75, %c0_76, %c0_77] : memref<9x32x64xbf16, #tpu.memory_space<vmem>>, vector<1x32x64xbf16>
    %126 = vector.shape_cast %125 : vector<1x32x64xbf16> to vector<32x64xbf16>
    %cst_78 = arith.constant dense<0.000000e+00> : vector<112x64xf32>
    %127 = tpu.matmul %124, %126, %cst_78 {dimension_numbers = #tpu.dot_dimension_numbers<[1], [0], [0], [1], [0, 0, 1, 1], [], []>} : vector<112x32xbf16>, vector<32x64xbf16>, vector<112x64xf32> -> vector<112x64xf32>
    %c1_79 = arith.constant 1 : index
    %c0_80 = arith.constant 0 : index
    %128 = vector.load %arg13[%c1_79, %c0_80] : memref<464x32xf32, #tpu.memory_space<vmem>>, vector<112x32xf32>
    %129 = arith.truncf %128 : vector<112x32xf32> to vector<112x32xbf16>
    %c1_81 = arith.constant 1 : index
    %c0_82 = arith.constant 0 : index
    %c0_83 = arith.constant 0 : index
    %130 = vector.load %arg4[%c1_81, %c0_82, %c0_83] : memref<9x32x64xbf16, #tpu.memory_space<vmem>>, vector<1x32x64xbf16>
    %131 = vector.shape_cast %130 : vector<1x32x64xbf16> to vector<32x64xbf16>
    %cst_84 = arith.constant dense<0.000000e+00> : vector<112x64xf32>
    %132 = tpu.matmul %129, %131, %cst_84 {dimension_numbers = #tpu.dot_dimension_numbers<[1], [0], [0], [1], [0, 0, 1, 1], [], []>} : vector<112x32xbf16>, vector<32x64xbf16>, vector<112x64xf32> -> vector<112x64xf32>
    %133 = arith.addf %127, %132 : vector<112x64xf32>
    %c113 = arith.constant 113 : index
    %c0_85 = arith.constant 0 : index
    %134 = vector.load %arg13[%c113, %c0_85] : memref<464x32xf32, #tpu.memory_space<vmem>>, vector<112x32xf32>
    %135 = arith.truncf %134 : vector<112x32xf32> to vector<112x32xbf16>
    %c2_86 = arith.constant 2 : index
    %c0_87 = arith.constant 0 : index
    %c0_88 = arith.constant 0 : index
    %136 = vector.load %arg4[%c2_86, %c0_87, %c0_88] : memref<9x32x64xbf16, #tpu.memory_space<vmem>>, vector<1x32x64xbf16>
    %137 = vector.shape_cast %136 : vector<1x32x64xbf16> to vector<32x64xbf16>
    %cst_89 = arith.constant dense<0.000000e+00> : vector<112x64xf32>
    %138 = tpu.matmul %135, %137, %cst_89 {dimension_numbers = #tpu.dot_dimension_numbers<[1], [0], [0], [1], [0, 0, 1, 1], [], []>} : vector<112x32xbf16>, vector<32x64xbf16>, vector<112x64xf32> -> vector<112x64xf32>
    %139 = arith.addf %133, %138 : vector<112x64xf32>
    %c336_90 = arith.constant 336 : index
    %c0_91 = arith.constant 0 : index
    %140 = vector.load %arg13[%c336_90, %c0_91] : memref<464x32xf32, #tpu.memory_space<vmem>>, vector<112x32xf32>
    %141 = arith.truncf %140 : vector<112x32xf32> to vector<112x32xbf16>
    %c3_92 = arith.constant 3 : index
    %c0_93 = arith.constant 0 : index
    %c0_94 = arith.constant 0 : index
    %142 = vector.load %arg4[%c3_92, %c0_93, %c0_94] : memref<9x32x64xbf16, #tpu.memory_space<vmem>>, vector<1x32x64xbf16>
    %143 = vector.shape_cast %142 : vector<1x32x64xbf16> to vector<32x64xbf16>
    %cst_95 = arith.constant dense<0.000000e+00> : vector<112x64xf32>
    %144 = tpu.matmul %141, %143, %cst_95 {dimension_numbers = #tpu.dot_dimension_numbers<[1], [0], [0], [1], [0, 0, 1, 1], [], []>} : vector<112x32xbf16>, vector<32x64xbf16>, vector<112x64xf32> -> vector<112x64xf32>
    %145 = arith.addf %139, %144 : vector<112x64xf32>
    %c225_96 = arith.constant 225 : index
    %c0_97 = arith.constant 0 : index
    %146 = vector.load %arg13[%c225_96, %c0_97] : memref<464x32xf32, #tpu.memory_space<vmem>>, vector<112x32xf32>
    %147 = arith.truncf %146 : vector<112x32xf32> to vector<112x32xbf16>
    %c4_98 = arith.constant 4 : index
    %c0_99 = arith.constant 0 : index
    %c0_100 = arith.constant 0 : index
    %148 = vector.load %arg4[%c4_98, %c0_99, %c0_100] : memref<9x32x64xbf16, #tpu.memory_space<vmem>>, vector<1x32x64xbf16>
    %149 = vector.shape_cast %148 : vector<1x32x64xbf16> to vector<32x64xbf16>
    %cst_101 = arith.constant dense<0.000000e+00> : vector<112x64xf32>
    %150 = tpu.matmul %147, %149, %cst_101 {dimension_numbers = #tpu.dot_dimension_numbers<[1], [0], [0], [1], [0, 0, 1, 1], [], []>} : vector<112x32xbf16>, vector<32x64xbf16>, vector<112x64xf32> -> vector<112x64xf32>
    %151 = arith.addf %145, %150 : vector<112x64xf32>
    %c337 = arith.constant 337 : index
    %c0_102 = arith.constant 0 : index
    %152 = vector.load %arg13[%c337, %c0_102] : memref<464x32xf32, #tpu.memory_space<vmem>>, vector<112x32xf32>
    %153 = arith.truncf %152 : vector<112x32xf32> to vector<112x32xbf16>
    %c5_103 = arith.constant 5 : index
    %c0_104 = arith.constant 0 : index
    %c0_105 = arith.constant 0 : index
    %154 = vector.load %arg4[%c5_103, %c0_104, %c0_105] : memref<9x32x64xbf16, #tpu.memory_space<vmem>>, vector<1x32x64xbf16>
    %155 = vector.shape_cast %154 : vector<1x32x64xbf16> to vector<32x64xbf16>
    %cst_106 = arith.constant dense<0.000000e+00> : vector<112x64xf32>
    %156 = tpu.matmul %153, %155, %cst_106 {dimension_numbers = #tpu.dot_dimension_numbers<[1], [0], [0], [1], [0, 0, 1, 1], [], []>} : vector<112x32xbf16>, vector<32x64xbf16>, vector<112x64xf32> -> vector<112x64xf32>
    %157 = arith.addf %151, %156 : vector<112x64xf32>
    %c120_107 = arith.constant 120 : index
    %c0_108 = arith.constant 0 : index
    %158 = vector.load %arg13[%c120_107, %c0_108] : memref<464x32xf32, #tpu.memory_space<vmem>>, vector<112x32xf32>
    %159 = arith.truncf %158 : vector<112x32xf32> to vector<112x32xbf16>
    %c6_109 = arith.constant 6 : index
    %c0_110 = arith.constant 0 : index
    %c0_111 = arith.constant 0 : index
    %160 = vector.load %arg4[%c6_109, %c0_110, %c0_111] : memref<9x32x64xbf16, #tpu.memory_space<vmem>>, vector<1x32x64xbf16>
    %161 = vector.shape_cast %160 : vector<1x32x64xbf16> to vector<32x64xbf16>
    %cst_112 = arith.constant dense<0.000000e+00> : vector<112x64xf32>
    %162 = tpu.matmul %159, %161, %cst_112 {dimension_numbers = #tpu.dot_dimension_numbers<[1], [0], [0], [1], [0, 0, 1, 1], [], []>} : vector<112x32xbf16>, vector<32x64xbf16>, vector<112x64xf32> -> vector<112x64xf32>
    %163 = arith.addf %157, %162 : vector<112x64xf32>
    %c9_113 = arith.constant 9 : index
    %c0_114 = arith.constant 0 : index
    %164 = vector.load %arg13[%c9_113, %c0_114] : memref<464x32xf32, #tpu.memory_space<vmem>>, vector<112x32xf32>
    %165 = arith.truncf %164 : vector<112x32xf32> to vector<112x32xbf16>
    %c7_115 = arith.constant 7 : index
    %c0_116 = arith.constant 0 : index
    %c0_117 = arith.constant 0 : index
    %166 = vector.load %arg4[%c7_115, %c0_116, %c0_117] : memref<9x32x64xbf16, #tpu.memory_space<vmem>>, vector<1x32x64xbf16>
    %167 = vector.shape_cast %166 : vector<1x32x64xbf16> to vector<32x64xbf16>
    %cst_118 = arith.constant dense<0.000000e+00> : vector<112x64xf32>
    %168 = tpu.matmul %165, %167, %cst_118 {dimension_numbers = #tpu.dot_dimension_numbers<[1], [0], [0], [1], [0, 0, 1, 1], [], []>} : vector<112x32xbf16>, vector<32x64xbf16>, vector<112x64xf32> -> vector<112x64xf32>
    %169 = arith.addf %163, %168 : vector<112x64xf32>
    %c121 = arith.constant 121 : index
    %c0_119 = arith.constant 0 : index
    %170 = vector.load %arg13[%c121, %c0_119] : memref<464x32xf32, #tpu.memory_space<vmem>>, vector<112x32xf32>
    %171 = arith.truncf %170 : vector<112x32xf32> to vector<112x32xbf16>
    %c8_120 = arith.constant 8 : index
    %c0_121 = arith.constant 0 : index
    %c0_122 = arith.constant 0 : index
    %172 = vector.load %arg4[%c8_120, %c0_121, %c0_122] : memref<9x32x64xbf16, #tpu.memory_space<vmem>>, vector<1x32x64xbf16>
    %173 = vector.shape_cast %172 : vector<1x32x64xbf16> to vector<32x64xbf16>
    %cst_123 = arith.constant dense<0.000000e+00> : vector<112x64xf32>
    %174 = tpu.matmul %171, %173, %cst_123 {dimension_numbers = #tpu.dot_dimension_numbers<[1], [0], [0], [1], [0, 0, 1, 1], [], []>} : vector<112x32xbf16>, vector<32x64xbf16>, vector<112x64xf32> -> vector<112x64xf32>
    %175 = arith.addf %169, %174 : vector<112x64xf32>
    %176 = vector.broadcast %64 : vector<1x64xf32> to vector<112x64xf32>
    %177 = arith.addf %175, %176 : vector<112x64xf32>
    %c0_124 = arith.constant 0 : index
    %c0_125 = arith.constant 0 : index
    %178 = vector.load %arg14[%c0_124, %c0_125] : memref<136x64xf32, #tpu.memory_space<vmem>>, vector<112x64xf32>
    %179 = arith.maximumf %178, %177 : vector<112x64xf32>
    %c0_126 = arith.constant 0 : index
    %c0_127 = arith.constant 0 : index
    %180 = vector.load %arg14[%c0_126, %c0_127] : memref<136x64xf32, #tpu.memory_space<vmem>>, vector<112x64xf32>
    tpu.vector_store %arg14[%c0_126, %c0_127], %179 {strides = array<i32>} : memref<136x64xf32, #tpu.memory_space<vmem>>, vector<112x64xf32>,
    %c224_128 = arith.constant 224 : index
    %c0_129 = arith.constant 0 : index
    %181 = vector.load %arg13[%c224_128, %c0_129] : memref<464x32xf32, #tpu.memory_space<vmem>>, vector<112x32xf32>
    %182 = arith.truncf %181 : vector<112x32xf32> to vector<112x32xbf16>
    %c0_130 = arith.constant 0 : index
    %c0_131 = arith.constant 0 : index
    %c0_132 = arith.constant 0 : index
    %183 = vector.load %arg4[%c0_130, %c0_131, %c0_132] : memref<9x32x64xbf16, #tpu.memory_space<vmem>>, vector<1x32x64xbf16>
    %184 = vector.shape_cast %183 : vector<1x32x64xbf16> to vector<32x64xbf16>
    %cst_133 = arith.constant dense<0.000000e+00> : vector<112x64xf32>
    %185 = tpu.matmul %182, %184, %cst_133 {dimension_numbers = #tpu.dot_dimension_numbers<[1], [0], [0], [1], [0, 0, 1, 1], [], []>} : vector<112x32xbf16>, vector<32x64xbf16>, vector<112x64xf32> -> vector<112x64xf32>
    %c336_134 = arith.constant 336 : index
    %c0_135 = arith.constant 0 : index
    %186 = vector.load %arg13[%c336_134, %c0_135] : memref<464x32xf32, #tpu.memory_space<vmem>>, vector<112x32xf32>
    %187 = arith.truncf %186 : vector<112x32xf32> to vector<112x32xbf16>
    %c1_136 = arith.constant 1 : index
    %c0_137 = arith.constant 0 : index
    %c0_138 = arith.constant 0 : index
    %188 = vector.load %arg4[%c1_136, %c0_137, %c0_138] : memref<9x32x64xbf16, #tpu.memory_space<vmem>>, vector<1x32x64xbf16>
    %189 = vector.shape_cast %188 : vector<1x32x64xbf16> to vector<32x64xbf16>
    %cst_139 = arith.constant dense<0.000000e+00> : vector<112x64xf32>
    %190 = tpu.matmul %187, %189, %cst_139 {dimension_numbers = #tpu.dot_dimension_numbers<[1], [0], [0], [1], [0, 0, 1, 1], [], []>} : vector<112x32xbf16>, vector<32x64xbf16>, vector<112x64xf32> -> vector<112x64xf32>
    %191 = arith.addf %185, %190 : vector<112x64xf32>
    %c225_140 = arith.constant 225 : index
    %c0_141 = arith.constant 0 : index
    %192 = vector.load %arg13[%c225_140, %c0_141] : memref<464x32xf32, #tpu.memory_space<vmem>>, vector<112x32xf32>
    %193 = arith.truncf %192 : vector<112x32xf32> to vector<112x32xbf16>
    %c2_142 = arith.constant 2 : index
    %c0_143 = arith.constant 0 : index
    %c0_144 = arith.constant 0 : index
    %194 = vector.load %arg4[%c2_142, %c0_143, %c0_144] : memref<9x32x64xbf16, #tpu.memory_space<vmem>>, vector<1x32x64xbf16>
    %195 = vector.shape_cast %194 : vector<1x32x64xbf16> to vector<32x64xbf16>
    %cst_145 = arith.constant dense<0.000000e+00> : vector<112x64xf32>
    %196 = tpu.matmul %193, %195, %cst_145 {dimension_numbers = #tpu.dot_dimension_numbers<[1], [0], [0], [1], [0, 0, 1, 1], [], []>} : vector<112x32xbf16>, vector<32x64xbf16>, vector<112x64xf32> -> vector<112x64xf32>
    %197 = arith.addf %191, %196 : vector<112x64xf32>
    %c8_146 = arith.constant 8 : index
    %c0_147 = arith.constant 0 : index
    %198 = vector.load %arg13[%c8_146, %c0_147] : memref<464x32xf32, #tpu.memory_space<vmem>>, vector<112x32xf32>
    %199 = arith.truncf %198 : vector<112x32xf32> to vector<112x32xbf16>
    %c3_148 = arith.constant 3 : index
    %c0_149 = arith.constant 0 : index
    %c0_150 = arith.constant 0 : index
    %200 = vector.load %arg4[%c3_148, %c0_149, %c0_150] : memref<9x32x64xbf16, #tpu.memory_space<vmem>>, vector<1x32x64xbf16>
    %201 = vector.shape_cast %200 : vector<1x32x64xbf16> to vector<32x64xbf16>
    %cst_151 = arith.constant dense<0.000000e+00> : vector<112x64xf32>
    %202 = tpu.matmul %199, %201, %cst_151 {dimension_numbers = #tpu.dot_dimension_numbers<[1], [0], [0], [1], [0, 0, 1, 1], [], []>} : vector<112x32xbf16>, vector<32x64xbf16>, vector<112x64xf32> -> vector<112x64xf32>
    %203 = arith.addf %197, %202 : vector<112x64xf32>
    %c120_152 = arith.constant 120 : index
    %c0_153 = arith.constant 0 : index
    %204 = vector.load %arg13[%c120_152, %c0_153] : memref<464x32xf32, #tpu.memory_space<vmem>>, vector<112x32xf32>
    %205 = arith.truncf %204 : vector<112x32xf32> to vector<112x32xbf16>
    %c4_154 = arith.constant 4 : index
    %c0_155 = arith.constant 0 : index
    %c0_156 = arith.constant 0 : index
    %206 = vector.load %arg4[%c4_154, %c0_155, %c0_156] : memref<9x32x64xbf16, #tpu.memory_space<vmem>>, vector<1x32x64xbf16>
    %207 = vector.shape_cast %206 : vector<1x32x64xbf16> to vector<32x64xbf16>
    %cst_157 = arith.constant dense<0.000000e+00> : vector<112x64xf32>
    %208 = tpu.matmul %205, %207, %cst_157 {dimension_numbers = #tpu.dot_dimension_numbers<[1], [0], [0], [1], [0, 0, 1, 1], [], []>} : vector<112x32xbf16>, vector<32x64xbf16>, vector<112x64xf32> -> vector<112x64xf32>
    %209 = arith.addf %203, %208 : vector<112x64xf32>
    %c9_158 = arith.constant 9 : index
    %c0_159 = arith.constant 0 : index
    %210 = vector.load %arg13[%c9_158, %c0_159] : memref<464x32xf32, #tpu.memory_space<vmem>>, vector<112x32xf32>
    %211 = arith.truncf %210 : vector<112x32xf32> to vector<112x32xbf16>
    %c5_160 = arith.constant 5 : index
    %c0_161 = arith.constant 0 : index
    %c0_162 = arith.constant 0 : index
    %212 = vector.load %arg4[%c5_160, %c0_161, %c0_162] : memref<9x32x64xbf16, #tpu.memory_space<vmem>>, vector<1x32x64xbf16>
    %213 = vector.shape_cast %212 : vector<1x32x64xbf16> to vector<32x64xbf16>
    %cst_163 = arith.constant dense<0.000000e+00> : vector<112x64xf32>
    %214 = tpu.matmul %211, %213, %cst_163 {dimension_numbers = #tpu.dot_dimension_numbers<[1], [0], [0], [1], [0, 0, 1, 1], [], []>} : vector<112x32xbf16>, vector<32x64xbf16>, vector<112x64xf32> -> vector<112x64xf32>
    %215 = arith.addf %209, %214 : vector<112x64xf32>
    %c232 = arith.constant 232 : index
    %c0_164 = arith.constant 0 : index
    %216 = vector.load %arg13[%c232, %c0_164] : memref<464x32xf32, #tpu.memory_space<vmem>>, vector<112x32xf32>
    %217 = arith.truncf %216 : vector<112x32xf32> to vector<112x32xbf16>
    %c6_165 = arith.constant 6 : index
    %c0_166 = arith.constant 0 : index
    %c0_167 = arith.constant 0 : index
    %218 = vector.load %arg4[%c6_165, %c0_166, %c0_167] : memref<9x32x64xbf16, #tpu.memory_space<vmem>>, vector<1x32x64xbf16>
    %219 = vector.shape_cast %218 : vector<1x32x64xbf16> to vector<32x64xbf16>
    %cst_168 = arith.constant dense<0.000000e+00> : vector<112x64xf32>
    %220 = tpu.matmul %217, %219, %cst_168 {dimension_numbers = #tpu.dot_dimension_numbers<[1], [0], [0], [1], [0, 0, 1, 1], [], []>} : vector<112x32xbf16>, vector<32x64xbf16>, vector<112x64xf32> -> vector<112x64xf32>
    %221 = arith.addf %215, %220 : vector<112x64xf32>
    %c344 = arith.constant 344 : index
    %c0_169 = arith.constant 0 : index
    %222 = vector.load %arg13[%c344, %c0_169] : memref<464x32xf32, #tpu.memory_space<vmem>>, vector<112x32xf32>
    %223 = arith.truncf %222 : vector<112x32xf32> to vector<112x32xbf16>
    %c7_170 = arith.constant 7 : index
    %c0_171 = arith.constant 0 : index
    %c0_172 = arith.constant 0 : index
    %224 = vector.load %arg4[%c7_170, %c0_171, %c0_172] : memref<9x32x64xbf16, #tpu.memory_space<vmem>>, vector<1x32x64xbf16>
    %225 = vector.shape_cast %224 : vector<1x32x64xbf16> to vector<32x64xbf16>
    %cst_173 = arith.constant dense<0.000000e+00> : vector<112x64xf32>
    %226 = tpu.matmul %223, %225, %cst_173 {dimension_numbers = #tpu.dot_dimension_numbers<[1], [0], [0], [1], [0, 0, 1, 1], [], []>} : vector<112x32xbf16>, vector<32x64xbf16>, vector<112x64xf32> -> vector<112x64xf32>
    %227 = arith.addf %221, %226 : vector<112x64xf32>
    %c233 = arith.constant 233 : index
    %c0_174 = arith.constant 0 : index
    %228 = vector.load %arg13[%c233, %c0_174] : memref<464x32xf32, #tpu.memory_space<vmem>>, vector<112x32xf32>
    %229 = arith.truncf %228 : vector<112x32xf32> to vector<112x32xbf16>
    %c8_175 = arith.constant 8 : index
    %c0_176 = arith.constant 0 : index
    %c0_177 = arith.constant 0 : index
    %230 = vector.load %arg4[%c8_175, %c0_176, %c0_177] : memref<9x32x64xbf16, #tpu.memory_space<vmem>>, vector<1x32x64xbf16>
    %231 = vector.shape_cast %230 : vector<1x32x64xbf16> to vector<32x64xbf16>
    %cst_178 = arith.constant dense<0.000000e+00> : vector<112x64xf32>
    %232 = tpu.matmul %229, %231, %cst_178 {dimension_numbers = #tpu.dot_dimension_numbers<[1], [0], [0], [1], [0, 0, 1, 1], [], []>} : vector<112x32xbf16>, vector<32x64xbf16>, vector<112x64xf32> -> vector<112x64xf32>
    %233 = arith.addf %227, %232 : vector<112x64xf32>
    %234 = vector.broadcast %64 : vector<1x64xf32> to vector<112x64xf32>
    %235 = arith.addf %233, %234 : vector<112x64xf32>
    %c0_179 = arith.constant 0 : index
    %c0_180 = arith.constant 0 : index
    %236 = vector.load %arg14[%c0_179, %c0_180] : memref<136x64xf32, #tpu.memory_space<vmem>>, vector<112x64xf32>
    %237 = arith.maximumf %236, %235 : vector<112x64xf32>
    %c0_181 = arith.constant 0 : index
    %c0_182 = arith.constant 0 : index
    %238 = vector.load %arg14[%c0_181, %c0_182] : memref<136x64xf32, #tpu.memory_space<vmem>>, vector<112x64xf32>
    tpu.vector_store %arg14[%c0_181, %c0_182], %237 {strides = array<i32>} : memref<136x64xf32, #tpu.memory_space<vmem>>, vector<112x64xf32>,
    %c336_183 = arith.constant 336 : index
    %c0_184 = arith.constant 0 : index
    %239 = vector.load %arg13[%c336_183, %c0_184] : memref<464x32xf32, #tpu.memory_space<vmem>>, vector<112x32xf32>
    %240 = arith.truncf %239 : vector<112x32xf32> to vector<112x32xbf16>
    %c0_185 = arith.constant 0 : index
    %c0_186 = arith.constant 0 : index
    %c0_187 = arith.constant 0 : index
    %241 = vector.load %arg4[%c0_185, %c0_186, %c0_187] : memref<9x32x64xbf16, #tpu.memory_space<vmem>>, vector<1x32x64xbf16>
    %242 = vector.shape_cast %241 : vector<1x32x64xbf16> to vector<32x64xbf16>
    %cst_188 = arith.constant dense<0.000000e+00> : vector<112x64xf32>
    %243 = tpu.matmul %240, %242, %cst_188 {dimension_numbers = #tpu.dot_dimension_numbers<[1], [0], [0], [1], [0, 0, 1, 1], [], []>} : vector<112x32xbf16>, vector<32x64xbf16>, vector<112x64xf32> -> vector<112x64xf32>
    %c225_189 = arith.constant 225 : index
    %c0_190 = arith.constant 0 : index
    %244 = vector.load %arg13[%c225_189, %c0_190] : memref<464x32xf32, #tpu.memory_space<vmem>>, vector<112x32xf32>
    %245 = arith.truncf %244 : vector<112x32xf32> to vector<112x32xbf16>
    %c1_191 = arith.constant 1 : index
    %c0_192 = arith.constant 0 : index
    %c0_193 = arith.constant 0 : index
    %246 = vector.load %arg4[%c1_191, %c0_192, %c0_193] : memref<9x32x64xbf16, #tpu.memory_space<vmem>>, vector<1x32x64xbf16>
    %247 = vector.shape_cast %246 : vector<1x32x64xbf16> to vector<32x64xbf16>
    %cst_194 = arith.constant dense<0.000000e+00> : vector<112x64xf32>
    %248 = tpu.matmul %245, %247, %cst_194 {dimension_numbers = #tpu.dot_dimension_numbers<[1], [0], [0], [1], [0, 0, 1, 1], [], []>} : vector<112x32xbf16>, vector<32x64xbf16>, vector<112x64xf32> -> vector<112x64xf32>
    %249 = arith.addf %243, %248 : vector<112x64xf32>
    %c337_195 = arith.constant 337 : index
    %c0_196 = arith.constant 0 : index
    %250 = vector.load %arg13[%c337_195, %c0_196] : memref<464x32xf32, #tpu.memory_space<vmem>>, vector<112x32xf32>
    %251 = arith.truncf %250 : vector<112x32xf32> to vector<112x32xbf16>
    %c2_197 = arith.constant 2 : index
    %c0_198 = arith.constant 0 : index
    %c0_199 = arith.constant 0 : index
    %252 = vector.load %arg4[%c2_197, %c0_198, %c0_199] : memref<9x32x64xbf16, #tpu.memory_space<vmem>>, vector<1x32x64xbf16>
    %253 = vector.shape_cast %252 : vector<1x32x64xbf16> to vector<32x64xbf16>
    %cst_200 = arith.constant dense<0.000000e+00> : vector<112x64xf32>
    %254 = tpu.matmul %251, %253, %cst_200 {dimension_numbers = #tpu.dot_dimension_numbers<[1], [0], [0], [1], [0, 0, 1, 1], [], []>} : vector<112x32xbf16>, vector<32x64xbf16>, vector<112x64xf32> -> vector<112x64xf32>
    %255 = arith.addf %249, %254 : vector<112x64xf32>
    %c120_201 = arith.constant 120 : index
    %c0_202 = arith.constant 0 : index
    %256 = vector.load %arg13[%c120_201, %c0_202] : memref<464x32xf32, #tpu.memory_space<vmem>>, vector<112x32xf32>
    %257 = arith.truncf %256 : vector<112x32xf32> to vector<112x32xbf16>
    %c3_203 = arith.constant 3 : index
    %c0_204 = arith.constant 0 : index
    %c0_205 = arith.constant 0 : index
    %258 = vector.load %arg4[%c3_203, %c0_204, %c0_205] : memref<9x32x64xbf16, #tpu.memory_space<vmem>>, vector<1x32x64xbf16>
    %259 = vector.shape_cast %258 : vector<1x32x64xbf16> to vector<32x64xbf16>
    %cst_206 = arith.constant dense<0.000000e+00> : vector<112x64xf32>
    %260 = tpu.matmul %257, %259, %cst_206 {dimension_numbers = #tpu.dot_dimension_numbers<[1], [0], [0], [1], [0, 0, 1, 1], [], []>} : vector<112x32xbf16>, vector<32x64xbf16>, vector<112x64xf32> -> vector<112x64xf32>
    %261 = arith.addf %255, %260 : vector<112x64xf32>
    %c9_207 = arith.constant 9 : index
    %c0_208 = arith.constant 0 : index
    %262 = vector.load %arg13[%c9_207, %c0_208] : memref<464x32xf32, #tpu.memory_space<vmem>>, vector<112x32xf32>
    %263 = arith.truncf %262 : vector<112x32xf32> to vector<112x32xbf16>
    %c4_209 = arith.constant 4 : index
    %c0_210 = arith.constant 0 : index
    %c0_211 = arith.constant 0 : index
    %264 = vector.load %arg4[%c4_209, %c0_210, %c0_211] : memref<9x32x64xbf16, #tpu.memory_space<vmem>>, vector<1x32x64xbf16>
    %265 = vector.shape_cast %264 : vector<1x32x64xbf16> to vector<32x64xbf16>
    %cst_212 = arith.constant dense<0.000000e+00> : vector<112x64xf32>
    %266 = tpu.matmul %263, %265, %cst_212 {dimension_numbers = #tpu.dot_dimension_numbers<[1], [0], [0], [1], [0, 0, 1, 1], [], []>} : vector<112x32xbf16>, vector<32x64xbf16>, vector<112x64xf32> -> vector<112x64xf32>
    %267 = arith.addf %261, %266 : vector<112x64xf32>
    %c121_213 = arith.constant 121 : index
    %c0_214 = arith.constant 0 : index
    %268 = vector.load %arg13[%c121_213, %c0_214] : memref<464x32xf32, #tpu.memory_space<vmem>>, vector<112x32xf32>
    %269 = arith.truncf %268 : vector<112x32xf32> to vector<112x32xbf16>
    %c5_215 = arith.constant 5 : index
    %c0_216 = arith.constant 0 : index
    %c0_217 = arith.constant 0 : index
    %270 = vector.load %arg4[%c5_215, %c0_216, %c0_217] : memref<9x32x64xbf16, #tpu.memory_space<vmem>>, vector<1x32x64xbf16>
    %271 = vector.shape_cast %270 : vector<1x32x64xbf16> to vector<32x64xbf16>
    %cst_218 = arith.constant dense<0.000000e+00> : vector<112x64xf32>
    %272 = tpu.matmul %269, %271, %cst_218 {dimension_numbers = #tpu.dot_dimension_numbers<[1], [0], [0], [1], [0, 0, 1, 1], [], []>} : vector<112x32xbf16>, vector<32x64xbf16>, vector<112x64xf32> -> vector<112x64xf32>
    %273 = arith.addf %267, %272 : vector<112x64xf32>
    %c344_219 = arith.constant 344 : index
    %c0_220 = arith.constant 0 : index
    %274 = vector.load %arg13[%c344_219, %c0_220] : memref<464x32xf32, #tpu.memory_space<vmem>>, vector<112x32xf32>
    %275 = arith.truncf %274 : vector<112x32xf32> to vector<112x32xbf16>
    %c6_221 = arith.constant 6 : index
    %c0_222 = arith.constant 0 : index
    %c0_223 = arith.constant 0 : index
    %276 = vector.load %arg4[%c6_221, %c0_222, %c0_223] : memref<9x32x64xbf16, #tpu.memory_space<vmem>>, vector<1x32x64xbf16>
    %277 = vector.shape_cast %276 : vector<1x32x64xbf16> to vector<32x64xbf16>
    %cst_224 = arith.constant dense<0.000000e+00> : vector<112x64xf32>
    %278 = tpu.matmul %275, %277, %cst_224 {dimension_numbers = #tpu.dot_dimension_numbers<[1], [0], [0], [1], [0, 0, 1, 1], [], []>} : vector<112x32xbf16>, vector<32x64xbf16>, vector<112x64xf32> -> vector<112x64xf32>
    %279 = arith.addf %273, %278 : vector<112x64xf32>
    %c233_225 = arith.constant 233 : index
    %c0_226 = arith.constant 0 : index
    %280 = vector.load %arg13[%c233_225, %c0_226] : memref<464x32xf32, #tpu.memory_space<vmem>>, vector<112x32xf32>
    %281 = arith.truncf %280 : vector<112x32xf32> to vector<112x32xbf16>
    %c7_227 = arith.constant 7 : index
    %c0_228 = arith.constant 0 : index
    %c0_229 = arith.constant 0 : index
    %282 = vector.load %arg4[%c7_227, %c0_228, %c0_229] : memref<9x32x64xbf16, #tpu.memory_space<vmem>>, vector<1x32x64xbf16>
    %283 = vector.shape_cast %282 : vector<1x32x64xbf16> to vector<32x64xbf16>
    %cst_230 = arith.constant dense<0.000000e+00> : vector<112x64xf32>
    %284 = tpu.matmul %281, %283, %cst_230 {dimension_numbers = #tpu.dot_dimension_numbers<[1], [0], [0], [1], [0, 0, 1, 1], [], []>} : vector<112x32xbf16>, vector<32x64xbf16>, vector<112x64xf32> -> vector<112x64xf32>
    %285 = arith.addf %279, %284 : vector<112x64xf32>
    %c345 = arith.constant 345 : index
    %c0_231 = arith.constant 0 : index
    %286 = vector.load %arg13[%c345, %c0_231] : memref<464x32xf32, #tpu.memory_space<vmem>>, vector<112x32xf32>
    %287 = arith.truncf %286 : vector<112x32xf32> to vector<112x32xbf16>
    %c8_232 = arith.constant 8 : index
    %c0_233 = arith.constant 0 : index
    %c0_234 = arith.constant 0 : index
    %288 = vector.load %arg4[%c8_232, %c0_233, %c0_234] : memref<9x32x64xbf16, #tpu.memory_space<vmem>>, vector<1x32x64xbf16>
    %289 = vector.shape_cast %288 : vector<1x32x64xbf16> to vector<32x64xbf16>
    %cst_235 = arith.constant dense<0.000000e+00> : vector<112x64xf32>
    %290 = tpu.matmul %287, %289, %cst_235 {dimension_numbers = #tpu.dot_dimension_numbers<[1], [0], [0], [1], [0, 0, 1, 1], [], []>} : vector<112x32xbf16>, vector<32x64xbf16>, vector<112x64xf32> -> vector<112x64xf32>
    %291 = arith.addf %285, %290 : vector<112x64xf32>
    %292 = vector.broadcast %64 : vector<1x64xf32> to vector<112x64xf32>
    %293 = arith.addf %291, %292 : vector<112x64xf32>
    %c0_236 = arith.constant 0 : index
    %c0_237 = arith.constant 0 : index
    %294 = vector.load %arg14[%c0_236, %c0_237] : memref<136x64xf32, #tpu.memory_space<vmem>>, vector<112x64xf32>
    %295 = arith.maximumf %294, %293 : vector<112x64xf32>
    %c0_238 = arith.constant 0 : index
    %c0_239 = arith.constant 0 : index
    %296 = vector.load %arg14[%c0_238, %c0_239] : memref<136x64xf32, #tpu.memory_space<vmem>>, vector<112x64xf32>
    tpu.vector_store %arg14[%c0_238, %c0_239], %295 {strides = array<i32>} : memref<136x64xf32, #tpu.memory_space<vmem>>, vector<112x64xf32>,
    %cst_240 = arith.constant 0.000000e+00 : f32
    %297 = vector.broadcast %cst_240 : f32 to vector<24x64xf32>
    %c112_241 = arith.constant 112 : index
    %c0_242 = arith.constant 0 : index
    %298 = vector.load %arg14[%c112_241, %c0_242] : memref<136x64xf32, #tpu.memory_space<vmem>>, vector<24x64xf32>
    tpu.vector_store %arg14[%c112_241, %c0_242], %297 {strides = array<i32>} : memref<136x64xf32, #tpu.memory_space<vmem>>, vector<24x64xf32>,
    %c0_i32_243 = arith.constant 0 : i32
    %299 = tpu.memref_slice %arg19[%c0_i32_243] : memref<2x!tpu.dma_semaphore, #tpu.memory_space<semaphore_mem>> -> memref<1x!tpu.dma_semaphore, #tpu.memory_space<semaphore_mem>>
    %300 = tpu.memref_squeeze %299 : memref<1x!tpu.dma_semaphore, #tpu.memory_space<semaphore_mem>> -> memref<!tpu.dma_semaphore, #tpu.memory_space<semaphore_mem>>
    tpu.wait_dma2 semaphore(%300 : memref<!tpu.dma_semaphore, #tpu.memory_space<semaphore_mem>>) src(%arg6 : memref<9x64x64xbf16, #tpu.memory_space<any>>) dst(%arg17 : memref<9x64x64xbf16, #tpu.memory_space<vmem>>)
    %c0_244 = arith.constant 0 : index
    %c0_245 = arith.constant 0 : index
    %301 = vector.load %arg7[%c0_244, %c0_245] : memref<1x64xf32, #tpu.memory_space<vmem>>, vector<1x64xf32>
    %c0_246 = arith.constant 0 : index
    %c0_247 = arith.constant 0 : index
    %302 = vector.load %arg14[%c0_246, %c0_247] : memref<136x64xf32, #tpu.memory_space<vmem>>, vector<112x64xf32>
    %303 = arith.truncf %302 : vector<112x64xf32> to vector<112x64xbf16>
    %c0_248 = arith.constant 0 : index
    %c0_249 = arith.constant 0 : index
    %c0_250 = arith.constant 0 : index
    %304 = vector.load %arg17[%c0_248, %c0_249, %c0_250] : memref<9x64x64xbf16, #tpu.memory_space<vmem>>, vector<1x64x64xbf16>
    %305 = vector.shape_cast %304 : vector<1x64x64xbf16> to vector<64x64xbf16>
    %cst_251 = arith.constant dense<0.000000e+00> : vector<112x64xf32>
    %306 = tpu.matmul %303, %305, %cst_251 {dimension_numbers = #tpu.dot_dimension_numbers<[1], [0], [0], [1], [0, 0, 1, 1], [], []>} : vector<112x64xbf16>, vector<64x64xbf16>, vector<112x64xf32> -> vector<112x64xf32>
    %c1_252 = arith.constant 1 : index
    %c0_253 = arith.constant 0 : index
    %307 = vector.load %arg14[%c1_252, %c0_253] : memref<136x64xf32, #tpu.memory_space<vmem>>, vector<112x64xf32>
    %308 = arith.truncf %307 : vector<112x64xf32> to vector<112x64xbf16>
    %c1_254 = arith.constant 1 : index
    %c0_255 = arith.constant 0 : index
    %c0_256 = arith.constant 0 : index
    %309 = vector.load %arg17[%c1_254, %c0_255, %c0_256] : memref<9x64x64xbf16, #tpu.memory_space<vmem>>, vector<1x64x64xbf16>
    %310 = vector.shape_cast %309 : vector<1x64x64xbf16> to vector<64x64xbf16>
    %cst_257 = arith.constant dense<0.000000e+00> : vector<112x64xf32>
    %311 = tpu.matmul %308, %310, %cst_257 {dimension_numbers = #tpu.dot_dimension_numbers<[1], [0], [0], [1], [0, 0, 1, 1], [], []>} : vector<112x64xbf16>, vector<64x64xbf16>, vector<112x64xf32> -> vector<112x64xf32>
    %312 = arith.addf %306, %311 : vector<112x64xf32>
    %c2_258 = arith.constant 2 : index
    %c0_259 = arith.constant 0 : index
    %313 = vector.load %arg14[%c2_258, %c0_259] : memref<136x64xf32, #tpu.memory_space<vmem>>, vector<112x64xf32>
    %314 = arith.truncf %313 : vector<112x64xf32> to vector<112x64xbf16>
    %c2_260 = arith.constant 2 : index
    %c0_261 = arith.constant 0 : index
    %c0_262 = arith.constant 0 : index
    %315 = vector.load %arg17[%c2_260, %c0_261, %c0_262] : memref<9x64x64xbf16, #tpu.memory_space<vmem>>, vector<1x64x64xbf16>
    %316 = vector.shape_cast %315 : vector<1x64x64xbf16> to vector<64x64xbf16>
    %cst_263 = arith.constant dense<0.000000e+00> : vector<112x64xf32>
    %317 = tpu.matmul %314, %316, %cst_263 {dimension_numbers = #tpu.dot_dimension_numbers<[1], [0], [0], [1], [0, 0, 1, 1], [], []>} : vector<112x64xbf16>, vector<64x64xbf16>, vector<112x64xf32> -> vector<112x64xf32>
    %318 = arith.addf %312, %317 : vector<112x64xf32>
    %c8_264 = arith.constant 8 : index
    %c0_265 = arith.constant 0 : index
    %319 = vector.load %arg14[%c8_264, %c0_265] : memref<136x64xf32, #tpu.memory_space<vmem>>, vector<112x64xf32>
    %320 = arith.truncf %319 : vector<112x64xf32> to vector<112x64xbf16>
    %c3_266 = arith.constant 3 : index
    %c0_267 = arith.constant 0 : index
    %c0_268 = arith.constant 0 : index
    %321 = vector.load %arg17[%c3_266, %c0_267, %c0_268] : memref<9x64x64xbf16, #tpu.memory_space<vmem>>, vector<1x64x64xbf16>
    %322 = vector.shape_cast %321 : vector<1x64x64xbf16> to vector<64x64xbf16>
    %cst_269 = arith.constant dense<0.000000e+00> : vector<112x64xf32>
    %323 = tpu.matmul %320, %322, %cst_269 {dimension_numbers = #tpu.dot_dimension_numbers<[1], [0], [0], [1], [0, 0, 1, 1], [], []>} : vector<112x64xbf16>, vector<64x64xbf16>, vector<112x64xf32> -> vector<112x64xf32>
    %324 = arith.addf %318, %323 : vector<112x64xf32>
    %c9_270 = arith.constant 9 : index
    %c0_271 = arith.constant 0 : index
    %325 = vector.load %arg14[%c9_270, %c0_271] : memref<136x64xf32, #tpu.memory_space<vmem>>, vector<112x64xf32>
    %326 = arith.truncf %325 : vector<112x64xf32> to vector<112x64xbf16>
    %c4_272 = arith.constant 4 : index
    %c0_273 = arith.constant 0 : index
    %c0_274 = arith.constant 0 : index
    %327 = vector.load %arg17[%c4_272, %c0_273, %c0_274] : memref<9x64x64xbf16, #tpu.memory_space<vmem>>, vector<1x64x64xbf16>
    %328 = vector.shape_cast %327 : vector<1x64x64xbf16> to vector<64x64xbf16>
    %cst_275 = arith.constant dense<0.000000e+00> : vector<112x64xf32>
    %329 = tpu.matmul %326, %328, %cst_275 {dimension_numbers = #tpu.dot_dimension_numbers<[1], [0], [0], [1], [0, 0, 1, 1], [], []>} : vector<112x64xbf16>, vector<64x64xbf16>, vector<112x64xf32> -> vector<112x64xf32>
    %330 = arith.addf %324, %329 : vector<112x64xf32>
    %c10 = arith.constant 10 : index
    %c0_276 = arith.constant 0 : index
    %331 = vector.load %arg14[%c10, %c0_276] : memref<136x64xf32, #tpu.memory_space<vmem>>, vector<112x64xf32>
    %332 = arith.truncf %331 : vector<112x64xf32> to vector<112x64xbf16>
    %c5_277 = arith.constant 5 : index
    %c0_278 = arith.constant 0 : index
    %c0_279 = arith.constant 0 : index
    %333 = vector.load %arg17[%c5_277, %c0_278, %c0_279] : memref<9x64x64xbf16, #tpu.memory_space<vmem>>, vector<1x64x64xbf16>
    %334 = vector.shape_cast %333 : vector<1x64x64xbf16> to vector<64x64xbf16>
    %cst_280 = arith.constant dense<0.000000e+00> : vector<112x64xf32>
    %335 = tpu.matmul %332, %334, %cst_280 {dimension_numbers = #tpu.dot_dimension_numbers<[1], [0], [0], [1], [0, 0, 1, 1], [], []>} : vector<112x64xbf16>, vector<64x64xbf16>, vector<112x64xf32> -> vector<112x64xf32>
    %336 = arith.addf %330, %335 : vector<112x64xf32>
    %c16 = arith.constant 16 : index
    %c0_281 = arith.constant 0 : index
    %337 = vector.load %arg14[%c16, %c0_281] : memref<136x64xf32, #tpu.memory_space<vmem>>, vector<112x64xf32>
    %338 = arith.truncf %337 : vector<112x64xf32> to vector<112x64xbf16>
    %c6_282 = arith.constant 6 : index
    %c0_283 = arith.constant 0 : index
    %c0_284 = arith.constant 0 : index
    %339 = vector.load %arg17[%c6_282, %c0_283, %c0_284] : memref<9x64x64xbf16, #tpu.memory_space<vmem>>, vector<1x64x64xbf16>
    %340 = vector.shape_cast %339 : vector<1x64x64xbf16> to vector<64x64xbf16>
    %cst_285 = arith.constant dense<0.000000e+00> : vector<112x64xf32>
    %341 = tpu.matmul %338, %340, %cst_285 {dimension_numbers = #tpu.dot_dimension_numbers<[1], [0], [0], [1], [0, 0, 1, 1], [], []>} : vector<112x64xbf16>, vector<64x64xbf16>, vector<112x64xf32> -> vector<112x64xf32>
    %342 = arith.addf %336, %341 : vector<112x64xf32>
    %c17 = arith.constant 17 : index
    %c0_286 = arith.constant 0 : index
    %343 = vector.load %arg14[%c17, %c0_286] : memref<136x64xf32, #tpu.memory_space<vmem>>, vector<112x64xf32>
    %344 = arith.truncf %343 : vector<112x64xf32> to vector<112x64xbf16>
    %c7_287 = arith.constant 7 : index
    %c0_288 = arith.constant 0 : index
    %c0_289 = arith.constant 0 : index
    %345 = vector.load %arg17[%c7_287, %c0_288, %c0_289] : memref<9x64x64xbf16, #tpu.memory_space<vmem>>, vector<1x64x64xbf16>
    %346 = vector.shape_cast %345 : vector<1x64x64xbf16> to vector<64x64xbf16>
    %cst_290 = arith.constant dense<0.000000e+00> : vector<112x64xf32>
    %347 = tpu.matmul %344, %346, %cst_290 {dimension_numbers = #tpu.dot_dimension_numbers<[1], [0], [0], [1], [0, 0, 1, 1], [], []>} : vector<112x64xbf16>, vector<64x64xbf16>, vector<112x64xf32> -> vector<112x64xf32>
    %348 = arith.addf %342, %347 : vector<112x64xf32>
    %c18 = arith.constant 18 : index
    %c0_291 = arith.constant 0 : index
    %349 = vector.load %arg14[%c18, %c0_291] : memref<136x64xf32, #tpu.memory_space<vmem>>, vector<112x64xf32>
    %350 = arith.truncf %349 : vector<112x64xf32> to vector<112x64xbf16>
    %c8_292 = arith.constant 8 : index
    %c0_293 = arith.constant 0 : index
    %c0_294 = arith.constant 0 : index
    %351 = vector.load %arg17[%c8_292, %c0_293, %c0_294] : memref<9x64x64xbf16, #tpu.memory_space<vmem>>, vector<1x64x64xbf16>
    %352 = vector.shape_cast %351 : vector<1x64x64xbf16> to vector<64x64xbf16>
    %cst_295 = arith.constant dense<0.000000e+00> : vector<112x64xf32>
    %353 = tpu.matmul %350, %352, %cst_295 {dimension_numbers = #tpu.dot_dimension_numbers<[1], [0], [0], [1], [0, 0, 1, 1], [], []>} : vector<112x64xbf16>, vector<64x64xbf16>, vector<112x64xf32> -> vector<112x64xf32>
    %354 = arith.addf %348, %353 : vector<112x64xf32>
    %355 = vector.broadcast %301 : vector<1x64xf32> to vector<112x64xf32>
    %356 = arith.addf %354, %355 : vector<112x64xf32>
    %cst_296 = arith.constant 0.000000e+00 : f32
    %357 = vector.broadcast %cst_296 : f32 to vector<112x64xf32>
    %358 = arith.maximumf %356, %357 : vector<112x64xf32>
    %c0_297 = arith.constant 0 : index
    %c0_298 = arith.constant 0 : index
    %359 = vector.load %arg15[%c0_297, %c0_298] : memref<112x64xf32, #tpu.memory_space<vmem>>, vector<112x64xf32>
    tpu.vector_store %arg15[%c0_297, %c0_298], %358 {strides = array<i32>} : memref<112x64xf32, #tpu.memory_space<vmem>>, vector<112x64xf32>,
    %c0_299 = arith.constant 0 : index
    %c0_300 = arith.constant 0 : index
    %360 = vector.load %arg15[%c0_299, %c0_300] : memref<112x64xf32, #tpu.memory_space<vmem>>, vector<1x64xf32>
    %c0_301 = arith.constant 0 : index
    %c0_302 = arith.constant 0 : index
    %361 = vector.load %arg16[%c0_301, %c0_302] : memref<2x1024xf32, #tpu.memory_space<vmem>>, vector<1x64xf32>
    tpu.vector_store %arg16[%c0_301, %c0_302], %360 {strides = array<i32>} : memref<2x1024xf32, #tpu.memory_space<vmem>>, vector<1x64xf32>,
    %c1_303 = arith.constant 1 : index
    %c0_304 = arith.constant 0 : index
    %362 = vector.load %arg15[%c1_303, %c0_304] : memref<112x64xf32, #tpu.memory_space<vmem>>, vector<1x64xf32>
    %c0_305 = arith.constant 0 : index
    %c64 = arith.constant 64 : index
    %363 = vector.load %arg16[%c0_305, %c64] : memref<2x1024xf32, #tpu.memory_space<vmem>>, vector<1x64xf32>
    tpu.vector_store %arg16[%c0_305, %c64], %362 {strides = array<i32>} : memref<2x1024xf32, #tpu.memory_space<vmem>>, vector<1x64xf32>,
    %c2_306 = arith.constant 2 : index
    %c0_307 = arith.constant 0 : index
    %364 = vector.load %arg15[%c2_306, %c0_307] : memref<112x64xf32, #tpu.memory_space<vmem>>, vector<1x64xf32>
    %c0_308 = arith.constant 0 : index
    %c128 = arith.constant 128 : index
    %365 = vector.load %arg16[%c0_308, %c128] : memref<2x1024xf32, #tpu.memory_space<vmem>>, vector<1x64xf32>
    tpu.vector_store %arg16[%c0_308, %c128], %364 {strides = array<i32>} : memref<2x1024xf32, #tpu.memory_space<vmem>>, vector<1x64xf32>,
    %c3_309 = arith.constant 3 : index
    %c0_310 = arith.constant 0 : index
    %366 = vector.load %arg15[%c3_309, %c0_310] : memref<112x64xf32, #tpu.memory_space<vmem>>, vector<1x64xf32>
    %c0_311 = arith.constant 0 : index
    %c192 = arith.constant 192 : index
    %367 = vector.load %arg16[%c0_311, %c192] : memref<2x1024xf32, #tpu.memory_space<vmem>>, vector<1x64xf32>
    tpu.vector_store %arg16[%c0_311, %c192], %366 {strides = array<i32>} : memref<2x1024xf32, #tpu.memory_space<vmem>>, vector<1x64xf32>,
    %c8_312 = arith.constant 8 : index
    %c0_313 = arith.constant 0 : index
    %368 = vector.load %arg15[%c8_312, %c0_313] : memref<112x64xf32, #tpu.memory_space<vmem>>, vector<1x64xf32>
    %c0_314 = arith.constant 0 : index
    %c256 = arith.constant 256 : index
    %369 = vector.load %arg16[%c0_314, %c256] : memref<2x1024xf32, #tpu.memory_space<vmem>>, vector<1x64xf32>
    tpu.vector_store %arg16[%c0_314, %c256], %368 {strides = array<i32>} : memref<2x1024xf32, #tpu.memory_space<vmem>>, vector<1x64xf32>,
    %c9_315 = arith.constant 9 : index
    %c0_316 = arith.constant 0 : index
    %370 = vector.load %arg15[%c9_315, %c0_316] : memref<112x64xf32, #tpu.memory_space<vmem>>, vector<1x64xf32>
    %c0_317 = arith.constant 0 : index
    %c320 = arith.constant 320 : index
    %371 = vector.load %arg16[%c0_317, %c320] : memref<2x1024xf32, #tpu.memory_space<vmem>>, vector<1x64xf32>
    tpu.vector_store %arg16[%c0_317, %c320], %370 {strides = array<i32>} : memref<2x1024xf32, #tpu.memory_space<vmem>>, vector<1x64xf32>,
    %c10_318 = arith.constant 10 : index
    %c0_319 = arith.constant 0 : index
    %372 = vector.load %arg15[%c10_318, %c0_319] : memref<112x64xf32, #tpu.memory_space<vmem>>, vector<1x64xf32>
    %c0_320 = arith.constant 0 : index
    %c384 = arith.constant 384 : index
    %373 = vector.load %arg16[%c0_320, %c384] : memref<2x1024xf32, #tpu.memory_space<vmem>>, vector<1x64xf32>
    tpu.vector_store %arg16[%c0_320, %c384], %372 {strides = array<i32>} : memref<2x1024xf32, #tpu.memory_space<vmem>>, vector<1x64xf32>,
    %c11 = arith.constant 11 : index
    %c0_321 = arith.constant 0 : index
    %374 = vector.load %arg15[%c11, %c0_321] : memref<112x64xf32, #tpu.memory_space<vmem>>, vector<1x64xf32>
    %c0_322 = arith.constant 0 : index
    %c448_323 = arith.constant 448 : index
    %375 = vector.load %arg16[%c0_322, %c448_323] : memref<2x1024xf32, #tpu.memory_space<vmem>>, vector<1x64xf32>
    tpu.vector_store %arg16[%c0_322, %c448_323], %374 {strides = array<i32>} : memref<2x1024xf32, #tpu.memory_space<vmem>>, vector<1x64xf32>,
    %c16_324 = arith.constant 16 : index
    %c0_325 = arith.constant 0 : index
    %376 = vector.load %arg15[%c16_324, %c0_325] : memref<112x64xf32, #tpu.memory_space<vmem>>, vector<1x64xf32>
    %c0_326 = arith.constant 0 : index
    %c512 = arith.constant 512 : index
    %377 = vector.load %arg16[%c0_326, %c512] : memref<2x1024xf32, #tpu.memory_space<vmem>>, vector<1x64xf32>
    tpu.vector_store %arg16[%c0_326, %c512], %376 {strides = array<i32>} : memref<2x1024xf32, #tpu.memory_space<vmem>>, vector<1x64xf32>,
    %c17_327 = arith.constant 17 : index
    %c0_328 = arith.constant 0 : index
    %378 = vector.load %arg15[%c17_327, %c0_328] : memref<112x64xf32, #tpu.memory_space<vmem>>, vector<1x64xf32>
    %c0_329 = arith.constant 0 : index
    %c576 = arith.constant 576 : index
    %379 = vector.load %arg16[%c0_329, %c576] : memref<2x1024xf32, #tpu.memory_space<vmem>>, vector<1x64xf32>
    tpu.vector_store %arg16[%c0_329, %c576], %378 {strides = array<i32>} : memref<2x1024xf32, #tpu.memory_space<vmem>>, vector<1x64xf32>,
    %c18_330 = arith.constant 18 : index
    %c0_331 = arith.constant 0 : index
    %380 = vector.load %arg15[%c18_330, %c0_331] : memref<112x64xf32, #tpu.memory_space<vmem>>, vector<1x64xf32>
    %c0_332 = arith.constant 0 : index
    %c640 = arith.constant 640 : index
    %381 = vector.load %arg16[%c0_332, %c640] : memref<2x1024xf32, #tpu.memory_space<vmem>>, vector<1x64xf32>
    tpu.vector_store %arg16[%c0_332, %c640], %380 {strides = array<i32>} : memref<2x1024xf32, #tpu.memory_space<vmem>>, vector<1x64xf32>,
    %c19 = arith.constant 19 : index
    %c0_333 = arith.constant 0 : index
    %382 = vector.load %arg15[%c19, %c0_333] : memref<112x64xf32, #tpu.memory_space<vmem>>, vector<1x64xf32>
    %c0_334 = arith.constant 0 : index
    %c704 = arith.constant 704 : index
    %383 = vector.load %arg16[%c0_334, %c704] : memref<2x1024xf32, #tpu.memory_space<vmem>>, vector<1x64xf32>
    tpu.vector_store %arg16[%c0_334, %c704], %382 {strides = array<i32>} : memref<2x1024xf32, #tpu.memory_space<vmem>>, vector<1x64xf32>,
    %c24 = arith.constant 24 : index
    %c0_335 = arith.constant 0 : index
    %384 = vector.load %arg15[%c24, %c0_335] : memref<112x64xf32, #tpu.memory_space<vmem>>, vector<1x64xf32>
    %c0_336 = arith.constant 0 : index
    %c768 = arith.constant 768 : index
    %385 = vector.load %arg16[%c0_336, %c768] : memref<2x1024xf32, #tpu.memory_space<vmem>>, vector<1x64xf32>
    tpu.vector_store %arg16[%c0_336, %c768], %384 {strides = array<i32>} : memref<2x1024xf32, #tpu.memory_space<vmem>>, vector<1x64xf32>,
    %c25 = arith.constant 25 : index
    %c0_337 = arith.constant 0 : index
    %386 = vector.load %arg15[%c25, %c0_337] : memref<112x64xf32, #tpu.memory_space<vmem>>, vector<1x64xf32>
    %c0_338 = arith.constant 0 : index
    %c832 = arith.constant 832 : index
    %387 = vector.load %arg16[%c0_338, %c832] : memref<2x1024xf32, #tpu.memory_space<vmem>>, vector<1x64xf32>
    tpu.vector_store %arg16[%c0_338, %c832], %386 {strides = array<i32>} : memref<2x1024xf32, #tpu.memory_space<vmem>>, vector<1x64xf32>,
    %c26 = arith.constant 26 : index
    %c0_339 = arith.constant 0 : index
    %388 = vector.load %arg15[%c26, %c0_339] : memref<112x64xf32, #tpu.memory_space<vmem>>, vector<1x64xf32>
    %c0_340 = arith.constant 0 : index
    %c896 = arith.constant 896 : index
    %389 = vector.load %arg16[%c0_340, %c896] : memref<2x1024xf32, #tpu.memory_space<vmem>>, vector<1x64xf32>
    tpu.vector_store %arg16[%c0_340, %c896], %388 {strides = array<i32>} : memref<2x1024xf32, #tpu.memory_space<vmem>>, vector<1x64xf32>,
    %c27 = arith.constant 27 : index
    %c0_341 = arith.constant 0 : index
    %390 = vector.load %arg15[%c27, %c0_341] : memref<112x64xf32, #tpu.memory_space<vmem>>, vector<1x64xf32>
    %c0_342 = arith.constant 0 : index
    %c960 = arith.constant 960 : index
    %391 = vector.load %arg16[%c0_342, %c960] : memref<2x1024xf32, #tpu.memory_space<vmem>>, vector<1x64xf32>
    tpu.vector_store %arg16[%c0_342, %c960], %390 {strides = array<i32>} : memref<2x1024xf32, #tpu.memory_space<vmem>>, vector<1x64xf32>,
    %c56 = arith.constant 56 : index
    %c0_343 = arith.constant 0 : index
    %392 = vector.load %arg15[%c56, %c0_343] : memref<112x64xf32, #tpu.memory_space<vmem>>, vector<1x64xf32>
    %c1_344 = arith.constant 1 : index
    %c0_345 = arith.constant 0 : index
    %393 = vector.load %arg16[%c1_344, %c0_345] : memref<2x1024xf32, #tpu.memory_space<vmem>>, vector<1x64xf32>
    tpu.vector_store %arg16[%c1_344, %c0_345], %392 {strides = array<i32>} : memref<2x1024xf32, #tpu.memory_space<vmem>>, vector<1x64xf32>,
    %c57 = arith.constant 57 : index
    %c0_346 = arith.constant 0 : index
    %394 = vector.load %arg15[%c57, %c0_346] : memref<112x64xf32, #tpu.memory_space<vmem>>, vector<1x64xf32>
    %c1_347 = arith.constant 1 : index
    %c64_348 = arith.constant 64 : index
    %395 = vector.load %arg16[%c1_347, %c64_348] : memref<2x1024xf32, #tpu.memory_space<vmem>>, vector<1x64xf32>
    tpu.vector_store %arg16[%c1_347, %c64_348], %394 {strides = array<i32>} : memref<2x1024xf32, #tpu.memory_space<vmem>>, vector<1x64xf32>,
    %c58 = arith.constant 58 : index
    %c0_349 = arith.constant 0 : index
    %396 = vector.load %arg15[%c58, %c0_349] : memref<112x64xf32, #tpu.memory_space<vmem>>, vector<1x64xf32>
    %c1_350 = arith.constant 1 : index
    %c128_351 = arith.constant 128 : index
    %397 = vector.load %arg16[%c1_350, %c128_351] : memref<2x1024xf32, #tpu.memory_space<vmem>>, vector<1x64xf32>
    tpu.vector_store %arg16[%c1_350, %c128_351], %396 {strides = array<i32>} : memref<2x1024xf32, #tpu.memory_space<vmem>>, vector<1x64xf32>,
    %c59 = arith.constant 59 : index
    %c0_352 = arith.constant 0 : index
    %398 = vector.load %arg15[%c59, %c0_352] : memref<112x64xf32, #tpu.memory_space<vmem>>, vector<1x64xf32>
    %c1_353 = arith.constant 1 : index
    %c192_354 = arith.constant 192 : index
    %399 = vector.load %arg16[%c1_353, %c192_354] : memref<2x1024xf32, #tpu.memory_space<vmem>>, vector<1x64xf32>
    tpu.vector_store %arg16[%c1_353, %c192_354], %398 {strides = array<i32>} : memref<2x1024xf32, #tpu.memory_space<vmem>>, vector<1x64xf32>,
    %c64_355 = arith.constant 64 : index
    %c0_356 = arith.constant 0 : index
    %400 = vector.load %arg15[%c64_355, %c0_356] : memref<112x64xf32, #tpu.memory_space<vmem>>, vector<1x64xf32>
    %c1_357 = arith.constant 1 : index
    %c256_358 = arith.constant 256 : index
    %401 = vector.load %arg16[%c1_357, %c256_358] : memref<2x1024xf32, #tpu.memory_space<vmem>>, vector<1x64xf32>
    tpu.vector_store %arg16[%c1_357, %c256_358], %400 {strides = array<i32>} : memref<2x1024xf32, #tpu.memory_space<vmem>>, vector<1x64xf32>,
    %c65 = arith.constant 65 : index
    %c0_359 = arith.constant 0 : index
    %402 = vector.load %arg15[%c65, %c0_359] : memref<112x64xf32, #tpu.memory_space<vmem>>, vector<1x64xf32>
    %c1_360 = arith.constant 1 : index
    %c320_361 = arith.constant 320 : index
    %403 = vector.load %arg16[%c1_360, %c320_361] : memref<2x1024xf32, #tpu.memory_space<vmem>>, vector<1x64xf32>
    tpu.vector_store %arg16[%c1_360, %c320_361], %402 {strides = array<i32>} : memref<2x1024xf32, #tpu.memory_space<vmem>>, vector<1x64xf32>,
    %c66 = arith.constant 66 : index
    %c0_362 = arith.constant 0 : index
    %404 = vector.load %arg15[%c66, %c0_362] : memref<112x64xf32, #tpu.memory_space<vmem>>, vector<1x64xf32>
    %c1_363 = arith.constant 1 : index
    %c384_364 = arith.constant 384 : index
    %405 = vector.load %arg16[%c1_363, %c384_364] : memref<2x1024xf32, #tpu.memory_space<vmem>>, vector<1x64xf32>
    tpu.vector_store %arg16[%c1_363, %c384_364], %404 {strides = array<i32>} : memref<2x1024xf32, #tpu.memory_space<vmem>>, vector<1x64xf32>,
    %c67 = arith.constant 67 : index
    %c0_365 = arith.constant 0 : index
    %406 = vector.load %arg15[%c67, %c0_365] : memref<112x64xf32, #tpu.memory_space<vmem>>, vector<1x64xf32>
    %c1_366 = arith.constant 1 : index
    %c448_367 = arith.constant 448 : index
    %407 = vector.load %arg16[%c1_366, %c448_367] : memref<2x1024xf32, #tpu.memory_space<vmem>>, vector<1x64xf32>
    tpu.vector_store %arg16[%c1_366, %c448_367], %406 {strides = array<i32>} : memref<2x1024xf32, #tpu.memory_space<vmem>>, vector<1x64xf32>,
    %c72 = arith.constant 72 : index
    %c0_368 = arith.constant 0 : index
    %408 = vector.load %arg15[%c72, %c0_368] : memref<112x64xf32, #tpu.memory_space<vmem>>, vector<1x64xf32>
    %c1_369 = arith.constant 1 : index
    %c512_370 = arith.constant 512 : index
    %409 = vector.load %arg16[%c1_369, %c512_370] : memref<2x1024xf32, #tpu.memory_space<vmem>>, vector<1x64xf32>
    tpu.vector_store %arg16[%c1_369, %c512_370], %408 {strides = array<i32>} : memref<2x1024xf32, #tpu.memory_space<vmem>>, vector<1x64xf32>,
    %c73 = arith.constant 73 : index
    %c0_371 = arith.constant 0 : index
    %410 = vector.load %arg15[%c73, %c0_371] : memref<112x64xf32, #tpu.memory_space<vmem>>, vector<1x64xf32>
    %c1_372 = arith.constant 1 : index
    %c576_373 = arith.constant 576 : index
    %411 = vector.load %arg16[%c1_372, %c576_373] : memref<2x1024xf32, #tpu.memory_space<vmem>>, vector<1x64xf32>
    tpu.vector_store %arg16[%c1_372, %c576_373], %410 {strides = array<i32>} : memref<2x1024xf32, #tpu.memory_space<vmem>>, vector<1x64xf32>,
    %c74 = arith.constant 74 : index
    %c0_374 = arith.constant 0 : index
    %412 = vector.load %arg15[%c74, %c0_374] : memref<112x64xf32, #tpu.memory_space<vmem>>, vector<1x64xf32>
    %c1_375 = arith.constant 1 : index
    %c640_376 = arith.constant 640 : index
    %413 = vector.load %arg16[%c1_375, %c640_376] : memref<2x1024xf32, #tpu.memory_space<vmem>>, vector<1x64xf32>
    tpu.vector_store %arg16[%c1_375, %c640_376], %412 {strides = array<i32>} : memref<2x1024xf32, #tpu.memory_space<vmem>>, vector<1x64xf32>,
    %c75 = arith.constant 75 : index
    %c0_377 = arith.constant 0 : index
    %414 = vector.load %arg15[%c75, %c0_377] : memref<112x64xf32, #tpu.memory_space<vmem>>, vector<1x64xf32>
    %c1_378 = arith.constant 1 : index
    %c704_379 = arith.constant 704 : index
    %415 = vector.load %arg16[%c1_378, %c704_379] : memref<2x1024xf32, #tpu.memory_space<vmem>>, vector<1x64xf32>
    tpu.vector_store %arg16[%c1_378, %c704_379], %414 {strides = array<i32>} : memref<2x1024xf32, #tpu.memory_space<vmem>>, vector<1x64xf32>,
    %c80 = arith.constant 80 : index
    %c0_380 = arith.constant 0 : index
    %416 = vector.load %arg15[%c80, %c0_380] : memref<112x64xf32, #tpu.memory_space<vmem>>, vector<1x64xf32>
    %c1_381 = arith.constant 1 : index
    %c768_382 = arith.constant 768 : index
    %417 = vector.load %arg16[%c1_381, %c768_382] : memref<2x1024xf32, #tpu.memory_space<vmem>>, vector<1x64xf32>
    tpu.vector_store %arg16[%c1_381, %c768_382], %416 {strides = array<i32>} : memref<2x1024xf32, #tpu.memory_space<vmem>>, vector<1x64xf32>,
    %c81 = arith.constant 81 : index
    %c0_383 = arith.constant 0 : index
    %418 = vector.load %arg15[%c81, %c0_383] : memref<112x64xf32, #tpu.memory_space<vmem>>, vector<1x64xf32>
    %c1_384 = arith.constant 1 : index
    %c832_385 = arith.constant 832 : index
    %419 = vector.load %arg16[%c1_384, %c832_385] : memref<2x1024xf32, #tpu.memory_space<vmem>>, vector<1x64xf32>
    tpu.vector_store %arg16[%c1_384, %c832_385], %418 {strides = array<i32>} : memref<2x1024xf32, #tpu.memory_space<vmem>>, vector<1x64xf32>,
    %c82 = arith.constant 82 : index
    %c0_386 = arith.constant 0 : index
    %420 = vector.load %arg15[%c82, %c0_386] : memref<112x64xf32, #tpu.memory_space<vmem>>, vector<1x64xf32>
    %c1_387 = arith.constant 1 : index
    %c896_388 = arith.constant 896 : index
    %421 = vector.load %arg16[%c1_387, %c896_388] : memref<2x1024xf32, #tpu.memory_space<vmem>>, vector<1x64xf32>
    tpu.vector_store %arg16[%c1_387, %c896_388], %420 {strides = array<i32>} : memref<2x1024xf32, #tpu.memory_space<vmem>>, vector<1x64xf32>,
    %c83 = arith.constant 83 : index
    %c0_389 = arith.constant 0 : index
    %422 = vector.load %arg15[%c83, %c0_389] : memref<112x64xf32, #tpu.memory_space<vmem>>, vector<1x64xf32>
    %c1_390 = arith.constant 1 : index
    %c960_391 = arith.constant 960 : index
    %423 = vector.load %arg16[%c1_390, %c960_391] : memref<2x1024xf32, #tpu.memory_space<vmem>>, vector<1x64xf32>
    tpu.vector_store %arg16[%c1_390, %c960_391], %422 {strides = array<i32>} : memref<2x1024xf32, #tpu.memory_space<vmem>>, vector<1x64xf32>,
    %c1_i32_392 = arith.constant 1 : i32
    %424 = tpu.memref_slice %arg19[%c1_i32_392] : memref<2x!tpu.dma_semaphore, #tpu.memory_space<semaphore_mem>> -> memref<1x!tpu.dma_semaphore, #tpu.memory_space<semaphore_mem>>
    %425 = tpu.memref_squeeze %424 : memref<1x!tpu.dma_semaphore, #tpu.memory_space<semaphore_mem>> -> memref<!tpu.dma_semaphore, #tpu.memory_space<semaphore_mem>>
    tpu.wait_dma2 semaphore(%425 : memref<!tpu.dma_semaphore, #tpu.memory_space<semaphore_mem>>) src(%arg8 : memref<1024x64xbf16, #tpu.memory_space<any>>) dst(%arg18 : memref<1024x64xbf16, #tpu.memory_space<vmem>>)
    %c0_393 = arith.constant 0 : index
    %c0_394 = arith.constant 0 : index
    %426 = vector.load %arg16[%c0_393, %c0_394] : memref<2x1024xf32, #tpu.memory_space<vmem>>, vector<2x1024xf32>
    %427 = arith.truncf %426 : vector<2x1024xf32> to vector<2x1024xbf16>
    %c0_395 = arith.constant 0 : index
    %c0_396 = arith.constant 0 : index
    %428 = vector.load %arg18[%c0_395, %c0_396] : memref<1024x64xbf16, #tpu.memory_space<vmem>>, vector<1024x64xbf16>
    %cst_397 = arith.constant dense<0.000000e+00> : vector<2x64xf32>
    %429 = tpu.matmul %427, %428, %cst_397 {dimension_numbers = #tpu.dot_dimension_numbers<[1], [0], [0], [1], [0, 0, 1, 1], [], []>} : vector<2x1024xbf16>, vector<1024x64xbf16>, vector<2x64xf32> -> vector<2x64xf32>
    %c0_398 = arith.constant 0 : index
    %c0_399 = arith.constant 0 : index
    %430 = vector.load %arg9[%c0_398, %c0_399] : memref<1x64xf32, #tpu.memory_space<vmem>>, vector<1x64xf32>
    %431 = vector.broadcast %430 : vector<1x64xf32> to vector<2x64xf32>
    %432 = arith.addf %429, %431 : vector<2x64xf32>
    %433 = arith.truncf %432 : vector<2x64xf32> to vector<2x64xbf16>
    %c0_400 = arith.constant 0 : index
    %c0_401 = arith.constant 0 : index
    %434 = vector.load %arg10[%c0_400, %c0_401] : memref<64x10xbf16, #tpu.memory_space<vmem>>, vector<64x10xbf16>
    %cst_402 = arith.constant dense<0.000000e+00> : vector<2x10xf32>
    %435 = tpu.matmul %433, %434, %cst_402 {dimension_numbers = #tpu.dot_dimension_numbers<[1], [0], [0], [1], [0, 0, 1, 1], [], []>} : vector<2x64xbf16>, vector<64x10xbf16>, vector<2x10xf32> -> vector<2x10xf32>
    %c0_403 = arith.constant 0 : index
    %c0_404 = arith.constant 0 : index
    %436 = vector.load %arg11[%c0_403, %c0_404] : memref<1x10xf32, #tpu.memory_space<vmem>>, vector<1x10xf32>
    %437 = vector.broadcast %436 : vector<1x10xf32> to vector<2x10xf32>
    %438 = arith.addf %435, %437 : vector<2x10xf32>
    %c0_405 = arith.constant 0 : index
    %c0_406 = arith.constant 0 : index
    %439 = vector.load %arg12[%c0_405, %c0_406] : memref<2x10xf32, #tpu.memory_space<vmem>>, vector<2x10xf32>
    tpu.vector_store %arg12[%c0_405, %c0_406], %438 {strides = array<i32>} : memref<2x10xf32, #tpu.memory_space<vmem>>, vector<2x10xf32>,
    return
  }
  func.func @transform_0(%arg0: i32) -> (i32, i32) {
    %c0_i32 = arith.constant 0 : i32
    %c0_i32_0 = arith.constant 0 : i32
    %c0_i32_1 = arith.constant 0 : i32
    return %c0_i32, %c0_i32_0 : i32, i32
  }
  func.func @transform_1(%arg0: i32) -> (i32, i32) {
    %c0_i32 = arith.constant 0 : i32
    %c0_i32_0 = arith.constant 0 : i32
    %c0_i32_1 = arith.constant 0 : i32
    return %c0_i32, %c0_i32_0 : i32, i32
  }
  func.func @transform_2(%arg0: i32) -> (i32, i32) {
    %c0_i32 = arith.constant 0 : i32
    %c0_i32_0 = arith.constant 0 : i32
    %c0_i32_1 = arith.constant 0 : i32
    return %c0_i32, %c0_i32_0 : i32, i32
  }
  func.func @transform_3(%arg0: i32) -> (i32, i32, i32) {
    %c0_i32 = arith.constant 0 : i32
    %c0_i32_0 = arith.constant 0 : i32
    %c0_i32_1 = arith.constant 0 : i32
    %c0_i32_2 = arith.constant 0 : i32
    return %c0_i32, %c0_i32_0, %c0_i32_1 : i32, i32, i32
  }
  func.func @transform_4(%arg0: i32) -> (i32, i32) {
    %c0_i32 = arith.constant 0 : i32
    %c0_i32_0 = arith.constant 0 : i32
    %c0_i32_1 = arith.constant 0 : i32
    return %c0_i32, %c0_i32_0 : i32, i32
  }
  func.func @transform_6(%arg0: i32) -> (i32, i32) {
    %c0_i32 = arith.constant 0 : i32
    %c0_i32_0 = arith.constant 0 : i32
    %c0_i32_1 = arith.constant 0 : i32
    return %c0_i32, %c0_i32_0 : i32, i32
  }
  func.func @transform_8(%arg0: i32) -> (i32, i32) {
    %c0_i32 = arith.constant 0 : i32
    %c0_i32_0 = arith.constant 0 : i32
    %c0_i32_1 = arith.constant 0 : i32
    return %c0_i32, %c0_i32_0 : i32, i32
  }
  func.func @transform_9(%arg0: i32) -> (i32, i32) {
    %c0_i32 = arith.constant 0 : i32
    %c0_i32_0 = arith.constant 0 : i32
    %c0_i32_1 = arith.constant 0 : i32
    return %c0_i32, %c0_i32_0 : i32, i32
  }
  func.func @transform_10(%arg0: i32) -> (i32, i32) {
    %c0_i32 = arith.constant 0 : i32
    %c0_i32_0 = arith.constant 0 : i32
    %c0_i32_1 = arith.constant 0 : i32
    return %c0_i32, %c0_i32_0 : i32, i32
  }
  func.func @transform_11(%arg0: i32) -> (i32, i32) {
    %c0_i32 = arith.constant 0 : i32
    %c0_i32_0 = arith.constant 0 : i32
    %c0_i32_1 = arith.constant 0 : i32
    return %c0_i32, %c0_i32_0 : i32, i32
  }
}

</mosaic_0001>

<bundles_post_ra>
// kernel: net_forward.1
= control target key start
LH: loop header
LB: loop body
LE: loop exit
PB: predicated region body
PF: predicated region fallthrough
CT: control target
= control target key end

     0   :  { %16 = vsyncpa [#allocation10], 0  ;;  %s17750_s0 = inlined_call_operand.vmem [shape: bf16[448,36], index: 0, kind: input, shape index: {}]   ;;  %s17751_s1 = inlined_call_operand.vmem [shape: bf16[36,128], index: 1, kind: input, shape index: {}]   ;;  %s17752_s2 = inlined_call_operand.vmem [shape: f32[1,32], index: 2, kind: input, shape index: {}]   ;;  %s17753_s3 = inlined_call_operand.vmem [shape: bf16[9,32,64], index: 3, kind: input, shape index: {}]   ;;  %s17754_s4 = inlined_call_operand.vmem [shape: f32[1,64], index: 4, kind: input, shape index: {}]   ;;  %s17755_s5 = inlined_call_operand.vmem [shape: bf16[9,64,64], index: 5, kind: input, shape index: {}]   ;;  %s17756_s6 = inlined_call_operand.vmem [shape: f32[1,64], index: 6, kind: input, shape index: {}]   ;;  %s17757_s7 = inlined_call_operand.vmem [shape: bf16[1024,64], index: 7, kind: input, shape index: {}]   ;;  %s17758_s8 = inlined_call_operand.vmem [shape: f32[1,64], index: 8, kind: input, shape index: {}]   ;;  %s17759_s9 = inlined_call_operand.vmem [shape: bf16[64,10], index: 9, kind: input, shape index: {}]   ;;  %s17760_s10 = inlined_call_operand.vmem [shape: f32[1,10], index: 10, kind: input, shape index: {}]   ;;  %s17761_s11 = inlined_call_operand.hbm [shape: f32[2,10], index: 11, kind: output, shape index: {}]  }
   0x1   :  { %v12694_v0 = vld [vmem:[%s17755_s5] sm:$0xff]  ;;  %v12699_v1 = vld [vmem:[%s17755_s5 + $0x8] sm:$0xff]  ;;  %v12704_v2 = vld [vmem:[%s17755_s5 + $0x10] sm:$0xff] }
   0x2   :  { %17808 = vst [vmem:[#allocation16_spill] sm:$0xff] %v12694_v0  ;;  %17809 = vst [vmem:[#allocation17_spill] sm:$0xff] %v12699_v1  ;;  %v12709_v3 = vld [vmem:[%s17755_s5 + $0x18] sm:$0xff]  ;;  %v12714_v4 = vld [vmem:[%s17755_s5 + $0x20] sm:$0xff] }
   0x3   :  { %17810 = vst [vmem:[#allocation18_spill] sm:$0xff] %v12704_v2  ;;  %17811 = vst [vmem:[#allocation19_spill] sm:$0xff] %v12709_v3  ;;  %v12719_v5 = vld [vmem:[%s17755_s5 + $0x28] sm:$0xff]  ;;  %v12724_v6 = vld [vmem:[%s17755_s5 + $0x30] sm:$0xff] }
   0x4   :  { %17812 = vst [vmem:[#allocation20_spill] sm:$0xff] %v12714_v4  ;;  %17813 = vst [vmem:[#allocation21_spill] sm:$0xff] %v12719_v5  ;;  %v12729_v7 = vld [vmem:[%s17755_s5 + $0x38] sm:$0xff]  ;;  %v12734_v8 = vld [vmem:[%s17755_s5 + $0x40] sm:$0xff] }
   0x5   :  { %17814 = vst [vmem:[#allocation22_spill] sm:$0xff] %v12724_v6  ;;  %17815 = vst [vmem:[#allocation23_spill] sm:$0xff] %v12729_v7  ;;  %v12739_v9 = vld [vmem:[%s17755_s5 + $0x48] sm:$0xff]  ;;  %v12744_v10 = vld [vmem:[%s17755_s5 + $0x50] sm:$0xff] }
   0x6   :  { %17816 = vst [vmem:[#allocation24_spill] sm:$0xff] %v12734_v8  ;;  %17817 = vst [vmem:[#allocation25_spill] sm:$0xff] %v12739_v9  ;;  %v12749_v11 = vld [vmem:[%s17755_s5 + $0x58] sm:$0xff]  ;;  %v12754_v12 = vld [vmem:[%s17755_s5 + $0x60] sm:$0xff] }
   0x7   :  { %17818 = vst [vmem:[#allocation26_spill] sm:$0xff] %v12744_v10  ;;  %17819 = vst [vmem:[#allocation27_spill] sm:$0xff] %v12749_v11  ;;  %v12759_v13 = vld [vmem:[%s17755_s5 + $0x68] sm:$0xff]  ;;  %v12764_v14 = vld [vmem:[%s17755_s5 + $0x70] sm:$0xff] }
   0x8   :  { %17820 = vst [vmem:[#allocation28_spill] sm:$0xff] %v12754_v12  ;;  %17821 = vst [vmem:[#allocation29_spill] sm:$0xff] %v12759_v13  ;;  %v12769_v15 = vld [vmem:[%s17755_s5 + $0x78] sm:$0xff]  ;;  %v12774_v16 = vld [vmem:[%s17755_s5 + $0x80] sm:$0xff] }
   0x9   :  { %17822 = vst [vmem:[#allocation30_spill] sm:$0xff] %v12764_v14  ;;  %17823 = vst [vmem:[#allocation31_spill] sm:$0xff] %v12769_v15  ;;  %v12779_v17 = vld [vmem:[%s17755_s5 + $0x88] sm:$0xff]  ;;  %v12784_v18 = vld [vmem:[%s17755_s5 + $0x90] sm:$0xff] }
   0xa   :  { %17824 = vst [vmem:[#allocation32_spill] sm:$0xff] %v12774_v16  ;;  %17825 = vst [vmem:[#allocation33_spill] sm:$0xff] %v12779_v17  ;;  %v12789_v19 = vld [vmem:[%s17755_s5 + $0x98] sm:$0xff]  ;;  %v12794_v20 = vld [vmem:[%s17755_s5 + $0xa0] sm:$0xff] }
   0xb   :  { %17826 = vst [vmem:[#allocation34_spill] sm:$0xff] %v12784_v18  ;;  %17827 = vst [vmem:[#allocation35_spill] sm:$0xff] %v12789_v19  ;;  %v12799_v21 = vld [vmem:[%s17755_s5 + $0xa8] sm:$0xff]  ;;  %v12804_v22 = vld [vmem:[%s17755_s5 + $0xb0] sm:$0xff] }
   0xc   :  { %17828 = vst [vmem:[#allocation36_spill] sm:$0xff] %v12794_v20  ;;  %17829 = vst [vmem:[#allocation37_spill] sm:$0xff] %v12799_v21  ;;  %v12809_v23 = vld [vmem:[%s17755_s5 + $0xb8] sm:$0xff]  ;;  %v12814_v24 = vld [vmem:[%s17755_s5 + $0xc0] sm:$0xff] }
   0xd   :  { %17830 = vst [vmem:[#allocation38_spill] sm:$0xff] %v12804_v22  ;;  %17831 = vst [vmem:[#allocation39_spill] sm:$0xff] %v12809_v23  ;;  %v12819_v25 = vld [vmem:[%s17755_s5 + $0xc8] sm:$0xff]  ;;  %v12824_v26 = vld [vmem:[%s17755_s5 + $0xd0] sm:$0xff] }
   0xe   :  { %17832 = vst [vmem:[#allocation40_spill] sm:$0xff] %v12814_v24  ;;  %17833 = vst [vmem:[#allocation41_spill] sm:$0xff] %v12819_v25  ;;  %v12829_v27 = vld [vmem:[%s17755_s5 + $0xd8] sm:$0xff]  ;;  %v12834_v28 = vld [vmem:[%s17755_s5 + $0xe0] sm:$0xff] }
   0xf   :  { %17834 = vst [vmem:[#allocation42_spill] sm:$0xff] %v12824_v26  ;;  %17835 = vst [vmem:[#allocation43_spill] sm:$0xff] %v12829_v27  ;;  %v12839_v29 = vld [vmem:[%s17755_s5 + $0xe8] sm:$0xff]  ;;  %v12844_v30 = vld [vmem:[%s17755_s5 + $0xf0] sm:$0xff] }
  0x10   :  { %17836 = vst [vmem:[#allocation44_spill] sm:$0xff] %v12834_v28  ;;  %17837 = vst [vmem:[#allocation45_spill] sm:$0xff] %v12839_v29  ;;  %v12849_v31 = vld [vmem:[%s17755_s5 + $0xf8] sm:$0xff]  ;;  %v12854_v32 = vld [vmem:[%s17755_s5 + $0x100] sm:$0xff] }
  0x11   :  { %17838 = vst [vmem:[#allocation46_spill] sm:$0xff] %v12844_v30  ;;  %17839 = vst [vmem:[#allocation47_spill] sm:$0xff] %v12849_v31  ;;  %v12859_v33 = vld [vmem:[%s17755_s5 + $0x108] sm:$0xff]  ;;  %v12864_v34 = vld [vmem:[%s17755_s5 + $0x110] sm:$0xff] }
  0x12   :  { %17840 = vst [vmem:[#allocation48_spill] sm:$0xff] %v12854_v32  ;;  %17841 = vst [vmem:[#allocation49_spill] sm:$0xff] %v12859_v33  ;;  %v12869_v35 = vld [vmem:[%s17755_s5 + $0x118] sm:$0xff] }
  0x13   :  { %17842 = vst [vmem:[#allocation50_spill] sm:$0xff] %v12864_v34  ;;  %17843 = vst [vmem:[#allocation51_spill] sm:$0xff] %v12869_v35 }
  0x14   :  { %147 = vsyncadd [#allocation8], 4608  ;;  %v12874_v36 = vld [vmem:[%s17757_s7] sm:$0xff]  ;;  %v12879_v37 = vld [vmem:[%s17757_s7 + $0x8] sm:$0xff] }
  0x15   :  { %17844 = vst [vmem:[#allocation52_spill] sm:$0xff] %v12874_v36  ;;  %17845 = vst [vmem:[#allocation53_spill] sm:$0xff] %v12879_v37  ;;  %v12884_v38 = vld [vmem:[%s17757_s7 + $0x10] sm:$0xff]  ;;  %v12889_v39 = vld [vmem:[%s17757_s7 + $0x18] sm:$0xff] }
  0x16   :  { %17846 = vst [vmem:[#allocation54_spill] sm:$0xff] %v12884_v38  ;;  %17847 = vst [vmem:[#allocation55_spill] sm:$0xff] %v12889_v39  ;;  %v12894_v40 = vld [vmem:[%s17757_s7 + $0x20] sm:$0xff]  ;;  %v12899_v41 = vld [vmem:[%s17757_s7 + $0x28] sm:$0xff] }
  0x17   :  { %17848 = vst [vmem:[#allocation56_spill] sm:$0xff] %v12894_v40  ;;  %17849 = vst [vmem:[#allocation57_spill] sm:$0xff] %v12899_v41  ;;  %v12904_v42 = vld [vmem:[%s17757_s7 + $0x30] sm:$0xff]  ;;  %v12909_v43 = vld [vmem:[%s17757_s7 + $0x38] sm:$0xff] }
  0x18   :  { %17850 = vst [vmem:[#allocation58_spill] sm:$0xff] %v12904_v42  ;;  %17851 = vst [vmem:[#allocation59_spill] sm:$0xff] %v12909_v43  ;;  %v12914_v44 = vld [vmem:[%s17757_s7 + $0x40] sm:$0xff]  ;;  %v12919_v45 = vld [vmem:[%s17757_s7 + $0x48] sm:$0xff] }
  0x19   :  { %17852 = vst [vmem:[#allocation60_spill] sm:$0xff] %v12914_v44  ;;  %17853 = vst [vmem:[#allocation61_spill] sm:$0xff] %v12919_v45  ;;  %v12924_v46 = vld [vmem:[%s17757_s7 + $0x50] sm:$0xff]  ;;  %v12929_v47 = vld [vmem:[%s17757_s7 + $0x58] sm:$0xff] }
  0x1a   :  { %17854 = vst [vmem:[#allocation62_spill] sm:$0xff] %v12924_v46  ;;  %17855 = vst [vmem:[#allocation63_spill] sm:$0xff] %v12929_v47  ;;  %v12934_v48 = vld [vmem:[%s17757_s7 + $0x60] sm:$0xff]  ;;  %v12939_v49 = vld [vmem:[%s17757_s7 + $0x68] sm:$0xff] }
  0x1b   :  { %17856 = vst [vmem:[#allocation64_spill] sm:$0xff] %v12934_v48  ;;  %17857 = vst [vmem:[#allocation65_spill] sm:$0xff] %v12939_v49  ;;  %v12944_v50 = vld [vmem:[%s17757_s7 + $0x70] sm:$0xff]  ;;  %v12949_v51 = vld [vmem:[%s17757_s7 + $0x78] sm:$0xff] }
  0x1c   :  { %17858 = vst [vmem:[#allocation66_spill] sm:$0xff] %v12944_v50  ;;  %17859 = vst [vmem:[#allocation67_spill] sm:$0xff] %v12949_v51  ;;  %v12954_v52 = vld [vmem:[%s17757_s7 + $0x80] sm:$0xff]  ;;  %v12959_v53 = vld [vmem:[%s17757_s7 + $0x88] sm:$0xff] }
  0x1d   :  { %17860 = vst [vmem:[#allocation68_spill] sm:$0xff] %v12954_v52  ;;  %17861 = vst [vmem:[#allocation69_spill] sm:$0xff] %v12959_v53  ;;  %v12964_v54 = vld [vmem:[%s17757_s7 + $0x90] sm:$0xff]  ;;  %v12969_v55 = vld [vmem:[%s17757_s7 + $0x98] sm:$0xff] }
  0x1e   :  { %17862 = vst [vmem:[#allocation70_spill] sm:$0xff] %v12964_v54  ;;  %17863 = vst [vmem:[#allocation71_spill] sm:$0xff] %v12969_v55  ;;  %v12974_v56 = vld [vmem:[%s17757_s7 + $0xa0] sm:$0xff]  ;;  %v12979_v57 = vld [vmem:[%s17757_s7 + $0xa8] sm:$0xff] }
  0x1f   :  { %17864 = vst [vmem:[#allocation72_spill] sm:$0xff] %v12974_v56  ;;  %17865 = vst [vmem:[#allocation73_spill] sm:$0xff] %v12979_v57  ;;  %v12984_v58 = vld [vmem:[%s17757_s7 + $0xb0] sm:$0xff]  ;;  %v12989_v59 = vld [vmem:[%s17757_s7 + $0xb8] sm:$0xff] }
  0x20   :  { %17866 = vst [vmem:[#allocation74_spill] sm:$0xff] %v12984_v58  ;;  %17867 = vst [vmem:[#allocation75_spill] sm:$0xff] %v12989_v59  ;;  %v12994_v60 = vld [vmem:[%s17757_s7 + $0xc0] sm:$0xff]  ;;  %v12999_v61 = vld [vmem:[%s17757_s7 + $0xc8] sm:$0xff] }
  0x21   :  { %17868 = vst [vmem:[#allocation76_spill] sm:$0xff] %v12994_v60  ;;  %17869 = vst [vmem:[#allocation77_spill] sm:$0xff] %v12999_v61  ;;  %v13004_v62 = vld [vmem:[%s17757_s7 + $0xd0] sm:$0xff]  ;;  %v13009_v63 = vld [vmem:[%s17757_s7 + $0xd8] sm:$0xff] }
  0x22   :  { %17870 = vst [vmem:[#allocation78_spill] sm:$0xff] %v13004_v62  ;;  %17871 = vst [vmem:[#allocation79_spill] sm:$0xff] %v13009_v63  ;;  %v13014_v59 = vld [vmem:[%s17757_s7 + $0xe0] sm:$0xff]  ;;  %v13019_v58 = vld [vmem:[%s17757_s7 + $0xe8] sm:$0xff] }
  0x23   :  { %17872 = vst [vmem:[#allocation80_spill] sm:$0xff] %v13014_v59  ;;  %17873 = vst [vmem:[#allocation81_spill] sm:$0xff] %v13019_v58  ;;  %v13024_v57 = vld [vmem:[%s17757_s7 + $0xf0] sm:$0xff]  ;;  %v13029_v56 = vld [vmem:[%s17757_s7 + $0xf8] sm:$0xff] }
  0x24   :  { %17874 = vst [vmem:[#allocation82_spill] sm:$0xff] %v13024_v57  ;;  %17875 = vst [vmem:[#allocation83_spill] sm:$0xff] %v13029_v56  ;;  %v13034_v55 = vld [vmem:[%s17757_s7 + $0x100] sm:$0xff]  ;;  %v13039_v59 = vld [vmem:[%s17757_s7 + $0x108] sm:$0xff] }
  0x25   :  { %17876 = vst [vmem:[#allocation84_spill] sm:$0xff] %v13034_v55  ;;  %17877 = vst [vmem:[#allocation85_spill] sm:$0xff] %v13039_v59  ;;  %v13044_v58 = vld [vmem:[%s17757_s7 + $0x110] sm:$0xff]  ;;  %v13049_v57 = vld [vmem:[%s17757_s7 + $0x118] sm:$0xff] }
  0x26   :  { %17878 = vst [vmem:[#allocation86_spill] sm:$0xff] %v13044_v58  ;;  %17879 = vst [vmem:[#allocation87_spill] sm:$0xff] %v13049_v57  ;;  %v13054_v56 = vld [vmem:[%s17757_s7 + $0x120] sm:$0xff]  ;;  %v13059_v63 = vld [vmem:[%s17757_s7 + $0x128] sm:$0xff] }
  0x27   :  { %17880 = vst [vmem:[#allocation88_spill] sm:$0xff] %v13054_v56  ;;  %17881 = vst [vmem:[#allocation89_spill] sm:$0xff] %v13059_v63  ;;  %v13064_v54 = vld [vmem:[%s17757_s7 + $0x130] sm:$0xff]  ;;  %v13069_v62 = vld [vmem:[%s17757_s7 + $0x138] sm:$0xff] }
  0x28   :  { %17882 = vst [vmem:[#allocation90_spill] sm:$0xff] %v13064_v54  ;;  %17883 = vst [vmem:[#allocation91_spill] sm:$0xff] %v13069_v62  ;;  %v13074_v53 = vld [vmem:[%s17757_s7 + $0x140] sm:$0xff]  ;;  %v13079_v61 = vld [vmem:[%s17757_s7 + $0x148] sm:$0xff] }
  0x29   :  { %17884 = vst [vmem:[#allocation92_spill] sm:$0xff] %v13074_v53  ;;  %17885 = vst [vmem:[#allocation93_spill] sm:$0xff] %v13079_v61  ;;  %v13084_v52 = vld [vmem:[%s17757_s7 + $0x150] sm:$0xff]  ;;  %v13089_v60 = vld [vmem:[%s17757_s7 + $0x158] sm:$0xff] }
  0x2a   :  { %17886 = vst [vmem:[#allocation94_spill] sm:$0xff] %v13084_v52  ;;  %17887 = vst [vmem:[#allocation95_spill] sm:$0xff] %v13089_v60  ;;  %v13094_v62 = vld [vmem:[%s17757_s7 + $0x160] sm:$0xff]  ;;  %v13099_v43 = vld [vmem:[%s17757_s7 + $0x168] sm:$0xff] }
  0x2b   :  { %17888 = vst [vmem:[#allocation96_spill] sm:$0xff] %v13094_v62  ;;  %17889 = vst [vmem:[#allocation97_spill] sm:$0xff] %v13099_v43  ;;  %v13104_v51 = vld [vmem:[%s17757_s7 + $0x170] sm:$0xff]  ;;  %v13109_v54 = vld [vmem:[%s17757_s7 + $0x178] sm:$0xff] }
  0x2c   :  { %17890 = vst [vmem:[#allocation98_spill] sm:$0xff] %v13104_v51  ;;  %17891 = vst [vmem:[#allocation99_spill] sm:$0xff] %v13109_v54  ;;  %v13114_v42 = vld [vmem:[%s17757_s7 + $0x180] sm:$0xff]  ;;  %v13119_v50 = vld [vmem:[%s17757_s7 + $0x188] sm:$0xff] }
  0x2d   :  { %17892 = vst [vmem:[#allocation100_spill] sm:$0xff] %v13114_v42  ;;  %17893 = vst [vmem:[#allocation101_spill] sm:$0xff] %v13119_v50  ;;  %v13124_v63 = vld [vmem:[%s17757_s7 + $0x190] sm:$0xff]  ;;  %v13129_v51 = vld [vmem:[%s17757_s7 + $0x198] sm:$0xff] }
  0x2e   :  { %17894 = vst [vmem:[#allocation102_spill] sm:$0xff] %v13124_v63  ;;  %17895 = vst [vmem:[#allocation103_spill] sm:$0xff] %v13129_v51  ;;  %v13134_v54 = vld [vmem:[%s17757_s7 + $0x1a0] sm:$0xff]  ;;  %v13139_v42 = vld [vmem:[%s17757_s7 + $0x1a8] sm:$0xff] }
  0x2f   :  { %17896 = vst [vmem:[#allocation104_spill] sm:$0xff] %v13134_v54  ;;  %17897 = vst [vmem:[#allocation105_spill] sm:$0xff] %v13139_v42  ;;  %v13144_v50 = vld [vmem:[%s17757_s7 + $0x1b0] sm:$0xff]  ;;  %v13149_v63 = vld [vmem:[%s17757_s7 + $0x1b8] sm:$0xff] }
  0x30   :  { %17898 = vst [vmem:[#allocation106_spill] sm:$0xff] %v13144_v50  ;;  %17899 = vst [vmem:[#allocation107_spill] sm:$0xff] %v13149_v63  ;;  %v13154_v51 = vld [vmem:[%s17757_s7 + $0x1c0] sm:$0xff]  ;;  %v13159_v54 = vld [vmem:[%s17757_s7 + $0x1c8] sm:$0xff] }
  0x31   :  { %17900 = vst [vmem:[#allocation108_spill] sm:$0xff] %v13154_v51  ;;  %17901 = vst [vmem:[#allocation109_spill] sm:$0xff] %v13159_v54  ;;  %v13164_v42 = vld [vmem:[%s17757_s7 + $0x1d0] sm:$0xff]  ;;  %v13169_v50 = vld [vmem:[%s17757_s7 + $0x1d8] sm:$0xff] }
  0x32   :  { %17902 = vst [vmem:[#allocation110_spill] sm:$0xff] %v13164_v42  ;;  %17903 = vst [vmem:[#allocation111_spill] sm:$0xff] %v13169_v50  ;;  %v13174_v63 = vld [vmem:[%s17757_s7 + $0x1e0] sm:$0xff]  ;;  %v13179_v51 = vld [vmem:[%s17757_s7 + $0x1e8] sm:$0xff] }
  0x33   :  { %17904 = vst [vmem:[#allocation112_spill] sm:$0xff] %v13174_v63  ;;  %17905 = vst [vmem:[#allocation113_spill] sm:$0xff] %v13179_v51  ;;  %v13184_v54 = vld [vmem:[%s17757_s7 + $0x1f0] sm:$0xff]  ;;  %v13189_v42 = vld [vmem:[%s17757_s7 + $0x1f8] sm:$0xff] }
  0x34   :  { %17906 = vst [vmem:[#allocation114_spill] sm:$0xff] %v13184_v54  ;;  %17907 = vst [vmem:[#allocation115_spill] sm:$0xff] %v13189_v42 }
  0x35   :  { %316 = vsyncadd [#allocation8 + $0x1], 8192  ;;  %v12451_v63 = vld [vmem:[%s17751_s1] sm:$0xff]   ;;  %v17762_v50 = vmov 0.0   ;;  %v12452_v54 = vld [vmem:[%s17751_s1 + $0x8] sm:$0xff]   ;;  %vm409_vm0 = vcmask 1041408  }
  0x36   :  { %10821 = vmatprep.subr.bf16.mxu0 %v17762_v50  ;;  %10855 = vmatprep.subr.bf16.mxu1 %v17762_v50  ;;  %v12453_v42 = vld [vmem:[%s17751_s1 + $0x10] ss:$0 sps:$4 sm:$0x33]   ;;  %vm12626_vm1 = vmmov 0   ;;  %v12454_v41 = vld [vmem:[%s17750_s0] sm:$0xff]   ;;  %v12455_v43 = vld [vmem:[%s17750_s0 + $0x38] sm:$0xff]  }
  0x37   :  { %10822 = vmatpush3.bf16.msra.mxu0 %v12451_v63  ;;  %10856 = vmatpush3.bf16.msra.mxu1 %v12451_v63  ;;  %v411_v51 = vsel %vm409_vm0, %v12453_v42, 0  ;;  %vm387_vm2 = vcmask 293888   ;;  %v12456_v42 = vld [vmem:[%s17750_s0 + $0x8] sm:$0xff]   ;;  %s12627_s17 = smov 96   ;;  %vm676_vm3 = vcmask 261120   ;;  %s12628_s19 = smov 64  }
  0x38   :  { %10823 = vmatprep.subr.bf16.mxu0 %v17762_v50  ;;  %10857 = vmatprep.subr.bf16.mxu1 %v17762_v50  ;;  %vm3180_vm4 = vcmask 523264  }
  0x39   :  { %10827 = vmatprep.mubr.msk.bf16.mxu0 %vm12626_vm1, %v17762_v50  ;;  %10861 = vmatprep.mubr.msk.bf16.mxu1 %vm12626_vm1, %v17762_v50 }
  0x3b   :  { %10824 = vmatpush3.bf16.msra.mxu0 %v12452_v54  ;;  %10858 = vmatpush3.bf16.msra.mxu1 %v12452_v54 }
  0x3c   :  { %10825 = vmatprep.subr.bf16.mxu0 %v17762_v50  ;;  %10859 = vmatprep.subr.bf16.mxu1 %v17762_v50 }
  0x3f   :  { %10826 = vmatpush3.bf16.msra.mxu0 %v411_v51  ;;  %10860 = vmatpush3.bf16.msra.mxu1 %v411_v51 }
  0x40   :  { %10889 = vmatprep.subr.bf16.mxu0 %v17762_v50  ;;  %10923 = vmatprep.subr.bf16.mxu1 %v17762_v50 }
  0x42   :  { %10828 = vmatmul.mubr.msk.bf16.vlgmr.msra.gmra.mrb[0].mxu0 %vm387_vm2, %v12454_v41  ;;  %10862 = vmatmul.mubr.msk.bf16.vlgmr.msra.gmra.mrb[0].mxu1 %vm387_vm2, %v12455_v43  ;;  %v12457_v41 = vld [vmem:[%s17750_s0 + $0x40] sm:$0xff]   ;;  %v12458_v43 = vld [vmem:[%s17750_s0 + $0x10] sm:$0xff]  }
  0x43   :  { %10890 = vmatpush3.bf16.msra.mxu0 %v12451_v63  ;;  %10831 = vmatprep.mubr.msk.bf16.mxu0 %vm12626_vm1, %v17762_v50 }
  0x44   :  { %10865 = vmatprep.mubr.msk.bf16.mxu1 %vm12626_vm1, %v17762_v50  ;;  %10891 = vmatprep.subr.bf16.mxu0 %v17762_v50 }
  0x45   :  { %10924 = vmatpush3.bf16.msra.mxu1 %v12451_v63  ;;  %v12461_v63 = vld [vmem:[%s17750_s0 + $0x50] sm:$0xff]  }
  0x46   :  { %10925 = vmatprep.subr.bf16.mxu1 %v17762_v50 }
  0x47   :  { %10892 = vmatpush3.bf16.msra.mxu0 %v12452_v54 }
  0x48   :  { %10893 = vmatprep.subr.bf16.mxu0 %v17762_v50 }
  0x49   :  { %10926 = vmatpush3.bf16.msra.mxu1 %v12452_v54  ;;  %v12459_v54 = vld [vmem:[%s17750_s0 + $0x48] sm:$0xff]  }
  0x4a   :  { %10832 = vmatmul.mubr.msk.bf16.gmra.mrb[4].mxu0 %vm387_vm2, %v12456_v42  ;;  %10866 = vmatmul.mubr.msk.bf16.gmra.mrb[4].mxu1 %vm387_vm2, %v12457_v41  ;;  %v12462_v42 = vld [vmem:[%s17750_s0 + $0x20] sm:$0xff]   ;;  %v12463_v41 = vld [vmem:[%s17750_s0 + $0x58] sm:$0xff]  }
  0x4b   :  { %10835 = vmatprep.mubr.msk.bf16.mxu0 %vm12626_vm1, %v17762_v50  ;;  %10869 = vmatprep.mubr.msk.bf16.mxu1 %vm12626_vm1, %v17762_v50 }
  0x4c   :  { %10894 = vmatpush3.bf16.msra.mxu0 %v411_v51  ;;  %10927 = vmatprep.subr.bf16.mxu1 %v17762_v50 }
  0x4d   :  { %10928 = vmatpush3.bf16.msra.mxu1 %v411_v51  ;;  %10957 = vmatprep.subr.bf16.mxu0 %v17762_v50  ;;  %v12460_v51 = vld [vmem:[%s17750_s0 + $0x18] sm:$0xff]  }
  0x4e   :  { %10989 = vmatprep.subr.bf16.mxu1 %v17762_v50 }
  0x52   :  { %10836 = vmatmul.mubr.msk.bf16.gmra.mrb[8].mxu0 %vm387_vm2, %v12458_v43  ;;  %10870 = vmatmul.mubr.msk.bf16.gmra.mrb[8].mxu1 %vm387_vm2, %v12459_v54  ;;  %v12464_v43 = vld [vmem:[%s17750_s0 + $0x28] sm:$0xff]   ;;  %v12465_v54 = vld [vmem:[%s17750_s0 + $0x60] sm:$0xff]  }
  0x53   :  { %10839 = vmatprep.mubr.msk.bf16.mxu0 %vm12626_vm1, %v17762_v50  ;;  %10873 = vmatprep.mubr.msk.bf16.mxu1 %vm12626_vm1, %v17762_v50 }
  0x5a   :  { %10840 = vmatmul.mubr.msk.bf16.gmra.mrb[12].mxu0 %vm387_vm2, %v12460_v51  ;;  %10874 = vmatmul.mubr.msk.bf16.gmra.mrb[12].mxu1 %vm387_vm2, %v12461_v63  ;;  %v12466_v51 = vld [vmem:[%s17750_s0 + $0x30] sm:$0xff]   ;;  %v12467_v63 = vld [vmem:[%s17750_s0 + $0x68] sm:$0xff]  }
  0x5b   :  { %10843 = vmatprep.mubr.msk.bf16.mxu0 %vm12626_vm1, %v17762_v50  ;;  %10877 = vmatprep.mubr.msk.bf16.mxu1 %vm12626_vm1, %v17762_v50 }
  0x62   :  { %10844 = vmatmul.mubr.msk.bf16.gmra.mrb[16].mxu0 %vm387_vm2, %v12462_v42  ;;  %10878 = vmatmul.mubr.msk.bf16.gmra.mrb[16].mxu1 %vm387_vm2, %v12463_v41  ;;  %v12468_v42 = vld [vmem:[%s17750_s0 + $0x70] sm:$0xff]   ;;  %v12475_v41 = vld [vmem:[%s17750_s0 + $0xa8] sm:$0xff]  }
  0x63   :  { %10847 = vmatprep.mubr.msk.bf16.mxu0 %vm12626_vm1, %v17762_v50  ;;  %10881 = vmatprep.mubr.msk.bf16.mxu1 %vm12626_vm1, %v17762_v50 }
  0x6a   :  { %10848 = vmatmul.mubr.msk.bf16.gmra.mrb[20].mxu0 %vm387_vm2, %v12464_v43  ;;  %10882 = vmatmul.mubr.msk.bf16.gmra.mrb[20].mxu1 %vm387_vm2, %v12465_v54  ;;  %v12469_v43 = vld [vmem:[%s17750_s0 + $0x78] sm:$0xff]   ;;  %v12476_v54 = vld [vmem:[%s17750_s0 + $0xb0] sm:$0xff]  }
  0x6b   :  { %10851 = vmatprep.mubr.msk.bf16.mxu0 %vm12626_vm1, %v17762_v50  ;;  %10885 = vmatprep.mubr.msk.bf16.mxu1 %vm12626_vm1, %v17762_v50 }
  0x72   :  { %10852 = vmatmul.mubr.msk.bf16.gmra.mrb[24].mxu0 %vm387_vm2, %v12466_v51  ;;  %10886 = vmatmul.mubr.msk.bf16.gmra.mrb[24].mxu1 %vm387_vm2, %v12467_v63  ;;  %v12470_v51 = vld [vmem:[%s17750_s0 + $0x80] sm:$0xff]   ;;  %v12477_v63 = vld [vmem:[%s17750_s0 + $0xb8] sm:$0xff]  }
  0x73   :  { %10895 = vmatprep.mubr.msk.bf16.mxu0 %vm12626_vm1, %v17762_v50  ;;  %10929 = vmatprep.mubr.msk.bf16.mxu1 %vm12626_vm1, %v17762_v50 }
  0x7a   :  { %10896 = vmatmul.mubr.msk.bf16.vlgmr.msra.gmra.mrb[28].mxu0 %vm387_vm2, %v12468_v42  ;;  %10930 = vmatmul.mubr.msk.bf16.vlgmr.msra.gmra.mrb[28].mxu1 %vm387_vm2, %v12475_v41  ;;  %v12471_v42 = vld [vmem:[%s17750_s0 + $0x88] sm:$0xff]   ;;  %v12478_v41 = vld [vmem:[%s17750_s0 + $0xc0] sm:$0xff]  }
  0x7b   :  { %10899 = vmatprep.mubr.msk.bf16.mxu0 %vm12626_vm1, %v17762_v50  ;;  %10933 = vmatprep.mubr.msk.bf16.mxu1 %vm12626_vm1, %v17762_v50 }
  0x82   :  { %10900 = vmatmul.mubr.msk.bf16.gmra.mrb[32].mxu0 %vm387_vm2, %v12469_v43  ;;  %10934 = vmatmul.mubr.msk.bf16.gmra.mrb[32].mxu1 %vm387_vm2, %v12476_v54  ;;  %v12472_v43 = vld [vmem:[%s17750_s0 + $0x90] sm:$0xff]   ;;  %v12479_v54 = vld [vmem:[%s17750_s0 + $0xc8] sm:$0xff]  }
  0x83   :  { %10903 = vmatprep.mubr.msk.bf16.mxu0 %vm12626_vm1, %v17762_v50  ;;  %10937 = vmatprep.mubr.msk.bf16.mxu1 %vm12626_vm1, %v17762_v50 }
  0x8a   :  { %10904 = vmatmul.mubr.msk.bf16.gmra.mrb[36].mxu0 %vm387_vm2, %v12470_v51  ;;  %10938 = vmatmul.mubr.msk.bf16.gmra.mrb[36].mxu1 %vm387_vm2, %v12477_v63  ;;  %v12473_v51 = vld [vmem:[%s17750_s0 + $0x98] sm:$0xff]   ;;  %v12480_v63 = vld [vmem:[%s17750_s0 + $0xd0] sm:$0xff]  }
  0x8b   :  { %10907 = vmatprep.mubr.msk.bf16.mxu0 %vm12626_vm1, %v17762_v50  ;;  %10941 = vmatprep.mubr.msk.bf16.mxu1 %vm12626_vm1, %v17762_v50 }
  0x92   :  { %10908 = vmatmul.mubr.msk.bf16.gmra.mrb[40].mxu0 %vm387_vm2, %v12471_v42  ;;  %10942 = vmatmul.mubr.msk.bf16.gmra.mrb[40].mxu1 %vm387_vm2, %v12478_v41  ;;  %v12474_v42 = vld [vmem:[%s17750_s0 + $0xa0] sm:$0xff]   ;;  %v12481_v41 = vld [vmem:[%s17750_s0 + $0xd8] sm:$0xff]  }
  0x93   :  { %10911 = vmatprep.mubr.msk.bf16.mxu0 %vm12626_vm1, %v17762_v50  ;;  %10945 = vmatprep.mubr.msk.bf16.mxu1 %vm12626_vm1, %v17762_v50 }
  0x9a   :  { %10912 = vmatmul.mubr.msk.bf16.gmra.mrb[44].mxu0 %vm387_vm2, %v12472_v43  ;;  %10946 = vmatmul.mubr.msk.bf16.gmra.mrb[44].mxu1 %vm387_vm2, %v12479_v54 }
  0x9b   :  { %10915 = vmatprep.mubr.msk.bf16.mxu0 %vm12626_vm1, %v17762_v50  ;;  %10949 = vmatprep.mubr.msk.bf16.mxu1 %vm12626_vm1, %v17762_v50 }
  0xa2   :  { %10916 = vmatmul.mubr.msk.bf16.gmra.mrb[48].mxu0 %vm387_vm2, %v12473_v51  ;;  %10950 = vmatmul.mubr.msk.bf16.gmra.mrb[48].mxu1 %vm387_vm2, %v12480_v63 }
  0xa3   :  { %10919 = vmatprep.mubr.msk.bf16.mxu0 %vm12626_vm1, %v17762_v50  ;;  %10953 = vmatprep.mubr.msk.bf16.mxu1 %vm12626_vm1, %v17762_v50 }
  0xaa   :  { %10920 = vmatmul.mubr.msk.bf16.gmra.mrb[52].mxu0 %vm387_vm2, %v12474_v42  ;;  %10954 = vmatmul.mubr.msk.bf16.gmra.mrb[52].mxu1 %vm387_vm2, %v12481_v41 }
  0xab   :  { %10961 = vmatprep.mubr.msk.bf16.mxu0 %vm12626_vm1, %v17762_v50  ;;  %10993 = vmatprep.mubr.msk.bf16.mxu1 %vm12626_vm1, %v17762_v50 }
 0x115   :  { %v13386_v43 = vpop.f32.mrb[0].mxu0  ;;  %v13388_v54 = vpop.f32.mrb[0].mxu1 }
 0x116   :  { %864 = vrot.lane.b32.xlu0 %v13388_v54, %s12627_s17  ;;  %v10863_v51 = vpop.f32.mrb[1].mxu1  ;;  %516 = vrot.lane.b32.xlu1 %v13386_v43, %s12627_s17  ;;  %v10829_v63 = vpop.f32.mrb[1].mxu0 }
 0x117   :  { %v13394_v42 = vpop.f32.mrb[2].mxu1  ;;  %v13396_v41 = vpop.f32.mrb[2].mxu0 }
 0x118   :  { %v10864_v49 = vpop.f32.mrb[3].mxu1  ;;  %v10830_v56 = vpop.f32.mrb[3].mxu0 }
 0x11a   :  { %866 = vrot.lane.b32.xlu0 %v13394_v42, %s12627_s17  ;;  %518 = vrot.lane.b32.xlu1 %v13396_v41, %s12627_s17 }
 0x11d   :  { %v13402_v50 = vpop.f32.mrb[4].mxu1  ;;  %v13404_v40 = vpop.f32.mrb[4].mxu0 }
 0x11e   :  { %868 = vrot.lane.b32.xlu0 %v13402_v50, %s12627_s17  ;;  %v10867_v51 = vpop.f32.mrb[5].mxu1  ;;  %v10833_v63 = vpop.f32.mrb[5].mxu0 }
 0x11f   :  { %v13408_v62 = vpop.f32.mrb[6].mxu1  ;;  %v13410_v48 = vpop.f32.mrb[6].mxu0 }
 0x120   :  { %v10868_v49 = vpop.f32.mrb[7].mxu1  ;;  %870 = vrot.lane.b32.xlu1 %v13408_v62, %s12627_s17  ;;  %v10834_v56 = vpop.f32.mrb[7].mxu0 }
 0x122   :  { %520 = vrot.lane.b32.xlu0 %v13404_v40, %s12627_s17 }
 0x124   :  { %522 = vrot.lane.b32.xlu1 %v13410_v48, %s12627_s17 }
 0x125   :  { %v13418_v57 = vpop.f32.mrb[8].mxu1  ;;  %v13420_v39 = vpop.f32.mrb[8].mxu0 }
 0x126   :  { %v10871_v51 = vpop.f32.mrb[9].mxu1  ;;  %872 = vrot.lane.b32.xlu0 %v13418_v57, %s12627_s17  ;;  %v10837_v63 = vpop.f32.mrb[9].mxu0 }
 0x127   :  { %v13424_v49 = vpop.f32.mrb[10].mxu1  ;;  %v13426_v60 = vpop.f32.mrb[10].mxu0 }
 0x128   :  { %v10872_v56 = vpop.f32.mrb[11].mxu1  ;;  %874 = vrot.lane.b32.xlu1 %v13424_v49, %s12627_s17  ;;  %v10838_v47 = vpop.f32.mrb[11].mxu0 }
 0x12a   :  { %524 = vrot.lane.b32.xlu0 %v13420_v39, %s12627_s17 }
 0x12c   :  { %526 = vrot.lane.b32.xlu1 %v13426_v60, %s12627_s17 }
 0x12d   :  { %v13434_v51 = vpop.f32.mrb[12].mxu1  ;;  %v13436_v58 = vpop.f32.mrb[12].mxu0 }
 0x12e   :  { %v10875_v63 = vpop.f32.mrb[13].mxu1  ;;  %876 = vrot.lane.b32.xlu0 %v13434_v51, %s12627_s17  ;;  %v10841_v38 = vpop.f32.mrb[13].mxu0 }
 0x12f   :  { %v13440_v56 = vpop.f32.mrb[14].mxu1  ;;  %v13442_v52 = vpop.f32.mrb[14].mxu0 }
 0x130   :  { %v10876_v47 = vpop.f32.mrb[15].mxu1  ;;  %878 = vrot.lane.b32.xlu1 %v13440_v56, %s12627_s17  ;;  %v10842_v46 = vpop.f32.mrb[15].mxu0 }
 0x132   :  { %528 = vrot.lane.b32.xlu0 %v13436_v58, %s12627_s17 }
 0x134   :  { %530 = vrot.lane.b32.xlu1 %v13442_v52, %s12627_s17 }
 0x135   :  { %v13450_v63 = vpop.f32.mrb[16].mxu1  ;;  %v13452_v59 = vpop.f32.mrb[16].mxu0 }
 0x136   :  { %v10879_v38 = vpop.f32.mrb[17].mxu1  ;;  %880 = vrot.lane.b32.xlu0 %v13450_v63, %s12627_s17  ;;  %v10845_v37 = vpop.f32.mrb[17].mxu0 }
 0x137   :  { %v13456_v47 = vpop.f32.mrb[18].mxu1  ;;  %v13458_v61 = vpop.f32.mrb[18].mxu0 }
 0x138   :  { %v10880_v46 = vpop.f32.mrb[19].mxu1  ;;  %882 = vrot.lane.b32.xlu1 %v13456_v47, %s12627_s17  ;;  %v10846_v45 = vpop.f32.mrb[19].mxu0 }
 0x13a   :  { %532 = vrot.lane.b32.xlu0 %v13452_v59, %s12627_s17 }
 0x13c   :  { %534 = vrot.lane.b32.xlu1 %v13458_v61, %s12627_s17 }
 0x13d   :  { %v13466_v38 = vpop.f32.mrb[20].mxu1  ;;  %v13468_v55 = vpop.f32.mrb[20].mxu0 }
 0x13e   :  { %v10883_v37 = vpop.f32.mrb[21].mxu1  ;;  %884 = vrot.lane.b32.xlu0 %v13466_v38, %s12627_s17  ;;  %v10849_v36 = vpop.f32.mrb[21].mxu0 }
 0x13f   :  { %v13472_v46 = vpop.f32.mrb[22].mxu1  ;;  %v13474_v53 = vpop.f32.mrb[22].mxu0 }
 0x140   :  { %v10884_v45 = vpop.f32.mrb[23].mxu1  ;;  %886 = vrot.lane.b32.xlu1 %v13472_v46, %s12627_s17  ;;  %v10850_v44 = vpop.f32.mrb[23].mxu0 }
 0x142   :  { %536 = vrot.lane.b32.xlu0 %v13468_v55, %s12627_s17 }
 0x144   :  { %538 = vrot.lane.b32.xlu1 %v13474_v53, %s12627_s17 }
 0x145   :  { %v13482_v37 = vpop.f32.mrb[24].mxu1  ;;  %v13484_v35 = vpop.f32.mrb[24].mxu0 }
 0x146   :  { %v10887_v36 = vpop.f32.mrb[25].mxu1  ;;  %888 = vrot.lane.b32.xlu0 %v13482_v37, %s12627_s17  ;;  %v10853_v34 = vpop.f32.mrb[25].mxu0 }
 0x147   :  { %v13488_v45 = vpop.f32.mrb[26].mxu1  ;;  %v13490_v33 = vpop.f32.mrb[26].mxu0 }
 0x148   :  { %v10888_v44 = vpop.f32.mrb[27].mxu1  ;;  %890 = vrot.lane.b32.xlu1 %v13488_v45, %s12627_s17  ;;  %v10854_v32 = vpop.f32.mrb[27].mxu0 }
 0x14a   :  { %540 = vrot.lane.b32.xlu0 %v13484_v35, %s12627_s17 }
 0x14c   :  { %542 = vrot.lane.b32.xlu1 %v13490_v33, %s12627_s17 }
 0x14d   :  { %v13498_v36 = vpop.f32.mrb[28].mxu0  ;;  %v13500_v31 = vpop.f32.mrb[28].mxu1 }
 0x14e   :  { %1205 = vrot.lane.b32.xlu0 %v13498_v36, %s12627_s17  ;;  %v10897_v34 = vpop.f32.mrb[29].mxu0  ;;  %v10931_v27 = vpop.f32.mrb[29].mxu1 }
 0x14f   :  { %v13504_v44 = vpop.f32.mrb[30].mxu0  ;;  %v13506_v30 = vpop.f32.mrb[30].mxu1 }
 0x150   :  { %1207 = vrot.lane.b32.xlu1 %v13504_v44, %s12627_s17  ;;  %v10898_v32 = vpop.f32.mrb[31].mxu0  ;;  %v10932_v26 = vpop.f32.mrb[31].mxu1 }
 0x155   :  { %v13510_v29 = vpop.f32.mrb[32].mxu0  ;;  %v13512_v25 = vpop.f32.mrb[32].mxu1 }
 0x156   :  { %1209 = vrot.lane.b32.xlu0 %v13510_v29, %s12627_s17  ;;  %v10901_v28 = vpop.f32.mrb[33].mxu0  ;;  %v10935_v24 = vpop.f32.mrb[33].mxu1 }
 0x157   :  { %v13516_v34 = vpop.f32.mrb[34].mxu0  ;;  %v13518_v27 = vpop.f32.mrb[34].mxu1 }
 0x158   :  { %1211 = vrot.lane.b32.xlu1 %v13516_v34, %s12627_s17  ;;  %v10902_v23 = vpop.f32.mrb[35].mxu0  ;;  %v10936_v19 = vpop.f32.mrb[35].mxu1 }
 0x15d   :  { %v13522_v32 = vpop.f32.mrb[36].mxu0  ;;  %v13524_v26 = vpop.f32.mrb[36].mxu1 }
 0x15e   :  { %1213 = vrot.lane.b32.xlu0 %v13522_v32, %s12627_s17  ;;  %v10905_v22 = vpop.f32.mrb[37].mxu0  ;;  %v10939_v18 = vpop.f32.mrb[37].mxu1 }
 0x15f   :  { %v13528_v28 = vpop.f32.mrb[38].mxu0  ;;  %v13530_v24 = vpop.f32.mrb[38].mxu1 }
 0x160   :  { %1215 = vrot.lane.b32.xlu1 %v13528_v28, %s12627_s17  ;;  %v10906_v21 = vpop.f32.mrb[39].mxu0  ;;  %v10940_v17 = vpop.f32.mrb[39].mxu1 }
 0x165   :  { %v13534_v23 = vpop.f32.mrb[40].mxu0  ;;  %v13536_v19 = vpop.f32.mrb[40].mxu1 }
 0x166   :  { %1217 = vrot.lane.b32.xlu0 %v13534_v23, %s12627_s17  ;;  %v10909_v20 = vpop.f32.mrb[41].mxu0  ;;  %v10943_v16 = vpop.f32.mrb[41].mxu1 }
 0x167   :  { %v13540_v22 = vpop.f32.mrb[42].mxu0  ;;  %v13542_v18 = vpop.f32.mrb[42].mxu1 }
 0x168   :  { %1219 = vrot.lane.b32.xlu1 %v13540_v22, %s12627_s17  ;;  %v10910_v15 = vpop.f32.mrb[43].mxu0  ;;  %v10944_v11 = vpop.f32.mrb[43].mxu1 }
 0x16d   :  { %v13546_v21 = vpop.f32.mrb[44].mxu0  ;;  %v13548_v17 = vpop.f32.mrb[44].mxu1 }
 0x16e   :  { %1221 = vrot.lane.b32.xlu0 %v13546_v21, %s12627_s17  ;;  %v10913_v14 = vpop.f32.mrb[45].mxu0  ;;  %v10947_v10 = vpop.f32.mrb[45].mxu1 }
 0x16f   :  { %v13552_v20 = vpop.f32.mrb[46].mxu0  ;;  %v13554_v16 = vpop.f32.mrb[46].mxu1 }
 0x170   :  { %1223 = vrot.lane.b32.xlu1 %v13552_v20, %s12627_s17  ;;  %v10914_v13 = vpop.f32.mrb[47].mxu0  ;;  %v10948_v9 = vpop.f32.mrb[47].mxu1 }
 0x171   :  { %v17909_v9 = vmov 0.0  }
 0x172   :  { %1714 = vst.msk [vmem:[#allocation2 + $0x1c0] sm:$0xff] %vm676_vm3, %v17909_v9  ;;  %1715 = vst.msk [vmem:[#allocation2 + $0x1c8] sm:$0xff] %vm676_vm3, %v17909_v9 }
 0x175   :  { %v13558_v15 = vpop.f32.mrb[48].mxu0  ;;  %v13560_v11 = vpop.f32.mrb[48].mxu1 }
 0x176   :  { %1225 = vrot.lane.b32.xlu0 %v13558_v15, %s12627_s17  ;;  %v10917_v12 = vpop.f32.mrb[49].mxu0  ;;  %v10951_v8 = vpop.f32.mrb[49].mxu1 }
 0x177   :  { %v13564_v14 = vpop.f32.mrb[50].mxu0  ;;  %v13566_v10 = vpop.f32.mrb[50].mxu1 }
 0x178   :  { %17908 = vst [vmem:[#allocation116_spill] sm:$0xff] %v13566_v10  ;;  %1227 = vrot.lane.b32.xlu1 %v13564_v14, %s12627_s17  ;;  %v10918_v3 = vpop.f32.mrb[51].mxu0  ;;  %v10952_v7 = vpop.f32.mrb[51].mxu1 }
 0x17d   :  { %v13574_v13 = vpop.f32.mrb[52].mxu0  ;;  %v13576_v12 = vpop.f32.mrb[52].mxu1 }
 0x17e   :  { %17910 = vst [vmem:[#allocation117_spill] sm:$0xff] %v13574_v13  ;;  %17911 = vst [vmem:[#allocation118_spill] sm:$0xff] %v13576_v12  ;;  %1229 = vrot.lane.b32.xlu0 %v13574_v13, %s12627_s17  ;;  %v10921_v8 = vpop.f32.mrb[53].mxu0  ;;  %v10955_v2 = vpop.f32.mrb[53].mxu1  ;;  %v12482_v13 = vld [vmem:[%s17753_s3 + $0x10] sm:$0xff]  }
 0x17f   :  { %v13580_v6 = vpop.f32.mrb[54].mxu0  ;;  %v13582_v3 = vpop.f32.mrb[54].mxu1  ;;  %10958 = vmatpush3.bf16.msra.mxu0 %v12482_v13  ;;  %v12485_v13 = vld [vmem:[%s17753_s3 + $0x8] sm:$0xff]  }
 0x180   :  { %17912 = vst [vmem:[#allocation119_spill] sm:$0xff] %v13582_v3  ;;  %1231 = vrot.lane.b32.xlu1 %v13580_v6, %s12627_s17  ;;  %v10922_v7 = vpop.f32.mrb[55].mxu0  ;;  %v10956_v1 = vpop.f32.mrb[55].mxu1  ;;  %10959 = vmatprep.subr.bf16.mxu0 %v17909_v9 }
 0x188   :  { %v865_v5 = vpop.permute.xlu0 %864  ;;  %v517_v0 = vpop.permute.xlu1 %516 }
 0x189   :  { %v13587_v4 = vmax.f32 %v13388_v54, %v865_v5  ;;  %v13596_v8 = vmax.f32 %v13386_v43, %v517_v0  ;;  %v12483_v5 = vld [vmem:[%s17753_s3 + $0x18] sm:$0xff]   ;;  %v12484_v54 = vld [vmem:[%s17753_s3] sm:$0xff]  }
 0x18a   :  { %10960 = vmatpush3.bf16.msra.mxu0 %v12483_v5  ;;  %10990 = vmatpush3.bf16.msra.mxu1 %v12484_v54 }
 0x18b   :  { %934 = vrot.lane.b32.xlu0 %v13587_v4, %s12628_s19  ;;  %10991 = vmatprep.subr.bf16.mxu1 %v17909_v9 }
 0x18c   :  { %v867_v2 = vpop.permute.xlu0 %866  ;;  %v519_v7 = vpop.permute.xlu1 %518  ;;  %11021 = vmatprep.subr.bf16.mxu0 %v17909_v9 }
 0x18d   :  { %v13599_v1 = vmax.f32 %v13394_v42, %v867_v2  ;;  %v13612_v43 = vmax.f32 %v13396_v41, %v519_v7 }
 0x18e   :  { %10992 = vmatpush3.bf16.msra.mxu1 %v12485_v13 }
 0x18f   :  { %586 = vrot.lane.b32.xlu0 %v13596_v8, %s12628_s19  ;;  %936 = vrot.lane.b32.xlu1 %v13599_v1, %s12628_s19 }
 0x190   :  { %v869_v0 = vpop.permute.xlu0 %868  ;;  %11053 = vmatprep.subr.bf16.mxu1 %v17909_v9 }
 0x191   :  { %v13615_v42 = vmax.f32 %v13402_v50, %v869_v0 }
 0x192   :  { %v871_v2 = vpop.permute.xlu1 %870 }
 0x193   :  { %938 = vrot.lane.b32.xlu0 %v13615_v42, %s12628_s19  ;;  %588 = vrot.lane.b32.xlu1 %v13612_v43, %s12628_s19  ;;  %v13627_v50 = vmax.f32 %v13408_v62, %v871_v2 }
 0x194   :  { %v521_v41 = vpop.permute.xlu0 %520 }
 0x195   :  { %v13630_v5 = vmax.f32 %v13404_v40, %v521_v41 }
 0x196   :  { %v523_v54 = vpop.permute.xlu1 %522 }
 0x197   :  { %590 = vrot.lane.b32.xlu0 %v13630_v5, %s12628_s19  ;;  %940 = vrot.lane.b32.xlu1 %v13627_v50, %s12628_s19  ;;  %v13638_v0 = vmax.f32 %v13410_v48, %v523_v54 }
 0x198   :  { %v873_v7 = vpop.permute.xlu0 %872 }
 0x199   :  { %v13641_v13 = vmax.f32 %v13418_v57, %v873_v7 }
 0x19a   :  { %v875_v62 = vpop.permute.xlu1 %874 }
 0x19b   :  { %942 = vrot.lane.b32.xlu0 %v13641_v13, %s12628_s19  ;;  %592 = vrot.lane.b32.xlu1 %v13638_v0, %s12628_s19  ;;  %v13648_v2 = vmax.f32 %v13424_v49, %v875_v62 }
 0x19c   :  { %v525_v40 = vpop.permute.xlu0 %524 }
 0x19d   :  { %v13651_v41 = vmax.f32 %v13420_v39, %v525_v40 }
 0x19e   :  { %v527_v9 = vpop.permute.xlu1 %526 }
 0x19f   :  { %594 = vrot.lane.b32.xlu0 %v13651_v41, %s12628_s19  ;;  %944 = vrot.lane.b32.xlu1 %v13648_v2, %s12628_s19  ;;  %v13658_v57 = vmax.f32 %v13426_v60, %v527_v9 }
 0x1a0   :  { %v877_v48 = vpop.permute.xlu0 %876 }
 0x1a1   :  { %v13661_v54 = vmax.f32 %v13434_v51, %v877_v48 }
 0x1a2   :  { %v879_v7 = vpop.permute.xlu1 %878 }
 0x1a3   :  { %946 = vrot.lane.b32.xlu0 %v13661_v54, %s12628_s19  ;;  %596 = vrot.lane.b32.xlu1 %v13658_v57, %s12628_s19  ;;  %v13668_v49 = vmax.f32 %v13440_v56, %v879_v7 }
 0x1a4   :  { %v529_v39 = vpop.permute.xlu0 %528 }
 0x1a5   :  { %v13671_v62 = vmax.f32 %v13436_v58, %v529_v39 }
 0x1a6   :  { %v531_v40 = vpop.permute.xlu1 %530 }
 0x1a7   :  { %598 = vrot.lane.b32.xlu0 %v13671_v62, %s12628_s19  ;;  %948 = vrot.lane.b32.xlu1 %v13668_v49, %s12628_s19  ;;  %v13678_v51 = vmax.f32 %v13442_v52, %v531_v40 }
 0x1a8   :  { %v881_v60 = vpop.permute.xlu0 %880 }
 0x1a9   :  { %v13681_v9 = vmax.f32 %v13450_v63, %v881_v60 }
 0x1aa   :  { %v883_v48 = vpop.permute.xlu1 %882 }
 0x1ab   :  { %950 = vrot.lane.b32.xlu0 %v13681_v9, %s12628_s19  ;;  %600 = vrot.lane.b32.xlu1 %v13678_v51, %s12628_s19  ;;  %v13688_v56 = vmax.f32 %v13456_v47, %v883_v48 }
 0x1ac   :  { %v533_v58 = vpop.permute.xlu0 %532 }
 0x1ad   :  { %v13691_v7 = vmax.f32 %v13452_v59, %v533_v58 }
 0x1ae   :  { %v535_v39 = vpop.permute.xlu1 %534 }
 0x1af   :  { %602 = vrot.lane.b32.xlu0 %v13691_v7, %s12628_s19  ;;  %952 = vrot.lane.b32.xlu1 %v13688_v56, %s12628_s19  ;;  %v13698_v63 = vmax.f32 %v13458_v61, %v535_v39 }
 0x1b0   :  { %v885_v52 = vpop.permute.xlu0 %884 }
 0x1b1   :  { %v13701_v40 = vmax.f32 %v13466_v38, %v885_v52 }
 0x1b2   :  { %v887_v60 = vpop.permute.xlu1 %886 }
 0x1b3   :  { %954 = vrot.lane.b32.xlu0 %v13701_v40, %s12628_s19  ;;  %604 = vrot.lane.b32.xlu1 %v13698_v63, %s12628_s19  ;;  %v13708_v47 = vmax.f32 %v13472_v46, %v887_v60 }
 0x1b4   :  { %v537_v59 = vpop.permute.xlu0 %536 }
 0x1b5   :  { %v13711_v48 = vmax.f32 %v13468_v55, %v537_v59 }
 0x1b6   :  { %v539_v58 = vpop.permute.xlu1 %538 }
 0x1b7   :  { %606 = vrot.lane.b32.xlu0 %v13711_v48, %s12628_s19  ;;  %956 = vrot.lane.b32.xlu1 %v13708_v47, %s12628_s19  ;;  %v13718_v38 = vmax.f32 %v13474_v53, %v539_v58 }
 0x1b8   :  { %v889_v61 = vpop.permute.xlu0 %888 }
 0x1b9   :  { %v13721_v39 = vmax.f32 %v13482_v37, %v889_v61 }
 0x1ba   :  { %v891_v52 = vpop.permute.xlu1 %890 }
 0x1bb   :  { %958 = vrot.lane.b32.xlu0 %v13721_v39, %s12628_s19  ;;  %608 = vrot.lane.b32.xlu1 %v13718_v38, %s12628_s19  ;;  %v13728_v46 = vmax.f32 %v13488_v45, %v891_v52 }
 0x1bc   :  { %v541_v55 = vpop.permute.xlu0 %540 }
 0x1bd   :  { %v13731_v60 = vmax.f32 %v13484_v35, %v541_v55 }
 0x1be   :  { %v543_v59 = vpop.permute.xlu1 %542 }
 0x1bf   :  { %610 = vrot.lane.b32.xlu0 %v13731_v60, %s12628_s19  ;;  %960 = vrot.lane.b32.xlu1 %v13728_v46, %s12628_s19  ;;  %v13738_v53 = vmax.f32 %v13490_v33, %v543_v59 }
 0x1c0   :  { %v1206_v37 = vpop.permute.xlu0 %1205 }
 0x1c1   :  { %v13745_v35 = vmax.f32 %v13498_v36, %v1206_v37 }
 0x1c2   :  { %v1208_v45 = vpop.permute.xlu1 %1207 }
 0x1c3   :  { %1546 = vrot.lane.b32.xlu0 %v13500_v31, %s12627_s17  ;;  %612 = vrot.lane.b32.xlu1 %v13738_v53, %s12628_s19  ;;  %v13752_v33 = vmax.f32 %v13504_v44, %v1208_v45 }
 0x1c7   :  { %1275 = vrot.lane.b32.xlu0 %v13745_v35, %s12628_s19  ;;  %1548 = vrot.lane.b32.xlu1 %v13506_v30, %s12627_s17 }
 0x1c8   :  { %v1210_v58 = vpop.permute.xlu0 %1209 }
 0x1c9   :  { %v13759_v36 = vmax.f32 %v13510_v29, %v1210_v58 }
 0x1ca   :  { %v1212_v61 = vpop.permute.xlu1 %1211 }
 0x1cb   :  { %1550 = vrot.lane.b32.xlu0 %v13512_v25, %s12627_s17  ;;  %1277 = vrot.lane.b32.xlu1 %v13752_v33, %s12628_s19  ;;  %v13766_v44 = vmax.f32 %v13516_v34, %v1212_v61 }
 0x1cf   :  { %1279 = vrot.lane.b32.xlu0 %v13759_v36, %s12628_s19  ;;  %1552 = vrot.lane.b32.xlu1 %v13518_v27, %s12627_s17 }
 0x1d0   :  { %v1214_v52 = vpop.permute.xlu0 %1213 }
 0x1d1   :  { %v13773_v29 = vmax.f32 %v13522_v32, %v1214_v52 }
 0x1d2   :  { %v1216_v55 = vpop.permute.xlu1 %1215 }
 0x1d3   :  { %1554 = vrot.lane.b32.xlu0 %v13524_v26, %s12627_s17  ;;  %1281 = vrot.lane.b32.xlu1 %v13766_v44, %s12628_s19  ;;  %v13780_v34 = vmax.f32 %v13528_v28, %v1216_v55 }
 0x1d7   :  { %1283 = vrot.lane.b32.xlu0 %v13773_v29, %s12628_s19  ;;  %1556 = vrot.lane.b32.xlu1 %v13530_v24, %s12627_s17 }
 0x1d8   :  { %v1218_v59 = vpop.permute.xlu0 %1217 }
 0x1d9   :  { %v13787_v32 = vmax.f32 %v13534_v23, %v1218_v59  ;;  %v17915_v59 = vld [vmem:[#allocation117_spill] sm:$0xff] }
 0x1da   :  { %v1220_v37 = vpop.permute.xlu1 %1219 }
 0x1db   :  { %1558 = vrot.lane.b32.xlu0 %v13536_v19, %s12627_s17  ;;  %1285 = vrot.lane.b32.xlu1 %v13780_v34, %s12628_s19  ;;  %v13794_v28 = vmax.f32 %v13540_v22, %v1220_v37 }
 0x1df   :  { %1287 = vrot.lane.b32.xlu0 %v13787_v32, %s12628_s19  ;;  %1560 = vrot.lane.b32.xlu1 %v13542_v18, %s12627_s17 }
 0x1e0   :  { %v1222_v45 = vpop.permute.xlu0 %1221 }
 0x1e1   :  { %v13801_v23 = vmax.f32 %v13546_v21, %v1222_v45  ;;  %v13843_v45 = vld [vmem:[%s17752_s2] ss:$0 sm:$0xff] }
 0x1e2   :  { %v1224_v58 = vpop.permute.xlu1 %1223 }
 0x1e3   :  { %1562 = vrot.lane.b32.xlu0 %v13548_v17, %s12627_s17  ;;  %1289 = vrot.lane.b32.xlu1 %v13794_v28, %s12628_s19  ;;  %v13808_v22 = vmax.f32 %v13552_v20, %v1224_v58 }
 0x1e7   :  { %1291 = vrot.lane.b32.xlu0 %v13801_v23, %s12628_s19  ;;  %1564 = vrot.lane.b32.xlu1 %v13554_v16, %s12627_s17 }
 0x1e8   :  { %v1226_v61 = vpop.permute.xlu0 %1225 }
 0x1e9   :  { %v13815_v21 = vmax.f32 %v13558_v15, %v1226_v61 }
 0x1ea   :  { %v1228_v52 = vpop.permute.xlu1 %1227 }
 0x1eb   :  { %1566 = vrot.lane.b32.xlu0 %v13560_v11, %s12627_s17  ;;  %1293 = vrot.lane.b32.xlu1 %v13808_v22, %s12628_s19  ;;  %17913 = vst [vmem:[#allocation120_spill] sm:$0xff] %v13815_v21  ;;  %v13822_v20 = vmax.f32 %v13564_v14, %v1228_v52 }
 0x1ed   :  { %17914 = vst [vmem:[#allocation121_spill] sm:$0xff] %v13822_v20 }
 0x1ef   :  { %1295 = vrot.lane.b32.xlu0 %v13815_v21, %s12628_s19  ;;  %1568 = vrot.lane.b32.xlu1 %v13566_v10, %s12627_s17 }
 0x1f0   :  { %v1230_v55 = vpop.permute.xlu0 %1229 }
 0x1f1   :  { %v13829_v15 = vmax.f32 %v17915_v59, %v1230_v55 }
 0x1f2   :  { %v1232_v37 = vpop.permute.xlu1 %1231 }
 0x1f3   :  { %1570 = vrot.lane.b32.xlu0 %v13576_v12, %s12627_s17  ;;  %1297 = vrot.lane.b32.xlu1 %v13822_v20, %s12628_s19  ;;  %17916 = vst [vmem:[#allocation117_spill] sm:$0xff] %v13829_v15  ;;  %v13836_v14 = vmax.f32 %v13580_v6, %v1232_v37 }
 0x1f5   :  { %17917 = vst [vmem:[#allocation122_spill] sm:$0xff] %v13836_v14 }
 0x1f7   :  { %1299 = vrot.lane.b32.xlu0 %v13829_v15, %s12628_s19  ;;  %1572 = vrot.lane.b32.xlu1 %v13582_v3, %s12627_s17 }
 0x1fb   :  { %1301 = vrot.lane.b32.xlu1 %v13836_v14, %s12628_s19 }
 0x1fd   :  { %v935_v58 = vpop.permute.xlu0 %934 }
 0x1fe   :  { %v976_v61 = vmax.f32 %v13587_v4, %v935_v58 }
 0x200   :  { %v990_v52 = vadd.f32 %v13843_v45, %v976_v61 }
 0x201   :  { %v587_v55 = vpop.permute.xlu0 %586  ;;  %v937_v59 = vpop.permute.xlu1 %936 }
 0x202   :  { %v1004_v15 = vmax.f32 %v990_v52, 0.0  ;;  %v628_v3 = vmax.f32 %v13596_v8, %v587_v55  ;;  %v977_v6 = vmax.f32 %v13599_v1, %v937_v59 }
 0x204   :  { %1018 = vst.msk [vmem:[#allocation2 + $0x70] sm:$0xff] %vm676_vm3, %v1004_v15  ;;  %v648_v37 = vadd.f32 %v13843_v45, %v628_v3  ;;  %v991_v14 = vadd.f32 %v13843_v45, %v977_v6 }
 0x205   :  { %v939_v20 = vpop.permute.xlu0 %938  ;;  %v589_v12 = vpop.permute.xlu1 %588 }
 0x206   :  { %v662_v10 = vmax.f32 %v648_v37, 0.0  ;;  %v1005_v21 = vmax.f32 %v991_v14, 0.0  ;;  %v978_v4 = vmax.f32 %v13615_v42, %v939_v20  ;;  %v629_v58 = vmax.f32 %v13612_v43, %v589_v12 }
 0x208   :  { %677 = vst.msk [vmem:[#allocation2] sm:$0xff] %vm676_vm3, %v662_v10  ;;  %1019 = vst.msk [vmem:[#allocation2 + $0x78] sm:$0xff] %vm676_vm3, %v1005_v21  ;;  %v992_v8 = vadd.f32 %v13843_v45, %v978_v4  ;;  %v649_v1 = vadd.f32 %v13843_v45, %v629_v58 }
 0x209   :  { %v591_v15 = vpop.permute.xlu0 %590  ;;  %v941_v3 = vpop.permute.xlu1 %940 }
 0x20a   :  { %v1006_v61 = vmax.f32 %v992_v8, 0.0  ;;  %v663_v52 = vmax.f32 %v649_v1, 0.0  ;;  %v630_v55 = vmax.f32 %v13630_v5, %v591_v15  ;;  %v979_v14 = vmax.f32 %v13627_v50, %v941_v3  ;;  %v12486_v50 = vld [vmem:[%s17753_s3 + $0x20] sm:$0xff]  }
 0x20b   :  { %v1742_v37 = vld [vmem:[#allocation2 + $0x70] sm:$0xff] }
 0x20c   :  { %1020 = vst.msk [vmem:[#allocation2 + $0x80] sm:$0xff] %vm676_vm3, %v1006_v61  ;;  %678 = vst.msk [vmem:[#allocation2 + $0x8] sm:$0xff] %vm676_vm3, %v663_v52  ;;  %v650_v10 = vadd.f32 %v13843_v45, %v630_v55  ;;  %v993_v12 = vadd.f32 %v13843_v45, %v979_v14  ;;  %v13871_v58 = vld [vmem:[#allocation2 + $0x70] sm:$0xff] }
 0x20d   :  { %v943_v43 = vpop.permute.xlu0 %942  ;;  %v593_v42 = vpop.permute.xlu1 %592 }
 0x20e   :  { %v664_v21 = vmax.f32 %v650_v10, 0.0  ;;  %v1007_v20 = vmax.f32 %v993_v12, 0.0  ;;  %v980_v59 = vmax.f32 %v13641_v13, %v943_v43  ;;  %v631_v6 = vmax.f32 %v13638_v0, %v593_v42  ;;  %v12487_v10 = vld [vmem:[%s17753_s3 + $0x28] sm:$0xff]  }
 0x20f   :  { %v5288_v5 = vld [vmem:[#allocation2 + $0x78] sm:$0xff]  ;;  %v1717_v42 = vld [vmem:[#allocation2] sm:$0xff] }
 0x210   :  { %v13869_v4 = vld [vmem:[#allocation2 + $0x78] sm:$0xff]  ;;  %679 = vst.msk [vmem:[#allocation2 + $0x10] sm:$0xff] %vm676_vm3, %v664_v21  ;;  %1021 = vst.msk [vmem:[#allocation2 + $0x88] sm:$0xff] %vm676_vm3, %v1007_v20  ;;  %v994_v8 = vadd.f32 %v13843_v45, %v980_v59  ;;  %v651_v13 = vadd.f32 %v13843_v45, %v631_v6  ;;  %v1756_v1 = vpack.c.bf16 %v5288_v5, %v1742_v37  ;;  %v17919_v21 = vmov 0.0   ;;  %v12488_v6 = vld [vmem:[%s17753_s3 + $0x30] sm:$0xff]  }
 0x211   :  { %v595_v15 = vpop.permute.xlu0 %594  ;;  %v945_v3 = vpop.permute.xlu1 %944  ;;  %7626 = vst.msk [vmem:[#allocation3 + $0x70] sm:$0xff] %vm3180_vm4, %v17919_v21  ;;  %7627 = vst.msk [vmem:[#allocation3 + $0x78] sm:$0xff] %vm3180_vm4, %v17919_v21 }
 0x212   :  { %v1008_v61 = vmax.f32 %v994_v8, 0.0  ;;  %v665_v52 = vmax.f32 %v651_v13, 0.0  ;;  %v632_v55 = vmax.f32 %v13651_v41, %v595_v15  ;;  %v981_v14 = vmax.f32 %v13648_v2, %v945_v3  ;;  %10962 = vmatmul.mubr.msk.bf16.vlgmr.msra.gmra.mrb[56].mxu0 %vm676_vm3, %v1756_v1  ;;  %7628 = vst.msk [vmem:[#allocation3 + $0x80] sm:$0xff] %vm3180_vm4, %v17919_v21 }
 0x213   :  { %v5289_v12 = vld [vmem:[#allocation2 + $0x80] sm:$0xff]  ;;  %v13885_v43 = vld [vmem:[#allocation2 + $0x8] sm:$0xff]  ;;  %10965 = vmatprep.mubr.msk.bf16.mxu0 %vm12626_vm1, %v17919_v21  ;;  %11022 = vmatpush3.bf16.msra.mxu0 %v12486_v50 }
 0x214   :  { %17918 = vst [vmem:[#allocation123_spill] sm:$0xff] %v13885_v43  ;;  %v13889_v20 = vpack.c.bf16 %v5289_v12, %v5288_v5  ;;  %1022 = vst.msk [vmem:[#allocation2 + $0x90] sm:$0xff] %vm676_vm3, %v1008_v61  ;;  %v652_v2 = vadd.f32 %v13843_v45, %v632_v55  ;;  %v995_v41 = vadd.f32 %v13843_v45, %v981_v14  ;;  %11023 = vmatprep.subr.bf16.mxu0 %v17919_v21 }
 0x215   :  { %680 = vst.msk [vmem:[#allocation2 + $0x18] sm:$0xff] %vm676_vm3, %v665_v52  ;;  %v1731_v59 = vpack.c.bf16 %v13885_v43, %v1717_v42  ;;  %v947_v37 = vpop.permute.xlu0 %946  ;;  %v597_v50 = vpop.permute.xlu1 %596 }
 0x216   :  { %17920 = vst [vmem:[#allocation124_spill] sm:$0xff] %v13889_v20  ;;  %v666_v5 = vmax.f32 %v652_v2, 0.0  ;;  %v1009_v8 = vmax.f32 %v995_v41, 0.0  ;;  %v982_v13 = vmax.f32 %v13661_v54, %v947_v37  ;;  %v633_v1 = vmax.f32 %v13658_v57, %v597_v50 }
 0x217   :  { %10994 = vmatmul.mubr.msk.bf16.vlgmr.msra.gmra.mrb[56].mxu1 %vm676_vm3, %v1731_v59  ;;  %v13903_v15 = vld [vmem:[#allocation2 + $0x10] sm:$0xff]  ;;  %11024 = vmatpush3.bf16.msra.mxu0 %v12487_v10  ;;  %v13913_v57 = vld [vmem:[#allocation2 + $0x88] sm:$0xff]  ;;  %v12489_v10 = vld [vmem:[%s17753_s3 + $0x38] sm:$0xff]  }
 0x218   :  { %17921 = vst [vmem:[#allocation125_spill] sm:$0xff] %v13903_v15  ;;  %10997 = vmatprep.mubr.msk.bf16.mxu1 %vm12626_vm1, %v17919_v21  ;;  %681 = vst.msk [vmem:[#allocation2 + $0x20] sm:$0xff] %vm676_vm3, %v666_v5  ;;  %v996_v61 = vadd.f32 %v13843_v45, %v982_v13  ;;  %v653_v54 = vadd.f32 %v13843_v45, %v633_v1  ;;  %11054 = vmatpush3.bf16.msra.mxu1 %v12488_v6  ;;  %v13921_v42 = vld [vmem:[#allocation2 + $0x9] sm:$0xff] }
 0x219   :  { %1023 = vst.msk [vmem:[#allocation2 + $0x98] sm:$0xff] %vm676_vm3, %v1009_v8  ;;  %v599_v52 = vpop.permute.xlu0 %598  ;;  %v949_v55 = vpop.permute.xlu1 %948  ;;  %v1757_v14 = vpack.c.bf16 %v13913_v57, %v5289_v12  ;;  %11055 = vmatprep.subr.bf16.mxu1 %v17919_v21  ;;  %11085 = vmatprep.subr.bf16.mxu0 %v17919_v21 }
 0x21a   :  { %v1010_v2 = vmax.f32 %v996_v61, 0.0  ;;  %v667_v41 = vmax.f32 %v653_v54, 0.0  ;;  %v634_v59 = vmax.f32 %v13671_v62, %v599_v52  ;;  %v983_v6 = vmax.f32 %v13668_v49, %v949_v55 }
 0x21b   :  { %10966 = vmatmul.mubr.msk.bf16.gmra.mrb[60].mxu0 %vm676_vm3, %v1757_v14  ;;  %v13928_v50 = vld [vmem:[#allocation2 + $0x90] sm:$0xff] }
 0x21c   :  { %v13925_v37 = vld [vmem:[#allocation2 + $0x11] sm:$0xff]  ;;  %1024 = vst.msk [vmem:[#allocation2 + $0xa0] sm:$0xff] %vm676_vm3, %v1010_v2  ;;  %682 = vst.msk [vmem:[#allocation2 + $0x28] sm:$0xff] %vm676_vm3, %v667_v41  ;;  %v654_v8 = vadd.f32 %v13843_v45, %v634_v59  ;;  %v997_v62 = vadd.f32 %v13843_v45, %v983_v6  ;;  %10969 = vmatprep.mubr.msk.bf16.mxu0 %vm12626_vm1, %v17919_v21  ;;  %11056 = vmatpush3.bf16.msra.mxu1 %v12489_v10 }
 0x21d   :  { %v1720_v12 = vld [vmem:[#allocation2 + $0x18] sm:$0xff]  ;;  %v13932_v5 = vpack.c.bf16 %v13925_v37, %v13921_v42  ;;  %v951_v13 = vpop.permute.xlu0 %950  ;;  %v601_v1 = vpop.permute.xlu1 %600  ;;  %11117 = vmatprep.subr.bf16.mxu1 %v17919_v21 }
 0x21e   :  { %v1732_v49 = vpack.c.bf16 %v1720_v12, %v13903_v15  ;;  %v668_v54 = vmax.f32 %v654_v8, 0.0  ;;  %v1011_v52 = vmax.f32 %v997_v62, 0.0  ;;  %v984_v55 = vmax.f32 %v13681_v9, %v951_v13  ;;  %v13957_v9 = vld [vmem:[#allocation2 + $0x89] sm:$0xff] }
 0x21f   :  { %17922 = vst [vmem:[#allocation126_spill] sm:$0xff] %v13932_v5  ;;  %v635_v14 = vmax.f32 %v13678_v51, %v601_v1 }
 0x220   :  { %10998 = vmatmul.mubr.msk.bf16.gmra.mrb[60].mxu1 %vm676_vm3, %v1732_v49  ;;  %v13947_v2 = vld [vmem:[#allocation2 + $0x98] sm:$0xff]  ;;  %683 = vst.msk [vmem:[#allocation2 + $0x30] sm:$0xff] %vm676_vm3, %v668_v54  ;;  %1025 = vst.msk [vmem:[#allocation2 + $0xa8] sm:$0xff] %vm676_vm3, %v1011_v52  ;;  %v998_v10 = vadd.f32 %v13843_v45, %v984_v55  ;;  %v1721_v54 = vld [vmem:[#allocation2 + $0x20] sm:$0xff] }
 0x221   :  { %11001 = vmatprep.mubr.msk.bf16.mxu1 %vm12626_vm1, %v17919_v21  ;;  %v655_v41 = vadd.f32 %v13843_v45, %v635_v14  ;;  %v1758_v51 = vpack.c.bf16 %v13947_v2, %v13928_v50  ;;  %v13959_v59 = vld [vmem:[#allocation2 + $0x91] sm:$0xff]  ;;  %v603_v6 = vpop.permute.xlu0 %602  ;;  %v953_v12 = vpop.permute.xlu1 %952 }
 0x222   :  { %v1012_v62 = vmax.f32 %v998_v10, 0.0  ;;  %v636_v13 = vmax.f32 %v13691_v7, %v603_v6  ;;  %v985_v1 = vmax.f32 %v13688_v56, %v953_v12  ;;  %v14166_v56 = vld [vmem:[#allocation2 + $0x19] sm:$0xff] }
 0x223   :  { %v669_v49 = vmax.f32 %v655_v41, 0.0  ;;  %10970 = vmatmul.mubr.msk.bf16.gmra.mrb[64].mxu0 %vm676_vm3, %v1758_v51  ;;  %v1722_v52 = vld [vmem:[#allocation2 + $0x28] sm:$0xff]  ;;  %v13966_v55 = vld [vmem:[#allocation2 + $0xa0] sm:$0xff] }
 0x224   :  { %1026 = vst.msk [vmem:[#allocation2 + $0xb0] sm:$0xff] %vm676_vm3, %v1012_v62  ;;  %v656_v14 = vadd.f32 %v13843_v45, %v636_v13  ;;  %v999_v3 = vadd.f32 %v13843_v45, %v985_v1  ;;  %v1733_v10 = vpack.c.bf16 %v1722_v52, %v1721_v54  ;;  %10973 = vmatprep.mubr.msk.bf16.mxu0 %vm12626_vm1, %v17919_v21 }
 0x225   :  { %684 = vst.msk [vmem:[#allocation2 + $0x38] sm:$0xff] %vm676_vm3, %v669_v49  ;;  %v955_v7 = vpop.permute.xlu0 %954  ;;  %v605_v41 = vpop.permute.xlu1 %604 }
 0x226   :  { %v670_v51 = vmax.f32 %v656_v14, 0.0  ;;  %v1013_v6 = vmax.f32 %v999_v3, 0.0  ;;  %v986_v12 = vmax.f32 %v13701_v40, %v955_v7  ;;  %v637_v62 = vmax.f32 %v13698_v63, %v605_v41  ;;  %v13989_v3 = vld [vmem:[#allocation2 + $0x99] sm:$0xff] }
 0x227   :  { %v13979_v49 = vld [vmem:[#allocation2 + $0xa8] sm:$0xff] }
 0x228   :  { %11002 = vmatmul.mubr.msk.bf16.gmra.mrb[64].mxu1 %vm676_vm3, %v1733_v10  ;;  %685 = vst.msk [vmem:[#allocation2 + $0x40] sm:$0xff] %vm676_vm3, %v670_v51  ;;  %1027 = vst.msk [vmem:[#allocation2 + $0xb8] sm:$0xff] %vm676_vm3, %v1013_v6  ;;  %v1000_v13 = vadd.f32 %v13843_v45, %v986_v12  ;;  %v657_v1 = vadd.f32 %v13843_v45, %v637_v62  ;;  %v1759_v40 = vpack.c.bf16 %v13979_v49, %v13966_v55  ;;  %v13991_v63 = vld [vmem:[#allocation2 + $0xa1] sm:$0xff]  ;;  %v1723_v6 = vld [vmem:[#allocation2 + $0x30] sm:$0xff] }
 0x229   :  { %11005 = vmatprep.mubr.msk.bf16.mxu1 %vm12626_vm1, %v17919_v21  ;;  %v607_v54 = vpop.permute.xlu0 %606  ;;  %v957_v52 = vpop.permute.xlu1 %956 }
 0x22a   :  { %v1014_v10 = vmax.f32 %v1000_v13, 0.0  ;;  %v671_v7 = vmax.f32 %v657_v1, 0.0  ;;  %v638_v41 = vmax.f32 %v13711_v48, %v607_v54  ;;  %v987_v51 = vmax.f32 %v13708_v47, %v957_v52 }
 0x22b   :  { %10974 = vmatmul.mubr.msk.bf16.gmra.mrb[68].mxu0 %vm676_vm3, %v1759_v40  ;;  %v13998_v62 = vld [vmem:[#allocation2 + $0xb0] sm:$0xff] }
 0x22c   :  { %v1724_v12 = vld [vmem:[#allocation2 + $0x38] sm:$0xff]  ;;  %1028 = vst.msk [vmem:[#allocation2 + $0xc0] sm:$0xff] %vm676_vm3, %v1014_v10  ;;  %686 = vst.msk [vmem:[#allocation2 + $0x48] sm:$0xff] %vm676_vm3, %v671_v7  ;;  %v658_v8 = vadd.f32 %v13843_v45, %v638_v41  ;;  %v1001_v14 = vadd.f32 %v13843_v45, %v987_v51  ;;  %10977 = vmatprep.mubr.msk.bf16.mxu0 %vm12626_vm1, %v17919_v21 }
 0x22d   :  { %v1734_v13 = vpack.c.bf16 %v1724_v12, %v1723_v6  ;;  %v959_v48 = vpop.permute.xlu0 %958  ;;  %v609_v1 = vpop.permute.xlu1 %608 }
 0x22e   :  { %v672_v40 = vmax.f32 %v658_v8, 0.0  ;;  %v1015_v54 = vmax.f32 %v1001_v14, 0.0  ;;  %v988_v52 = vmax.f32 %v13721_v39, %v959_v48  ;;  %v639_v10 = vmax.f32 %v13718_v38, %v609_v1  ;;  %v14021_v14 = vld [vmem:[#allocation2 + $0xa9] sm:$0xff] }
 0x22f   :  { %v14011_v7 = vld [vmem:[#allocation2 + $0xb8] sm:$0xff] }
 0x230   :  { %11006 = vmatmul.mubr.msk.bf16.gmra.mrb[68].mxu1 %vm676_vm3, %v1734_v13  ;;  %687 = vst.msk [vmem:[#allocation2 + $0x50] sm:$0xff] %vm676_vm3, %v672_v40  ;;  %1029 = vst.msk [vmem:[#allocation2 + $0xc8] sm:$0xff] %vm676_vm3, %v1015_v54  ;;  %v1002_v41 = vadd.f32 %v13843_v45, %v988_v52  ;;  %v659_v8 = vadd.f32 %v13843_v45, %v639_v10  ;;  %v1760_v39 = vpack.c.bf16 %v14011_v7, %v13998_v62  ;;  %v14023_v38 = vld [vmem:[#allocation2 + $0xb1] sm:$0xff]  ;;  %v1725_v54 = vld [vmem:[#allocation2 + $0x40] sm:$0xff] }
 0x231   :  { %11009 = vmatprep.mubr.msk.bf16.mxu1 %vm12626_vm1, %v17919_v21  ;;  %v611_v51 = vpop.permute.xlu0 %610  ;;  %v961_v6 = vpop.permute.xlu1 %960 }
 0x232   :  { %v1016_v13 = vmax.f32 %v1002_v41, 0.0  ;;  %v673_v48 = vmax.f32 %v659_v8, 0.0  ;;  %v640_v1 = vmax.f32 %v13731_v60, %v611_v51  ;;  %v989_v40 = vmax.f32 %v13728_v46, %v961_v6 }
 0x233   :  { %10978 = vmatmul.mubr.msk.bf16.gmra.mrb[72].mxu0 %vm676_vm3, %v1760_v39  ;;  %v1726_v52 = vld [vmem:[#allocation2 + $0x48] sm:$0xff]  ;;  %v14030_v10 = vld [vmem:[#allocation2 + $0xc0] sm:$0xff] }
 0x234   :  { %1030 = vst.msk [vmem:[#allocation2 + $0xd0] sm:$0xff] %vm676_vm3, %v1016_v13  ;;  %688 = vst.msk [vmem:[#allocation2 + $0x58] sm:$0xff] %vm676_vm3, %v673_v48  ;;  %v660_v0 = vadd.f32 %v13843_v45, %v640_v1  ;;  %v1003_v12 = vadd.f32 %v13843_v45, %v989_v40  ;;  %v1735_v41 = vpack.c.bf16 %v1726_v52, %v1725_v54  ;;  %10981 = vmatprep.mubr.msk.bf16.mxu0 %vm12626_vm1, %v17919_v21 }
 0x235   :  { %v1547_v60 = vpop.permute.xlu0 %1546  ;;  %v613_v8 = vpop.permute.xlu1 %612 }
 0x236   :  { %v674_v39 = vmax.f32 %v660_v0, 0.0  ;;  %v1017_v51 = vmax.f32 %v1003_v12, 0.0  ;;  %v14041_v6 = vmax.f32 %v13500_v31, %v1547_v60  ;;  %v641_v13 = vmax.f32 %v13738_v53, %v613_v8  ;;  %v14056_v53 = vld [vmem:[#allocation2 + $0xb9] sm:$0xff] }
 0x237   :  { %v14045_v48 = vld [vmem:[#allocation2 + $0xc8] sm:$0xff]  ;;  %v1727_v8 = vld [vmem:[#allocation2 + $0x50] sm:$0xff] }
 0x238   :  { %11010 = vmatmul.mubr.msk.bf16.gmra.mrb[72].mxu1 %vm676_vm3, %v1735_v41  ;;  %689 = vst.msk [vmem:[#allocation2 + $0x60] sm:$0xff] %vm676_vm3, %v674_v39  ;;  %1031 = vst.msk [vmem:[#allocation2 + $0xd8] sm:$0xff] %vm676_vm3, %v1017_v51  ;;  %v661_v1 = vadd.f32 %v13843_v45, %v641_v13  ;;  %1616 = vrot.lane.b32.xlu0 %v14041_v6, %s12628_s19  ;;  %v1761_v31 = vpack.c.bf16 %v14045_v48, %v14030_v10  ;;  %v14058_v0 = vld [vmem:[#allocation2 + $0xc1] sm:$0xff] }
 0x239   :  { %11013 = vmatprep.mubr.msk.bf16.mxu1 %vm12626_vm1, %v17919_v21  ;;  %v1276_v12 = vpop.permute.xlu0 %1275  ;;  %v1549_v40 = vpop.permute.xlu1 %1548 }
 0x23a   :  { %v675_v52 = vmax.f32 %v661_v1, 0.0  ;;  %v1317_v41 = vmax.f32 %v13745_v35, %v1276_v12  ;;  %v14064_v60 = vmax.f32 %v13506_v30, %v1549_v40 }
 0x23b   :  { %10982 = vmatmul.mubr.msk.bf16.gmra.mrb[76].mxu0 %vm676_vm3, %v1761_v31  ;;  %v1728_v39 = vld [vmem:[#allocation2 + $0x58] sm:$0xff]  ;;  %v14067_v51 = vld [vmem:[#allocation2 + $0xd0] sm:$0xff] }
 0x23c   :  { %690 = vst.msk [vmem:[#allocation2 + $0x68] sm:$0xff] %vm676_vm3, %v675_v52  ;;  %v1331_v13 = vadd.f32 %v13843_v45, %v1317_v41  ;;  %1618 = vrot.lane.b32.xlu1 %v14064_v60, %s12628_s19  ;;  %v1736_v54 = vpack.c.bf16 %v1728_v39, %v1727_v8  ;;  %10985 = vmatprep.mubr.msk.bf16.mxu0 %vm12626_vm1, %v17919_v21 }
 0x23d   :  { %v1551_v35 = vpop.permute.xlu0 %1550  ;;  %v1278_v1 = vpop.permute.xlu1 %1277 }
 0x23e   :  { %v1345_v31 = vmax.f32 %v1331_v13, 0.0  ;;  %v14078_v12 = vmax.f32 %v13512_v25, %v1551_v35  ;;  %v1318_v40 = vmax.f32 %v13752_v33, %v1278_v1  ;;  %v14098_v1 = vld [vmem:[#allocation2 + $0xc9] sm:$0xff] }
 0x23f   :  { %v14082_v52 = vld [vmem:[#allocation2 + $0xd8] sm:$0xff] }
 0x240   :  { %11014 = vmatmul.mubr.msk.bf16.gmra.mrb[76].mxu1 %vm676_vm3, %v1736_v54  ;;  %1359 = vst.msk [vmem:[#allocation2 + $0xe0] sm:$0xff] %vm676_vm3, %v1345_v31  ;;  %v1332_v41 = vadd.f32 %v13843_v45, %v1318_v40  ;;  %1620 = vrot.lane.b32.xlu0 %v14078_v12, %s12628_s19  ;;  %v1762_v25 = vpack.c.bf16 %v14082_v52, %v14067_v51  ;;  %v14092_v33 = vld [vmem:[#allocation2 + $0xd1] sm:$0xff]  ;;  %v1729_v31 = vld [vmem:[#allocation2 + $0x60] sm:$0xff] }
 0x241   :  { %11017 = vmatprep.mubr.msk.bf16.mxu1 %vm12626_vm1, %v17919_v21  ;;  %v1280_v8 = vpop.permute.xlu0 %1279  ;;  %v1553_v39 = vpop.permute.xlu1 %1552 }
 0x242   :  { %v1346_v54 = vmax.f32 %v1332_v41, 0.0  ;;  %v1319_v13 = vmax.f32 %v13759_v36, %v1280_v8  ;;  %v14096_v35 = vmax.f32 %v13518_v27, %v1553_v39 }
 0x243   :  { %10986 = vmatmul.mubr.msk.bf16.gmra.mrb[80].mxu0 %vm676_vm3, %v1762_v25  ;;  %v1730_v40 = vld [vmem:[#allocation2 + $0x68] sm:$0xff] }
 0x244   :  { %1360 = vst.msk [vmem:[#allocation2 + $0xe8] sm:$0xff] %vm676_vm3, %v1346_v54  ;;  %v1333_v46 = vadd.f32 %v13843_v45, %v1319_v13  ;;  %1622 = vrot.lane.b32.xlu1 %v14096_v35, %s12628_s19  ;;  %v1737_v36 = vpack.c.bf16 %v1730_v40, %v1729_v31  ;;  %11025 = vmatprep.mubr.msk.bf16.mxu0 %vm12626_vm1, %v17919_v21 }
 0x245   :  { %v1555_v27 = vpop.permute.xlu0 %1554  ;;  %v1282_v41 = vpop.permute.xlu1 %1281 }
 0x246   :  { %v1347_v8 = vmax.f32 %v1333_v46, 0.0  ;;  %v14110_v25 = vmax.f32 %v13524_v26, %v1555_v27  ;;  %v1320_v39 = vmax.f32 %v13766_v44, %v1282_v41  ;;  %v14122_v46 = vld [vmem:[#allocation2 + $0x1] sm:$0xff] }
 0x247   :  { %v14114_v54 = vld [vmem:[#allocation2 + $0xe0] sm:$0xff]  ;;  %v2026_v40 = vpack.c.bf16 %v13921_v42, %v14122_v46 }
 0x248   :  { %11018 = vmatmul.mubr.msk.bf16.gmra.mrb[80].mxu1 %vm676_vm3, %v1737_v36  ;;  %1361 = vst.msk [vmem:[#allocation2 + $0xf0] sm:$0xff] %vm676_vm3, %v1347_v8  ;;  %v1334_v13 = vadd.f32 %v13843_v45, %v1320_v39  ;;  %1624 = vrot.lane.b32.xlu0 %v14110_v25, %s12628_s19  ;;  %v12492_v36 = vld [vmem:[%s17753_s3 + $0x40] sm:$0xff]   ;;  %v12490_v39 = vld [vmem:[%s17753_s3 + $0x50] sm:$0xff]  }
 0x249   :  { %11057 = vmatprep.mubr.msk.bf16.mxu1 %vm12626_vm1, %v17919_v21  ;;  %v1284_v44 = vpop.permute.xlu0 %1283  ;;  %v1557_v31 = vpop.permute.xlu1 %1556  ;;  %v14141_v26 = vld [vmem:[#allocation2 + $0xd9] sm:$0xff] }
 0x24a   :  { %v1348_v27 = vmax.f32 %v1334_v13, 0.0  ;;  %v1321_v41 = vmax.f32 %v13773_v29, %v1284_v44  ;;  %v14133_v8 = vmax.f32 %v13530_v24, %v1557_v31  ;;  %17924 = vst [vmem:[#allocation128_spill] sm:$0xff] %v14141_v26 }
 0x24b   :  { %v14138_v30 = vld [vmem:[#allocation2 + $0xe8] sm:$0xff]  ;;  %11026 = vmatmul.mubr.msk.bf16.vlgmr.msra.gmra.mrb[84].mxu0 %vm676_vm3, %v2026_v40 }
 0x24c   :  { %17923 = vst [vmem:[#allocation127_spill] sm:$0xff] %v14138_v30  ;;  %v14143_v42 = vld [vmem:[#allocation2 + $0xe1] sm:$0xff]  ;;  %v14147_v13 = vpack.c.bf16 %v14138_v30, %v14114_v54  ;;  %1362 = vst.msk [vmem:[#allocation2 + $0xf8] sm:$0xff] %vm676_vm3, %v1348_v27  ;;  %v1335_v24 = vadd.f32 %v13843_v45, %v1321_v41  ;;  %1626 = vrot.lane.b32.xlu1 %v14133_v8, %s12628_s19  ;;  %11029 = vmatprep.mubr.msk.bf16.mxu0 %vm12626_vm1, %v17919_v21 }
 0x24d   :  { %17925 = vst [vmem:[#allocation129_spill] sm:$0xff] %v14143_v42  ;;  %v1559_v44 = vpop.permute.xlu0 %1558  ;;  %v1286_v31 = vpop.permute.xlu1 %1285  ;;  %11086 = vmatpush3.bf16.msra.mxu0 %v12492_v36  ;;  %v12493_v40 = vld [vmem:[%s17753_s3 + $0x48] sm:$0xff]   ;;  %v4133_v42 = vld [vmem:[#allocation2 + $0x78] sm:$0xff] }
 0x24e   :  { %17926 = vst [vmem:[#allocation130_spill] sm:$0xff] %v14147_v13  ;;  %v1349_v47 = vmax.f32 %v1335_v24, 0.0  ;;  %v14161_v27 = vmax.f32 %v13536_v19, %v1559_v44  ;;  %v1322_v41 = vmax.f32 %v13780_v34, %v1286_v31  ;;  %11087 = vmatprep.subr.bf16.mxu0 %v17919_v21  ;;  %v12491_v19 = vld [vmem:[%s17753_s3 + $0x58] sm:$0xff]  }
 0x24f   :  { %v14169_v29 = vld [vmem:[#allocation2 + $0xf0] sm:$0xff] }
 0x250   :  { %11058 = vmatmul.mubr.msk.bf16.vlgmr.msra.gmra.mrb[84].mxu1 %vm676_vm3, %v14147_v13  ;;  %17927 = vst [vmem:[#allocation131_spill] sm:$0xff] %v14169_v29  ;;  %1363 = vst.msk [vmem:[#allocation2 + $0x100] sm:$0xff] %vm676_vm3, %v1349_v47  ;;  %v1336_v36 = vadd.f32 %v13843_v45, %v1322_v41  ;;  %1628 = vrot.lane.b32.xlu0 %v14161_v27, %s12628_s19  ;;  %v14190_v47 = vld [vmem:[#allocation2 + $0xe9] sm:$0xff] }
 0x251   :  { %11061 = vmatprep.mubr.msk.bf16.mxu1 %vm12626_vm1, %v17919_v21  ;;  %11118 = vmatpush3.bf16.msra.mxu1 %v12490_v39  ;;  %v1288_v24 = vpop.permute.xlu0 %1287  ;;  %v1561_v44 = vpop.permute.xlu1 %1560  ;;  %v2027_v39 = vpack.c.bf16 %v14166_v56, %v13925_v37 }
 0x252   :  { %11119 = vmatprep.subr.bf16.mxu1 %v17919_v21  ;;  %11088 = vmatpush3.bf16.msra.mxu0 %v12493_v40  ;;  %v1350_v31 = vmax.f32 %v1336_v36, 0.0  ;;  %v1323_v61 = vmax.f32 %v13787_v32, %v1288_v24  ;;  %v14187_v34 = vmax.f32 %v13542_v18, %v1561_v44 }
 0x253   :  { %11149 = vmatprep.subr.bf16.mxu0 %v17919_v21  ;;  %v14192_v41 = vld [vmem:[#allocation2 + $0xf1] sm:$0xff]  ;;  %11030 = vmatmul.mubr.msk.bf16.gmra.mrb[88].mxu0 %vm676_vm3, %v2027_v39  ;;  %v2016_v39 = vld [vmem:[#allocation2 + $0x21] sm:$0xff] }
 0x254   :  { %v2177_v30 = vld [vmem:[#allocation2 + $0xf8] sm:$0xff]  ;;  %v14197_v37 = vpack.c.bf16 %v14192_v41, %v14190_v47  ;;  %1364 = vst.msk [vmem:[#allocation2 + $0x108] sm:$0xff] %vm676_vm3, %v1350_v31  ;;  %v1337_v32 = vadd.f32 %v13843_v45, %v1323_v61  ;;  %1630 = vrot.lane.b32.xlu1 %v14187_v34, %s12628_s19  ;;  %11033 = vmatprep.mubr.msk.bf16.mxu0 %vm12626_vm1, %v17919_v21  ;;  %v2017_v61 = vld [vmem:[#allocation2 + $0x29] sm:$0xff] }
 0x255   :  { %11120 = vmatpush3.bf16.msra.mxu1 %v12491_v19  ;;  %v2189_v18 = vpack.c.bf16 %v2177_v30, %v14169_v29  ;;  %v1563_v40 = vpop.permute.xlu0 %1562  ;;  %v1290_v36 = vpop.permute.xlu1 %1289 }
 0x256   :  { %17928 = vst [vmem:[#allocation132_spill] sm:$0xff] %v14197_v37  ;;  %11181 = vmatprep.subr.bf16.mxu1 %v17919_v21  ;;  %v1351_v19 = vmax.f32 %v1337_v32, 0.0  ;;  %v14208_v24 = vmax.f32 %v13548_v17, %v1563_v40  ;;  %v1324_v44 = vmax.f32 %v13794_v28, %v1290_v36  ;;  %v14218_v17 = vpack.c.bf16 %v2017_v61, %v2016_v39 }
 0x257   :  { %v2178_v36 = vld [vmem:[#allocation2 + $0x100] sm:$0xff] }
 0x258   :  { %11062 = vmatmul.mubr.msk.bf16.gmra.mrb[88].mxu1 %vm676_vm3, %v2189_v18  ;;  %1365 = vst.msk [vmem:[#allocation2 + $0x110] sm:$0xff] %vm676_vm3, %v1351_v19  ;;  %v1338_v30 = vadd.f32 %v13843_v45, %v1324_v44  ;;  %1632 = vrot.lane.b32.xlu0 %v14208_v24, %s12628_s19 }
 0x259   :  { %11065 = vmatprep.mubr.msk.bf16.mxu1 %vm12626_vm1, %v17919_v21  ;;  %v1292_v31 = vpop.permute.xlu0 %1291  ;;  %v1565_v32 = vpop.permute.xlu1 %1564 }
 0x25a   :  { %v1352_v40 = vmax.f32 %v1338_v30, 0.0  ;;  %v1325_v28 = vmax.f32 %v13801_v23, %v1292_v31  ;;  %v14222_v18 = vmax.f32 %v13554_v16, %v1565_v32  ;;  %v2019_v32 = vld [vmem:[#allocation2 + $0x39] sm:$0xff] }
 0x25b   :  { %11034 = vmatmul.mubr.msk.bf16.gmra.mrb[92].mxu0 %vm676_vm3, %v14218_v17  ;;  %v2179_v19 = vld [vmem:[#allocation2 + $0x108] sm:$0xff] }
 0x25c   :  { %1366 = vst.msk [vmem:[#allocation2 + $0x118] sm:$0xff] %vm676_vm3, %v1352_v40  ;;  %v1339_v44 = vadd.f32 %v13843_v45, %v1325_v28  ;;  %1634 = vrot.lane.b32.xlu1 %v14222_v18, %s12628_s19  ;;  %v2190_v61 = vpack.c.bf16 %v2179_v19, %v2178_v36  ;;  %11037 = vmatprep.mubr.msk.bf16.mxu0 %vm12626_vm1, %v17919_v21  ;;  %v2018_v28 = vld [vmem:[#allocation2 + $0x31] sm:$0xff] }
 0x25d   :  { %v1567_v23 = vpop.permute.xlu0 %1566  ;;  %v1294_v30 = vpop.permute.xlu1 %1293 }
 0x25e   :  { %v1353_v16 = vmax.f32 %v1339_v44, 0.0  ;;  %v14233_v39 = vmax.f32 %v13560_v11, %v1567_v23  ;;  %v1326_v31 = vmax.f32 %v13808_v22, %v1294_v30  ;;  %v14243_v11 = vpack.c.bf16 %v2019_v32, %v2018_v28  ;;  %v17929_v22 = vld [vmem:[#allocation120_spill] sm:$0xff] }
 0x260   :  { %11066 = vmatmul.mubr.msk.bf16.gmra.mrb[92].mxu1 %vm676_vm3, %v2190_v61  ;;  %1367 = vst.msk [vmem:[#allocation2 + $0x120] sm:$0xff] %vm676_vm3, %v1353_v16  ;;  %v1340_v40 = vadd.f32 %v13843_v45, %v1326_v31  ;;  %1636 = vrot.lane.b32.xlu0 %v14233_v39, %s12628_s19  ;;  %v17930_v61 = vld [vmem:[#allocation116_spill] sm:$0xff]  ;;  %v2180_v16 = vld [vmem:[#allocation2 + $0x110] sm:$0xff] }
 0x261   :  { %11069 = vmatprep.mubr.msk.bf16.mxu1 %vm12626_vm1, %v17919_v21  ;;  %v1296_v36 = vpop.permute.xlu0 %1295  ;;  %v1569_v19 = vpop.permute.xlu1 %1568 }
 0x262   :  { %v1354_v44 = vmax.f32 %v1340_v40, 0.0  ;;  %v1327_v23 = vmax.f32 %v17929_v22, %v1296_v36  ;;  %v14247_v30 = vmax.f32 %v17930_v61, %v1569_v19  ;;  %v17931_v19 = vld [vmem:[#allocation118_spill] sm:$0xff]  ;;  %v17932_v61 = vld [vmem:[#allocation121_spill] sm:$0xff] }
 0x263   :  { %11038 = vmatmul.mubr.msk.bf16.gmra.mrb[96].mxu0 %vm676_vm3, %v14243_v11  ;;  %v2181_v37 = vld [vmem:[#allocation2 + $0x118] sm:$0xff] }
 0x264   :  { %1368 = vst.msk [vmem:[#allocation2 + $0x128] sm:$0xff] %vm676_vm3, %v1354_v44  ;;  %v1341_v31 = vadd.f32 %v13843_v45, %v1327_v23  ;;  %1638 = vrot.lane.b32.xlu1 %v14247_v30, %s12628_s19  ;;  %v2191_v32 = vpack.c.bf16 %v2181_v37, %v2180_v16  ;;  %11041 = vmatprep.mubr.msk.bf16.mxu0 %vm12626_vm1, %v17919_v21  ;;  %v2021_v44 = vld [vmem:[#allocation2 + $0x49] sm:$0xff]  ;;  %v2020_v23 = vld [vmem:[#allocation2 + $0x41] sm:$0xff] }
 0x265   :  { %v1571_v40 = vpop.permute.xlu0 %1570  ;;  %v1298_v28 = vpop.permute.xlu1 %1297 }
 0x266   :  { %v1355_v36 = vmax.f32 %v1341_v31, 0.0  ;;  %v14258_v22 = vmax.f32 %v17931_v19, %v1571_v40  ;;  %v1328_v29 = vmax.f32 %v17932_v61, %v1298_v28  ;;  %v14268_v40 = vpack.c.bf16 %v2021_v44, %v2020_v23  ;;  %v17933_v28 = vld [vmem:[#allocation117_spill] sm:$0xff] }
 0x268   :  { %11070 = vmatmul.mubr.msk.bf16.gmra.mrb[96].mxu1 %vm676_vm3, %v2191_v32  ;;  %1369 = vst.msk [vmem:[#allocation2 + $0x130] sm:$0xff] %vm676_vm3, %v1355_v36  ;;  %v1342_v37 = vadd.f32 %v13843_v45, %v1328_v29  ;;  %1640 = vrot.lane.b32.xlu0 %v14258_v22, %s12628_s19  ;;  %v17934_v32 = vld [vmem:[#allocation119_spill] sm:$0xff]  ;;  %v2182_v36 = vld [vmem:[#allocation2 + $0x120] sm:$0xff] }
 0x269   :  { %11073 = vmatprep.mubr.msk.bf16.mxu1 %vm12626_vm1, %v17919_v21  ;;  %v1300_v16 = vpop.permute.xlu0 %1299  ;;  %v1573_v31 = vpop.permute.xlu1 %1572 }
 0x26a   :  { %v1356_v19 = vmax.f32 %v1342_v37, 0.0  ;;  %v1329_v61 = vmax.f32 %v17933_v28, %v1300_v16  ;;  %v14272_v20 = vmax.f32 %v17934_v32, %v1573_v31  ;;  %v17935_v16 = vld [vmem:[#allocation122_spill] sm:$0xff]  ;;  %v2023_v28 = vld [vmem:[#allocation2 + $0x59] sm:$0xff] }
 0x26b   :  { %11042 = vmatmul.mubr.msk.bf16.gmra.mrb[100].mxu0 %vm676_vm3, %v14268_v40  ;;  %v2183_v43 = vld [vmem:[#allocation2 + $0x128] sm:$0xff] }
 0x26c   :  { %1370 = vst.msk [vmem:[#allocation2 + $0x138] sm:$0xff] %vm676_vm3, %v1356_v19  ;;  %v1343_v29 = vadd.f32 %v13843_v45, %v1329_v61  ;;  %1642 = vrot.lane.b32.xlu1 %v14272_v20, %s12628_s19  ;;  %v2192_v44 = vpack.c.bf16 %v2183_v43, %v2182_v36  ;;  %11045 = vmatprep.mubr.msk.bf16.mxu0 %vm12626_vm1, %v17919_v21  ;;  %v2022_v61 = vld [vmem:[#allocation2 + $0x51] sm:$0xff] }
 0x26d   :  { %v1302_v37 = vpop.permute.xlu1 %1301  ;;  %v14288_v32 = vpack.c.bf16 %v2023_v28, %v2022_v61  ;;  %v4966_v61 = vld [vmem:[#allocation2 + $0xe1] sm:$0xff] }
 0x26e   :  { %v1357_v23 = vmax.f32 %v1343_v29, 0.0  ;;  %v1330_v31 = vmax.f32 %v17935_v16, %v1302_v37  ;;  %v2024_v37 = vld [vmem:[#allocation2 + $0x61] sm:$0xff] }
 0x26f   :  { %v2184_v36 = vld [vmem:[#allocation2 + $0x130] sm:$0xff] }
 0x270   :  { %11074 = vmatmul.mubr.msk.bf16.gmra.mrb[100].mxu1 %vm676_vm3, %v2192_v44  ;;  %1371 = vst.msk [vmem:[#allocation2 + $0x140] sm:$0xff] %vm676_vm3, %v1357_v23  ;;  %v1344_v19 = vadd.f32 %v13843_v45, %v1330_v31  ;;  %v2025_v23 = vld [vmem:[#allocation2 + $0x69] sm:$0xff] }
 0x271   :  { %11077 = vmatprep.mubr.msk.bf16.mxu1 %vm12626_vm1, %v17919_v21  ;;  %v14298_v16 = vpack.c.bf16 %v2025_v23, %v2024_v37  ;;  %v2502_v23 = vld [vmem:[#allocation2 + $0x101] sm:$0xff] }
 0x272   :  { %v1358_v43 = vmax.f32 %v1344_v19, 0.0 }
 0x273   :  { %11046 = vmatmul.mubr.msk.bf16.gmra.mrb[104].mxu0 %vm676_vm3, %v14288_v32  ;;  %v2185_v29 = vld [vmem:[#allocation2 + $0x138] sm:$0xff] }
 0x274   :  { %1372 = vst.msk [vmem:[#allocation2 + $0x148] sm:$0xff] %vm676_vm3, %v1358_v43  ;;  %v2193_v44 = vpack.c.bf16 %v2185_v29, %v2184_v36  ;;  %11049 = vmatprep.mubr.msk.bf16.mxu0 %vm12626_vm1, %v17919_v21  ;;  %v12494_v43 = vld [vmem:[%s17753_s3 + $0x70] sm:$0xff]   ;;  %v14311_v36 = vpack.c.bf16 %v14190_v47, %v4966_v61  ;;  %v12496_v29 = vld [vmem:[%s17753_s3 + $0x78] sm:$0xff]  }
 0x275   :  { %v2503_v47 = vld [vmem:[#allocation2 + $0x109] sm:$0xff] }
 0x276   :  { %17936 = vst [vmem:[#allocation120_spill] sm:$0xff] %v14311_v36 }
 0x277   :  { %v2186_v31 = vld [vmem:[#allocation2 + $0x140] sm:$0xff] }
 0x278   :  { %11078 = vmatmul.mubr.msk.bf16.gmra.mrb[104].mxu1 %vm676_vm3, %v2193_v44  ;;  %v2501_v44 = vld [vmem:[#allocation2 + $0xf9] sm:$0xff] }
 0x279   :  { %11081 = vmatprep.mubr.msk.bf16.mxu1 %vm12626_vm1, %v17919_v21  ;;  %v2513_v37 = vpack.c.bf16 %v2501_v44, %v14192_v41  ;;  %v2507_v41 = vld [vmem:[#allocation2 + $0x129] sm:$0xff]  ;;  %v2509_v44 = vld [vmem:[#allocation2 + $0x139] sm:$0xff] }
 0x27b   :  { %11050 = vmatmul.mubr.msk.bf16.gmra.mrb[108].mxu0 %vm676_vm3, %v14298_v16  ;;  %v2187_v28 = vld [vmem:[#allocation2 + $0x148] sm:$0xff] }
 0x27c   :  { %v2194_v19 = vpack.c.bf16 %v2187_v28, %v2186_v31  ;;  %11089 = vmatprep.mubr.msk.bf16.mxu0 %vm12626_vm1, %v17919_v21  ;;  %v2514_v31 = vpack.c.bf16 %v2503_v47, %v2502_v23  ;;  %v2505_v28 = vld [vmem:[#allocation2 + $0x119] sm:$0xff]  ;;  %v2508_v23 = vld [vmem:[#allocation2 + $0x131] sm:$0xff]  ;;  %v3823_v13 = vld [vmem:[#allocation2 + $0x141] sm:$0xff] }
 0x280   :  { %11082 = vmatmul.mubr.msk.bf16.gmra.mrb[108].mxu1 %vm676_vm3, %v2194_v19  ;;  %v2504_v19 = vld [vmem:[#allocation2 + $0x111] sm:$0xff] }
 0x281   :  { %11121 = vmatprep.mubr.msk.bf16.mxu1 %vm12626_vm1, %v17919_v21  ;;  %v2515_v61 = vpack.c.bf16 %v2505_v28, %v2504_v19 }
 0x288   :  { %11122 = vmatmul.mubr.msk.bf16.vlgmr.msra.gmra.mrb[112].mxu1 %vm676_vm3, %v14311_v36 }
 0x289   :  { %11125 = vmatprep.mubr.msk.bf16.mxu1 %vm12626_vm1, %v17919_v21  ;;  %11182 = vmatpush3.bf16.msra.mxu1 %v12494_v43  ;;  %v2506_v43 = vld [vmem:[#allocation2 + $0x121] sm:$0xff] }
 0x28a   :  { %11183 = vmatprep.subr.bf16.mxu1 %v17919_v21 }
 0x28d   :  { %11184 = vmatpush3.bf16.msra.mxu1 %v12496_v29  ;;  %v2516_v29 = vpack.c.bf16 %v2507_v41, %v2506_v43 }
 0x28e   :  { %11245 = vmatprep.subr.bf16.mxu1 %v17919_v21 }
 0x290   :  { %11126 = vmatmul.mubr.msk.bf16.gmra.mrb[116].mxu1 %vm676_vm3, %v2513_v37 }
 0x291   :  { %11129 = vmatprep.mubr.msk.bf16.mxu1 %vm12626_vm1, %v17919_v21 }
 0x298   :  { %11130 = vmatmul.mubr.msk.bf16.gmra.mrb[120].mxu1 %vm676_vm3, %v2514_v31  ;;  %v2517_v31 = vpack.c.bf16 %v2509_v44, %v2508_v23 }
 0x299   :  { %11133 = vmatprep.mubr.msk.bf16.mxu1 %vm12626_vm1, %v17919_v21 }
 0x2a0   :  { %11134 = vmatmul.mubr.msk.bf16.gmra.mrb[124].mxu1 %vm676_vm3, %v2515_v61 }
 0x2a1   :  { %11137 = vmatprep.mubr.msk.bf16.mxu1 %vm12626_vm1, %v17919_v21 }
 0x2a8   :  { %11138 = vmatmul.mubr.msk.bf16.gmra.mrb[128].mxu1 %vm676_vm3, %v2516_v29 }
 0x2a9   :  { %11141 = vmatprep.mubr.msk.bf16.mxu1 %vm12626_vm1, %v17919_v21 }
 0x2aa   :  { %v1617_v37 = vpop.permute.xlu0 %1616 }
 0x2ab   :  { %v1658_v47 = vmax.f32 %v14041_v6, %v1617_v37 }
 0x2ad   :  { %v1672_v28 = vadd.f32 %v13843_v45, %v1658_v47 }
 0x2ae   :  { %v1619_v19 = vpop.permute.xlu1 %1618 }
 0x2af   :  { %v1686_v61 = vmax.f32 %v1672_v28, 0.0  ;;  %v1659_v36 = vmax.f32 %v14064_v60, %v1619_v19  ;;  %v2510_v60 = vld [vmem:[#allocation2 + $0x141] sm:$0xff] }
 0x2b0   :  { %11142 = vmatmul.mubr.msk.bf16.gmra.mrb[132].mxu1 %vm676_vm3, %v2517_v31 }
 0x2b1   :  { %11145 = vmatprep.mubr.msk.bf16.mxu1 %vm12626_vm1, %v17919_v21  ;;  %1700 = vst.msk [vmem:[#allocation2 + $0x150] sm:$0xff] %vm676_vm3, %v1686_v61  ;;  %v1673_v41 = vadd.f32 %v13843_v45, %v1659_v36 }
 0x2b2   :  { %v1621_v43 = vpop.permute.xlu0 %1620 }
 0x2b3   :  { %v1687_v29 = vmax.f32 %v1673_v41, 0.0  ;;  %v1660_v6 = vmax.f32 %v14078_v12, %v1621_v43 }
 0x2b5   :  { %1701 = vst.msk [vmem:[#allocation2 + $0x158] sm:$0xff] %vm676_vm3, %v1687_v29  ;;  %v1674_v44 = vadd.f32 %v13843_v45, %v1660_v6  ;;  %v12495_v29 = vld [vmem:[%s17753_s3 + $0x60] sm:$0xff]  }
 0x2b6   :  { %v1623_v37 = vpop.permute.xlu1 %1622 }
 0x2b7   :  { %v1688_v47 = vmax.f32 %v1674_v44, 0.0  ;;  %v1661_v23 = vmax.f32 %v14096_v35, %v1623_v37  ;;  %v14365_v44 = vld [vmem:[#allocation2 + $0x80] sm:$0xff] }
 0x2b8   :  { %v2511_v31 = vld [vmem:[#allocation2 + $0x149] sm:$0xff] }
 0x2b9   :  { %1702 = vst.msk [vmem:[#allocation2 + $0x160] sm:$0xff] %vm676_vm3, %v1688_v47  ;;  %v1675_v28 = vadd.f32 %v13843_v45, %v1661_v23  ;;  %v2518_v19 = vpack.c.bf16 %v2511_v31, %v2510_v60  ;;  %v4697_v12 = vld [vmem:[#allocation2 + $0x150] sm:$0xff]  ;;  %v14362_v45 = vld [vmem:[%s17752_s2] ss:$0 sm:$0xff]  ;;  %v12497_v60 = vld [vmem:[%s17753_s3 + $0x68] sm:$0xff]  }
 0x2ba   :  { %v1625_v36 = vpop.permute.xlu0 %1624 }
 0x2bb   :  { %v1689_v61 = vmax.f32 %v1675_v28, 0.0  ;;  %v1662_v41 = vmax.f32 %v14110_v25, %v1625_v36  ;;  %11146 = vmatmul.mubr.msk.bf16.gmra.mrb[136].mxu1 %vm676_vm3, %v2518_v19  ;;  %v12498_v19 = vld [vmem:[%s17753_s3 + $0x10] sm:$0xff]  }
 0x2bc   :  { %v4698_v43 = vld [vmem:[#allocation2 + $0x158] sm:$0xff]  ;;  %11185 = vmatprep.mubr.msk.bf16.mxu1 %vm12626_vm1, %v17919_v21 }
 0x2bd   :  { %v14356_v35 = vpack.c.bf16 %v4698_v43, %v4697_v12  ;;  %1703 = vst.msk [vmem:[#allocation2 + $0x168] sm:$0xff] %vm676_vm3, %v1689_v61  ;;  %v1676_v25 = vadd.f32 %v14362_v45, %v1662_v41 }
 0x2be   :  { %v1627_v6 = vpop.permute.xlu1 %1626 }
 0x2bf   :  { %17937 = vst [vmem:[#allocation116_spill] sm:$0xff] %v14356_v35  ;;  %v1690_v37 = vmax.f32 %v1676_v25, 0.0  ;;  %v1663_v47 = vmax.f32 %v14133_v8, %v1627_v6  ;;  %11090 = vmatmul.mubr.msk.bf16.vlgmr.msra.gmra.mrb[112].mxu0 %vm676_vm3, %v14356_v35  ;;  %v2836_v8 = vpack.c.bf16 %v14365_v44, %v13869_v4  ;;  %v12500_v25 = vld [vmem:[%s17753_s3 + $0x18] sm:$0xff]  }
 0x2c0   :  { %v5772_v23 = vld [vmem:[#allocation2 + $0x160] sm:$0xff]  ;;  %11150 = vmatpush3.bf16.msra.mxu0 %v12495_v29  ;;  %11093 = vmatprep.mubr.msk.bf16.mxu0 %vm12626_vm1, %v17919_v21 }
 0x2c1   :  { %v14375_v31 = vpack.c.bf16 %v5772_v23, %v4698_v43  ;;  %1704 = vst.msk [vmem:[#allocation2 + $0x170] sm:$0xff] %vm676_vm3, %v1690_v37  ;;  %v1677_v28 = vadd.f32 %v14362_v45, %v1663_v47  ;;  %11151 = vmatprep.subr.bf16.mxu0 %v17919_v21 }
 0x2c2   :  { %v1629_v36 = vpop.permute.xlu0 %1628 }
 0x2c3   :  { %17938 = vst [vmem:[#allocation118_spill] sm:$0xff] %v14375_v31  ;;  %v1691_v61 = vmax.f32 %v1677_v28, 0.0  ;;  %v1664_v41 = vmax.f32 %v14161_v27, %v1629_v36  ;;  %11186 = vmatmul.mubr.msk.bf16.vlgmr.msra.gmra.mrb[140].mxu1 %vm676_vm3, %v2836_v8  ;;  %v17941_v36 = vpack.c.bf16 %v13928_v50, %v13913_v57 }
 0x2c4   :  { %v2339_v12 = vld [vmem:[#allocation2 + $0x168] sm:$0xff]  ;;  %11189 = vmatprep.mubr.msk.bf16.mxu1 %vm12626_vm1, %v17919_v21  ;;  %11152 = vmatpush3.bf16.msra.mxu0 %v12497_v60 }
 0x2c5   :  { %1705 = vst.msk [vmem:[#allocation2 + $0x178] sm:$0xff] %vm676_vm3, %v1691_v61  ;;  %v1678_v43 = vadd.f32 %v14362_v45, %v1664_v41  ;;  %v2351_v29 = vpack.c.bf16 %v2339_v12, %v5772_v23  ;;  %11246 = vmatpush3.bf16.msra.mxu1 %v12498_v19  ;;  %11213 = vmatprep.subr.bf16.mxu0 %v17919_v21  ;;  %v14402_v23 = vld [vmem:[#allocation2 + $0x168] sm:$0xff] }
 0x2c6   :  { %v1631_v27 = vpop.permute.xlu1 %1630  ;;  %11247 = vmatprep.subr.bf16.mxu1 %v17919_v21  ;;  %17939 = vst [vmem:[#allocation121_spill] sm:$0xff] %v14402_v23  ;;  %v14852_v23 = vld [vmem:[#allocation2 + $0xd8] sm:$0xff] }
 0x2c7   :  { %v1692_v6 = vmax.f32 %v1678_v43, 0.0  ;;  %v1665_v37 = vmax.f32 %v14187_v34, %v1631_v27  ;;  %11094 = vmatmul.mubr.msk.bf16.gmra.mrb[116].mxu0 %vm676_vm3, %v2351_v29  ;;  %v17964_v34 = vpack.c.bf16 %v14114_v54, %v14082_v52  ;;  %v12501_v54 = vld [vmem:[%s17753_s3 + $0x88] sm:$0xff]  }
 0x2c8   :  { %11097 = vmatprep.mubr.msk.bf16.mxu0 %vm12626_vm1, %v17919_v21  ;;  %v14404_v60 = vld [vmem:[#allocation2 + $0x170] sm:$0xff] }
 0x2c9   :  { %1706 = vst.msk [vmem:[#allocation2 + $0x180] sm:$0xff] %vm676_vm3, %v1692_v6  ;;  %v1679_v47 = vadd.f32 %v14362_v45, %v1665_v37  ;;  %11248 = vmatpush3.bf16.msra.mxu1 %v12500_v25  ;;  %17940 = vst [vmem:[#allocation117_spill] sm:$0xff] %v14404_v60  ;;  %v2340_v61 = vld [vmem:[#allocation2 + $0x170] sm:$0xff] }
 0x2ca   :  { %v1633_v28 = vpop.permute.xlu0 %1632  ;;  %11309 = vmatprep.subr.bf16.mxu1 %v17919_v21  ;;  %v14418_v29 = vld [vmem:[#allocation2 + $0x169] sm:$0xff] }
 0x2cb   :  { %v1693_v8 = vmax.f32 %v1679_v47, 0.0  ;;  %v1666_v19 = vmax.f32 %v14208_v24, %v1633_v28  ;;  %11190 = vmatmul.mubr.msk.bf16.gmra.mrb[144].mxu1 %vm676_vm3, %v17941_v36  ;;  %17942 = vst [vmem:[#allocation119_spill] sm:$0xff] %v14418_v29  ;;  %v17946_v36 = vpack.c.bf16 %v13966_v55, %v13947_v2 }
 0x2cc   :  { %v2341_v41 = vld [vmem:[#allocation2 + $0x178] sm:$0xff]  ;;  %11193 = vmatprep.mubr.msk.bf16.mxu1 %vm12626_vm1, %v17919_v21 }
 0x2cd   :  { %1707 = vst.msk [vmem:[#allocation2 + $0x188] sm:$0xff] %vm676_vm3, %v1693_v8  ;;  %v1680_v12 = vadd.f32 %v14362_v45, %v1666_v19  ;;  %v2352_v43 = vpack.c.bf16 %v2341_v41, %v2340_v61  ;;  %v14420_v25 = vld [vmem:[#allocation2 + $0x171] sm:$0xff] }
 0x2ce   :  { %17943 = vst [vmem:[#allocation122_spill] sm:$0xff] %v14420_v25  ;;  %v1635_v24 = vpop.permute.xlu1 %1634  ;;  %v14430_v37 = vld [vmem:[#allocation2 + $0x178] sm:$0xff] }
 0x2cf   :  { %v1694_v50 = vmax.f32 %v1680_v12, 0.0  ;;  %v1667_v27 = vmax.f32 %v14222_v18, %v1635_v24  ;;  %11098 = vmatmul.mubr.msk.bf16.gmra.mrb[120].mxu0 %vm676_vm3, %v2352_v43  ;;  %17944 = vst [vmem:[#allocation133_spill] sm:$0xff] %v14430_v37  ;;  %v3818_v25 = vld [vmem:[#allocation2 + $0x119] sm:$0xff] }
 0x2d0   :  { %11101 = vmatprep.mubr.msk.bf16.mxu0 %vm12626_vm1, %v17919_v21  ;;  %v14432_v47 = vld [vmem:[#allocation2 + $0x180] sm:$0xff] }
 0x2d1   :  { %1708 = vst.msk [vmem:[#allocation2 + $0x190] sm:$0xff] %vm676_vm3, %v1694_v50  ;;  %v1681_v6 = vadd.f32 %v14362_v45, %v1667_v27  ;;  %17945 = vst [vmem:[#allocation134_spill] sm:$0xff] %v14432_v47  ;;  %v2342_v61 = vld [vmem:[#allocation2 + $0x180] sm:$0xff] }
 0x2d2   :  { %v1637_v28 = vpop.permute.xlu0 %1636  ;;  %v14445_v24 = vld [vmem:[#allocation2 + $0x179] sm:$0xff] }
 0x2d3   :  { %v1695_v19 = vmax.f32 %v1681_v6, 0.0  ;;  %v1668_v18 = vmax.f32 %v14233_v39, %v1637_v28  ;;  %11194 = vmatmul.mubr.msk.bf16.gmra.mrb[148].mxu1 %vm676_vm3, %v17946_v36  ;;  %17947 = vst [vmem:[#allocation135_spill] sm:$0xff] %v14445_v24 }
 0x2d4   :  { %v2343_v41 = vld [vmem:[#allocation2 + $0x188] sm:$0xff]  ;;  %11197 = vmatprep.mubr.msk.bf16.mxu1 %vm12626_vm1, %v17919_v21 }
 0x2d5   :  { %1709 = vst.msk [vmem:[#allocation2 + $0x198] sm:$0xff] %vm676_vm3, %v1695_v19  ;;  %v1682_v12 = vadd.f32 %v14362_v45, %v1668_v18  ;;  %v2353_v43 = vpack.c.bf16 %v2343_v41, %v2342_v61  ;;  %v14447_v50 = vld [vmem:[#allocation2 + $0x181] sm:$0xff]  ;;  %v17951_v41 = vpack.c.bf16 %v13998_v62, %v13979_v49 }
 0x2d6   :  { %17948 = vst [vmem:[#allocation136_spill] sm:$0xff] %v14447_v50  ;;  %v1639_v39 = vpop.permute.xlu1 %1638  ;;  %v14457_v28 = vld [vmem:[#allocation2 + $0x188] sm:$0xff] }
 0x2d7   :  { %v1696_v55 = vmax.f32 %v1682_v12, 0.0  ;;  %v1669_v27 = vmax.f32 %v14247_v30, %v1639_v39  ;;  %11102 = vmatmul.mubr.msk.bf16.gmra.mrb[124].mxu0 %vm676_vm3, %v2353_v43  ;;  %17949 = vst [vmem:[#allocation137_spill] sm:$0xff] %v14457_v28  ;;  %v3822_v28 = vld [vmem:[#allocation2 + $0x139] sm:$0xff] }
 0x2d8   :  { %11105 = vmatprep.mubr.msk.bf16.mxu0 %vm12626_vm1, %v17919_v21  ;;  %v14459_v19 = vld [vmem:[#allocation2 + $0x190] sm:$0xff] }
 0x2d9   :  { %1710 = vst.msk [vmem:[#allocation2 + $0x1a0] sm:$0xff] %vm676_vm3, %v1696_v55  ;;  %v1683_v6 = vadd.f32 %v14362_v45, %v1669_v27  ;;  %17950 = vst [vmem:[#allocation138_spill] sm:$0xff] %v14459_v19  ;;  %v2344_v12 = vld [vmem:[#allocation2 + $0x190] sm:$0xff] }
 0x2da   :  { %v1641_v18 = vpop.permute.xlu0 %1640  ;;  %v14472_v27 = vld [vmem:[#allocation2 + $0x189] sm:$0xff] }
 0x2db   :  { %v1697_v61 = vmax.f32 %v1683_v6, 0.0  ;;  %v1670_v30 = vmax.f32 %v14258_v22, %v1641_v18  ;;  %11198 = vmatmul.mubr.msk.bf16.gmra.mrb[152].mxu1 %vm676_vm3, %v17951_v41  ;;  %17952 = vst [vmem:[#allocation139_spill] sm:$0xff] %v14472_v27 }
 0x2dc   :  { %v2345_v43 = vld [vmem:[#allocation2 + $0x198] sm:$0xff]  ;;  %11201 = vmatprep.mubr.msk.bf16.mxu1 %vm12626_vm1, %v17919_v21 }
 0x2dd   :  { %1711 = vst.msk [vmem:[#allocation2 + $0x1a8] sm:$0xff] %vm676_vm3, %v1697_v61  ;;  %v1684_v39 = vadd.f32 %v14362_v45, %v1670_v30  ;;  %v2354_v55 = vpack.c.bf16 %v2345_v43, %v2344_v12  ;;  %v14474_v6 = vld [vmem:[#allocation2 + $0x191] sm:$0xff] }
 0x2de   :  { %17953 = vst [vmem:[#allocation140_spill] sm:$0xff] %v14474_v6  ;;  %v1643_v22 = vpop.permute.xlu1 %1642  ;;  %v14484_v30 = vld [vmem:[#allocation2 + $0x198] sm:$0xff] }
 0x2df   :  { %v1698_v62 = vmax.f32 %v1684_v39, 0.0  ;;  %v1671_v18 = vmax.f32 %v14272_v20, %v1643_v22  ;;  %11106 = vmatmul.mubr.msk.bf16.gmra.mrb[128].mxu0 %vm676_vm3, %v2354_v55  ;;  %17954 = vst [vmem:[#allocation141_spill] sm:$0xff] %v14484_v30  ;;  %v17956_v20 = vpack.c.bf16 %v14030_v10, %v14011_v7  ;;  %v14821_v30 = vld [vmem:[#allocation2 + $0xb0] sm:$0xff] }
 0x2e0   :  { %11109 = vmatprep.mubr.msk.bf16.mxu0 %vm12626_vm1, %v17919_v21  ;;  %v14486_v41 = vld [vmem:[#allocation2 + $0x1a0] sm:$0xff] }
 0x2e1   :  { %1712 = vst.msk [vmem:[#allocation2 + $0x1b0] sm:$0xff] %vm676_vm3, %v1698_v62  ;;  %v1685_v61 = vadd.f32 %v14362_v45, %v1671_v18  ;;  %17955 = vst [vmem:[#allocation142_spill] sm:$0xff] %v14486_v41  ;;  %v2346_v39 = vld [vmem:[#allocation2 + $0x1a0] sm:$0xff]  ;;  %v3820_v41 = vld [vmem:[#allocation2 + $0x129] sm:$0xff] }
 0x2e2   :  { %v14497_v62 = vld [vmem:[#allocation2 + $0x199] sm:$0xff] }
 0x2e3   :  { %v1699_v43 = vmax.f32 %v1685_v61, 0.0  ;;  %11202 = vmatmul.mubr.msk.bf16.gmra.mrb[156].mxu1 %vm676_vm3, %v17956_v20  ;;  %17957 = vst [vmem:[#allocation143_spill] sm:$0xff] %v14497_v62  ;;  %v17961_v61 = vpack.c.bf16 %v14067_v51, %v14045_v48 }
 0x2e4   :  { %v2347_v55 = vld [vmem:[#allocation2 + $0x1a8] sm:$0xff]  ;;  %11205 = vmatprep.mubr.msk.bf16.mxu1 %vm12626_vm1, %v17919_v21 }
 0x2e5   :  { %1713 = vst.msk [vmem:[#allocation2 + $0x1b8] sm:$0xff] %vm676_vm3, %v1699_v43  ;;  %v1835_v45 = vpop.f32.mrb[56].mxu0  ;;  %v2355_v22 = vpack.c.bf16 %v2347_v55, %v2346_v39  ;;  %v14499_v18 = vld [vmem:[#allocation2 + $0x1a1] sm:$0xff] }
 0x2e6   :  { %17958 = vst [vmem:[#allocation144_spill] sm:$0xff] %v14499_v18  ;;  %v10963_v49 = vpop.f32.mrb[57].mxu0  ;;  %v14506_v2 = vld [vmem:[#allocation2 + $0x1a8] sm:$0xff] }
 0x2e7   :  { %v1838_v7 = vpop.f32.mrb[58].mxu0  ;;  %11110 = vmatmul.mubr.msk.bf16.gmra.mrb[132].mxu0 %vm676_vm3, %v2355_v22  ;;  %17959 = vst [vmem:[#allocation145_spill] sm:$0xff] %v14506_v2  ;;  %v2664_v18 = vld [vmem:[#allocation2 + $0x28] sm:$0xff] }
 0x2e8   :  { %v10964_v10 = vpop.f32.mrb[59].mxu0  ;;  %11113 = vmatprep.mubr.msk.bf16.mxu0 %vm12626_vm1, %v17919_v21  ;;  %v14508_v43 = vld [vmem:[#allocation2 + $0x1b0] sm:$0xff] }
 0x2e9   :  { %17960 = vst [vmem:[#allocation146_spill] sm:$0xff] %v14508_v43  ;;  %v2348_v12 = vld [vmem:[#allocation2 + $0x1b0] sm:$0xff] }
 0x2ea   :  { %v1957_v20 = vpop.f32.mrb[56].mxu1 }
 0x2eb   :  { %v14510_v39 = vadd.f32 %v1957_v20, %v1835_v45  ;;  %v10995_v55 = vpop.f32.mrb[57].mxu1  ;;  %11206 = vmatmul.mubr.msk.bf16.gmra.mrb[160].mxu1 %vm676_vm3, %v17961_v61  ;;  %v14522_v20 = vld [vmem:[#allocation2 + $0x1a9] sm:$0xff] }
 0x2ec   :  { %v1960_v57 = vpop.f32.mrb[58].mxu1  ;;  %v2349_v36 = vld [vmem:[#allocation2 + $0x1b8] sm:$0xff]  ;;  %11209 = vmatprep.mubr.msk.bf16.mxu1 %vm12626_vm1, %v17919_v21  ;;  %17962 = vst [vmem:[#allocation147_spill] sm:$0xff] %v14522_v20  ;;  %v12499_v20 = vld [vmem:[%s17753_s3 + $0x80] sm:$0xff]  }
 0x2ed   :  { %v14518_v22 = vadd.f32 %v1960_v57, %v1838_v7  ;;  %v10996_v10 = vpop.f32.mrb[59].mxu1  ;;  %v2356_v45 = vpack.c.bf16 %v2349_v36, %v2348_v12  ;;  %v14524_v55 = vld [vmem:[#allocation2 + $0x1b1] sm:$0xff] }
 0x2ee   :  { %17963 = vst [vmem:[#allocation148_spill] sm:$0xff] %v14524_v55  ;;  %v1843_v49 = vpop.f32.mrb[60].mxu0  ;;  %v2661_v12 = vld [vmem:[#allocation2 + $0x10] sm:$0xff]  ;;  %v2662_v55 = vld [vmem:[#allocation2 + $0x18] sm:$0xff] }
 0x2ef   :  { %v10967_v48 = vpop.f32.mrb[61].mxu0  ;;  %11114 = vmatmul.mubr.msk.bf16.gmra.mrb[136].mxu0 %vm676_vm3, %v2356_v45  ;;  %v2660_v45 = vld [vmem:[#allocation2 + $0x8] sm:$0xff] }
 0x2f0   :  { %v1846_v51 = vpop.f32.mrb[62].mxu0  ;;  %11153 = vmatprep.mubr.msk.bf16.mxu0 %vm12626_vm1, %v17919_v21 }
 0x2f1   :  { %v10968_v57 = vpop.f32.mrb[63].mxu0 }
 0x2f3   :  { %v1965_v61 = vpop.f32.mrb[60].mxu1  ;;  %11210 = vmatmul.mubr.msk.bf16.gmra.mrb[164].mxu1 %vm676_vm3, %v17964_v34 }
 0x2f4   :  { %v14531_v7 = vadd.f32 %v1965_v61, %v1843_v49  ;;  %v10999_v36 = vpop.f32.mrb[61].mxu1  ;;  %11249 = vmatprep.mubr.msk.bf16.mxu1 %vm12626_vm1, %v17919_v21  ;;  %v2674_v49 = vpack.c.bf16 %v2661_v12, %v2660_v45  ;;  %v14544_v61 = vld [vmem:[#allocation2 + $0x9] sm:$0xff]  ;;  %v2663_v45 = vld [vmem:[#allocation2 + $0x20] sm:$0xff] }
 0x2f5   :  { %v1968_v10 = vpop.f32.mrb[62].mxu1  ;;  %v3234_v12 = vpack.c.bf16 %v14544_v61, %v14122_v46  ;;  %v2675_v46 = vpack.c.bf16 %v2663_v45, %v2662_v55 }
 0x2f6   :  { %v14537_v8 = vadd.f32 %v1968_v10, %v1846_v51  ;;  %v11000_v48 = vpop.f32.mrb[63].mxu1  ;;  %v1851_v57 = vpop.f32.mrb[64].mxu0  ;;  %v12502_v10 = vld [vmem:[%s17753_s3 + $0x20] sm:$0xff]  }
 0x2f7   :  { %v10971_v36 = vpop.f32.mrb[65].mxu0  ;;  %11154 = vmatmul.mubr.msk.bf16.vlgmr.msra.gmra.mrb[140].mxu0 %vm676_vm3, %v2674_v49 }
 0x2f8   :  { %v1854_v52 = vpop.f32.mrb[66].mxu0  ;;  %11214 = vmatpush3.bf16.msra.mxu0 %v12499_v20  ;;  %11157 = vmatprep.mubr.msk.bf16.mxu0 %vm12626_vm1, %v17919_v21 }
 0x2f9   :  { %v10972_v34 = vpop.f32.mrb[67].mxu0  ;;  %11215 = vmatprep.subr.bf16.mxu0 %v17919_v21 }
 0x2fb   :  { %v1973_v51 = vpop.f32.mrb[64].mxu1  ;;  %11250 = vmatmul.mubr.msk.bf16.vlgmr.msra.gmra.mrb[168].mxu1 %vm676_vm3, %v3234_v12 }
 0x2fc   :  { %v14558_v48 = vadd.f32 %v1973_v51, %v1851_v57  ;;  %v11003_v20 = vpop.f32.mrb[65].mxu1  ;;  %11253 = vmatprep.mubr.msk.bf16.mxu1 %vm12626_vm1, %v17919_v21  ;;  %11216 = vmatpush3.bf16.msra.mxu0 %v12501_v54  ;;  %v12504_v57 = vld [vmem:[%s17753_s3 + $0x28] sm:$0xff]  }
 0x2fd   :  { %v1976_v49 = vpop.f32.mrb[66].mxu1  ;;  %11310 = vmatpush3.bf16.msra.mxu1 %v12502_v10  ;;  %11277 = vmatprep.subr.bf16.mxu0 %v17919_v21  ;;  %v14571_v20 = vld [vmem:[#allocation2 + $0x11] sm:$0xff] }
 0x2fe   :  { %v14561_v36 = vadd.f32 %v1976_v49, %v1854_v52  ;;  %v11004_v34 = vpop.f32.mrb[67].mxu1  ;;  %v1859_v51 = vpop.f32.mrb[68].mxu0  ;;  %11311 = vmatprep.subr.bf16.mxu1 %v17919_v21  ;;  %v3235_v10 = vpack.c.bf16 %v14166_v56, %v14571_v20 }
 0x2ff   :  { %v10975_v12 = vpop.f32.mrb[69].mxu0  ;;  %11158 = vmatmul.mubr.msk.bf16.gmra.mrb[144].mxu0 %vm676_vm3, %v2675_v46  ;;  %v2665_v34 = vld [vmem:[#allocation2 + $0x30] sm:$0xff] }
 0x300   :  { %v1862_v52 = vpop.f32.mrb[70].mxu0  ;;  %11161 = vmatprep.mubr.msk.bf16.mxu0 %vm12626_vm1, %v17919_v21 }
 0x301   :  { %v10976_v55 = vpop.f32.mrb[71].mxu0  ;;  %11312 = vmatpush3.bf16.msra.mxu1 %v12504_v57 }
 0x302   :  { %11373 = vmatprep.subr.bf16.mxu1 %v17919_v21  ;;  %v2676_v55 = vpack.c.bf16 %v2665_v34, %v2664_v18  ;;  %v2666_v34 = vld [vmem:[#allocation2 + $0x38] sm:$0xff] }
 0x303   :  { %v1981_v54 = vpop.f32.mrb[68].mxu1  ;;  %11254 = vmatmul.mubr.msk.bf16.gmra.mrb[172].mxu1 %vm676_vm3, %v3235_v10  ;;  %v2667_v10 = vld [vmem:[#allocation2 + $0x40] sm:$0xff] }
 0x304   :  { %v14577_v45 = vadd.f32 %v1981_v54, %v1859_v51  ;;  %v11007_v49 = vpop.f32.mrb[69].mxu1  ;;  %11257 = vmatprep.mubr.msk.bf16.mxu1 %vm12626_vm1, %v17919_v21 }
 0x305   :  { %v1984_v12 = vpop.f32.mrb[70].mxu1 }
 0x306   :  { %v14581_v46 = vadd.f32 %v1984_v12, %v1862_v52  ;;  %v11008_v62 = vpop.f32.mrb[71].mxu1  ;;  %v1867_v27 = vpop.f32.mrb[72].mxu0 }
 0x307   :  { %v10979_v56 = vpop.f32.mrb[73].mxu0  ;;  %11162 = vmatmul.mubr.msk.bf16.gmra.mrb[148].mxu0 %vm676_vm3, %v2676_v55  ;;  %v2677_v55 = vpack.c.bf16 %v2667_v10, %v2666_v34 }
 0x308   :  { %v1870_v57 = vpop.f32.mrb[74].mxu0  ;;  %11165 = vmatprep.mubr.msk.bf16.mxu0 %vm12626_vm1, %v17919_v21 }
 0x309   :  { %v10980_v51 = vpop.f32.mrb[75].mxu0 }
 0x30b   :  { %v1989_v54 = vpop.f32.mrb[72].mxu1  ;;  %11258 = vmatmul.mubr.msk.bf16.gmra.mrb[176].mxu1 %vm676_vm3, %v14218_v17 }
 0x30c   :  { %v14588_v49 = vadd.f32 %v1989_v54, %v1867_v27  ;;  %v11011_v52 = vpop.f32.mrb[73].mxu1  ;;  %11261 = vmatprep.mubr.msk.bf16.mxu1 %vm12626_vm1, %v17919_v21 }
 0x30d   :  { %v1992_v62 = vpop.f32.mrb[74].mxu1 }
 0x30e   :  { %v14592_v12 = vadd.f32 %v1992_v62, %v1870_v57  ;;  %v11012_v18 = vpop.f32.mrb[75].mxu1  ;;  %v1875_v56 = vpop.f32.mrb[76].mxu0  ;;  %v2669_v57 = vld [vmem:[#allocation2 + $0x50] sm:$0xff] }
 0x30f   :  { %v10983_v6 = vpop.f32.mrb[77].mxu0  ;;  %11166 = vmatmul.mubr.msk.bf16.gmra.mrb[152].mxu0 %vm676_vm3, %v2677_v55 }
 0x310   :  { %v1878_v27 = vpop.f32.mrb[78].mxu0  ;;  %11169 = vmatprep.mubr.msk.bf16.mxu0 %vm12626_vm1, %v17919_v21  ;;  %v2668_v6 = vld [vmem:[#allocation2 + $0x48] sm:$0xff] }
 0x311   :  { %v10984_v51 = vpop.f32.mrb[79].mxu0  ;;  %v2678_v34 = vpack.c.bf16 %v2669_v57, %v2668_v6 }
 0x313   :  { %v1997_v54 = vpop.f32.mrb[76].mxu1  ;;  %11262 = vmatmul.mubr.msk.bf16.gmra.mrb[180].mxu1 %vm676_vm3, %v14243_v11 }
 0x314   :  { %v14599_v52 = vadd.f32 %v1997_v54, %v1875_v56  ;;  %v11015_v17 = vpop.f32.mrb[77].mxu1  ;;  %11265 = vmatprep.mubr.msk.bf16.mxu1 %vm12626_vm1, %v17919_v21 }
 0x315   :  { %v2000_v62 = vpop.f32.mrb[78].mxu1 }
 0x316   :  { %v14603_v18 = vadd.f32 %v2000_v62, %v1878_v27  ;;  %v11016_v10 = vpop.f32.mrb[79].mxu1  ;;  %v1883_v55 = vpop.f32.mrb[80].mxu0  ;;  %v2671_v27 = vld [vmem:[#allocation2 + $0x60] sm:$0xff] }
 0x317   :  { %v10987_v24 = vpop.f32.mrb[81].mxu0  ;;  %11170 = vmatmul.mubr.msk.bf16.gmra.mrb[156].mxu0 %vm676_vm3, %v2678_v34 }
 0x318   :  { %v1886_v56 = vpop.f32.mrb[82].mxu0  ;;  %11173 = vmatprep.mubr.msk.bf16.mxu0 %vm12626_vm1, %v17919_v21  ;;  %v2670_v24 = vld [vmem:[#allocation2 + $0x58] sm:$0xff] }
 0x319   :  { %v10988_v51 = vpop.f32.mrb[83].mxu0  ;;  %v2679_v6 = vpack.c.bf16 %v2671_v27, %v2670_v24  ;;  %v12555_v27 = vld [vmem:[#allocation2 + $0x70] sm:$0xff] }
 0x31b   :  { %v2005_v54 = vpop.f32.mrb[80].mxu1  ;;  %11266 = vmatmul.mubr.msk.bf16.gmra.mrb[184].mxu1 %vm676_vm3, %v14268_v40 }
 0x31c   :  { %v14610_v17 = vadd.f32 %v2005_v54, %v1883_v55  ;;  %v11019_v11 = vpop.f32.mrb[81].mxu1  ;;  %11269 = vmatprep.mubr.msk.bf16.mxu1 %vm12626_vm1, %v17919_v21 }
 0x31d   :  { %v2008_v62 = vpop.f32.mrb[82].mxu1 }
 0x31e   :  { %v14614_v10 = vadd.f32 %v2008_v62, %v1886_v56  ;;  %v11020_v57 = vpop.f32.mrb[83].mxu1  ;;  %v2105_v34 = vpop.f32.mrb[84].mxu0 }
 0x31f   :  { %v2160_v51 = vadd.f32 %v2105_v34, %v14510_v39  ;;  %v11027_v50 = vpop.f32.mrb[85].mxu0  ;;  %11174 = vmatmul.mubr.msk.bf16.gmra.mrb[160].mxu0 %vm676_vm3, %v2679_v6  ;;  %v2672_v57 = vld [vmem:[#allocation2 + $0x68] sm:$0xff] }
 0x320   :  { %v2108_v55 = vpop.f32.mrb[86].mxu0  ;;  %11177 = vmatprep.mubr.msk.bf16.mxu0 %vm12626_vm1, %v17919_v21  ;;  %v2680_v24 = vpack.c.bf16 %v12555_v27, %v2672_v57  ;;  %v12503_v57 = vld [vmem:[%s17753_s3] sm:$0xff]  }
 0x321   :  { %v2161_v40 = vadd.f32 %v2108_v55, %v14518_v22  ;;  %v11028_v56 = vpop.f32.mrb[87].mxu0  ;;  %v3490_v27 = vld [vmem:[#allocation2 + $0x79] sm:$0xff] }
 0x323   :  { %v2267_v54 = vpop.f32.mrb[84].mxu1  ;;  %11270 = vmatmul.mubr.msk.bf16.gmra.mrb[188].mxu1 %vm676_vm3, %v14288_v32 }
 0x324   :  { %v14623_v11 = vadd.f32 %v2267_v54, %v2160_v51  ;;  %v11059_v62 = vpop.f32.mrb[85].mxu1  ;;  %11273 = vmatprep.mubr.msk.bf16.mxu1 %vm12626_vm1, %v17919_v21 }
 0x325   :  { %v2270_v29 = vpop.f32.mrb[86].mxu1 }
 0x326   :  { %v14627_v39 = vadd.f32 %v2270_v29, %v2161_v40  ;;  %v11060_v50 = vpop.f32.mrb[87].mxu1  ;;  %v2113_v6 = vpop.f32.mrb[88].mxu0 }
 0x327   :  { %v2162_v22 = vadd.f32 %v2113_v6, %v14531_v7  ;;  %v11031_v34 = vpop.f32.mrb[89].mxu0  ;;  %11178 = vmatmul.mubr.msk.bf16.gmra.mrb[164].mxu0 %vm676_vm3, %v2680_v24 }
 0x328   :  { %v2116_v51 = vpop.f32.mrb[90].mxu0  ;;  %11217 = vmatprep.mubr.msk.bf16.mxu0 %vm12626_vm1, %v17919_v21  ;;  %v12505_v34 = vld [vmem:[%s17753_s3 + $0x8] sm:$0xff]  }
 0x329   :  { %v2163_v32 = vadd.f32 %v2116_v51, %v14537_v8  ;;  %v11032_v29 = vpop.f32.mrb[91].mxu0  ;;  %v2998_v8 = vpack.c.bf16 %v14571_v20, %v14544_v61 }
 0x32b   :  { %v2275_v55 = vpop.f32.mrb[88].mxu1  ;;  %11274 = vmatmul.mubr.msk.bf16.gmra.mrb[192].mxu1 %vm676_vm3, %v14298_v16 }
 0x32c   :  { %v14636_v40 = vadd.f32 %v2275_v55, %v2162_v22  ;;  %v11063_v56 = vpop.f32.mrb[89].mxu1  ;;  %11313 = vmatprep.mubr.msk.bf16.mxu1 %vm12626_vm1, %v17919_v21  ;;  %v14651_v22 = vld [vmem:[#allocation2 + $0x71] sm:$0xff] }
 0x32d   :  { %v2278_v54 = vpop.f32.mrb[90].mxu1  ;;  %v2987_v56 = vld [vmem:[#allocation2 + $0x21] sm:$0xff] }
 0x32e   :  { %v14640_v62 = vadd.f32 %v2278_v54, %v2163_v32  ;;  %v11064_v7 = vpop.f32.mrb[91].mxu1  ;;  %v2121_v50 = vpop.f32.mrb[92].mxu0  ;;  %v12506_v32 = vld [vmem:[%s17753_s3 + $0x40] sm:$0xff]  }
 0x32f   :  { %v2164_v24 = vadd.f32 %v2121_v50, %v14558_v48  ;;  %v11035_v6 = vpop.f32.mrb[93].mxu0  ;;  %11218 = vmatmul.mubr.msk.bf16.vlgmr.msra.gmra.mrb[168].mxu0 %vm676_vm3, %v2998_v8  ;;  %v3503_v48 = vpack.c.bf16 %v3490_v27, %v14651_v22  ;;  %v12508_v50 = vld [vmem:[%s17753_s3 + $0x48] sm:$0xff]  }
 0x330   :  { %v2124_v16 = vpop.f32.mrb[94].mxu0  ;;  %11278 = vmatpush3.bf16.msra.mxu0 %v12503_v57  ;;  %11221 = vmatprep.mubr.msk.bf16.mxu0 %vm12626_vm1, %v17919_v21  ;;  %v2986_v57 = vld [vmem:[#allocation2 + $0x19] sm:$0xff] }
 0x331   :  { %v2165_v61 = vadd.f32 %v2124_v16, %v14561_v36  ;;  %v11036_v20 = vpop.f32.mrb[95].mxu0  ;;  %11279 = vmatprep.subr.bf16.mxu0 %v17919_v21  ;;  %v2999_v8 = vpack.c.bf16 %v2987_v56, %v2986_v57 }
 0x333   :  { %v2283_v51 = vpop.f32.mrb[92].mxu1  ;;  %11314 = vmatmul.mubr.msk.bf16.vlgmr.msra.gmra.mrb[196].mxu1 %vm676_vm3, %v3503_v48  ;;  %v12556_v48 = vld [vmem:[#allocation2 + $0x89] sm:$0xff] }
 0x334   :  { %v14664_v29 = vadd.f32 %v2283_v51, %v2164_v24  ;;  %v11067_v55 = vpop.f32.mrb[93].mxu1  ;;  %11317 = vmatprep.mubr.msk.bf16.mxu1 %vm12626_vm1, %v17919_v21  ;;  %11280 = vmatpush3.bf16.msra.mxu0 %v12505_v34 }
 0x335   :  { %v2286_v54 = vpop.f32.mrb[94].mxu1  ;;  %11374 = vmatpush3.bf16.msra.mxu1 %v12506_v32  ;;  %11341 = vmatprep.subr.bf16.mxu0 %v17919_v21 }
 0x336   :  { %v14667_v7 = vadd.f32 %v2286_v54, %v2165_v61  ;;  %v11068_v36 = vpop.f32.mrb[95].mxu1  ;;  %v2129_v27 = vpop.f32.mrb[96].mxu0  ;;  %11375 = vmatprep.subr.bf16.mxu1 %v17919_v21  ;;  %v3491_v61 = vld [vmem:[#allocation2 + $0x81] sm:$0xff]  ;;  %v2989_v54 = vld [vmem:[#allocation2 + $0x31] sm:$0xff] }
 0x337   :  { %v2166_v24 = vadd.f32 %v2129_v27, %v14577_v45  ;;  %v11039_v6 = vpop.f32.mrb[97].mxu0  ;;  %11222 = vmatmul.mubr.msk.bf16.gmra.mrb[172].mxu0 %vm676_vm3, %v2999_v8  ;;  %v3504_v32 = vpack.c.bf16 %v12556_v48, %v3491_v61  ;;  %v2988_v8 = vld [vmem:[#allocation2 + $0x29] sm:$0xff] }
 0x338   :  { %v2132_v16 = vpop.f32.mrb[98].mxu0  ;;  %11225 = vmatprep.mubr.msk.bf16.mxu0 %vm12626_vm1, %v17919_v21 }
 0x339   :  { %v2167_v34 = vadd.f32 %v2132_v16, %v14581_v46  ;;  %v11040_v20 = vpop.f32.mrb[99].mxu0  ;;  %11376 = vmatpush3.bf16.msra.mxu1 %v12508_v50  ;;  %v3000_v46 = vpack.c.bf16 %v2989_v54, %v2988_v8  ;;  %v2991_v54 = vld [vmem:[#allocation2 + $0x41] sm:$0xff]  ;;  %v2990_v8 = vld [vmem:[#allocation2 + $0x39] sm:$0xff] }
 0x33a   :  { %11437 = vmatprep.subr.bf16.mxu1 %v17919_v21  ;;  %v12557_v20 = vld [vmem:[#allocation2 + $0x91] sm:$0xff] }
 0x33b   :  { %v2291_v51 = vpop.f32.mrb[96].mxu1  ;;  %11318 = vmatmul.mubr.msk.bf16.gmra.mrb[200].mxu1 %vm676_vm3, %v3504_v32 }
 0x33c   :  { %v14681_v55 = vadd.f32 %v2291_v51, %v2166_v24  ;;  %v11071_v56 = vpop.f32.mrb[97].mxu1  ;;  %11321 = vmatprep.mubr.msk.bf16.mxu1 %vm12626_vm1, %v17919_v21  ;;  %v12558_v51 = vld [vmem:[#allocation2 + $0x99] sm:$0xff] }
 0x33d   :  { %v2294_v45 = vpop.f32.mrb[98].mxu1  ;;  %v3505_v48 = vpack.c.bf16 %v12558_v51, %v12557_v20  ;;  %v12560_v20 = vld [vmem:[#allocation2 + $0xa9] sm:$0xff] }
 0x33e   :  { %v14685_v36 = vadd.f32 %v2294_v45, %v2167_v34  ;;  %v11072_v57 = vpop.f32.mrb[99].mxu1  ;;  %v2137_v27 = vpop.f32.mrb[100].mxu0 }
 0x33f   :  { %v2168_v50 = vadd.f32 %v2137_v27, %v14588_v49  ;;  %v11043_v24 = vpop.f32.mrb[101].mxu0  ;;  %11226 = vmatmul.mubr.msk.bf16.gmra.mrb[176].mxu0 %vm676_vm3, %v3000_v46 }
 0x340   :  { %v2140_v6 = vpop.f32.mrb[102].mxu0  ;;  %11229 = vmatprep.mubr.msk.bf16.mxu0 %vm12626_vm1, %v17919_v21 }
 0x341   :  { %v2169_v16 = vadd.f32 %v2140_v6, %v14592_v12  ;;  %v11044_v61 = vpop.f32.mrb[103].mxu0  ;;  %v3001_v12 = vpack.c.bf16 %v2991_v54, %v2990_v8  ;;  %v2993_v54 = vld [vmem:[#allocation2 + $0x51] sm:$0xff]  ;;  %v2992_v8 = vld [vmem:[#allocation2 + $0x49] sm:$0xff] }
 0x343   :  { %v2299_v34 = vpop.f32.mrb[100].mxu1  ;;  %11322 = vmatmul.mubr.msk.bf16.gmra.mrb[204].mxu1 %vm676_vm3, %v3505_v48 }
 0x344   :  { %v14694_v32 = vadd.f32 %v2299_v34, %v2168_v50  ;;  %v11075_v56 = vpop.f32.mrb[101].mxu1  ;;  %11325 = vmatprep.mubr.msk.bf16.mxu1 %vm12626_vm1, %v17919_v21  ;;  %v12559_v34 = vld [vmem:[#allocation2 + $0xa1] sm:$0xff] }
 0x345   :  { %v2302_v45 = vpop.f32.mrb[102].mxu1  ;;  %v3506_v51 = vpack.c.bf16 %v12560_v20, %v12559_v34  ;;  %v12562_v34 = vld [vmem:[#allocation2 + $0xb9] sm:$0xff] }
 0x346   :  { %v14697_v49 = vadd.f32 %v2302_v45, %v2169_v16  ;;  %v11076_v57 = vpop.f32.mrb[103].mxu1  ;;  %v2145_v46 = vpop.f32.mrb[104].mxu0 }
 0x347   :  { %v2170_v27 = vadd.f32 %v2145_v46, %v14599_v52  ;;  %v11047_v24 = vpop.f32.mrb[105].mxu0  ;;  %11230 = vmatmul.mubr.msk.bf16.gmra.mrb[180].mxu0 %vm676_vm3, %v3001_v12 }
 0x348   :  { %v2148_v50 = vpop.f32.mrb[106].mxu0  ;;  %11233 = vmatprep.mubr.msk.bf16.mxu0 %vm12626_vm1, %v17919_v21 }
 0x349   :  { %v2171_v6 = vadd.f32 %v2148_v50, %v14603_v18  ;;  %v11048_v16 = vpop.f32.mrb[107].mxu0  ;;  %v3002_v18 = vpack.c.bf16 %v2993_v54, %v2992_v8  ;;  %v2995_v54 = vld [vmem:[#allocation2 + $0x61] sm:$0xff]  ;;  %v2994_v8 = vld [vmem:[#allocation2 + $0x59] sm:$0xff] }
 0x34b   :  { %v2307_v61 = vpop.f32.mrb[104].mxu1  ;;  %11326 = vmatmul.mubr.msk.bf16.gmra.mrb[208].mxu1 %vm676_vm3, %v3506_v51 }
 0x34c   :  { %v14706_v48 = vadd.f32 %v2307_v61, %v2170_v27  ;;  %v11079_v56 = vpop.f32.mrb[105].mxu1  ;;  %11329 = vmatprep.mubr.msk.bf16.mxu1 %vm12626_vm1, %v17919_v21  ;;  %v12561_v61 = vld [vmem:[#allocation2 + $0xb1] sm:$0xff] }
 0x34d   :  { %v2310_v45 = vpop.f32.mrb[106].mxu1  ;;  %v3507_v20 = vpack.c.bf16 %v12562_v34, %v12561_v61 }
 0x34e   :  { %v14709_v52 = vadd.f32 %v2310_v45, %v2171_v6  ;;  %v11080_v57 = vpop.f32.mrb[107].mxu1  ;;  %v2153_v12 = vpop.f32.mrb[108].mxu0 }
 0x34f   :  { %v2172_v46 = vadd.f32 %v2153_v12, %v14610_v17  ;;  %v11051_v24 = vpop.f32.mrb[109].mxu0  ;;  %11234 = vmatmul.mubr.msk.bf16.gmra.mrb[184].mxu0 %vm676_vm3, %v3002_v18  ;;  %v12563_v12 = vld [vmem:[#allocation2 + $0xc1] sm:$0xff] }
 0x350   :  { %v2156_v27 = vpop.f32.mrb[110].mxu0  ;;  %11237 = vmatprep.mubr.msk.bf16.mxu0 %vm12626_vm1, %v17919_v21 }
 0x351   :  { %v2173_v50 = vadd.f32 %v2156_v27, %v14614_v10  ;;  %v11052_v6 = vpop.f32.mrb[111].mxu0  ;;  %v3003_v10 = vpack.c.bf16 %v2995_v54, %v2994_v8 }
 0x352   :  { %v2996_v6 = vld [vmem:[#allocation2 + $0x69] sm:$0xff] }
 0x353   :  { %v2315_v16 = vpop.f32.mrb[108].mxu1  ;;  %11330 = vmatmul.mubr.msk.bf16.gmra.mrb[212].mxu1 %vm676_vm3, %v3507_v20  ;;  %v3004_v61 = vpack.c.bf16 %v14651_v22, %v2996_v6  ;;  %v12565_v20 = vld [vmem:[#allocation2 + $0xd1] sm:$0xff] }
 0x354   :  { %v14718_v51 = vadd.f32 %v2315_v16, %v2172_v46  ;;  %v11083_v56 = vpop.f32.mrb[109].mxu1  ;;  %11333 = vmatprep.mubr.msk.bf16.mxu1 %vm12626_vm1, %v17919_v21  ;;  %v12564_v46 = vld [vmem:[#allocation2 + $0xc9] sm:$0xff] }
 0x355   :  { %v2318_v45 = vpop.f32.mrb[110].mxu1  ;;  %v3508_v24 = vpack.c.bf16 %v12564_v46, %v12563_v12  ;;  %v12566_v56 = vld [vmem:[#allocation2 + $0xd9] sm:$0xff]  ;;  %v12507_v22 = vld [vmem:[%s17753_s3 + $0x30] sm:$0xff]   ;;  %v17965_v12 = vpack.c.bf16 %v13869_v4, %v13871_v58 }
 0x356   :  { %v14721_v17 = vadd.f32 %v2318_v45, %v2173_v50  ;;  %v11084_v57 = vpop.f32.mrb[111].mxu1  ;;  %v3509_v54 = vpack.c.bf16 %v12566_v56, %v12565_v20  ;;  %v12509_v46 = vld [vmem:[%s17753_s3 + $0x38] sm:$0xff]   ;;  %v12510_v4 = vld [vmem:[%s17753_s3 + $0x60] sm:$0xff]  }
 0x357   :  { %11238 = vmatmul.mubr.msk.bf16.gmra.mrb[188].mxu0 %vm676_vm3, %v3003_v10  ;;  %v3812_v10 = vld [vmem:[#allocation2 + $0xe9] sm:$0xff] }
 0x358   :  { %11241 = vmatprep.mubr.msk.bf16.mxu0 %vm12626_vm1, %v17919_v21 }
 0x35b   :  { %v14728_v18 = vpop.f32.mrb[112].mxu1  ;;  %11334 = vmatmul.mubr.msk.bf16.gmra.mrb[216].mxu1 %vm676_vm3, %v3508_v24 }
 0x35c   :  { %v11123_v27 = vpop.f32.mrb[113].mxu1  ;;  %11337 = vmatprep.mubr.msk.bf16.mxu1 %vm12626_vm1, %v17919_v21 }
 0x35d   :  { %v14730_v50 = vpop.f32.mrb[114].mxu1  ;;  %v12567_v27 = vld [vmem:[#allocation2 + $0xe1] sm:$0xff] }
 0x35e   :  { %v11124_v16 = vpop.f32.mrb[115].mxu1  ;;  %v3825_v6 = vpack.c.bf16 %v3812_v10, %v12567_v27 }
 0x35f   :  { %11242 = vmatmul.mubr.msk.bf16.gmra.mrb[192].mxu0 %vm676_vm3, %v3004_v61  ;;  %v14764_v16 = vld [vmem:[#allocation2 + $0x88] sm:$0xff] }
 0x360   :  { %11281 = vmatprep.mubr.msk.bf16.mxu0 %vm12626_vm1, %v17919_v21  ;;  %v3210_v56 = vpack.c.bf16 %v14764_v16, %v14365_v44 }
 0x363   :  { %v14739_v34 = vpop.f32.mrb[116].mxu1  ;;  %11338 = vmatmul.mubr.msk.bf16.gmra.mrb[220].mxu1 %vm676_vm3, %v3509_v54  ;;  %v12512_v54 = vld [vmem:[%s17753_s3 + $0x68] sm:$0xff]  }
 0x364   :  { %v11127_v45 = vpop.f32.mrb[117].mxu1  ;;  %11377 = vmatprep.mubr.msk.bf16.mxu1 %vm12626_vm1, %v17919_v21 }
 0x365   :  { %v14741_v57 = vpop.f32.mrb[118].mxu1  ;;  %v3814_v45 = vld [vmem:[#allocation2 + $0xf9] sm:$0xff] }
 0x366   :  { %v11128_v8 = vpop.f32.mrb[119].mxu1 }
 0x367   :  { %11282 = vmatmul.mubr.msk.bf16.vlgmr.msra.gmra.mrb[196].mxu0 %vm676_vm3, %v17965_v12  ;;  %v3813_v8 = vld [vmem:[#allocation2 + $0xf1] sm:$0xff] }
 0x368   :  { %11342 = vmatpush3.bf16.msra.mxu0 %v12507_v22  ;;  %11285 = vmatprep.mubr.msk.bf16.mxu0 %vm12626_vm1, %v17919_v21  ;;  %v3826_v10 = vpack.c.bf16 %v3814_v45, %v3813_v8  ;;  %v14783_v12 = vld [vmem:[#allocation2 + $0x98] sm:$0xff]  ;;  %v14800_v8 = vld [vmem:[#allocation2 + $0xa8] sm:$0xff] }
 0x369   :  { %11343 = vmatprep.subr.bf16.mxu0 %v17919_v21 }
 0x36b   :  { %v14758_v24 = vpop.f32.mrb[120].mxu1  ;;  %11378 = vmatmul.mubr.msk.bf16.vlgmr.msra.gmra.mrb[224].mxu1 %vm676_vm3, %v3825_v6  ;;  %v14789_v6 = vld [vmem:[#allocation2 + $0x90] sm:$0xff] }
 0x36c   :  { %v11131_v58 = vpop.f32.mrb[121].mxu1  ;;  %11381 = vmatprep.mubr.msk.bf16.mxu1 %vm12626_vm1, %v17919_v21  ;;  %11344 = vmatpush3.bf16.msra.mxu0 %v12509_v46 }
 0x36d   :  { %v14766_v61 = vpop.f32.mrb[122].mxu1  ;;  %11438 = vmatpush3.bf16.msra.mxu1 %v12510_v4  ;;  %11405 = vmatprep.subr.bf16.mxu0 %v17919_v21  ;;  %v3211_v4 = vpack.c.bf16 %v14783_v12, %v14789_v6  ;;  %v3816_v58 = vld [vmem:[#allocation2 + $0x109] sm:$0xff] }
 0x36e   :  { %v11132_v20 = vpop.f32.mrb[123].mxu1  ;;  %11439 = vmatprep.subr.bf16.mxu1 %v17919_v21 }
 0x36f   :  { %11286 = vmatmul.mubr.msk.bf16.gmra.mrb[200].mxu0 %vm676_vm3, %v3210_v56  ;;  %v3815_v20 = vld [vmem:[#allocation2 + $0x101] sm:$0xff] }
 0x370   :  { %11289 = vmatprep.mubr.msk.bf16.mxu0 %vm12626_vm1, %v17919_v21 }
 0x371   :  { %11440 = vmatpush3.bf16.msra.mxu1 %v12512_v54  ;;  %v3827_v54 = vpack.c.bf16 %v3816_v58, %v3815_v20  ;;  %v3817_v58 = vld [vmem:[#allocation2 + $0x111] sm:$0xff] }
 0x372   :  { %11501 = vmatprep.subr.bf16.mxu1 %v17919_v21 }
 0x373   :  { %v14781_v22 = vpop.f32.mrb[124].mxu1  ;;  %11382 = vmatmul.mubr.msk.bf16.gmra.mrb[228].mxu1 %vm676_vm3, %v3826_v10 }
 0x374   :  { %v11135_v44 = vpop.f32.mrb[125].mxu1  ;;  %11385 = vmatprep.mubr.msk.bf16.mxu1 %vm12626_vm1, %v17919_v21 }
 0x375   :  { %v14786_v46 = vpop.f32.mrb[126].mxu1 }
 0x376   :  { %v11136_v27 = vpop.f32.mrb[127].mxu1 }
 0x377   :  { %11290 = vmatmul.mubr.msk.bf16.gmra.mrb[204].mxu0 %vm676_vm3, %v3211_v4  ;;  %v14805_v27 = vld [vmem:[#allocation2 + $0xa0] sm:$0xff] }
 0x378   :  { %11293 = vmatprep.mubr.msk.bf16.mxu0 %vm12626_vm1, %v17919_v21  ;;  %v3212_v4 = vpack.c.bf16 %v14800_v8, %v14805_v27 }
 0x37b   :  { %v14798_v56 = vpop.f32.mrb[128].mxu1  ;;  %11386 = vmatmul.mubr.msk.bf16.gmra.mrb[232].mxu1 %vm676_vm3, %v3827_v54 }
 0x37c   :  { %v11139_v45 = vpop.f32.mrb[129].mxu1  ;;  %11389 = vmatprep.mubr.msk.bf16.mxu1 %vm12626_vm1, %v17919_v21 }
 0x37d   :  { %v14802_v10 = vpop.f32.mrb[130].mxu1  ;;  %v3828_v45 = vpack.c.bf16 %v3818_v25, %v3817_v58  ;;  %v3819_v25 = vld [vmem:[#allocation2 + $0x121] sm:$0xff] }
 0x37e   :  { %v11140_v44 = vpop.f32.mrb[131].mxu1  ;;  %v14836_v58 = vld [vmem:[#allocation2 + $0xc8] sm:$0xff] }
 0x37f   :  { %11294 = vmatmul.mubr.msk.bf16.gmra.mrb[208].mxu0 %vm676_vm3, %v3212_v4  ;;  %v14816_v44 = vld [vmem:[#allocation2 + $0xb8] sm:$0xff] }
 0x380   :  { %11297 = vmatprep.mubr.msk.bf16.mxu0 %vm12626_vm1, %v17919_v21  ;;  %v3213_v4 = vpack.c.bf16 %v14816_v44, %v14821_v30 }
 0x383   :  { %v14814_v20 = vpop.f32.mrb[132].mxu1  ;;  %11390 = vmatmul.mubr.msk.bf16.gmra.mrb[236].mxu1 %vm676_vm3, %v3828_v45  ;;  %v14839_v45 = vld [vmem:[#allocation2 + $0xc0] sm:$0xff] }
 0x384   :  { %v11143_v54 = vpop.f32.mrb[133].mxu1  ;;  %11393 = vmatprep.mubr.msk.bf16.mxu1 %vm12626_vm1, %v17919_v21 }
 0x385   :  { %v14818_v2 = vpop.f32.mrb[134].mxu1  ;;  %v3214_v54 = vpack.c.bf16 %v14836_v58, %v14839_v45 }
 0x386   :  { %v11144_v43 = vpop.f32.mrb[135].mxu1 }
 0x387   :  { %11298 = vmatmul.mubr.msk.bf16.gmra.mrb[212].mxu0 %vm676_vm3, %v3213_v4  ;;  %v3829_v43 = vpack.c.bf16 %v3820_v41, %v3819_v25  ;;  %v3821_v41 = vld [vmem:[#allocation2 + $0x131] sm:$0xff] }
 0x388   :  { %11301 = vmatprep.mubr.msk.bf16.mxu0 %vm12626_vm1, %v17919_v21 }
 0x38b   :  { %11394 = vmatmul.mubr.msk.bf16.gmra.mrb[240].mxu1 %vm676_vm3, %v3829_v43  ;;  %v3830_v43 = vpack.c.bf16 %v3822_v28, %v3821_v41 }
 0x38c   :  { %11397 = vmatprep.mubr.msk.bf16.mxu1 %vm12626_vm1, %v17919_v21 }
 0x38e   :  { %v14845_v4 = vpop.f32.mrb[136].mxu1 }
 0x38f   :  { %v11147_v19 = vpop.f32.mrb[137].mxu1  ;;  %11302 = vmatmul.mubr.msk.bf16.gmra.mrb[216].mxu0 %vm676_vm3, %v3214_v54 }
 0x390   :  { %v14848_v37 = vpop.f32.mrb[138].mxu1  ;;  %11305 = vmatprep.mubr.msk.bf16.mxu0 %vm12626_vm1, %v17919_v21  ;;  %v14856_v19 = vld [vmem:[#allocation2 + $0xd0] sm:$0xff] }
 0x391   :  { %v11148_v25 = vpop.f32.mrb[139].mxu1  ;;  %v3215_v28 = vpack.c.bf16 %v14852_v23, %v14856_v19 }
 0x392   :  { %v2429_v47 = vpop.f32.mrb[112].mxu0 }
 0x393   :  { %v2484_v60 = vadd.f32 %v2429_v47, %v14623_v11  ;;  %v11091_v31 = vpop.f32.mrb[113].mxu0  ;;  %11398 = vmatmul.mubr.msk.bf16.gmra.mrb[244].mxu1 %vm676_vm3, %v3830_v43 }
 0x394   :  { %v2432_v15 = vpop.f32.mrb[114].mxu0  ;;  %11401 = vmatprep.mubr.msk.bf16.mxu1 %vm12626_vm1, %v17919_v21  ;;  %v3824_v31 = vld [vmem:[#allocation2 + $0x149] sm:$0xff] }
 0x395   :  { %v2485_v54 = vadd.f32 %v2432_v15, %v14627_v39  ;;  %v11092_v35 = vpop.f32.mrb[115].mxu0  ;;  %v14864_v41 = vadd.f32 %v14728_v18, %v2484_v60  ;;  %v3651_v60 = vld [vmem:[#allocation2 + $0x158] sm:$0xff] }
 0x396   :  { %v14866_v25 = vpop.f32.mrb[140].mxu1  ;;  %v3831_v35 = vpack.c.bf16 %v3824_v31, %v3823_v13 }
 0x397   :  { %v11187_v47 = vpop.f32.mrb[141].mxu1  ;;  %11306 = vmatmul.mubr.msk.bf16.gmra.mrb[220].mxu0 %vm676_vm3, %v3215_v28  ;;  %v14870_v11 = vadd.f32 %v14730_v50, %v2485_v54  ;;  %v3650_v28 = vld [vmem:[#allocation2 + $0x150] sm:$0xff] }
 0x398   :  { %v14872_v43 = vpop.f32.mrb[142].mxu1  ;;  %11345 = vmatprep.mubr.msk.bf16.mxu0 %vm12626_vm1, %v17919_v21  ;;  %v12511_v50 = vld [vmem:[%s17753_s3 + $0x50] sm:$0xff]   ;;  %v3664_v13 = vpack.c.bf16 %v3651_v60, %v3650_v28 }
 0x399   :  { %v11188_v15 = vpop.f32.mrb[143].mxu1 }
 0x39a   :  { %v2437_v39 = vpop.f32.mrb[116].mxu0 }
 0x39b   :  { %v2486_v18 = vadd.f32 %v2437_v39, %v14636_v40  ;;  %v11095_v5 = vpop.f32.mrb[117].mxu0  ;;  %11402 = vmatmul.mubr.msk.bf16.gmra.mrb[248].mxu1 %vm676_vm3, %v3831_v35 }
 0x39c   :  { %v2440_v47 = vpop.f32.mrb[118].mxu0  ;;  %11441 = vmatprep.mubr.msk.bf16.mxu1 %vm12626_vm1, %v17919_v21  ;;  %v4134_v5 = vld [vmem:[#allocation2 + $0x80] sm:$0xff] }
 0x39d   :  { %v2487_v54 = vadd.f32 %v2440_v47, %v14640_v62  ;;  %v11096_v15 = vpop.f32.mrb[119].mxu0  ;;  %v14885_v31 = vadd.f32 %v14739_v34, %v2486_v18  ;;  %v12513_v62 = vld [vmem:[%s17753_s3 + $0x58] sm:$0xff]   ;;  %v4147_v60 = vpack.c.bf16 %v4134_v5, %v4133_v42  ;;  %v3653_v47 = vld [vmem:[#allocation2 + $0x168] sm:$0xff] }
 0x39e   :  { %v14887_v40 = vpop.f32.mrb[144].mxu1  ;;  %v3652_v15 = vld [vmem:[#allocation2 + $0x160] sm:$0xff] }
 0x39f   :  { %v11191_v35 = vpop.f32.mrb[145].mxu1  ;;  %11346 = vmatmul.mubr.msk.bf16.vlgmr.msra.gmra.mrb[224].mxu0 %vm676_vm3, %v3664_v13  ;;  %v14891_v39 = vadd.f32 %v14741_v57, %v2487_v54  ;;  %v12514_v57 = vld [vmem:[%s17753_s3 + $0x80] sm:$0xff]   ;;  %v3665_v5 = vpack.c.bf16 %v3653_v47, %v3652_v15  ;;  %v3655_v47 = vld [vmem:[#allocation2 + $0x178] sm:$0xff] }
 0x3a0   :  { %11406 = vmatpush3.bf16.msra.mxu0 %v12511_v50  ;;  %v14893_v26 = vpop.f32.mrb[146].mxu1  ;;  %11349 = vmatprep.mubr.msk.bf16.mxu0 %vm12626_vm1, %v17919_v21 }
 0x3a1   :  { %v11192_v34 = vpop.f32.mrb[147].mxu1  ;;  %11407 = vmatprep.subr.bf16.mxu0 %v17919_v21 }
 0x3a2   :  { %v2445_v18 = vpop.f32.mrb[120].mxu0 }
 0x3a3   :  { %v2488_v28 = vadd.f32 %v2445_v18, %v14664_v29  ;;  %v11099_v50 = vpop.f32.mrb[121].mxu0  ;;  %11442 = vmatmul.mubr.msk.bf16.vlgmr.msra.gmra.mrb[252].mxu1 %vm676_vm3, %v4147_v60  ;;  %v12516_v29 = vld [vmem:[%s17753_s3 + $0x88] sm:$0xff]  }
 0x3a4   :  { %v2448_v54 = vpop.f32.mrb[122].mxu0  ;;  %11445 = vmatprep.mubr.msk.bf16.mxu1 %vm12626_vm1, %v17919_v21  ;;  %11408 = vmatpush3.bf16.msra.mxu0 %v12513_v62 }
 0x3a5   :  { %v2489_v42 = vadd.f32 %v2448_v54, %v14667_v7  ;;  %v11100_v13 = vpop.f32.mrb[123].mxu0  ;;  %11502 = vmatpush3.bf16.msra.mxu1 %v12514_v57  ;;  %11469 = vmatprep.subr.bf16.mxu0 %v17919_v21  ;;  %v14914_v35 = vadd.f32 %v14758_v24, %v2488_v28  ;;  %v4148_v24 = vpack.c.bf16 %v14789_v6, %v14764_v16  ;;  %v3654_v54 = vld [vmem:[#allocation2 + $0x170] sm:$0xff] }
 0x3a6   :  { %v14916_v34 = vpop.f32.mrb[148].mxu1  ;;  %11503 = vmatprep.subr.bf16.mxu1 %v17919_v21  ;;  %v3666_v13 = vpack.c.bf16 %v3655_v47, %v3654_v54 }
 0x3a7   :  { %v11195_v60 = vpop.f32.mrb[149].mxu1  ;;  %11350 = vmatmul.mubr.msk.bf16.gmra.mrb[228].mxu0 %vm676_vm3, %v3665_v5  ;;  %v14921_v7 = vadd.f32 %v14766_v61, %v2489_v42 }
 0x3a8   :  { %v14923_v62 = vpop.f32.mrb[150].mxu1  ;;  %11353 = vmatprep.mubr.msk.bf16.mxu0 %vm12626_vm1, %v17919_v21 }
 0x3a9   :  { %v11196_v57 = vpop.f32.mrb[151].mxu1  ;;  %11504 = vmatpush3.bf16.msra.mxu1 %v12516_v29 }
 0x3aa   :  { %v2453_v18 = vpop.f32.mrb[124].mxu0  ;;  %11565 = vmatprep.subr.bf16.mxu1 %v17919_v21 }
 0x3ab   :  { %v2490_v28 = vadd.f32 %v2453_v18, %v14681_v55  ;;  %v11103_v50 = vpop.f32.mrb[125].mxu0  ;;  %11446 = vmatmul.mubr.msk.bf16.gmra.mrb[0].mxu1 %vm676_vm3, %v4148_v24 }
 0x3ac   :  { %v2456_v61 = vpop.f32.mrb[126].mxu0  ;;  %11449 = vmatprep.mubr.msk.bf16.mxu1 %vm12626_vm1, %v17919_v21 }
 0x3ad   :  { %v2491_v15 = vadd.f32 %v2456_v61, %v14685_v36  ;;  %v11104_v42 = vpop.f32.mrb[127].mxu0  ;;  %v14936_v16 = vadd.f32 %v14781_v22, %v2490_v28  ;;  %v4149_v36 = vpack.c.bf16 %v14805_v27, %v14783_v12  ;;  %v3657_v22 = vld [vmem:[#allocation2 + $0x188] sm:$0xff]  ;;  %v3656_v28 = vld [vmem:[#allocation2 + $0x180] sm:$0xff] }
 0x3ae   :  { %v14938_v6 = vpop.f32.mrb[152].mxu1  ;;  %v3667_v61 = vpack.c.bf16 %v3657_v22, %v3656_v28 }
 0x3af   :  { %v11199_v5 = vpop.f32.mrb[153].mxu1  ;;  %11354 = vmatmul.mubr.msk.bf16.gmra.mrb[232].mxu0 %vm676_vm3, %v3666_v13  ;;  %v14942_v55 = vadd.f32 %v14786_v46, %v2491_v15 }
 0x3b0   :  { %v14944_v29 = vpop.f32.mrb[154].mxu1  ;;  %11357 = vmatprep.mubr.msk.bf16.mxu0 %vm12626_vm1, %v17919_v21 }
 0x3b1   :  { %v11200_v60 = vpop.f32.mrb[155].mxu1 }
 0x3b2   :  { %v2461_v57 = vpop.f32.mrb[128].mxu0 }
 0x3b3   :  { %v2492_v24 = vadd.f32 %v2461_v57, %v14694_v32  ;;  %v11107_v18 = vpop.f32.mrb[129].mxu0  ;;  %11450 = vmatmul.mubr.msk.bf16.gmra.mrb[4].mxu1 %vm676_vm3, %v4149_v36  ;;  %v3658_v57 = vld [vmem:[#allocation2 + $0x190] sm:$0xff] }
 0x3b4   :  { %v2464_v47 = vpop.f32.mrb[130].mxu0  ;;  %11453 = vmatprep.mubr.msk.bf16.mxu1 %vm12626_vm1, %v17919_v21 }
 0x3b5   :  { %v2493_v46 = vadd.f32 %v2464_v47, %v14697_v49  ;;  %v11108_v50 = vpop.f32.mrb[131].mxu0  ;;  %v14956_v54 = vadd.f32 %v14798_v56, %v2492_v24  ;;  %v4150_v49 = vpack.c.bf16 %v14821_v30, %v14800_v8  ;;  %v3659_v56 = vld [vmem:[#allocation2 + $0x198] sm:$0xff] }
 0x3b6   :  { %v14958_v12 = vpop.f32.mrb[156].mxu1  ;;  %v3668_v24 = vpack.c.bf16 %v3659_v56, %v3658_v57 }
 0x3b7   :  { %v11203_v27 = vpop.f32.mrb[157].mxu1  ;;  %11358 = vmatmul.mubr.msk.bf16.gmra.mrb[236].mxu0 %vm676_vm3, %v3667_v61  ;;  %v14962_v32 = vadd.f32 %v14802_v10, %v2493_v46 }
 0x3b8   :  { %v14964_v15 = vpop.f32.mrb[158].mxu1  ;;  %11361 = vmatprep.mubr.msk.bf16.mxu0 %vm12626_vm1, %v17919_v21 }
 0x3b9   :  { %v11204_v42 = vpop.f32.mrb[159].mxu1 }
 0x3ba   :  { %v2469_v13 = vpop.f32.mrb[132].mxu0  ;;  %v3660_v42 = vld [vmem:[#allocation2 + $0x1a0] sm:$0xff] }
 0x3bb   :  { %v2494_v5 = vadd.f32 %v2469_v13, %v14706_v48  ;;  %v11111_v60 = vpop.f32.mrb[133].mxu0  ;;  %11454 = vmatmul.mubr.msk.bf16.gmra.mrb[8].mxu1 %vm676_vm3, %v4150_v49 }
 0x3bc   :  { %v2472_v36 = vpop.f32.mrb[134].mxu0  ;;  %11457 = vmatprep.mubr.msk.bf16.mxu1 %vm12626_vm1, %v17919_v21 }
 0x3bd   :  { %v2495_v10 = vadd.f32 %v2472_v36, %v14709_v52  ;;  %v11112_v22 = vpop.f32.mrb[135].mxu0  ;;  %v14976_v18 = vadd.f32 %v14814_v20, %v2494_v5  ;;  %v4151_v52 = vpack.c.bf16 %v14839_v45, %v14816_v44  ;;  %v3661_v20 = vld [vmem:[#allocation2 + $0x1a8] sm:$0xff] }
 0x3be   :  { %v14978_v30 = vpop.f32.mrb[160].mxu1  ;;  %v3669_v13 = vpack.c.bf16 %v3661_v20, %v3660_v42 }
 0x3bf   :  { %v11207_v8 = vpop.f32.mrb[161].mxu1  ;;  %11362 = vmatmul.mubr.msk.bf16.gmra.mrb[240].mxu0 %vm676_vm3, %v3668_v24  ;;  %v14982_v48 = vadd.f32 %v14818_v2, %v2495_v10  ;;  %v3662_v24 = vld [vmem:[#allocation2 + $0x1b0] sm:$0xff] }
 0x3c0   :  { %v14984_v47 = vpop.f32.mrb[162].mxu1  ;;  %11365 = vmatprep.mubr.msk.bf16.mxu0 %vm12626_vm1, %v17919_v21 }
 0x3c1   :  { %v11208_v28 = vpop.f32.mrb[163].mxu1 }
 0x3c2   :  { %v2477_v46 = vpop.f32.mrb[136].mxu0 }
 0x3c3   :  { %v2496_v50 = vadd.f32 %v2477_v46, %v14718_v51  ;;  %v11115_v61 = vpop.f32.mrb[137].mxu0  ;;  %11458 = vmatmul.mubr.msk.bf16.gmra.mrb[12].mxu1 %vm676_vm3, %v4151_v52 }
 0x3c4   :  { %v2480_v27 = vpop.f32.mrb[138].mxu0  ;;  %11461 = vmatprep.mubr.msk.bf16.mxu1 %vm12626_vm1, %v17919_v21 }
 0x3c5   :  { %v2497_v2 = vadd.f32 %v2480_v27, %v14721_v17  ;;  %v11116_v49 = vpop.f32.mrb[139].mxu0  ;;  %v14996_v56 = vadd.f32 %v14845_v4, %v2496_v50  ;;  %v4152_v17 = vpack.c.bf16 %v14856_v19, %v14836_v58  ;;  %v3663_v4 = vld [vmem:[#allocation2 + $0x1b8] sm:$0xff]  ;;  %v4146_v19 = vld [vmem:[#allocation2 + $0xe0] sm:$0xff] }
 0x3c6   :  { %v14998_v44 = vpop.f32.mrb[164].mxu1  ;;  %v3670_v28 = vpack.c.bf16 %v3663_v4, %v3662_v24  ;;  %v4153_v50 = vpack.c.bf16 %v4146_v19, %v14852_v23  ;;  %v3972_v49 = vld [vmem:[#allocation2 + $0x151] sm:$0xff] }
 0x3c7   :  { %v11211_v45 = vpop.f32.mrb[165].mxu1  ;;  %11366 = vmatmul.mubr.msk.bf16.gmra.mrb[244].mxu0 %vm676_vm3, %v3669_v13  ;;  %v15002_v51 = vadd.f32 %v14848_v37, %v2497_v2 }
 0x3c8   :  { %v15004_v5 = vpop.f32.mrb[166].mxu1  ;;  %11369 = vmatprep.mubr.msk.bf16.mxu0 %vm12626_vm1, %v17919_v21 }
 0x3c9   :  { %v11212_v60 = vpop.f32.mrb[167].mxu1 }
 0x3ca   :  { %v2753_v36 = vpop.f32.mrb[140].mxu0 }
 0x3cb   :  { %v2808_v57 = vadd.f32 %v2753_v36, %v14864_v41  ;;  %v11155_v10 = vpop.f32.mrb[141].mxu0  ;;  %11462 = vmatmul.mubr.msk.bf16.gmra.mrb[16].mxu1 %vm676_vm3, %v4152_v17 }
 0x3cc   :  { %v2756_v22 = vpop.f32.mrb[142].mxu0  ;;  %11465 = vmatprep.mubr.msk.bf16.mxu1 %vm12626_vm1, %v17919_v21 }
 0x3cd   :  { %v2809_v37 = vadd.f32 %v2756_v22, %v14870_v11  ;;  %v11156_v8 = vpop.f32.mrb[143].mxu0  ;;  %v15016_v52 = vadd.f32 %v14866_v25, %v2808_v57  ;;  %v3973_v25 = vld [vmem:[#allocation2 + $0x159] sm:$0xff] }
 0x3ce   :  { %v15018_v58 = vpop.f32.mrb[168].mxu1  ;;  %v3986_v23 = vpack.c.bf16 %v3973_v25, %v3972_v49  ;;  %v4455_v57 = vld [vmem:[#allocation2 + $0x79] sm:$0xff] }
 0x3cf   :  { %v11251_v46 = vpop.f32.mrb[169].mxu1  ;;  %11370 = vmatmul.mubr.msk.bf16.gmra.mrb[248].mxu0 %vm676_vm3, %v3670_v28  ;;  %v15022_v41 = vadd.f32 %v14872_v43, %v2809_v37  ;;  %v12515_v43 = vld [vmem:[%s17753_s3 + $0x70] sm:$0xff]  }
 0x3d0   :  { %v15024_v20 = vpop.f32.mrb[170].mxu1  ;;  %11409 = vmatprep.mubr.msk.bf16.mxu0 %vm12626_vm1, %v17919_v21  ;;  %v3975_v37 = vld [vmem:[#allocation2 + $0x169] sm:$0xff]  ;;  %v3974_v46 = vld [vmem:[#allocation2 + $0x161] sm:$0xff] }
 0x3d1   :  { %v11252_v11 = vpop.f32.mrb[171].mxu1 }
 0x3d2   :  { %v2761_v61 = vpop.f32.mrb[144].mxu0 }
 0x3d3   :  { %v2810_v27 = vadd.f32 %v2761_v61, %v14885_v31  ;;  %v11159_v42 = vpop.f32.mrb[145].mxu0  ;;  %11466 = vmatmul.mubr.msk.bf16.gmra.mrb[20].mxu1 %vm676_vm3, %v4153_v50  ;;  %v4456_v31 = vld [vmem:[#allocation2 + $0x81] sm:$0xff]  ;;  %v3987_v61 = vpack.c.bf16 %v3975_v37, %v3974_v46  ;;  %v3979_v37 = vld [vmem:[#allocation2 + $0x189] sm:$0xff] }
 0x3d4   :  { %v2764_v2 = vpop.f32.mrb[146].mxu0  ;;  %11505 = vmatprep.mubr.msk.bf16.mxu1 %vm12626_vm1, %v17919_v21  ;;  %v3978_v46 = vld [vmem:[#allocation2 + $0x181] sm:$0xff] }
 0x3d5   :  { %v2811_v13 = vadd.f32 %v2764_v2, %v14891_v39  ;;  %v11160_v45 = vpop.f32.mrb[147].mxu0  ;;  %v15038_v60 = vadd.f32 %v14887_v40, %v2810_v27  ;;  %v12517_v40 = vld [vmem:[%s17753_s3 + $0x78] sm:$0xff]   ;;  %v15053_v39 = vpack.c.bf16 %v4456_v31, %v4455_v57 }
 0x3d6   :  { %v15040_v17 = vpop.f32.mrb[172].mxu1  ;;  %v3976_v31 = vld [vmem:[#allocation2 + $0x171] sm:$0xff] }
 0x3d7   :  { %v11255_v36 = vpop.f32.mrb[173].mxu1  ;;  %11410 = vmatmul.mubr.msk.bf16.vlgmr.msra.gmra.mrb[252].mxu0 %vm676_vm3, %v3986_v23  ;;  %v15044_v4 = vadd.f32 %v14893_v26, %v2811_v13  ;;  %v12518_v26 = vld [vmem:[%s17753_s3] sm:$0xff]   ;;  %v17966_v23 = vpack.c.bf16 %v13959_v59, %v13957_v9 }
 0x3d8   :  { %11470 = vmatpush3.bf16.msra.mxu0 %v12515_v43  ;;  %v15046_v10 = vpop.f32.mrb[174].mxu1  ;;  %11413 = vmatprep.mubr.msk.bf16.mxu0 %vm12626_vm1, %v17919_v21 }
 0x3d9   :  { %v11256_v22 = vpop.f32.mrb[175].mxu1  ;;  %11471 = vmatprep.subr.bf16.mxu0 %v17919_v21 }
 0x3da   :  { %v2769_v24 = vpop.f32.mrb[148].mxu0 }
 0x3db   :  { %v2812_v8 = vadd.f32 %v2769_v24, %v14914_v35  ;;  %v11163_v28 = vpop.f32.mrb[149].mxu0  ;;  %11506 = vmatmul.mubr.msk.bf16.vlgmr.msra.gmra.mrb[24].mxu1 %vm676_vm3, %v15053_v39  ;;  %v12520_v35 = vld [vmem:[%s17753_s3 + $0x8] sm:$0xff]  }
 0x3dc   :  { %v2772_v19 = vpop.f32.mrb[150].mxu0  ;;  %11509 = vmatprep.mubr.msk.bf16.mxu1 %vm12626_vm1, %v17919_v21  ;;  %11472 = vmatpush3.bf16.msra.mxu0 %v12517_v40  ;;  %v17967_v28 = vpack.c.bf16 %v13991_v63, %v13989_v3 }
 0x3dd   :  { %v2813_v11 = vadd.f32 %v2772_v19, %v14921_v7  ;;  %v11164_v50 = vpop.f32.mrb[151].mxu0  ;;  %11566 = vmatpush3.bf16.msra.mxu1 %v12518_v26  ;;  %11533 = vmatprep.subr.bf16.mxu0 %v17919_v21  ;;  %v15070_v25 = vadd.f32 %v14916_v34, %v2812_v8  ;;  %v3977_v34 = vld [vmem:[#allocation2 + $0x179] sm:$0xff] }
 0x3de   :  { %v15072_v27 = vpop.f32.mrb[176].mxu1  ;;  %11567 = vmatprep.subr.bf16.mxu1 %v17919_v21  ;;  %v3988_v40 = vpack.c.bf16 %v3977_v34, %v3976_v31  ;;  %v3989_v50 = vpack.c.bf16 %v3979_v37, %v3978_v46  ;;  %v17968_v34 = vpack.c.bf16 %v14023_v38, %v14021_v14  ;;  %v3982_v37 = vld [vmem:[#allocation2 + $0x1a1] sm:$0xff] }
 0x3df   :  { %v11259_v42 = vpop.f32.mrb[177].mxu1  ;;  %11414 = vmatmul.mubr.msk.bf16.gmra.mrb[0].mxu0 %vm676_vm3, %v3987_v61  ;;  %v15077_v7 = vadd.f32 %v14923_v62, %v2813_v11 }
 0x3e0   :  { %v15079_v2 = vpop.f32.mrb[178].mxu1  ;;  %11417 = vmatprep.mubr.msk.bf16.mxu0 %vm12626_vm1, %v17919_v21 }
 0x3e1   :  { %v11260_v49 = vpop.f32.mrb[179].mxu1  ;;  %11568 = vmatpush3.bf16.msra.mxu1 %v12520_v35 }
 0x3e2   :  { %v2777_v43 = vpop.f32.mrb[152].mxu0  ;;  %11629 = vmatprep.subr.bf16.mxu1 %v17919_v21  ;;  %v3981_v49 = vld [vmem:[#allocation2 + $0x199] sm:$0xff] }
 0x3e3   :  { %v2814_v13 = vadd.f32 %v2777_v43, %v14936_v16  ;;  %v11167_v45 = vpop.f32.mrb[153].mxu0  ;;  %11510 = vmatmul.mubr.msk.bf16.gmra.mrb[28].mxu1 %vm676_vm3, %v17966_v23 }
 0x3e4   :  { %v2780_v62 = vpop.f32.mrb[154].mxu0  ;;  %11513 = vmatprep.mubr.msk.bf16.mxu1 %vm12626_vm1, %v17919_v21  ;;  %v3980_v45 = vld [vmem:[#allocation2 + $0x191] sm:$0xff] }
 0x3e5   :  { %v2815_v36 = vadd.f32 %v2780_v62, %v14942_v55  ;;  %v11168_v57 = vpop.f32.mrb[155].mxu0  ;;  %v15093_v22 = vadd.f32 %v14938_v6, %v2814_v13  ;;  %v3990_v62 = vpack.c.bf16 %v3981_v49, %v3980_v45 }
 0x3e6   :  { %v15095_v26 = vpop.f32.mrb[180].mxu1 }
 0x3e7   :  { %v11263_v16 = vpop.f32.mrb[181].mxu1  ;;  %11418 = vmatmul.mubr.msk.bf16.gmra.mrb[4].mxu0 %vm676_vm3, %v3988_v40  ;;  %v15099_v9 = vadd.f32 %v14944_v29, %v2815_v36  ;;  %v3983_v40 = vld [vmem:[#allocation2 + $0x1a9] sm:$0xff] }
 0x3e8   :  { %v15101_v59 = vpop.f32.mrb[182].mxu1  ;;  %11421 = vmatprep.mubr.msk.bf16.mxu0 %vm12626_vm1, %v17919_v21 }
 0x3e9   :  { %v11264_v24 = vpop.f32.mrb[183].mxu1 }
 0x3ea   :  { %v2785_v55 = vpop.f32.mrb[156].mxu0  ;;  %v17969_v24 = vpack.c.bf16 %v14058_v0, %v14056_v53 }
 0x3eb   :  { %v2816_v8 = vadd.f32 %v2785_v55, %v14956_v54  ;;  %v11171_v6 = vpop.f32.mrb[157].mxu0  ;;  %11514 = vmatmul.mubr.msk.bf16.gmra.mrb[32].mxu1 %vm676_vm3, %v17967_v28 }
 0x3ec   :  { %v2788_v19 = vpop.f32.mrb[158].mxu0  ;;  %11517 = vmatprep.mubr.msk.bf16.mxu1 %vm12626_vm1, %v17919_v21  ;;  %v3991_v6 = vpack.c.bf16 %v3983_v40, %v3982_v37 }
 0x3ed   :  { %v2817_v29 = vadd.f32 %v2788_v19, %v14962_v32  ;;  %v11172_v11 = vpop.f32.mrb[159].mxu0  ;;  %v15114_v61 = vadd.f32 %v14958_v12, %v2816_v8 }
 0x3ee   :  { %v15116_v35 = vpop.f32.mrb[184].mxu1  ;;  %v3985_v11 = vld [vmem:[#allocation2 + $0x1b9] sm:$0xff] }
 0x3ef   :  { %v11267_v54 = vpop.f32.mrb[185].mxu1  ;;  %11422 = vmatmul.mubr.msk.bf16.gmra.mrb[8].mxu0 %vm676_vm3, %v3989_v50  ;;  %v15120_v3 = vadd.f32 %v14964_v15, %v2817_v29  ;;  %v3984_v29 = vld [vmem:[#allocation2 + $0x1b1] sm:$0xff] }
 0x3f0   :  { %v15122_v63 = vpop.f32.mrb[186].mxu1  ;;  %11425 = vmatprep.mubr.msk.bf16.mxu0 %vm12626_vm1, %v17919_v21 }
 0x3f1   :  { %v11268_v42 = vpop.f32.mrb[187].mxu1 }
 0x3f2   :  { %v2793_v32 = vpop.f32.mrb[160].mxu0 }
 0x3f3   :  { %v2818_v43 = vadd.f32 %v2793_v32, %v14976_v18  ;;  %v11175_v12 = vpop.f32.mrb[161].mxu0  ;;  %11518 = vmatmul.mubr.msk.bf16.gmra.mrb[36].mxu1 %vm676_vm3, %v17968_v34 }
 0x3f4   :  { %v2796_v13 = vpop.f32.mrb[162].mxu0  ;;  %11521 = vmatprep.mubr.msk.bf16.mxu1 %vm12626_vm1, %v17919_v21  ;;  %v3992_v12 = vpack.c.bf16 %v3985_v11, %v3984_v29  ;;  %v12522_v29 = vld [vmem:[%s17753_s3 + $0x30] sm:$0xff]  }
 0x3f5   :  { %v2819_v15 = vadd.f32 %v2796_v13, %v14982_v48  ;;  %v11176_v23 = vpop.f32.mrb[163].mxu0  ;;  %v15135_v31 = vadd.f32 %v14978_v30, %v2818_v43 }
 0x3f6   :  { %v15137_v36 = vpop.f32.mrb[188].mxu1 }
 0x3f7   :  { %v11271_v18 = vpop.f32.mrb[189].mxu1  ;;  %11426 = vmatmul.mubr.msk.bf16.gmra.mrb[12].mxu0 %vm676_vm3, %v3990_v62  ;;  %v15141_v14 = vadd.f32 %v14984_v47, %v2819_v15 }
 0x3f8   :  { %v15143_v38 = vpop.f32.mrb[190].mxu1  ;;  %11429 = vmatprep.mubr.msk.bf16.mxu0 %vm12626_vm1, %v17919_v21  ;;  %v17971_v18 = vld [vmem:[#allocation129_spill] sm:$0xff] }
 0x3f9   :  { %v11272_v57 = vpop.f32.mrb[191].mxu1 }
 0x3fa   :  { %v2801_v48 = vpop.f32.mrb[164].mxu0  ;;  %v17972_v57 = vld [vmem:[#allocation128_spill] sm:$0xff] }
 0x3fb   :  { %v2820_v16 = vadd.f32 %v2801_v48, %v14996_v56  ;;  %v11179_v30 = vpop.f32.mrb[165].mxu0  ;;  %11522 = vmatmul.mubr.msk.bf16.gmra.mrb[40].mxu1 %vm676_vm3, %v17969_v24  ;;  %v17973_v48 = vpack.c.bf16 %v17971_v18, %v17972_v57 }
 0x3fc   :  { %v2804_v55 = vpop.f32.mrb[166].mxu0  ;;  %11525 = vmatprep.mubr.msk.bf16.mxu1 %vm12626_vm1, %v17919_v21 }
 0x3fd   :  { %v2821_v47 = vadd.f32 %v2804_v55, %v15002_v51  ;;  %v11180_v8 = vpop.f32.mrb[167].mxu0  ;;  %v15156_v28 = vadd.f32 %v14998_v44, %v2820_v16  ;;  %v15171_v51 = vld [vmem:[%s17754_s4] ss:$0 sm:$0xff]  ;;  %v12519_v16 = vld [vmem:[%s17753_s3 + $0x10] sm:$0xff]  }
 0x3fe   :  { %v15158_v19 = vpop.f32.mrb[192].mxu1 }
 0x3ff   :  { %v11275_v56 = vpop.f32.mrb[193].mxu1  ;;  %11430 = vmatmul.mubr.msk.bf16.gmra.mrb[16].mxu0 %vm676_vm3, %v3991_v6  ;;  %v15162_v53 = vadd.f32 %v15004_v5, %v2821_v47  ;;  %v17970_v5 = vpack.c.bf16 %v14092_v33, %v14098_v1  ;;  %v17974_v6 = vld [vmem:[#allocation126_spill] sm:$0xff] }
 0x400   :  { %v15164_v0 = vpop.f32.mrb[194].mxu1  ;;  %11433 = vmatprep.mubr.msk.bf16.mxu0 %vm12626_vm1, %v17919_v21 }
 0x401   :  { %v11276_v46 = vpop.f32.mrb[195].mxu1 }
 0x402   :  { %v3077_v44 = vpop.f32.mrb[168].mxu0 }
 0x403   :  { %v3132_v50 = vadd.f32 %v3077_v44, %v15016_v52  ;;  %v11219_v54 = vpop.f32.mrb[169].mxu0  ;;  %11526 = vmatmul.mubr.msk.bf16.gmra.mrb[44].mxu1 %vm676_vm3, %v17970_v5 }
 0x404   :  { %v3080_v42 = vpop.f32.mrb[170].mxu0  ;;  %11529 = vmatprep.mubr.msk.bf16.mxu1 %vm12626_vm1, %v17919_v21 }
 0x405   :  { %v3152_v32 = vadd.f32 %v15171_v51, %v3132_v50  ;;  %v3133_v49 = vadd.f32 %v3080_v42, %v15022_v41  ;;  %v11220_v43 = vpop.f32.mrb[171].mxu0  ;;  %v4297_v50 = vld [vmem:[#allocation2 + $0x21] sm:$0xff]  ;;  %v17975_v42 = vld [vmem:[#allocation130_spill] sm:$0xff] }
 0x406   :  { %v15182_v34 = vpop.f32.mrb[196].mxu1 }
 0x407   :  { %v3166_v13 = vmax.f32 %v3152_v32, 0.0  ;;  %v3153_v52 = vadd.f32 %v15171_v51, %v3133_v49  ;;  %v11315_v45 = vpop.f32.mrb[197].mxu1  ;;  %11434 = vmatmul.mubr.msk.bf16.gmra.mrb[20].mxu0 %vm676_vm3, %v3992_v12  ;;  %v4296_v49 = vld [vmem:[#allocation2 + $0x19] sm:$0xff] }
 0x408   :  { %v15186_v33 = vpop.f32.mrb[198].mxu1  ;;  %11473 = vmatprep.mubr.msk.bf16.mxu0 %vm12626_vm1, %v17919_v21 }
 0x409   :  { %3181 = vst.msk [vmem:[#allocation3] sm:$0xff] %vm3180_vm4, %v3166_v13  ;;  %v3167_v1 = vmax.f32 %v3153_v52, 0.0  ;;  %v11316_v15 = vpop.f32.mrb[199].mxu1  ;;  %v15229_v52 = vpack.c.bf16 %v4297_v50, %v4296_v49 }
 0x40a   :  { %v3085_v41 = vpop.f32.mrb[172].mxu0 }
 0x40b   :  { %3182 = vst.msk [vmem:[#allocation3 + $0x8] sm:$0xff] %vm3180_vm4, %v3167_v1  ;;  %v3134_v23 = vadd.f32 %v3085_v41, %v15038_v60  ;;  %v11223_v62 = vpop.f32.mrb[173].mxu0  ;;  %11530 = vmatmul.mubr.msk.bf16.gmra.mrb[48].mxu1 %vm676_vm3, %v17973_v48  ;;  %v4675_v1 = vld [vmem:[#allocation2 + $0xf8] sm:$0xff] }
 0x40c   :  { %v3088_v40 = vpop.f32.mrb[174].mxu0  ;;  %11569 = vmatprep.mubr.msk.bf16.mxu1 %vm12626_vm1, %v17919_v21  ;;  %v4674_v62 = vld [vmem:[#allocation2 + $0xf0] sm:$0xff] }
 0x40d   :  { %v3154_v30 = vadd.f32 %v15171_v51, %v3134_v23  ;;  %v3135_v24 = vadd.f32 %v3088_v40, %v15044_v4  ;;  %v11224_v55 = vpop.f32.mrb[175].mxu0  ;;  %v12521_v4 = vld [vmem:[%s17753_s3 + $0x18] sm:$0xff]   ;;  %v4687_v48 = vpack.c.bf16 %v4675_v1, %v4674_v62 }
 0x40e   :  { %v15204_v60 = vpop.f32.mrb[200].mxu1  ;;  %v4300_v1 = vld [vmem:[#allocation2 + $0x39] sm:$0xff] }
 0x40f   :  { %v3168_v37 = vmax.f32 %v3154_v30, 0.0  ;;  %v3155_v47 = vadd.f32 %v15171_v51, %v3135_v24  ;;  %v11319_v8 = vpop.f32.mrb[201].mxu1  ;;  %11474 = vmatmul.mubr.msk.bf16.vlgmr.msra.gmra.mrb[24].mxu0 %vm676_vm3, %v17974_v6 }
 0x410   :  { %11534 = vmatpush3.bf16.msra.mxu0 %v12519_v16  ;;  %v15209_v56 = vpop.f32.mrb[202].mxu1  ;;  %11477 = vmatprep.mubr.msk.bf16.mxu0 %vm12626_vm1, %v17919_v21  ;;  %v4299_v16 = vld [vmem:[#allocation2 + $0x31] sm:$0xff] }
 0x411   :  { %3183 = vst.msk [vmem:[#allocation3 + $0x10] sm:$0xff] %vm3180_vm4, %v3168_v37  ;;  %v3169_v46 = vmax.f32 %v3155_v47, 0.0  ;;  %v11320_v44 = vpop.f32.mrb[203].mxu1  ;;  %11535 = vmatprep.subr.bf16.mxu0 %v17919_v21  ;;  %v4298_v37 = vld [vmem:[#allocation2 + $0x29] sm:$0xff] }
 0x412   :  { %v3093_v11 = vpop.f32.mrb[176].mxu0 }
 0x413   :  { %3184 = vst.msk [vmem:[#allocation3 + $0x18] sm:$0xff] %vm3180_vm4, %v3169_v46  ;;  %v3136_v54 = vadd.f32 %v3093_v11, %v15070_v25  ;;  %v11227_v5 = vpop.f32.mrb[177].mxu0  ;;  %11570 = vmatmul.mubr.msk.bf16.vlgmr.msra.gmra.mrb[52].mxu1 %vm676_vm3, %v17975_v42  ;;  %v12524_v25 = vld [vmem:[%s17753_s3 + $0x38] sm:$0xff]   ;;  %v15254_v46 = vpack.c.bf16 %v4299_v16, %v4298_v37 }
 0x414   :  { %v3096_v32 = vpop.f32.mrb[178].mxu0  ;;  %11573 = vmatprep.mubr.msk.bf16.mxu1 %vm12626_vm1, %v17919_v21  ;;  %11536 = vmatpush3.bf16.msra.mxu0 %v12521_v4  ;;  %v4676_v5 = vld [vmem:[#allocation2 + $0x100] sm:$0xff] }
 0x415   :  { %v3156_v43 = vadd.f32 %v15171_v51, %v3136_v54  ;;  %v3137_v12 = vadd.f32 %v3096_v32, %v15077_v7  ;;  %v11228_v13 = vpop.f32.mrb[179].mxu0  ;;  %11630 = vmatpush3.bf16.msra.mxu1 %v12522_v29  ;;  %11597 = vmatprep.subr.bf16.mxu0 %v17919_v21  ;;  %v4677_v29 = vld [vmem:[#allocation2 + $0x108] sm:$0xff] }
 0x416   :  { %v15235_v45 = vpop.f32.mrb[204].mxu1  ;;  %11631 = vmatprep.subr.bf16.mxu1 %v17919_v21  ;;  %v4688_v32 = vpack.c.bf16 %v4677_v29, %v4676_v5 }
 0x417   :  { %v3170_v15 = vmax.f32 %v3156_v43, 0.0  ;;  %v3157_v41 = vadd.f32 %v15171_v51, %v3137_v12  ;;  %v11323_v23 = vpop.f32.mrb[205].mxu1  ;;  %11478 = vmatmul.mubr.msk.bf16.gmra.mrb[28].mxu0 %vm676_vm3, %v15229_v52  ;;  %v4301_v43 = vld [vmem:[#allocation2 + $0x41] sm:$0xff] }
 0x418   :  { %v15241_v7 = vpop.f32.mrb[206].mxu1  ;;  %11481 = vmatprep.mubr.msk.bf16.mxu0 %vm12626_vm1, %v17919_v21  ;;  %v15273_v62 = vpack.c.bf16 %v4301_v43, %v4300_v1 }
 0x419   :  { %3185 = vst.msk [vmem:[#allocation3 + $0x20] sm:$0xff] %vm3180_vm4, %v3170_v15  ;;  %v3171_v18 = vmax.f32 %v3157_v41, 0.0  ;;  %v11324_v57 = vpop.f32.mrb[207].mxu1  ;;  %11632 = vmatpush3.bf16.msra.mxu1 %v12524_v25 }
 0x41a   :  { %v3101_v40 = vpop.f32.mrb[180].mxu0  ;;  %11693 = vmatprep.subr.bf16.mxu1 %v17919_v21  ;;  %v4679_v57 = vld [vmem:[#allocation2 + $0x118] sm:$0xff] }
 0x41b   :  { %3186 = vst.msk [vmem:[#allocation3 + $0x28] sm:$0xff] %vm3180_vm4, %v3171_v18  ;;  %v3138_v30 = vadd.f32 %v3101_v40, %v15093_v22  ;;  %v11231_v24 = vpop.f32.mrb[181].mxu0  ;;  %11574 = vmatmul.mubr.msk.bf16.gmra.mrb[56].mxu1 %vm676_vm3, %v4687_v48 }
 0x41c   :  { %v3104_v55 = vpop.f32.mrb[182].mxu0  ;;  %11577 = vmatprep.mubr.msk.bf16.mxu1 %vm12626_vm1, %v17919_v21 }
 0x41d   :  { %v3158_v47 = vadd.f32 %v15171_v51, %v3138_v30  ;;  %v3139_v8 = vadd.f32 %v3104_v55, %v15099_v9  ;;  %v11232_v4 = vpop.f32.mrb[183].mxu0  ;;  %v4678_v30 = vld [vmem:[#allocation2 + $0x110] sm:$0xff] }
 0x41e   :  { %v15256_v44 = vpop.f32.mrb[208].mxu1  ;;  %v4689_v55 = vpack.c.bf16 %v4679_v57, %v4678_v30 }
 0x41f   :  { %v3172_v11 = vmax.f32 %v3158_v47, 0.0  ;;  %v3159_v22 = vadd.f32 %v15171_v51, %v3139_v8  ;;  %v11327_v50 = vpop.f32.mrb[209].mxu1  ;;  %11482 = vmatmul.mubr.msk.bf16.gmra.mrb[32].mxu0 %vm676_vm3, %v15254_v46  ;;  %v4303_v47 = vld [vmem:[#allocation2 + $0x51] sm:$0xff] }
 0x420   :  { %v15261_v54 = vpop.f32.mrb[210].mxu1  ;;  %11485 = vmatprep.mubr.msk.bf16.mxu0 %vm12626_vm1, %v17919_v21 }
 0x421   :  { %3187 = vst.msk [vmem:[#allocation3 + $0x30] sm:$0xff] %vm3180_vm4, %v3172_v11  ;;  %v3173_v9 = vmax.f32 %v3159_v22, 0.0  ;;  %v11328_v42 = vpop.f32.mrb[211].mxu1  ;;  %v4302_v11 = vld [vmem:[#allocation2 + $0x49] sm:$0xff] }
 0x422   :  { %v3109_v49 = vpop.f32.mrb[184].mxu0 }
 0x423   :  { %3188 = vst.msk [vmem:[#allocation3 + $0x38] sm:$0xff] %vm3180_vm4, %v3173_v9  ;;  %v3140_v12 = vadd.f32 %v3109_v49, %v15114_v61  ;;  %v11235_v13 = vpop.f32.mrb[185].mxu0  ;;  %11578 = vmatmul.mubr.msk.bf16.gmra.mrb[60].mxu1 %vm676_vm3, %v4688_v32  ;;  %v15292_v9 = vpack.c.bf16 %v4303_v47, %v4302_v11  ;;  %v4681_v32 = vld [vmem:[#allocation2 + $0x128] sm:$0xff] }
 0x424   :  { %v3112_v25 = vpop.f32.mrb[186].mxu0  ;;  %11581 = vmatprep.mubr.msk.bf16.mxu1 %vm12626_vm1, %v17919_v21  ;;  %v4680_v13 = vld [vmem:[#allocation2 + $0x120] sm:$0xff] }
 0x425   :  { %v3160_v15 = vadd.f32 %v15171_v51, %v3140_v12  ;;  %v3141_v41 = vadd.f32 %v3112_v25, %v15120_v3  ;;  %v11236_v23 = vpop.f32.mrb[187].mxu0  ;;  %v4690_v1 = vpack.c.bf16 %v4681_v32, %v4680_v13 }
 0x426   :  { %v15275_v18 = vpop.f32.mrb[212].mxu1 }
 0x427   :  { %v3174_v48 = vmax.f32 %v3160_v15, 0.0  ;;  %v3161_v61 = vadd.f32 %v15171_v51, %v3141_v41  ;;  %v11331_v40 = vpop.f32.mrb[213].mxu1  ;;  %11486 = vmatmul.mubr.msk.bf16.gmra.mrb[36].mxu0 %vm676_vm3, %v15273_v62  ;;  %v4305_v41 = vld [vmem:[#allocation2 + $0x61] sm:$0xff] }
 0x428   :  { %v15280_v16 = vpop.f32.mrb[214].mxu1  ;;  %11489 = vmatprep.mubr.msk.bf16.mxu0 %vm12626_vm1, %v17919_v21 }
 0x429   :  { %3189 = vst.msk [vmem:[#allocation3 + $0x40] sm:$0xff] %vm3180_vm4, %v3174_v48  ;;  %v3175_v3 = vmax.f32 %v3161_v61, 0.0  ;;  %v11332_v24 = vpop.f32.mrb[215].mxu1  ;;  %v4304_v61 = vld [vmem:[#allocation2 + $0x59] sm:$0xff] }
 0x42a   :  { %v3117_v37 = vpop.f32.mrb[188].mxu0  ;;  %v15311_v24 = vpack.c.bf16 %v4305_v41, %v4304_v61 }
 0x42b   :  { %3190 = vst.msk [vmem:[#allocation3 + $0x48] sm:$0xff] %vm3180_vm4, %v3175_v3  ;;  %v3142_v8 = vadd.f32 %v3117_v37, %v15135_v31  ;;  %v11239_v4 = vpop.f32.mrb[189].mxu0  ;;  %11582 = vmatmul.mubr.msk.bf16.gmra.mrb[64].mxu1 %vm676_vm3, %v4689_v55  ;;  %v4683_v37 = vld [vmem:[#allocation2 + $0x138] sm:$0xff] }
 0x42c   :  { %v3120_v29 = vpop.f32.mrb[190].mxu0  ;;  %11585 = vmatprep.mubr.msk.bf16.mxu1 %vm12626_vm1, %v17919_v21 }
 0x42d   :  { %v3162_v22 = vadd.f32 %v15171_v51, %v3142_v8  ;;  %v3143_v50 = vadd.f32 %v3120_v29, %v15141_v14  ;;  %v11240_v5 = vpop.f32.mrb[191].mxu0  ;;  %v4682_v29 = vld [vmem:[#allocation2 + $0x130] sm:$0xff] }
 0x42e   :  { %v15294_v42 = vpop.f32.mrb[216].mxu1  ;;  %v4306_v5 = vld [vmem:[#allocation2 + $0x69] sm:$0xff] }
 0x42f   :  { %v3176_v49 = vmax.f32 %v3162_v22, 0.0  ;;  %v3163_v31 = vadd.f32 %v15171_v51, %v3143_v50  ;;  %v11335_v43 = vpop.f32.mrb[217].mxu1  ;;  %11490 = vmatmul.mubr.msk.bf16.gmra.mrb[40].mxu0 %vm676_vm3, %v15292_v9  ;;  %v4691_v22 = vpack.c.bf16 %v4683_v37, %v4682_v29 }
 0x430   :  { %v15299_v12 = vpop.f32.mrb[218].mxu1  ;;  %11493 = vmatprep.mubr.msk.bf16.mxu0 %vm12626_vm1, %v17919_v21 }
 0x431   :  { %3191 = vst.msk [vmem:[#allocation3 + $0x50] sm:$0xff] %vm3180_vm4, %v3176_v49  ;;  %v3177_v14 = vmax.f32 %v3163_v31, 0.0  ;;  %v11336_v25 = vpop.f32.mrb[219].mxu1  ;;  %v4307_v31 = vld [vmem:[#allocation2 + $0x71] sm:$0xff] }
 0x432   :  { %v3125_v15 = vpop.f32.mrb[192].mxu0 }
 0x433   :  { %3192 = vst.msk [vmem:[#allocation3 + $0x58] sm:$0xff] %vm3180_vm4, %v3177_v14  ;;  %v3144_v23 = vadd.f32 %v3125_v15, %v15156_v28  ;;  %v11243_v57 = vpop.f32.mrb[193].mxu0  ;;  %11586 = vmatmul.mubr.msk.bf16.gmra.mrb[68].mxu1 %vm676_vm3, %v4690_v1  ;;  %v15329_v14 = vpack.c.bf16 %v4307_v31, %v4306_v5  ;;  %v4685_v15 = vld [vmem:[#allocation2 + $0x148] sm:$0xff]  ;;  %v4699_v31 = vld [vmem:[#allocation2 + $0x160] sm:$0xff] }
 0x434   :  { %v3128_v48 = vpop.f32.mrb[194].mxu0  ;;  %11589 = vmatprep.mubr.msk.bf16.mxu1 %vm12626_vm1, %v17919_v21  ;;  %v4684_v57 = vld [vmem:[#allocation2 + $0x140] sm:$0xff] }
 0x435   :  { %v3164_v40 = vadd.f32 %v15171_v51, %v3144_v23  ;;  %v3145_v30 = vadd.f32 %v3128_v48, %v15162_v53  ;;  %v11244_v3 = vpop.f32.mrb[195].mxu0  ;;  %v4692_v48 = vpack.c.bf16 %v4685_v15, %v4684_v57  ;;  %v17977_v5 = vld [vmem:[#allocation125_spill] sm:$0xff] }
 0x436   :  { %v15313_v55 = vpop.f32.mrb[220].mxu1  ;;  %v12568_v15 = vld [vmem:[#allocation2 + $0x168] sm:$0xff] }
 0x437   :  { %v3178_v47 = vmax.f32 %v3164_v40, 0.0  ;;  %v3165_v28 = vadd.f32 %v15171_v51, %v3145_v30  ;;  %v11339_v8 = vpop.f32.mrb[221].mxu1  ;;  %11494 = vmatmul.mubr.msk.bf16.gmra.mrb[44].mxu0 %vm676_vm3, %v15311_v24 }
 0x438   :  { %v15318_v4 = vpop.f32.mrb[222].mxu1  ;;  %11497 = vmatprep.mubr.msk.bf16.mxu0 %vm12626_vm1, %v17919_v21  ;;  %v17976_v8 = vld [vmem:[#allocation116_spill] sm:$0xff] }
 0x439   :  { %3193 = vst.msk [vmem:[#allocation3 + $0x60] sm:$0xff] %vm3180_vm4, %v3178_v47  ;;  %v3179_v53 = vmax.f32 %v3165_v28, 0.0  ;;  %v11340_v11 = vpop.f32.mrb[223].mxu1 }
 0x43a   :  { %v3434_v50 = vpop.f32.mrb[196].mxu0  ;;  %v12526_v11 = vld [vmem:[%s17753_s3 + $0x50] sm:$0xff]  }
 0x43b   :  { %3194 = vst.msk [vmem:[#allocation3 + $0x68] sm:$0xff] %vm3180_vm4, %v3179_v53  ;;  %v3435_v51 = vadd.f32 %v3434_v50, %v15018_v58  ;;  %v11283_v32 = vpop.f32.mrb[197].mxu0  ;;  %11590 = vmatmul.mubr.msk.bf16.gmra.mrb[72].mxu1 %vm676_vm3, %v4691_v22 }
 0x43c   :  { %v3437_v49 = vpop.f32.mrb[198].mxu0  ;;  %11593 = vmatprep.mubr.msk.bf16.mxu1 %vm12626_vm1, %v17919_v21 }
 0x43d   :  { %v3438_v43 = vadd.f32 %v3437_v49, %v15024_v20  ;;  %v11284_v13 = vpop.f32.mrb[199].mxu0  ;;  %v15332_v25 = vadd.f32 %v15182_v34, %v3435_v51  ;;  %v17978_v51 = vld [vmem:[#allocation123_spill] sm:$0xff] }
 0x43e   :  { %v15334_v1 = vpop.f32.mrb[224].mxu1  ;;  %v17979_v32 = vpack.c.bf16 %v17977_v5, %v17978_v51  ;;  %v5132_v5 = vld [vmem:[#allocation2 + $0x30] sm:$0xff] }
 0x43f   :  { %v11379_v58 = vpop.f32.mrb[225].mxu1  ;;  %11498 = vmatmul.mubr.msk.bf16.gmra.mrb[48].mxu0 %vm676_vm3, %v15329_v14  ;;  %v15339_v41 = vadd.f32 %v15186_v33, %v3438_v43  ;;  %v12523_v33 = vld [vmem:[%s17753_s3 + $0x20] sm:$0xff]  }
 0x440   :  { %v15341_v23 = vpop.f32.mrb[226].mxu1  ;;  %11537 = vmatprep.mubr.msk.bf16.mxu0 %vm12626_vm1, %v17919_v21  ;;  %v4712_v58 = vpack.c.bf16 %v12568_v15, %v4699_v31 }
 0x441   :  { %v11380_v20 = vpop.f32.mrb[227].mxu1 }
 0x442   :  { %v3442_v34 = vpop.f32.mrb[200].mxu0 }
 0x443   :  { %v3443_v61 = vadd.f32 %v3442_v34, %v15040_v17  ;;  %v11287_v40 = vpop.f32.mrb[201].mxu0  ;;  %11594 = vmatmul.mubr.msk.bf16.gmra.mrb[76].mxu1 %vm676_vm3, %v4692_v48  ;;  %v5130_v48 = vld [vmem:[#allocation2 + $0x20] sm:$0xff] }
 0x444   :  { %v3445_v30 = vpop.f32.mrb[202].mxu0  ;;  %11633 = vmatprep.mubr.msk.bf16.mxu1 %vm12626_vm1, %v17919_v21  ;;  %v5129_v40 = vld [vmem:[#allocation2 + $0x18] sm:$0xff] }
 0x445   :  { %v3446_v3 = vadd.f32 %v3445_v30, %v15046_v10  ;;  %v11288_v37 = vpop.f32.mrb[203].mxu0  ;;  %v15354_v47 = vadd.f32 %v15204_v60, %v3443_v61  ;;  %v12525_v10 = vld [vmem:[%s17753_s3 + $0x28] sm:$0xff]  }
 0x446   :  { %v15356_v28 = vpop.f32.mrb[228].mxu1 }
 0x447   :  { %v11383_v17 = vpop.f32.mrb[229].mxu1  ;;  %11538 = vmatmul.mubr.msk.bf16.vlgmr.msra.gmra.mrb[52].mxu0 %vm676_vm3, %v17976_v8  ;;  %v15361_v29 = vadd.f32 %v15209_v56, %v3446_v3 }
 0x448   :  { %11598 = vmatpush3.bf16.msra.mxu0 %v12523_v33  ;;  %v15363_v53 = vpop.f32.mrb[230].mxu1  ;;  %11541 = vmatprep.mubr.msk.bf16.mxu0 %vm12626_vm1, %v17919_v21 }
 0x449   :  { %v11384_v60 = vpop.f32.mrb[231].mxu1  ;;  %11599 = vmatprep.subr.bf16.mxu0 %v17919_v21 }
 0x44a   :  { %v3450_v22 = vpop.f32.mrb[204].mxu0  ;;  %v12569_v60 = vld [vmem:[#allocation2 + $0x170] sm:$0xff] }
 0x44b   :  { %v3451_v56 = vadd.f32 %v3450_v22, %v15072_v27  ;;  %v11291_v50 = vpop.f32.mrb[205].mxu0  ;;  %11634 = vmatmul.mubr.msk.bf16.vlgmr.msra.gmra.mrb[80].mxu1 %vm676_vm3, %v17979_v32  ;;  %v12528_v27 = vld [vmem:[%s17753_s3 + $0x58] sm:$0xff]  }
 0x44c   :  { %v3453_v49 = vpop.f32.mrb[206].mxu0  ;;  %11637 = vmatprep.mubr.msk.bf16.mxu1 %vm12626_vm1, %v17919_v21  ;;  %11600 = vmatpush3.bf16.msra.mxu0 %v12525_v10 }
 0x44d   :  { %v3454_v43 = vadd.f32 %v3453_v49, %v15079_v2  ;;  %v11292_v13 = vpop.f32.mrb[207].mxu0  ;;  %11694 = vmatpush3.bf16.msra.mxu1 %v12526_v11  ;;  %11661 = vmatprep.subr.bf16.mxu0 %v17919_v21  ;;  %v15387_v57 = vadd.f32 %v15235_v45, %v3451_v56  ;;  %v5142_v45 = vpack.c.bf16 %v5130_v48, %v5129_v40  ;;  %v12570_v11 = vld [vmem:[#allocation2 + $0x178] sm:$0xff]  ;;  %v5131_v49 = vld [vmem:[#allocation2 + $0x28] sm:$0xff] }
 0x44e   :  { %v15389_v20 = vpop.f32.mrb[232].mxu1  ;;  %11695 = vmatprep.subr.bf16.mxu1 %v17919_v21  ;;  %v4713_v22 = vpack.c.bf16 %v12570_v11, %v12569_v60  ;;  %v5143_v31 = vpack.c.bf16 %v5132_v5, %v5131_v49  ;;  %v12572_v48 = vld [vmem:[#allocation2 + $0x188] sm:$0xff]  ;;  %v12574_v5 = vld [vmem:[#allocation2 + $0x198] sm:$0xff] }
 0x44f   :  { %v11387_v34 = vpop.f32.mrb[233].mxu1  ;;  %11542 = vmatmul.mubr.msk.bf16.gmra.mrb[56].mxu0 %vm676_vm3, %v4712_v58  ;;  %v15394_v2 = vadd.f32 %v15241_v7, %v3454_v43 }
 0x450   :  { %v15396_v61 = vpop.f32.mrb[234].mxu1  ;;  %11545 = vmatprep.mubr.msk.bf16.mxu0 %vm12626_vm1, %v17919_v21 }
 0x451   :  { %v11388_v30 = vpop.f32.mrb[235].mxu1  ;;  %11696 = vmatpush3.bf16.msra.mxu1 %v12528_v27  ;;  %v12571_v27 = vld [vmem:[#allocation2 + $0x180] sm:$0xff] }
 0x452   :  { %v3458_v33 = vpop.f32.mrb[208].mxu0  ;;  %11757 = vmatprep.subr.bf16.mxu1 %v17919_v21  ;;  %v4714_v34 = vpack.c.bf16 %v12572_v48, %v12571_v27 }
 0x453   :  { %v3459_v3 = vadd.f32 %v3458_v33, %v15095_v26  ;;  %v11295_v37 = vpop.f32.mrb[209].mxu0  ;;  %11638 = vmatmul.mubr.msk.bf16.gmra.mrb[84].mxu1 %vm676_vm3, %v5142_v45  ;;  %v5134_v45 = vld [vmem:[#allocation2 + $0x40] sm:$0xff] }
 0x454   :  { %v3461_v17 = vpop.f32.mrb[210].mxu0  ;;  %11641 = vmatprep.mubr.msk.bf16.mxu1 %vm12626_vm1, %v17919_v21  ;;  %v5133_v37 = vld [vmem:[#allocation2 + $0x38] sm:$0xff] }
 0x455   :  { %v3462_v7 = vadd.f32 %v3461_v17, %v15101_v59  ;;  %v11296_v10 = vpop.f32.mrb[211].mxu0  ;;  %v15407_v56 = vadd.f32 %v15256_v44, %v3459_v3  ;;  %v5144_v17 = vpack.c.bf16 %v5134_v45, %v5133_v37  ;;  %v12576_v45 = vld [vmem:[#allocation2 + $0x1a8] sm:$0xff] }
 0x456   :  { %v15409_v50 = vpop.f32.mrb[236].mxu1 }
 0x457   :  { %v11391_v26 = vpop.f32.mrb[237].mxu1  ;;  %11546 = vmatmul.mubr.msk.bf16.gmra.mrb[60].mxu0 %vm676_vm3, %v4713_v22  ;;  %v15413_v51 = vadd.f32 %v15261_v54, %v3462_v7  ;;  %v12573_v22 = vld [vmem:[#allocation2 + $0x190] sm:$0xff] }
 0x458   :  { %v15415_v32 = vpop.f32.mrb[238].mxu1  ;;  %11549 = vmatprep.mubr.msk.bf16.mxu0 %vm12626_vm1, %v17919_v21  ;;  %v4715_v26 = vpack.c.bf16 %v12574_v5, %v12573_v22 }
 0x459   :  { %v11392_v59 = vpop.f32.mrb[239].mxu1 }
 0x45a   :  { %v3466_v43 = vpop.f32.mrb[212].mxu0 }
 0x45b   :  { %v3467_v44 = vadd.f32 %v3466_v43, %v15116_v35  ;;  %v11299_v13 = vpop.f32.mrb[213].mxu0  ;;  %11642 = vmatmul.mubr.msk.bf16.gmra.mrb[88].mxu1 %vm676_vm3, %v5143_v31  ;;  %v5136_v31 = vld [vmem:[#allocation2 + $0x50] sm:$0xff] }
 0x45c   :  { %v3469_v15 = vpop.f32.mrb[214].mxu0  ;;  %11645 = vmatprep.mubr.msk.bf16.mxu1 %vm12626_vm1, %v17919_v21  ;;  %v5135_v13 = vld [vmem:[#allocation2 + $0x48] sm:$0xff] }
 0x45d   :  { %v3470_v54 = vadd.f32 %v3469_v15, %v15122_v63  ;;  %v11300_v58 = vpop.f32.mrb[215].mxu0  ;;  %v15425_v40 = vadd.f32 %v15275_v18, %v3467_v44  ;;  %v5145_v15 = vpack.c.bf16 %v5136_v31, %v5135_v13  ;;  %v12577_v31 = vld [vmem:[#allocation2 + $0x1b0] sm:$0xff] }
 0x45e   :  { %v15427_v30 = vpop.f32.mrb[240].mxu1 }
 0x45f   :  { %v11395_v35 = vpop.f32.mrb[241].mxu1  ;;  %11550 = vmatmul.mubr.msk.bf16.gmra.mrb[64].mxu0 %vm676_vm3, %v4714_v34  ;;  %v15431_v33 = vadd.f32 %v15280_v16, %v3470_v54  ;;  %v12575_v34 = vld [vmem:[#allocation2 + $0x1a0] sm:$0xff] }
 0x460   :  { %v15433_v3 = vpop.f32.mrb[242].mxu1  ;;  %11553 = vmatprep.mubr.msk.bf16.mxu0 %vm12626_vm1, %v17919_v21  ;;  %v4716_v35 = vpack.c.bf16 %v12576_v45, %v12575_v34 }
 0x461   :  { %v11396_v63 = vpop.f32.mrb[243].mxu1 }
 0x462   :  { %v3474_v7 = vpop.f32.mrb[216].mxu0 }
 0x463   :  { %v3475_v18 = vadd.f32 %v3474_v7, %v15137_v36  ;;  %v11303_v10 = vpop.f32.mrb[217].mxu0  ;;  %11646 = vmatmul.mubr.msk.bf16.gmra.mrb[92].mxu1 %vm676_vm3, %v5144_v17  ;;  %v5138_v17 = vld [vmem:[#allocation2 + $0x60] sm:$0xff] }
 0x464   :  { %v3477_v60 = vpop.f32.mrb[218].mxu0  ;;  %11649 = vmatprep.mubr.msk.bf16.mxu1 %vm12626_vm1, %v17919_v21  ;;  %v5137_v10 = vld [vmem:[#allocation2 + $0x58] sm:$0xff] }
 0x465   :  { %v3478_v16 = vadd.f32 %v3477_v60, %v15143_v38  ;;  %v11304_v11 = vpop.f32.mrb[219].mxu0  ;;  %v15443_v49 = vadd.f32 %v15294_v42, %v3475_v18  ;;  %v5146_v60 = vpack.c.bf16 %v5138_v17, %v5137_v10  ;;  %v17980_v10 = vld [vmem:[#allocation120_spill] sm:$0xff] }
 0x466   :  { %v15445_v59 = vpop.f32.mrb[244].mxu1 }
 0x467   :  { %v11399_v36 = vpop.f32.mrb[245].mxu1  ;;  %11554 = vmatmul.mubr.msk.bf16.gmra.mrb[68].mxu0 %vm676_vm3, %v4715_v26  ;;  %v15449_v43 = vadd.f32 %v15299_v12, %v3478_v16 }
 0x468   :  { %v15451_v44 = vpop.f32.mrb[246].mxu1  ;;  %11557 = vmatprep.mubr.msk.bf16.mxu0 %vm12626_vm1, %v17919_v21 }
 0x469   :  { %v11400_v38 = vpop.f32.mrb[247].mxu1 }
 0x46a   :  { %v3482_v54 = vpop.f32.mrb[220].mxu0 }
 0x46b   :  { %v3483_v42 = vadd.f32 %v3482_v54, %v15158_v19  ;;  %v11307_v58 = vpop.f32.mrb[221].mxu0  ;;  %11650 = vmatmul.mubr.msk.bf16.gmra.mrb[96].mxu1 %vm676_vm3, %v5145_v15  ;;  %v5139_v15 = vld [vmem:[#allocation2 + $0x68] sm:$0xff] }
 0x46c   :  { %v3485_v27 = vpop.f32.mrb[222].mxu0  ;;  %11653 = vmatprep.mubr.msk.bf16.mxu1 %vm12626_vm1, %v17919_v21  ;;  %v5140_v58 = vld [vmem:[#allocation2 + $0x70] sm:$0xff] }
 0x46d   :  { %v3486_v12 = vadd.f32 %v3485_v27, %v15164_v0  ;;  %v11308_v48 = vpop.f32.mrb[223].mxu0  ;;  %v15461_v37 = vadd.f32 %v15313_v55, %v3483_v42  ;;  %v15473_v55 = vld [vmem:[#allocation2 + $0x1b8] sm:$0xff]  ;;  %v5147_v27 = vpack.c.bf16 %v5140_v58, %v5139_v15 }
 0x46e   :  { %v15463_v63 = vpop.f32.mrb[248].mxu1  ;;  %v4717_v36 = vpack.c.bf16 %v15473_v55, %v12577_v31 }
 0x46f   :  { %v11403_v19 = vpop.f32.mrb[249].mxu1  ;;  %11558 = vmatmul.mubr.msk.bf16.gmra.mrb[72].mxu0 %vm676_vm3, %v4716_v35  ;;  %v15467_v7 = vadd.f32 %v15318_v4, %v3486_v12 }
 0x470   :  { %v15469_v18 = vpop.f32.mrb[250].mxu1  ;;  %11561 = vmatprep.mubr.msk.bf16.mxu0 %vm12626_vm1, %v17919_v21 }
 0x471   :  { %v11404_v0 = vpop.f32.mrb[251].mxu1 }
 0x472   :  { %v3742_v16 = vpop.f32.mrb[224].mxu0 }
 0x473   :  { %v3797_v11 = vadd.f32 %v3742_v16, %v15332_v25  ;;  %v11347_v22 = vpop.f32.mrb[225].mxu0  ;;  %11654 = vmatmul.mubr.msk.bf16.gmra.mrb[100].mxu1 %vm676_vm3, %v5146_v60  ;;  %v12530_v16 = vld [vmem:[%s17753_s3 + $0x70] sm:$0xff]  }
 0x474   :  { %v3745_v5 = vpop.f32.mrb[226].mxu0  ;;  %11657 = vmatprep.mubr.msk.bf16.mxu1 %vm12626_vm1, %v17919_v21 }
 0x475   :  { %v3798_v4 = vadd.f32 %v3745_v5, %v15339_v41  ;;  %v11348_v26 = vpop.f32.mrb[227].mxu0  ;;  %v15482_v13 = vadd.f32 %v15334_v1, %v3797_v11 }
 0x476   :  { %v15484_v38 = vpop.f32.mrb[252].mxu1  ;;  %v4968_v26 = vld [vmem:[#allocation2 + $0xf1] sm:$0xff] }
 0x477   :  { %v11443_v25 = vpop.f32.mrb[253].mxu1  ;;  %11562 = vmatmul.mubr.msk.bf16.gmra.mrb[76].mxu0 %vm676_vm3, %v4717_v36  ;;  %v15488_v54 = vadd.f32 %v15341_v23, %v3798_v4  ;;  %v12527_v23 = vld [vmem:[%s17753_s3 + $0x40] sm:$0xff]  }
 0x478   :  { %v15490_v42 = vpop.f32.mrb[254].mxu1  ;;  %11601 = vmatprep.mubr.msk.bf16.mxu0 %vm12626_vm1, %v17919_v21 }
 0x479   :  { %v11444_v41 = vpop.f32.mrb[255].mxu1 }
 0x47a   :  { %v3750_v12 = vpop.f32.mrb[228].mxu0 }
 0x47b   :  { %v3799_v1 = vadd.f32 %v3750_v12, %v15354_v47  ;;  %v11351_v48 = vpop.f32.mrb[229].mxu0  ;;  %11658 = vmatmul.mubr.msk.bf16.gmra.mrb[104].mxu1 %vm676_vm3, %v5147_v27 }
 0x47c   :  { %v3753_v34 = vpop.f32.mrb[230].mxu0  ;;  %11697 = vmatprep.mubr.msk.bf16.mxu1 %vm12626_vm1, %v17919_v21 }
 0x47d   :  { %v3800_v45 = vadd.f32 %v3753_v34, %v15361_v29  ;;  %v11352_v35 = vpop.f32.mrb[231].mxu0  ;;  %v15503_v17 = vadd.f32 %v15356_v28, %v3799_v1  ;;  %v12529_v28 = vld [vmem:[%s17753_s3 + $0x48] sm:$0xff]  }
 0x47e   :  { %v15505_v19 = vpop.f32.mrb[0].mxu1  ;;  %v4971_v1 = vld [vmem:[#allocation2 + $0x109] sm:$0xff] }
 0x47f   :  { %v11447_v47 = vpop.f32.mrb[1].mxu1  ;;  %11602 = vmatmul.mubr.msk.bf16.vlgmr.msra.gmra.mrb[80].mxu0 %vm676_vm3, %v17980_v10  ;;  %v15510_v0 = vadd.f32 %v15363_v53, %v3800_v45  ;;  %v4969_v53 = vld [vmem:[#allocation2 + $0xf9] sm:$0xff] }
 0x480   :  { %11662 = vmatpush3.bf16.msra.mxu0 %v12527_v23  ;;  %v15512_v60 = vpop.f32.mrb[2].mxu1  ;;  %11605 = vmatprep.mubr.msk.bf16.mxu0 %vm12626_vm1, %v17919_v21  ;;  %v15529_v15 = vpack.c.bf16 %v4969_v53, %v4968_v26  ;;  %v4973_v53 = vld [vmem:[#allocation2 + $0x119] sm:$0xff] }
 0x481   :  { %v11448_v29 = vpop.f32.mrb[3].mxu1  ;;  %11663 = vmatprep.subr.bf16.mxu0 %v17919_v21 }
 0x482   :  { %v3758_v11 = vpop.f32.mrb[232].mxu0 }
 0x483   :  { %v3801_v22 = vadd.f32 %v3758_v11, %v15387_v57  ;;  %v11355_v5 = vpop.f32.mrb[233].mxu0  ;;  %11698 = vmatmul.mubr.msk.bf16.vlgmr.msra.gmra.mrb[108].mxu1 %vm676_vm3, %v17974_v6  ;;  %v12532_v57 = vld [vmem:[%s17753_s3 + $0x78] sm:$0xff]  }
 0x484   :  { %v3761_v4 = vpop.f32.mrb[234].mxu0  ;;  %11701 = vmatprep.mubr.msk.bf16.mxu1 %vm12626_vm1, %v17919_v21  ;;  %11664 = vmatpush3.bf16.msra.mxu0 %v12529_v28 }
 0x485   :  { %v3802_v31 = vadd.f32 %v3761_v4, %v15394_v2  ;;  %v11356_v36 = vpop.f32.mrb[235].mxu0  ;;  %11758 = vmatpush3.bf16.msra.mxu1 %v12530_v16  ;;  %11725 = vmatprep.subr.bf16.mxu0 %v17919_v21  ;;  %v15536_v25 = vadd.f32 %v15389_v20, %v3801_v22  ;;  %v4972_v4 = vld [vmem:[#allocation2 + $0x111] sm:$0xff] }
 0x486   :  { %v15538_v58 = vpop.f32.mrb[4].mxu1  ;;  %11759 = vmatprep.subr.bf16.mxu1 %v17919_v21 }
 0x487   :  { %v11451_v41 = vpop.f32.mrb[5].mxu1  ;;  %11606 = vmatmul.mubr.msk.bf16.gmra.mrb[84].mxu0 %vm676_vm3, %v15529_v15  ;;  %v15544_v2 = vadd.f32 %v15396_v61, %v3802_v31  ;;  %v4970_v61 = vld [vmem:[#allocation2 + $0x101] sm:$0xff]  ;;  %v15579_v31 = vpack.c.bf16 %v4973_v53, %v4972_v4 }
 0x488   :  { %v15546_v27 = vpop.f32.mrb[6].mxu1  ;;  %11609 = vmatprep.mubr.msk.bf16.mxu0 %vm12626_vm1, %v17919_v21  ;;  %v15557_v47 = vpack.c.bf16 %v4971_v1, %v4970_v61 }
 0x489   :  { %v11452_v12 = vpop.f32.mrb[7].mxu1  ;;  %11760 = vmatpush3.bf16.msra.mxu1 %v12532_v57 }
 0x48a   :  { %v3766_v20 = vpop.f32.mrb[236].mxu0  ;;  %11821 = vmatprep.subr.bf16.mxu1 %v17919_v21 }
 0x48b   :  { %v3803_v48 = vadd.f32 %v3766_v20, %v15407_v56  ;;  %v11359_v34 = vpop.f32.mrb[237].mxu0  ;;  %11702 = vmatmul.mubr.msk.bf16.gmra.mrb[112].mxu1 %vm676_vm3, %v15229_v52  ;;  %v4975_v20 = vld [vmem:[#allocation2 + $0x129] sm:$0xff] }
 0x48c   :  { %v3769_v23 = vpop.f32.mrb[238].mxu0  ;;  %11705 = vmatprep.mubr.msk.bf16.mxu1 %vm12626_vm1, %v17919_v21  ;;  %v4974_v34 = vld [vmem:[#allocation2 + $0x121] sm:$0xff] }
 0x48d   :  { %v3804_v45 = vadd.f32 %v3769_v23, %v15413_v51  ;;  %v11360_v35 = vpop.f32.mrb[239].mxu0  ;;  %v15560_v28 = vadd.f32 %v15409_v50, %v3803_v48  ;;  %v15601_v61 = vpack.c.bf16 %v4975_v20, %v4974_v34 }
 0x48e   :  { %v15562_v29 = vpop.f32.mrb[8].mxu1 }
 0x48f   :  { %v11455_v56 = vpop.f32.mrb[9].mxu1  ;;  %11610 = vmatmul.mubr.msk.bf16.gmra.mrb[88].mxu0 %vm676_vm3, %v15557_v47  ;;  %v15567_v52 = vadd.f32 %v15415_v32, %v3804_v45 }
 0x490   :  { %v15569_v16 = vpop.f32.mrb[10].mxu1  ;;  %11613 = vmatprep.mubr.msk.bf16.mxu0 %vm12626_vm1, %v17919_v21 }
 0x491   :  { %v11456_v51 = vpop.f32.mrb[11].mxu1 }
 0x492   :  { %v3774_v11 = vpop.f32.mrb[240].mxu0 }
 0x493   :  { %v3805_v50 = vadd.f32 %v3774_v11, %v15425_v40  ;;  %v11363_v22 = vpop.f32.mrb[241].mxu0  ;;  %11706 = vmatmul.mubr.msk.bf16.gmra.mrb[116].mxu1 %vm676_vm3, %v15254_v46  ;;  %v4977_v11 = vld [vmem:[#allocation2 + $0x139] sm:$0xff] }
 0x494   :  { %v3777_v5 = vpop.f32.mrb[242].mxu0  ;;  %11709 = vmatprep.mubr.msk.bf16.mxu1 %vm12626_vm1, %v17919_v21  ;;  %v4976_v22 = vld [vmem:[#allocation2 + $0x131] sm:$0xff] }
 0x495   :  { %v3806_v32 = vadd.f32 %v3777_v5, %v15431_v33  ;;  %v11364_v26 = vpop.f32.mrb[243].mxu0  ;;  %v15582_v36 = vadd.f32 %v15427_v30, %v3805_v50  ;;  %v15623_v4 = vpack.c.bf16 %v4977_v11, %v4976_v22 }
 0x496   :  { %v15584_v57 = vpop.f32.mrb[12].mxu1 }
 0x497   :  { %v11459_v40 = vpop.f32.mrb[13].mxu1  ;;  %11614 = vmatmul.mubr.msk.bf16.gmra.mrb[92].mxu0 %vm676_vm3, %v15579_v31  ;;  %v15589_v46 = vadd.f32 %v15433_v3, %v3806_v32 }
 0x498   :  { %v15591_v41 = vpop.f32.mrb[14].mxu1  ;;  %11617 = vmatprep.mubr.msk.bf16.mxu0 %vm12626_vm1, %v17919_v21 }
 0x499   :  { %v11460_v33 = vpop.f32.mrb[15].mxu1 }
 0x49a   :  { %v3782_v12 = vpop.f32.mrb[244].mxu0 }
 0x49b   :  { %v3807_v30 = vadd.f32 %v3782_v12, %v15443_v49  ;;  %v11367_v1 = vpop.f32.mrb[245].mxu0  ;;  %11710 = vmatmul.mubr.msk.bf16.gmra.mrb[120].mxu1 %vm676_vm3, %v15273_v62  ;;  %v4979_v12 = vld [vmem:[#allocation2 + $0x149] sm:$0xff] }
 0x49c   :  { %v3785_v48 = vpop.f32.mrb[246].mxu0  ;;  %11713 = vmatprep.mubr.msk.bf16.mxu1 %vm12626_vm1, %v17919_v21  ;;  %v4978_v1 = vld [vmem:[#allocation2 + $0x141] sm:$0xff] }
 0x49d   :  { %v3808_v3 = vadd.f32 %v3785_v48, %v15449_v43  ;;  %v11368_v23 = vpop.f32.mrb[247].mxu0  ;;  %v15604_v45 = vadd.f32 %v15445_v59, %v3807_v30  ;;  %v15645_v34 = vpack.c.bf16 %v4979_v12, %v4978_v1 }
 0x49e   :  { %v15606_v35 = vpop.f32.mrb[16].mxu1 }
 0x49f   :  { %v11463_v49 = vpop.f32.mrb[17].mxu1  ;;  %11618 = vmatmul.mubr.msk.bf16.gmra.mrb[96].mxu0 %vm676_vm3, %v15601_v61  ;;  %v15611_v62 = vadd.f32 %v15451_v44, %v3808_v3 }
 0x4a0   :  { %v15613_v56 = vpop.f32.mrb[18].mxu1  ;;  %11621 = vmatprep.mubr.msk.bf16.mxu0 %vm12626_vm1, %v17919_v21 }
 0x4a1   :  { %v11464_v43 = vpop.f32.mrb[19].mxu1 }
 0x4a2   :  { %v3790_v51 = vpop.f32.mrb[248].mxu0 }
 0x4a3   :  { %v3809_v59 = vadd.f32 %v3790_v51, %v15461_v37  ;;  %v11371_v53 = vpop.f32.mrb[249].mxu0  ;;  %11714 = vmatmul.mubr.msk.bf16.gmra.mrb[124].mxu1 %vm676_vm3, %v15292_v9 }
 0x4a4   :  { %v3793_v50 = vpop.f32.mrb[250].mxu0  ;;  %11717 = vmatprep.mubr.msk.bf16.mxu1 %vm12626_vm1, %v17919_v21 }
 0x4a5   :  { %v3810_v44 = vadd.f32 %v3793_v50, %v15467_v7  ;;  %v11372_v5 = vpop.f32.mrb[251].mxu0  ;;  %v15626_v32 = vadd.f32 %v15463_v63, %v3809_v59  ;;  %v12531_v59 = vld [vmem:[%s17753_s3 + $0x60] sm:$0xff]  }
 0x4a6   :  { %v15628_v26 = vpop.f32.mrb[20].mxu1 }
 0x4a7   :  { %v11467_v37 = vpop.f32.mrb[21].mxu1  ;;  %11622 = vmatmul.mubr.msk.bf16.gmra.mrb[100].mxu0 %vm676_vm3, %v15623_v4  ;;  %v15633_v9 = vadd.f32 %v15469_v18, %v3810_v44  ;;  %v17981_v44 = vld [vmem:[#allocation124_spill] sm:$0xff] }
 0x4a8   :  { %v15635_v40 = vpop.f32.mrb[22].mxu1  ;;  %11625 = vmatprep.mubr.msk.bf16.mxu0 %vm12626_vm1, %v17919_v21  ;;  %v12534_v37 = vld [vmem:[%s17753_s3 + $0x10] sm:$0xff]  }
 0x4a9   :  { %v11468_v7 = vpop.f32.mrb[23].mxu1 }
 0x4aa   :  { %v4064_v33 = vpop.f32.mrb[252].mxu0 }
 0x4ab   :  { %v4119_v63 = vadd.f32 %v4064_v33, %v15482_v13  ;;  %v11411_v20 = vpop.f32.mrb[253].mxu0  ;;  %11718 = vmatmul.mubr.msk.bf16.gmra.mrb[128].mxu1 %vm676_vm3, %v15311_v24 }
 0x4ac   :  { %v4067_v30 = vpop.f32.mrb[254].mxu0  ;;  %11721 = vmatprep.mubr.msk.bf16.mxu1 %vm12626_vm1, %v17919_v21 }
 0x4ad   :  { %v4120_v18 = vadd.f32 %v4067_v30, %v15488_v54  ;;  %v11412_v48 = vpop.f32.mrb[255].mxu0  ;;  %v15648_v3 = vadd.f32 %v15484_v38, %v4119_v63  ;;  %v17982_v63 = vld [vmem:[#allocation118_spill] sm:$0xff] }
 0x4ae   :  { %v15650_v23 = vpop.f32.mrb[24].mxu1  ;;  %v5290_v30 = vld [vmem:[#allocation2 + $0x88] sm:$0xff] }
 0x4af   :  { %v11507_v13 = vpop.f32.mrb[25].mxu1  ;;  %11626 = vmatmul.mubr.msk.bf16.gmra.mrb[104].mxu0 %vm676_vm3, %v15645_v34  ;;  %v15655_v24 = vadd.f32 %v15490_v42, %v4120_v18 }
 0x4b0   :  { %v15657_v49 = vpop.f32.mrb[26].mxu1  ;;  %11665 = vmatprep.mubr.msk.bf16.mxu0 %vm12626_vm1, %v17919_v21 }
 0x4b1   :  { %v11508_v54 = vpop.f32.mrb[27].mxu1 }
 0x4b2   :  { %v4072_v43 = vpop.f32.mrb[0].mxu0 }
 0x4b3   :  { %v4121_v51 = vadd.f32 %v4072_v43, %v15503_v17  ;;  %v11415_v38 = vpop.f32.mrb[1].mxu0  ;;  %11722 = vmatmul.mubr.msk.bf16.gmra.mrb[132].mxu1 %vm676_vm3, %v15329_v14 }
 0x4b4   :  { %v4075_v11 = vpop.f32.mrb[2].mxu0  ;;  %11761 = vmatprep.mubr.msk.bf16.mxu1 %vm12626_vm1, %v17919_v21 }
 0x4b5   :  { %v4122_v42 = vadd.f32 %v4075_v11, %v15510_v0  ;;  %v11416_v53 = vpop.f32.mrb[3].mxu0  ;;  %v15671_v50 = vadd.f32 %v15505_v19, %v4121_v51  ;;  %v12533_v19 = vld [vmem:[%s17753_s3 + $0x68] sm:$0xff]  }
 0x4b6   :  { %v15673_v22 = vpop.f32.mrb[28].mxu1  ;;  %v17983_v53 = vld [vmem:[#allocation117_spill] sm:$0xff] }
 0x4b7   :  { %v11511_v17 = vpop.f32.mrb[29].mxu1  ;;  %11666 = vmatmul.mubr.msk.bf16.vlgmr.msra.gmra.mrb[108].mxu0 %vm676_vm3, %v17981_v44  ;;  %v15678_v14 = vadd.f32 %v15512_v60, %v4122_v42  ;;  %v5291_v60 = vld [vmem:[#allocation2 + $0x90] sm:$0xff] }
 0x4b8   :  { %11726 = vmatpush3.bf16.msra.mxu0 %v12531_v59  ;;  %v15680_v5 = vpop.f32.mrb[30].mxu1  ;;  %11669 = vmatprep.mubr.msk.bf16.mxu0 %vm12626_vm1, %v17919_v21  ;;  %v5303_v48 = vpack.c.bf16 %v5291_v60, %v5290_v30  ;;  %v17984_v17 = vld [vmem:[#allocation121_spill] sm:$0xff] }
 0x4b9   :  { %v11512_v0 = vpop.f32.mrb[31].mxu1  ;;  %11727 = vmatprep.subr.bf16.mxu0 %v17919_v21 }
 0x4ba   :  { %v4080_v7 = vpop.f32.mrb[4].mxu0  ;;  %v5292_v0 = vld [vmem:[#allocation2 + $0x98] sm:$0xff] }
 0x4bb   :  { %v4123_v33 = vadd.f32 %v4080_v7, %v15536_v25  ;;  %v11419_v12 = vpop.f32.mrb[5].mxu0  ;;  %11762 = vmatmul.mubr.msk.bf16.vlgmr.msra.gmra.mrb[136].mxu1 %vm676_vm3, %v17982_v63  ;;  %v12536_v25 = vld [vmem:[%s17753_s3 + $0x18] sm:$0xff]  }
 0x4bc   :  { %v4083_v20 = vpop.f32.mrb[6].mxu0  ;;  %11765 = vmatprep.mubr.msk.bf16.mxu1 %vm12626_vm1, %v17919_v21  ;;  %11728 = vmatpush3.bf16.msra.mxu0 %v12533_v19  ;;  %v17985_v19 = vpack.c.bf16 %v17983_v53, %v17984_v17 }
 0x4bd   :  { %v4124_v1 = vadd.f32 %v4083_v20, %v15544_v2  ;;  %v11420_v18 = vpop.f32.mrb[7].mxu0  ;;  %11822 = vmatpush3.bf16.msra.mxu1 %v12534_v37  ;;  %11789 = vmatprep.subr.bf16.mxu0 %v17919_v21  ;;  %v15702_v13 = vadd.f32 %v15538_v58, %v4123_v33  ;;  %v5293_v58 = vld [vmem:[#allocation2 + $0xa0] sm:$0xff] }
 0x4be   :  { %v15704_v54 = vpop.f32.mrb[32].mxu1  ;;  %11823 = vmatprep.subr.bf16.mxu1 %v17919_v21  ;;  %v5304_v60 = vpack.c.bf16 %v5293_v58, %v5292_v0  ;;  %v5295_v18 = vld [vmem:[#allocation2 + $0xb0] sm:$0xff]  ;;  %v5294_v58 = vld [vmem:[#allocation2 + $0xa8] sm:$0xff] }
 0x4bf   :  { %v11515_v43 = vpop.f32.mrb[33].mxu1  ;;  %11670 = vmatmul.mubr.msk.bf16.gmra.mrb[112].mxu0 %vm676_vm3, %v5303_v48  ;;  %v15709_v2 = vadd.f32 %v15546_v27, %v4124_v1 }
 0x4c0   :  { %v15711_v51 = vpop.f32.mrb[34].mxu1  ;;  %11673 = vmatprep.mubr.msk.bf16.mxu0 %vm12626_vm1, %v17919_v21  ;;  %v17987_v43 = vld [vmem:[#allocation133_spill] sm:$0xff] }
 0x4c1   :  { %v11516_v38 = vpop.f32.mrb[35].mxu1  ;;  %11824 = vmatpush3.bf16.msra.mxu1 %v12536_v25  ;;  %v17986_v25 = vld [vmem:[#allocation134_spill] sm:$0xff] }
 0x4c2   :  { %v4088_v11 = vpop.f32.mrb[8].mxu0  ;;  %11885 = vmatprep.subr.bf16.mxu1 %v17919_v21  ;;  %v17988_v38 = vpack.c.bf16 %v17986_v25, %v17987_v43 }
 0x4c3   :  { %v4125_v59 = vadd.f32 %v4088_v11, %v15560_v28  ;;  %v11423_v42 = vpop.f32.mrb[9].mxu0  ;;  %11766 = vmatmul.mubr.msk.bf16.gmra.mrb[140].mxu1 %vm676_vm3, %v17985_v19 }
 0x4c4   :  { %v4091_v27 = vpop.f32.mrb[10].mxu0  ;;  %11769 = vmatprep.mubr.msk.bf16.mxu1 %vm12626_vm1, %v17919_v21  ;;  %v5305_v42 = vpack.c.bf16 %v5295_v18, %v5294_v58  ;;  %v5296_v18 = vld [vmem:[#allocation2 + $0xb8] sm:$0xff] }
 0x4c5   :  { %v4126_v37 = vadd.f32 %v4091_v27, %v15567_v52  ;;  %v11424_v7 = vpop.f32.mrb[11].mxu0  ;;  %v15725_v33 = vadd.f32 %v15562_v29, %v4125_v59 }
 0x4c6   :  { %v15727_v12 = vpop.f32.mrb[36].mxu1 }
 0x4c7   :  { %v11519_v28 = vpop.f32.mrb[37].mxu1  ;;  %11674 = vmatmul.mubr.msk.bf16.gmra.mrb[116].mxu0 %vm676_vm3, %v5304_v60  ;;  %v15731_v20 = vadd.f32 %v15569_v16, %v4126_v37  ;;  %v5297_v37 = vld [vmem:[#allocation2 + $0xc0] sm:$0xff]  ;;  %v17989_v60 = vld [vmem:[#allocation138_spill] sm:$0xff] }
 0x4c8   :  { %v15733_v30 = vpop.f32.mrb[38].mxu1  ;;  %11677 = vmatprep.mubr.msk.bf16.mxu0 %vm12626_vm1, %v17919_v21  ;;  %v17990_v28 = vld [vmem:[#allocation137_spill] sm:$0xff] }
 0x4c9   :  { %v11520_v1 = vpop.f32.mrb[39].mxu1 }
 0x4ca   :  { %v4096_v52 = vpop.f32.mrb[12].mxu0  ;;  %v17991_v1 = vpack.c.bf16 %v17989_v60, %v17990_v28 }
 0x4cb   :  { %v4127_v48 = vadd.f32 %v4096_v52, %v15582_v36  ;;  %v11427_v29 = vpop.f32.mrb[13].mxu0  ;;  %11770 = vmatmul.mubr.msk.bf16.gmra.mrb[144].mxu1 %vm676_vm3, %v17988_v38 }
 0x4cc   :  { %v4099_v11 = vpop.f32.mrb[14].mxu0  ;;  %11773 = vmatprep.mubr.msk.bf16.mxu1 %vm12626_vm1, %v17919_v21  ;;  %v5306_v29 = vpack.c.bf16 %v5297_v37, %v5296_v18  ;;  %v5298_v37 = vld [vmem:[#allocation2 + $0xc8] sm:$0xff] }
 0x4cd   :  { %v4128_v16 = vadd.f32 %v4099_v11, %v15589_v46  ;;  %v11428_v59 = vpop.f32.mrb[15].mxu0  ;;  %v15746_v53 = vadd.f32 %v15584_v57, %v4127_v48 }
 0x4ce   :  { %v15748_v17 = vpop.f32.mrb[40].mxu1 }
 0x4cf   :  { %v11523_v36 = vpop.f32.mrb[41].mxu1  ;;  %11678 = vmatmul.mubr.msk.bf16.gmra.mrb[120].mxu0 %vm676_vm3, %v5305_v42  ;;  %v15752_v19 = vadd.f32 %v15591_v41, %v4128_v16  ;;  %v5299_v16 = vld [vmem:[#allocation2 + $0xd0] sm:$0xff] }
 0x4d0   :  { %v15754_v27 = vpop.f32.mrb[42].mxu1  ;;  %11681 = vmatprep.mubr.msk.bf16.mxu0 %vm12626_vm1, %v17919_v21  ;;  %v17992_v42 = vld [vmem:[#allocation142_spill] sm:$0xff]  ;;  %v17993_v36 = vld [vmem:[#allocation141_spill] sm:$0xff] }
 0x4d1   :  { %v11524_v0 = vpop.f32.mrb[43].mxu1 }
 0x4d2   :  { %v4104_v46 = vpop.f32.mrb[16].mxu0  ;;  %v17994_v0 = vpack.c.bf16 %v17992_v42, %v17993_v36 }
 0x4d3   :  { %v4129_v7 = vadd.f32 %v4104_v46, %v15604_v45  ;;  %v11431_v57 = vpop.f32.mrb[17].mxu0  ;;  %11774 = vmatmul.mubr.msk.bf16.gmra.mrb[148].mxu1 %vm676_vm3, %v17991_v1 }
 0x4d4   :  { %v4107_v52 = vpop.f32.mrb[18].mxu0  ;;  %11777 = vmatprep.mubr.msk.bf16.mxu1 %vm12626_vm1, %v17919_v21  ;;  %v5307_v57 = vpack.c.bf16 %v5299_v16, %v5298_v37  ;;  %v5300_v16 = vld [vmem:[#allocation2 + $0xd8] sm:$0xff] }
 0x4d5   :  { %v4130_v41 = vadd.f32 %v4107_v52, %v15611_v62  ;;  %v11432_v48 = vpop.f32.mrb[19].mxu0  ;;  %v15767_v25 = vadd.f32 %v15606_v35, %v4129_v7 }
 0x4d6   :  { %v15769_v43 = vpop.f32.mrb[44].mxu1 }
 0x4d7   :  { %v11527_v45 = vpop.f32.mrb[45].mxu1  ;;  %11682 = vmatmul.mubr.msk.bf16.gmra.mrb[124].mxu0 %vm676_vm3, %v5306_v29  ;;  %v15773_v38 = vadd.f32 %v15613_v56, %v4130_v41  ;;  %v5301_v41 = vld [vmem:[#allocation2 + $0xe0] sm:$0xff]  ;;  %v17995_v29 = vld [vmem:[#allocation146_spill] sm:$0xff] }
 0x4d8   :  { %v15775_v11 = vpop.f32.mrb[46].mxu1  ;;  %11685 = vmatprep.mubr.msk.bf16.mxu0 %vm12626_vm1, %v17919_v21  ;;  %v17996_v45 = vld [vmem:[#allocation145_spill] sm:$0xff]  ;;  %v5308_v42 = vpack.c.bf16 %v5301_v41, %v5300_v16 }
 0x4d9   :  { %v11528_v58 = vpop.f32.mrb[47].mxu1 }
 0x4da   :  { %v4112_v62 = vpop.f32.mrb[20].mxu0  ;;  %v17997_v58 = vpack.c.bf16 %v17995_v29, %v17996_v45  ;;  %v12535_v45 = vld [vmem:[%s17753_s3 + $0x80] sm:$0xff]  }
 0x4db   :  { %v4131_v59 = vadd.f32 %v4112_v62, %v15626_v32  ;;  %v11435_v35 = vpop.f32.mrb[21].mxu0  ;;  %11778 = vmatmul.mubr.msk.bf16.gmra.mrb[152].mxu1 %vm676_vm3, %v17994_v0  ;;  %v15814_v0 = vld [vmem:[%s17754_s4] ss:$0 sm:$0xff] }
 0x4dc   :  { %v4115_v46 = vpop.f32.mrb[22].mxu0  ;;  %11781 = vmatprep.mubr.msk.bf16.mxu1 %vm12626_vm1, %v17919_v21 }
 0x4dd   :  { %v4132_v56 = vadd.f32 %v4115_v46, %v15633_v9  ;;  %v11436_v7 = vpop.f32.mrb[23].mxu0  ;;  %v15788_v60 = vadd.f32 %v15628_v26, %v4131_v59 }
 0x4de   :  { %v15790_v28 = vpop.f32.mrb[48].mxu1 }
 0x4df   :  { %v11531_v32 = vpop.f32.mrb[49].mxu1  ;;  %11686 = vmatmul.mubr.msk.bf16.gmra.mrb[128].mxu0 %vm676_vm3, %v5307_v57  ;;  %v15794_v1 = vadd.f32 %v15635_v40, %v4132_v56 }
 0x4e0   :  { %v15796_v52 = vpop.f32.mrb[50].mxu1  ;;  %11689 = vmatprep.mubr.msk.bf16.mxu0 %vm12626_vm1, %v17919_v21 }
 0x4e1   :  { %v11532_v18 = vpop.f32.mrb[51].mxu1 }
 0x4e2   :  { %v4386_v9 = vpop.f32.mrb[24].mxu0 }
 0x4e3   :  { %v4441_v48 = vadd.f32 %v4386_v9, %v15648_v3  ;;  %v11475_v26 = vpop.f32.mrb[25].mxu0  ;;  %11782 = vmatmul.mubr.msk.bf16.gmra.mrb[156].mxu1 %vm676_vm3, %v17997_v58  ;;  %v5784_v3 = vld [vmem:[#allocation2 + $0x1c0] sm:$0xff]  ;;  %v4631_v9 = vld [vmem:[#allocation3 + $0x8] sm:$0xff] }
 0x4e4   :  { %v4389_v62 = vpop.f32.mrb[26].mxu0  ;;  %11785 = vmatprep.mubr.msk.bf16.mxu1 %vm12626_vm1, %v17919_v21  ;;  %v5791_v18 = vpack.c.bf16 %v5784_v3, %v15473_v55 }
 0x4e5   :  { %v4602_v40 = vadd.f32 %v15650_v23, %v4441_v48  ;;  %v4442_v59 = vadd.f32 %v4389_v62, %v15655_v24  ;;  %v11476_v35 = vpop.f32.mrb[27].mxu0  ;;  %v4630_v23 = vld [vmem:[#allocation3] sm:$0xff] }
 0x4e6   :  { %v15809_v36 = vpop.f32.mrb[52].mxu1  ;;  %v17998_v35 = vld [vmem:[#allocation131_spill] sm:$0xff] }
 0x4e7   :  { %v4616_v46 = vadd.f32 %v15814_v0, %v4602_v40  ;;  %v4603_v37 = vadd.f32 %v15657_v49, %v4442_v59  ;;  %v11571_v56 = vpop.f32.mrb[53].mxu1  ;;  %11690 = vmatmul.mubr.msk.bf16.gmra.mrb[132].mxu0 %vm676_vm3, %v5308_v42  ;;  %v17999_v42 = vld [vmem:[#allocation127_spill] sm:$0xff] }
 0x4e8   :  { %v15819_v7 = vpop.f32.mrb[54].mxu1  ;;  %11729 = vmatprep.mubr.msk.bf16.mxu0 %vm12626_vm1, %v17919_v21  ;;  %v18000_v3 = vpack.c.bf16 %v17998_v35, %v17999_v42  ;;  %v4635_v42 = vld [vmem:[#allocation3 + $0x28] sm:$0xff] }
 0x4e9   :  { %v4644_v24 = vmax.f32 %v4630_v23, %v4616_v46  ;;  %v4617_v57 = vadd.f32 %v15814_v0, %v4603_v37  ;;  %v11572_v32 = vpop.f32.mrb[55].mxu1  ;;  %v4632_v46 = vld [vmem:[#allocation3 + $0x10] sm:$0xff] }
 0x4ea   :  { %v4394_v41 = vpop.f32.mrb[28].mxu0  ;;  %v12538_v23 = vld [vmem:[%s17753_s3 + $0x20] sm:$0xff]  }
 0x4eb   :  { %4658 = vst.msk [vmem:[#allocation3] sm:$0xff] %vm3180_vm4, %v4644_v24  ;;  %v4645_v49 = vmax.f32 %v4631_v9, %v4617_v57  ;;  %v4443_v48 = vadd.f32 %v4394_v41, %v15671_v50  ;;  %v11479_v26 = vpop.f32.mrb[29].mxu0  ;;  %11786 = vmatmul.mubr.msk.bf16.gmra.mrb[160].mxu1 %vm676_vm3, %v5791_v18  ;;  %v4633_v24 = vld [vmem:[#allocation3 + $0x18] sm:$0xff]  ;;  %v5613_v32 = vld [vmem:[#allocation2 + $0x100] sm:$0xff] }
 0x4ec   :  { %v4397_v29 = vpop.f32.mrb[30].mxu0  ;;  %11825 = vmatprep.mubr.msk.bf16.mxu1 %vm12626_vm1, %v17919_v21 }
 0x4ed   :  { %4659 = vst.msk [vmem:[#allocation3 + $0x8] sm:$0xff] %vm3180_vm4, %v4645_v49  ;;  %v4604_v55 = vadd.f32 %v15673_v22, %v4443_v48  ;;  %v4444_v58 = vadd.f32 %v4397_v29, %v15678_v14  ;;  %v11480_v62 = vpop.f32.mrb[31].mxu0  ;;  %v12537_v22 = vld [vmem:[%s17753_s3 + $0x88] sm:$0xff]   ;;  %v5612_v48 = vld [vmem:[#allocation2 + $0xf8] sm:$0xff] }
 0x4ee   :  { %v15836_v16 = vpop.f32.mrb[56].mxu1 }
 0x4ef   :  { %v4618_v50 = vadd.f32 %v15814_v0, %v4604_v55  ;;  %v4605_v40 = vadd.f32 %v15680_v5, %v4444_v58  ;;  %v11575_v59 = vpop.f32.mrb[57].mxu1  ;;  %11730 = vmatmul.mubr.msk.bf16.vlgmr.msra.gmra.mrb[136].mxu0 %vm676_vm3, %v18000_v3  ;;  %v5625_v55 = vpack.c.bf16 %v5613_v32, %v5612_v48 }
 0x4f0   :  { %11790 = vmatpush3.bf16.msra.mxu0 %v12535_v45  ;;  %v15844_v37 = vpop.f32.mrb[58].mxu1  ;;  %11733 = vmatprep.mubr.msk.bf16.mxu0 %vm12626_vm1, %v17919_v21 }
 0x4f1   :  { %v4646_v14 = vmax.f32 %v4632_v46, %v4618_v50  ;;  %v4619_v5 = vadd.f32 %v15814_v0, %v4605_v40  ;;  %v11576_v56 = vpop.f32.mrb[59].mxu1  ;;  %11791 = vmatprep.subr.bf16.mxu0 %v17919_v21  ;;  %v5615_v46 = vld [vmem:[#allocation2 + $0x110] sm:$0xff] }
 0x4f2   :  { %v4402_v57 = vpop.f32.mrb[32].mxu0  ;;  %v5614_v56 = vld [vmem:[#allocation2 + $0x108] sm:$0xff] }
 0x4f3   :  { %4660 = vst.msk [vmem:[#allocation3 + $0x10] sm:$0xff] %vm3180_vm4, %v4646_v14  ;;  %v4647_v18 = vmax.f32 %v4633_v24, %v4619_v5  ;;  %v4445_v9 = vadd.f32 %v4402_v57, %v15702_v13  ;;  %v11483_v41 = vpop.f32.mrb[33].mxu0  ;;  %11826 = vmatmul.mubr.msk.bf16.vlgmr.msra.gmra.mrb[164].mxu1 %vm676_vm3, %v17980_v10  ;;  %v12540_v10 = vld [vmem:[%s17753_s3 + $0x28] sm:$0xff]   ;;  %v5626_v32 = vpack.c.bf16 %v5615_v46, %v5614_v56 }
 0x4f4   :  { %v4405_v49 = vpop.f32.mrb[34].mxu0  ;;  %11829 = vmatprep.mubr.msk.bf16.mxu1 %vm12626_vm1, %v17919_v21  ;;  %11792 = vmatpush3.bf16.msra.mxu0 %v12537_v22  ;;  %v4636_v41 = vld [vmem:[#allocation3 + $0x30] sm:$0xff] }
 0x4f5   :  { %4661 = vst.msk [vmem:[#allocation3 + $0x18] sm:$0xff] %vm3180_vm4, %v4647_v18  ;;  %v4606_v26 = vadd.f32 %v15704_v54, %v4445_v9  ;;  %v4446_v29 = vadd.f32 %v4405_v49, %v15709_v2  ;;  %v11484_v45 = vpop.f32.mrb[35].mxu0  ;;  %11886 = vmatpush3.bf16.msra.mxu1 %v12538_v23  ;;  %11853 = vmatprep.subr.bf16.mxu0 %v17919_v21  ;;  %v4634_v2 = vld [vmem:[#allocation3 + $0x20] sm:$0xff] }
 0x4f6   :  { %v15869_v13 = vpop.f32.mrb[60].mxu1  ;;  %11887 = vmatprep.subr.bf16.mxu1 %v17919_v21  ;;  %v5617_v45 = vld [vmem:[#allocation2 + $0x120] sm:$0xff] }
 0x4f7   :  { %v4620_v58 = vadd.f32 %v15814_v0, %v4606_v26  ;;  %v4607_v62 = vadd.f32 %v15711_v51, %v4446_v29  ;;  %v11579_v54 = vpop.f32.mrb[61].mxu1  ;;  %11734 = vmatmul.mubr.msk.bf16.gmra.mrb[140].mxu0 %vm676_vm3, %v5625_v55  ;;  %v4637_v26 = vld [vmem:[#allocation3 + $0x38] sm:$0xff] }
 0x4f8   :  { %v15875_v50 = vpop.f32.mrb[62].mxu1  ;;  %11737 = vmatprep.mubr.msk.bf16.mxu0 %vm12626_vm1, %v17919_v21 }
 0x4f9   :  { %v4648_v40 = vmax.f32 %v4634_v2, %v4620_v58  ;;  %v4621_v59 = vadd.f32 %v15814_v0, %v4607_v62  ;;  %v11580_v35 = vpop.f32.mrb[63].mxu1  ;;  %11888 = vmatpush3.bf16.msra.mxu1 %v12540_v10  ;;  %v5616_v62 = vld [vmem:[#allocation2 + $0x118] sm:$0xff] }
 0x4fa   :  { %v4410_v3 = vpop.f32.mrb[36].mxu0  ;;  %11949 = vmatprep.subr.bf16.mxu1 %v17919_v21 }
 0x4fb   :  { %4662 = vst.msk [vmem:[#allocation3 + $0x20] sm:$0xff] %vm3180_vm4, %v4648_v40  ;;  %v4649_v51 = vmax.f32 %v4635_v42, %v4621_v59  ;;  %v4447_v22 = vadd.f32 %v4410_v3, %v15725_v33  ;;  %v11487_v14 = vpop.f32.mrb[37].mxu0  ;;  %11830 = vmatmul.mubr.msk.bf16.gmra.mrb[168].mxu1 %vm676_vm3, %v15529_v15  ;;  %v5627_v59 = vpack.c.bf16 %v5617_v45, %v5616_v62  ;;  %v4638_v3 = vld [vmem:[#allocation3 + $0x40] sm:$0xff]  ;;  %v5620_v62 = vld [vmem:[#allocation2 + $0x138] sm:$0xff] }
 0x4fc   :  { %v4413_v5 = vpop.f32.mrb[38].mxu0  ;;  %11833 = vmatprep.mubr.msk.bf16.mxu1 %vm12626_vm1, %v17919_v21 }
 0x4fd   :  { %4663 = vst.msk [vmem:[#allocation3 + $0x28] sm:$0xff] %vm3180_vm4, %v4649_v51  ;;  %v4608_v23 = vadd.f32 %v15727_v12, %v4447_v22  ;;  %v4448_v24 = vadd.f32 %v4413_v5, %v15731_v20  ;;  %v11488_v57 = vpop.f32.mrb[39].mxu0  ;;  %v4639_v22 = vld [vmem:[#allocation3 + $0x48] sm:$0xff]  ;;  %v5619_v5 = vld [vmem:[#allocation2 + $0x130] sm:$0xff] }
 0x4fe   :  { %v15890_v18 = vpop.f32.mrb[64].mxu1  ;;  %v5618_v57 = vld [vmem:[#allocation2 + $0x128] sm:$0xff] }
 0x4ff   :  { %v4622_v33 = vadd.f32 %v15814_v0, %v4608_v23  ;;  %v4609_v9 = vadd.f32 %v15733_v30, %v4448_v24  ;;  %v11583_v15 = vpop.f32.mrb[65].mxu1  ;;  %11738 = vmatmul.mubr.msk.bf16.gmra.mrb[144].mxu0 %vm676_vm3, %v5626_v32 }
 0x500   :  { %v15895_v49 = vpop.f32.mrb[66].mxu1  ;;  %11741 = vmatprep.mubr.msk.bf16.mxu0 %vm12626_vm1, %v17919_v21  ;;  %v5628_v15 = vpack.c.bf16 %v5619_v5, %v5618_v57 }
 0x501   :  { %v4650_v12 = vmax.f32 %v4636_v41, %v4622_v33  ;;  %v4623_v20 = vadd.f32 %v15814_v0, %v4609_v9  ;;  %v11584_v48 = vpop.f32.mrb[67].mxu1 }
 0x502   :  { %v4418_v29 = vpop.f32.mrb[40].mxu0 }
 0x503   :  { %4664 = vst.msk [vmem:[#allocation3 + $0x30] sm:$0xff] %vm3180_vm4, %v4650_v12  ;;  %v4651_v55 = vmax.f32 %v4637_v26, %v4623_v20  ;;  %v4449_v30 = vadd.f32 %v4418_v29, %v15746_v53  ;;  %v11491_v10 = vpop.f32.mrb[41].mxu0  ;;  %11834 = vmatmul.mubr.msk.bf16.gmra.mrb[172].mxu1 %vm676_vm3, %v15557_v47  ;;  %v4640_v20 = vld [vmem:[#allocation3 + $0x50] sm:$0xff]  ;;  %v4641_v29 = vld [vmem:[#allocation3 + $0x58] sm:$0xff] }
 0x504   :  { %v4421_v58 = vpop.f32.mrb[42].mxu0  ;;  %11837 = vmatprep.mubr.msk.bf16.mxu1 %vm12626_vm1, %v17919_v21 }
 0x505   :  { %4665 = vst.msk [vmem:[#allocation3 + $0x38] sm:$0xff] %vm3180_vm4, %v4651_v55  ;;  %v4610_v54 = vadd.f32 %v15748_v17, %v4449_v30  ;;  %v4450_v2 = vadd.f32 %v4421_v58, %v15752_v19  ;;  %v11492_v40 = vpop.f32.mrb[43].mxu0  ;;  %v5621_v55 = vld [vmem:[#allocation2 + $0x140] sm:$0xff] }
 0x506   :  { %v15909_v35 = vpop.f32.mrb[68].mxu1 }
 0x507   :  { %v4624_v53 = vadd.f32 %v15814_v0, %v4610_v54  ;;  %v4611_v42 = vadd.f32 %v15754_v27, %v4450_v2  ;;  %v11587_v47 = vpop.f32.mrb[69].mxu1  ;;  %11742 = vmatmul.mubr.msk.bf16.gmra.mrb[148].mxu0 %vm676_vm3, %v5627_v59  ;;  %v5629_v59 = vpack.c.bf16 %v5621_v55, %v5620_v62  ;;  %v12542_v55 = vld [vmem:[%s17753_s3 + $0x40] sm:$0xff]  }
 0x508   :  { %v15914_v46 = vpop.f32.mrb[70].mxu1  ;;  %11745 = vmatprep.mubr.msk.bf16.mxu0 %vm12626_vm1, %v17919_v21  ;;  %v4642_v47 = vld [vmem:[#allocation3 + $0x60] sm:$0xff] }
 0x509   :  { %v4652_v17 = vmax.f32 %v4638_v3, %v4624_v53  ;;  %v4625_v19 = vadd.f32 %v15814_v0, %v4611_v42  ;;  %v11588_v51 = vpop.f32.mrb[71].mxu1 }
 0x50a   :  { %v4426_v14 = vpop.f32.mrb[44].mxu0 }
 0x50b   :  { %4666 = vst.msk [vmem:[#allocation3 + $0x40] sm:$0xff] %vm3180_vm4, %v4652_v17  ;;  %v4653_v56 = vmax.f32 %v4639_v22, %v4625_v19  ;;  %v4451_v27 = vadd.f32 %v4426_v14, %v15767_v25  ;;  %v11495_v23 = vpop.f32.mrb[45].mxu0  ;;  %11838 = vmatmul.mubr.msk.bf16.gmra.mrb[176].mxu1 %vm676_vm3, %v15579_v31  ;;  %v4643_v19 = vld [vmem:[#allocation3 + $0x68] sm:$0xff]  ;;  %v5623_v22 = vld [vmem:[#allocation2 + $0x150] sm:$0xff] }
 0x50c   :  { %v4429_v24 = vpop.f32.mrb[46].mxu0  ;;  %11841 = vmatprep.mubr.msk.bf16.mxu1 %vm12626_vm1, %v17919_v21 }
 0x50d   :  { %4667 = vst.msk [vmem:[#allocation3 + $0x48] sm:$0xff] %vm3180_vm4, %v4653_v56  ;;  %v4612_v32 = vadd.f32 %v15769_v43, %v4451_v27  ;;  %v4452_v33 = vadd.f32 %v4429_v24, %v15773_v38  ;;  %v11496_v9 = vpop.f32.mrb[47].mxu0  ;;  %v5622_v27 = vld [vmem:[#allocation2 + $0x148] sm:$0xff] }
 0x50e   :  { %v15928_v41 = vpop.f32.mrb[72].mxu1  ;;  %v5630_v24 = vpack.c.bf16 %v5623_v22, %v5622_v27 }
 0x50f   :  { %v4626_v25 = vadd.f32 %v15814_v0, %v4612_v32  ;;  %v4613_v12 = vadd.f32 %v15775_v11, %v4452_v33  ;;  %v11591_v31 = vpop.f32.mrb[73].mxu1  ;;  %11746 = vmatmul.mubr.msk.bf16.gmra.mrb[152].mxu0 %vm676_vm3, %v5628_v15 }
 0x510   :  { %v15933_v48 = vpop.f32.mrb[74].mxu1  ;;  %11749 = vmatprep.mubr.msk.bf16.mxu0 %vm12626_vm1, %v17919_v21 }
 0x511   :  { %v4654_v43 = vmax.f32 %v4640_v20, %v4626_v25  ;;  %v4627_v38 = vadd.f32 %v15814_v0, %v4613_v12  ;;  %v11592_v26 = vpop.f32.mrb[75].mxu1  ;;  %v12539_v25 = vld [vmem:[%s17753_s3] sm:$0xff]  }
 0x512   :  { %v4434_v45 = vpop.f32.mrb[48].mxu0  ;;  %v15989_v20 = vld [vmem:[#allocation2 + $0x159] sm:$0xff] }
 0x513   :  { %4668 = vst.msk [vmem:[#allocation3 + $0x50] sm:$0xff] %vm3180_vm4, %v4654_v43  ;;  %v4655_v30 = vmax.f32 %v4641_v29, %v4627_v38  ;;  %v4453_v11 = vadd.f32 %v4434_v45, %v15788_v60  ;;  %v11499_v10 = vpop.f32.mrb[49].mxu0  ;;  %11842 = vmatmul.mubr.msk.bf16.gmra.mrb[180].mxu1 %vm676_vm3, %v15601_v61  ;;  %v18001_v38 = vld [vmem:[#allocation132_spill] sm:$0xff] }
 0x514   :  { %v4437_v58 = vpop.f32.mrb[50].mxu0  ;;  %11845 = vmatprep.mubr.msk.bf16.mxu1 %vm12626_vm1, %v17919_v21 }
 0x515   :  { %4669 = vst.msk [vmem:[#allocation3 + $0x58] sm:$0xff] %vm3180_vm4, %v4655_v30  ;;  %v4614_v54 = vadd.f32 %v15790_v28, %v4453_v11  ;;  %v4454_v2 = vadd.f32 %v4437_v58, %v15794_v1  ;;  %v11500_v40 = vpop.f32.mrb[51].mxu0  ;;  %v5935_v11 = vld [vmem:[#allocation2 + $0x101] sm:$0xff] }
 0x516   :  { %v15947_v53 = vpop.f32.mrb[76].mxu1 }
 0x517   :  { %v4628_v60 = vadd.f32 %v15814_v0, %v4614_v54  ;;  %v4615_v42 = vadd.f32 %v15796_v52, %v4454_v2  ;;  %v11595_v61 = vpop.f32.mrb[77].mxu1  ;;  %11750 = vmatmul.mubr.msk.bf16.gmra.mrb[156].mxu0 %vm676_vm3, %v5629_v59  ;;  %v5934_v54 = vld [vmem:[#allocation2 + $0xf9] sm:$0xff] }
 0x518   :  { %v15952_v3 = vpop.f32.mrb[78].mxu1  ;;  %11753 = vmatprep.mubr.msk.bf16.mxu0 %vm12626_vm1, %v17919_v21  ;;  %v5947_v59 = vpack.c.bf16 %v5935_v11, %v5934_v54  ;;  %v12583_v54 = vld [vmem:[#allocation2 + $0x189] sm:$0xff] }
 0x519   :  { %v4656_v28 = vmax.f32 %v4642_v47, %v4628_v60  ;;  %v4629_v1 = vadd.f32 %v15814_v0, %v4615_v42  ;;  %v11596_v17 = vpop.f32.mrb[79].mxu1 }
 0x51a   :  { %v4789_v51 = vpop.f32.mrb[52].mxu0 }
 0x51b   :  { %4670 = vst.msk [vmem:[#allocation3 + $0x60] sm:$0xff] %vm3180_vm4, %v4656_v28  ;;  %v4657_v14 = vmax.f32 %v4643_v19, %v4629_v1  ;;  %v15959_v52 = vadd.f32 %v15809_v36, %v4789_v51  ;;  %v11539_v5 = vpop.f32.mrb[53].mxu0  ;;  %11846 = vmatmul.mubr.msk.bf16.gmra.mrb[184].mxu1 %vm676_vm3, %v15623_v4  ;;  %v12579_v28 = vld [vmem:[#allocation2 + $0x169] sm:$0xff]  ;;  %v5937_v19 = vld [vmem:[#allocation2 + $0x111] sm:$0xff] }
 0x51c   :  { %v4792_v56 = vpop.f32.mrb[54].mxu0  ;;  %11849 = vmatprep.mubr.msk.bf16.mxu1 %vm12626_vm1, %v17919_v21  ;;  %v5936_v5 = vld [vmem:[#allocation2 + $0x109] sm:$0xff] }
 0x51d   :  { %4671 = vst.msk [vmem:[#allocation3 + $0x68] sm:$0xff] %vm3180_vm4, %v4657_v14  ;;  %v15967_v0 = vadd.f32 %v15819_v7, %v4792_v56  ;;  %v11540_v23 = vpop.f32.mrb[55].mxu0 }
 0x51e   :  { %v15969_v57 = vpop.f32.mrb[80].mxu1  ;;  %v5948_v23 = vpack.c.bf16 %v5937_v19, %v5936_v5  ;;  %v12584_v5 = vld [vmem:[#allocation2 + $0x191] sm:$0xff] }
 0x51f   :  { %v11635_v36 = vpop.f32.mrb[81].mxu1  ;;  %11754 = vmatmul.mubr.msk.bf16.gmra.mrb[160].mxu0 %vm676_vm3, %v5630_v24 }
 0x520   :  { %v15972_v32 = vpop.f32.mrb[82].mxu1  ;;  %11793 = vmatprep.mubr.msk.bf16.mxu0 %vm12626_vm1, %v17919_v21 }
 0x521   :  { %v11636_v4 = vpop.f32.mrb[83].mxu1 }
 0x522   :  { %v4797_v33 = vpop.f32.mrb[56].mxu0 }
 0x523   :  { %v15977_v9 = vadd.f32 %v15836_v16, %v4797_v33  ;;  %v11543_v15 = vpop.f32.mrb[57].mxu0  ;;  %11850 = vmatmul.mubr.msk.bf16.gmra.mrb[188].mxu1 %vm676_vm3, %v15645_v34  ;;  %v6443_v34 = vld [vmem:[#allocation2 + $0x151] sm:$0xff] }
 0x524   :  { %v4800_v7 = vpop.f32.mrb[58].mxu0  ;;  %11889 = vmatprep.mubr.msk.bf16.mxu1 %vm12626_vm1, %v17919_v21  ;;  %v6457_v29 = vpack.c.bf16 %v15989_v20, %v6443_v34  ;;  %v12580_v33 = vld [vmem:[#allocation2 + $0x171] sm:$0xff]  ;;  %v12581_v15 = vld [vmem:[#allocation2 + $0x179] sm:$0xff] }
 0x525   :  { %v15987_v12 = vadd.f32 %v15844_v37, %v4800_v7  ;;  %v11544_v31 = vpop.f32.mrb[59].mxu0  ;;  %v12541_v37 = vld [vmem:[%s17753_s3 + $0x8] sm:$0xff]   ;;  %v6459_v7 = vpack.c.bf16 %v12581_v15, %v12580_v33 }
 0x526   :  { %v15991_v16 = vpop.f32.mrb[84].mxu1  ;;  %v5939_v31 = vld [vmem:[#allocation2 + $0x121] sm:$0xff] }
 0x527   :  { %v11639_v43 = vpop.f32.mrb[85].mxu1  ;;  %11794 = vmatmul.mubr.msk.bf16.vlgmr.msra.gmra.mrb[164].mxu0 %vm676_vm3, %v18001_v38 }
 0x528   :  { %11854 = vmatpush3.bf16.msra.mxu0 %v12539_v25  ;;  %v15995_v26 = vpop.f32.mrb[86].mxu1  ;;  %11797 = vmatprep.mubr.msk.bf16.mxu0 %vm12626_vm1, %v17919_v21 }
 0x529   :  { %v11640_v45 = vpop.f32.mrb[87].mxu1  ;;  %11855 = vmatprep.subr.bf16.mxu0 %v17919_v21 }
 0x52a   :  { %v4805_v30 = vpop.f32.mrb[60].mxu0 }
 0x52b   :  { %v16008_v10 = vadd.f32 %v15869_v13, %v4805_v30  ;;  %v11547_v58 = vpop.f32.mrb[61].mxu0  ;;  %11890 = vmatmul.mubr.msk.bf16.vlgmr.msra.gmra.mrb[192].mxu1 %vm676_vm3, %v6457_v29  ;;  %v12544_v13 = vld [vmem:[%s17753_s3 + $0x48] sm:$0xff]  }
 0x52c   :  { %v4808_v62 = vpop.f32.mrb[62].mxu0  ;;  %11893 = vmatprep.mubr.msk.bf16.mxu1 %vm12626_vm1, %v17919_v21  ;;  %11856 = vmatpush3.bf16.msra.mxu0 %v12541_v37  ;;  %v5938_v37 = vld [vmem:[#allocation2 + $0x119] sm:$0xff] }
 0x52d   :  { %v16014_v2 = vadd.f32 %v15875_v50, %v4808_v62  ;;  %v11548_v40 = vpop.f32.mrb[63].mxu0  ;;  %11950 = vmatpush3.bf16.msra.mxu1 %v12542_v55  ;;  %11917 = vmatprep.subr.bf16.mxu0 %v17919_v21  ;;  %v6445_v50 = vld [vmem:[#allocation2 + $0x161] sm:$0xff]  ;;  %v5949_v55 = vpack.c.bf16 %v5939_v31, %v5938_v37 }
 0x52e   :  { %v16020_v60 = vpop.f32.mrb[88].mxu1  ;;  %11951 = vmatprep.subr.bf16.mxu1 %v17919_v21  ;;  %v6458_v1 = vpack.c.bf16 %v12579_v28, %v6445_v50  ;;  %v12582_v62 = vld [vmem:[#allocation2 + $0x181] sm:$0xff] }
 0x52f   :  { %v11643_v42 = vpop.f32.mrb[89].mxu1  ;;  %11798 = vmatmul.mubr.msk.bf16.gmra.mrb[168].mxu0 %vm676_vm3, %v5947_v59  ;;  %v6460_v40 = vpack.c.bf16 %v12583_v54, %v12582_v62  ;;  %v5945_v54 = vld [vmem:[#allocation2 + $0x151] sm:$0xff] }
 0x530   :  { %v16024_v61 = vpop.f32.mrb[90].mxu1  ;;  %11801 = vmatprep.mubr.msk.bf16.mxu0 %vm12626_vm1, %v17919_v21 }
 0x531   :  { %v11644_v47 = vpop.f32.mrb[91].mxu1  ;;  %11952 = vmatpush3.bf16.msra.mxu1 %v12544_v13  ;;  %v5941_v13 = vld [vmem:[#allocation2 + $0x131] sm:$0xff] }
 0x532   :  { %v4813_v17 = vpop.f32.mrb[64].mxu0  ;;  %12013 = vmatprep.subr.bf16.mxu1 %v17919_v21  ;;  %v5940_v47 = vld [vmem:[#allocation2 + $0x129] sm:$0xff] }
 0x533   :  { %v16030_v51 = vadd.f32 %v15890_v18, %v4813_v17  ;;  %v11551_v22 = vpop.f32.mrb[65].mxu0  ;;  %11894 = vmatmul.mubr.msk.bf16.gmra.mrb[196].mxu1 %vm676_vm3, %v6458_v1  ;;  %v5950_v17 = vpack.c.bf16 %v5941_v13, %v5940_v47  ;;  %v5944_v13 = vld [vmem:[#allocation2 + $0x149] sm:$0xff] }
 0x534   :  { %v4816_v14 = vpop.f32.mrb[66].mxu0  ;;  %11897 = vmatprep.mubr.msk.bf16.mxu1 %vm12626_vm1, %v17919_v21  ;;  %v5952_v47 = vpack.c.bf16 %v5945_v54, %v5944_v13  ;;  %v6151_v54 = vld [vmem:[#allocation2 + $0x160] sm:$0xff] }
 0x535   :  { %v16036_v56 = vadd.f32 %v15895_v49, %v4816_v14  ;;  %v11552_v27 = vpop.f32.mrb[67].mxu0 }
 0x536   :  { %v16038_v24 = vpop.f32.mrb[92].mxu1  ;;  %v12585_v27 = vld [vmem:[#allocation2 + $0x199] sm:$0xff] }
 0x537   :  { %v11647_v36 = vpop.f32.mrb[93].mxu1  ;;  %11802 = vmatmul.mubr.msk.bf16.gmra.mrb[172].mxu0 %vm676_vm3, %v5948_v23  ;;  %v6461_v23 = vpack.c.bf16 %v12585_v27, %v12584_v5  ;;  %v12588_v27 = vld [vmem:[#allocation2 + $0x1b1] sm:$0xff] }
 0x538   :  { %v16041_v18 = vpop.f32.mrb[94].mxu1  ;;  %11805 = vmatprep.mubr.msk.bf16.mxu0 %vm12626_vm1, %v17919_v21 }
 0x539   :  { %v11648_v4 = vpop.f32.mrb[95].mxu1 }
 0x53a   :  { %v4821_v25 = vpop.f32.mrb[68].mxu0  ;;  %v5943_v4 = vld [vmem:[#allocation2 + $0x141] sm:$0xff] }
 0x53b   :  { %v16046_v49 = vadd.f32 %v15909_v35, %v4821_v25  ;;  %v11555_v43 = vpop.f32.mrb[69].mxu0  ;;  %11898 = vmatmul.mubr.msk.bf16.gmra.mrb[200].mxu1 %vm676_vm3, %v6459_v7  ;;  %v5942_v7 = vld [vmem:[#allocation2 + $0x139] sm:$0xff] }
 0x53c   :  { %v4824_v34 = vpop.f32.mrb[70].mxu0  ;;  %11901 = vmatprep.mubr.msk.bf16.mxu1 %vm12626_vm1, %v17919_v21  ;;  %v5951_v43 = vpack.c.bf16 %v5943_v4, %v5942_v7 }
 0x53d   :  { %v16052_v29 = vadd.f32 %v15914_v46, %v4824_v34  ;;  %v11556_v45 = vpop.f32.mrb[71].mxu0 }
 0x53e   :  { %v16054_v30 = vpop.f32.mrb[96].mxu1 }
 0x53f   :  { %v11651_v11 = vpop.f32.mrb[97].mxu1  ;;  %11806 = vmatmul.mubr.msk.bf16.gmra.mrb[176].mxu0 %vm676_vm3, %v5949_v55  ;;  %v12586_v55 = vld [vmem:[#allocation2 + $0x1a1] sm:$0xff] }
 0x540   :  { %v16057_v35 = vpop.f32.mrb[98].mxu1  ;;  %11809 = vmatprep.mubr.msk.bf16.mxu0 %vm12626_vm1, %v17919_v21  ;;  %v12587_v11 = vld [vmem:[#allocation2 + $0x1a9] sm:$0xff] }
 0x541   :  { %v11652_v58 = vpop.f32.mrb[99].mxu1 }
 0x542   :  { %v4829_v59 = vpop.f32.mrb[72].mxu0  ;;  %v6462_v58 = vpack.c.bf16 %v12587_v11, %v12586_v55 }
 0x543   :  { %v16062_v46 = vadd.f32 %v15928_v41, %v4829_v59  ;;  %v11559_v42 = vpop.f32.mrb[73].mxu0  ;;  %11902 = vmatmul.mubr.msk.bf16.gmra.mrb[204].mxu1 %vm676_vm3, %v6460_v40 }
 0x544   :  { %v4832_v50 = vpop.f32.mrb[74].mxu0  ;;  %11905 = vmatprep.mubr.msk.bf16.mxu1 %vm12626_vm1, %v17919_v21 }
 0x545   :  { %v16068_v28 = vadd.f32 %v15933_v48, %v4832_v50  ;;  %v11560_v1 = vpop.f32.mrb[75].mxu0 }
 0x546   :  { %v16070_v19 = vpop.f32.mrb[100].mxu1 }
 0x547   :  { %v11655_v22 = vpop.f32.mrb[101].mxu1  ;;  %11810 = vmatmul.mubr.msk.bf16.gmra.mrb[180].mxu0 %vm676_vm3, %v5950_v17 }
 0x548   :  { %v16073_v41 = vpop.f32.mrb[102].mxu1  ;;  %11813 = vmatprep.mubr.msk.bf16.mxu0 %vm12626_vm1, %v17919_v21  ;;  %v16103_v22 = vld [vmem:[#allocation2 + $0x1b9] sm:$0xff] }
 0x549   :  { %v11656_v14 = vpop.f32.mrb[103].mxu1 }
 0x54a   :  { %v4837_v36 = vpop.f32.mrb[76].mxu0 }
 0x54b   :  { %v16078_v48 = vadd.f32 %v15947_v53, %v4837_v36  ;;  %v11563_v33 = vpop.f32.mrb[77].mxu0  ;;  %11906 = vmatmul.mubr.msk.bf16.gmra.mrb[208].mxu1 %vm676_vm3, %v6461_v23 }
 0x54c   :  { %v4840_v15 = vpop.f32.mrb[78].mxu0  ;;  %11909 = vmatprep.mubr.msk.bf16.mxu1 %vm12626_vm1, %v17919_v21 }
 0x54d   :  { %v16084_v25 = vadd.f32 %v15952_v3, %v4840_v15  ;;  %v11564_v31 = vpop.f32.mrb[79].mxu0 }
 0x54e   :  { %v16086_v34 = vpop.f32.mrb[104].mxu1 }
 0x54f   :  { %v11659_v37 = vpop.f32.mrb[105].mxu1  ;;  %11814 = vmatmul.mubr.msk.bf16.gmra.mrb[184].mxu0 %vm676_vm3, %v5951_v43 }
 0x550   :  { %v16089_v53 = vpop.f32.mrb[106].mxu1  ;;  %11817 = vmatprep.mubr.msk.bf16.mxu0 %vm12626_vm1, %v17919_v21 }
 0x551   :  { %v11660_v45 = vpop.f32.mrb[107].mxu1 }
 0x552   :  { %v5058_v62 = vpop.f32.mrb[80].mxu0 }
 0x553   :  { %v5113_v3 = vadd.f32 %v5058_v62, %v15959_v52  ;;  %v11603_v40 = vpop.f32.mrb[81].mxu0  ;;  %11910 = vmatmul.mubr.msk.bf16.gmra.mrb[212].mxu1 %vm676_vm3, %v6462_v58 }
 0x554   :  { %v5061_v59 = vpop.f32.mrb[82].mxu0  ;;  %11913 = vmatprep.mubr.msk.bf16.mxu1 %vm12626_vm1, %v17919_v21 }
 0x555   :  { %v5114_v42 = vadd.f32 %v5061_v59, %v15967_v0  ;;  %v11604_v50 = vpop.f32.mrb[83].mxu0  ;;  %v16099_v1 = vadd.f32 %v15969_v57, %v5113_v3  ;;  %v6463_v57 = vpack.c.bf16 %v16103_v22, %v12588_v27 }
 0x556   :  { %v16101_v17 = vpop.f32.mrb[108].mxu1 }
 0x557   :  { %v11699_v52 = vpop.f32.mrb[109].mxu1  ;;  %11818 = vmatmul.mubr.msk.bf16.gmra.mrb[188].mxu0 %vm676_vm3, %v5952_v47  ;;  %v16107_v14 = vadd.f32 %v15972_v32, %v5114_v42  ;;  %v12543_v32 = vld [vmem:[%s17753_s3 + $0x30] sm:$0xff]   ;;  %v6768_v42 = vld [vmem:[#allocation2 + $0x21] sm:$0xff] }
 0x558   :  { %v16109_v5 = vpop.f32.mrb[110].mxu1  ;;  %11857 = vmatprep.mubr.msk.bf16.mxu0 %vm12626_vm1, %v17919_v21  ;;  %v6767_v52 = vld [vmem:[#allocation2 + $0x19] sm:$0xff] }
 0x559   :  { %v11700_v0 = vpop.f32.mrb[111].mxu1 }
 0x55a   :  { %v5066_v23 = vpop.f32.mrb[84].mxu0 }
 0x55b   :  { %v5115_v36 = vadd.f32 %v5066_v23, %v15977_v9  ;;  %v11607_v4 = vpop.f32.mrb[85].mxu0  ;;  %11914 = vmatmul.mubr.msk.bf16.gmra.mrb[216].mxu1 %vm676_vm3, %v6463_v57  ;;  %v16170_v57 = vld [vmem:[#allocation2 + $0x178] sm:$0xff] }
 0x55c   :  { %v5069_v33 = vpop.f32.mrb[86].mxu0  ;;  %11953 = vmatprep.mubr.msk.bf16.mxu1 %vm12626_vm1, %v17919_v21  ;;  %v16175_v4 = vld [vmem:[#allocation2 + $0x170] sm:$0xff] }
 0x55d   :  { %v5116_v15 = vadd.f32 %v5069_v33, %v15987_v12  ;;  %v11608_v7 = vpop.f32.mrb[87].mxu0  ;;  %v16123_v31 = vadd.f32 %v15991_v16, %v5115_v36  ;;  %v12545_v12 = vld [vmem:[%s17753_s3 + $0x38] sm:$0xff]  }
 0x55e   :  { %v16125_v43 = vpop.f32.mrb[112].mxu1 }
 0x55f   :  { %v11703_v9 = vpop.f32.mrb[113].mxu1  ;;  %11858 = vmatmul.mubr.msk.bf16.vlgmr.msra.gmra.mrb[192].mxu0 %vm676_vm3, %v17976_v8  ;;  %v16130_v37 = vadd.f32 %v15995_v26, %v5116_v15  ;;  %v12546_v8 = vld [vmem:[%s17753_s3 + $0x60] sm:$0xff]   ;;  %v16143_v26 = vld [vmem:[#allocation2 + $0x168] sm:$0xff]  ;;  %v6165_v15 = vpack.c.bf16 %v16170_v57, %v16175_v4 }
 0x560   :  { %11918 = vmatpush3.bf16.msra.mxu0 %v12543_v32  ;;  %v16132_v45 = vpop.f32.mrb[114].mxu1  ;;  %11861 = vmatprep.mubr.msk.bf16.mxu0 %vm12626_vm1, %v17919_v21  ;;  %v6164_v59 = vpack.c.bf16 %v16143_v26, %v6151_v54 }
 0x561   :  { %v11704_v16 = vpop.f32.mrb[115].mxu1  ;;  %11919 = vmatprep.subr.bf16.mxu0 %v17919_v21 }
 0x562   :  { %v5074_v55 = vpop.f32.mrb[88].mxu0 }
 0x563   :  { %v5117_v11 = vadd.f32 %v5074_v55, %v16008_v10  ;;  %v11611_v58 = vpop.f32.mrb[89].mxu0  ;;  %11954 = vmatmul.mubr.msk.bf16.vlgmr.msra.gmra.mrb[220].mxu1 %vm676_vm3, %v17974_v6  ;;  %v12548_v10 = vld [vmem:[%s17753_s3 + $0x68] sm:$0xff]  }
 0x564   :  { %v5077_v62 = vpop.f32.mrb[90].mxu0  ;;  %11957 = vmatprep.mubr.msk.bf16.mxu1 %vm12626_vm1, %v17919_v21  ;;  %11920 = vmatpush3.bf16.msra.mxu0 %v12545_v12  ;;  %v6769_v55 = vld [vmem:[#allocation2 + $0x29] sm:$0xff] }
 0x565   :  { %v5118_v3 = vadd.f32 %v5077_v62, %v16014_v2  ;;  %v11612_v40 = vpop.f32.mrb[91].mxu0  ;;  %12014 = vmatpush3.bf16.msra.mxu1 %v12546_v8  ;;  %11981 = vmatprep.subr.bf16.mxu0 %v17919_v21  ;;  %v16157_v6 = vadd.f32 %v16020_v60, %v5117_v11  ;;  %v6780_v60 = vpack.c.bf16 %v6768_v42, %v6767_v52 }
 0x566   :  { %v16159_v13 = vpop.f32.mrb[116].mxu1  ;;  %12015 = vmatprep.subr.bf16.mxu1 %v17919_v21  ;;  %v16199_v40 = vld [vmem:[#allocation2 + $0x180] sm:$0xff] }
 0x567   :  { %v11707_v50 = vpop.f32.mrb[117].mxu1  ;;  %11862 = vmatmul.mubr.msk.bf16.gmra.mrb[196].mxu0 %vm676_vm3, %v6164_v59  ;;  %v16164_v2 = vadd.f32 %v16024_v61, %v5118_v3 }
 0x568   :  { %v16166_v47 = vpop.f32.mrb[118].mxu1  ;;  %11865 = vmatprep.mubr.msk.bf16.mxu0 %vm12626_vm1, %v17919_v21 }
 0x569   :  { %v11708_v0 = vpop.f32.mrb[119].mxu1  ;;  %12016 = vmatpush3.bf16.msra.mxu1 %v12548_v10 }
 0x56a   :  { %v5082_v27 = vpop.f32.mrb[92].mxu0  ;;  %12077 = vmatprep.subr.bf16.mxu1 %v17919_v21 }
 0x56b   :  { %v5119_v23 = vadd.f32 %v5082_v27, %v16030_v51  ;;  %v11615_v36 = vpop.f32.mrb[93].mxu0  ;;  %11958 = vmatmul.mubr.msk.bf16.gmra.mrb[224].mxu1 %vm676_vm3, %v6780_v60  ;;  %v6770_v51 = vld [vmem:[#allocation2 + $0x31] sm:$0xff]  ;;  %v6771_v27 = vld [vmem:[#allocation2 + $0x39] sm:$0xff] }
 0x56c   :  { %v5085_v61 = vpop.f32.mrb[94].mxu0  ;;  %11961 = vmatprep.mubr.msk.bf16.mxu1 %vm12626_vm1, %v17919_v21  ;;  %v6781_v11 = vpack.c.bf16 %v6770_v51, %v6769_v55 }
 0x56d   :  { %v5120_v33 = vadd.f32 %v5085_v61, %v16036_v56  ;;  %v11616_v32 = vpop.f32.mrb[95].mxu0  ;;  %v16183_v7 = vadd.f32 %v16038_v24, %v5119_v23  ;;  %v16195_v24 = vld [vmem:[#allocation2 + $0x188] sm:$0xff] }
 0x56e   :  { %v16185_v9 = vpop.f32.mrb[120].mxu1  ;;  %v6166_v10 = vpack.c.bf16 %v16195_v24, %v16199_v40 }
 0x56f   :  { %v11711_v12 = vpop.f32.mrb[121].mxu1  ;;  %11866 = vmatmul.mubr.msk.bf16.gmra.mrb[200].mxu0 %vm676_vm3, %v6165_v15  ;;  %v16189_v16 = vadd.f32 %v16041_v18, %v5120_v33  ;;  %v16223_v15 = vld [vmem:[#allocation2 + $0x190] sm:$0xff] }
 0x570   :  { %v16191_v8 = vpop.f32.mrb[122].mxu1  ;;  %11869 = vmatprep.mubr.msk.bf16.mxu0 %vm12626_vm1, %v17919_v21 }
 0x571   :  { %v11712_v56 = vpop.f32.mrb[123].mxu1 }
 0x572   :  { %v5090_v58 = vpop.f32.mrb[96].mxu0 }
 0x573   :  { %v5121_v62 = vadd.f32 %v5090_v58, %v16046_v49  ;;  %v11619_v54 = vpop.f32.mrb[97].mxu0  ;;  %11962 = vmatmul.mubr.msk.bf16.gmra.mrb[228].mxu1 %vm676_vm3, %v6781_v11  ;;  %v6772_v49 = vld [vmem:[#allocation2 + $0x41] sm:$0xff] }
 0x574   :  { %v5093_v3 = vpop.f32.mrb[98].mxu0  ;;  %11965 = vmatprep.mubr.msk.bf16.mxu1 %vm12626_vm1, %v17919_v21  ;;  %v6782_v23 = vpack.c.bf16 %v6772_v49, %v6771_v27  ;;  %v6773_v54 = vld [vmem:[#allocation2 + $0x49] sm:$0xff] }
 0x575   :  { %v5122_v18 = vadd.f32 %v5093_v3, %v16052_v29  ;;  %v11620_v59 = vpop.f32.mrb[99].mxu0  ;;  %v16207_v42 = vadd.f32 %v16054_v30, %v5121_v62  ;;  %v16219_v30 = vld [vmem:[#allocation2 + $0x198] sm:$0xff] }
 0x576   :  { %v16209_v50 = vpop.f32.mrb[124].mxu1  ;;  %v6167_v12 = vpack.c.bf16 %v16219_v30, %v16223_v15 }
 0x577   :  { %v11715_v52 = vpop.f32.mrb[125].mxu1  ;;  %11870 = vmatmul.mubr.msk.bf16.gmra.mrb[204].mxu0 %vm676_vm3, %v6166_v10  ;;  %v16213_v0 = vadd.f32 %v16057_v35, %v5122_v18 }
 0x578   :  { %v16215_v60 = vpop.f32.mrb[126].mxu1  ;;  %11873 = vmatprep.mubr.msk.bf16.mxu0 %vm12626_vm1, %v17919_v21  ;;  %v16247_v52 = vld [vmem:[#allocation2 + $0x1a0] sm:$0xff] }
 0x579   :  { %v11716_v29 = vpop.f32.mrb[127].mxu1 }
 0x57a   :  { %v5098_v36 = vpop.f32.mrb[100].mxu0 }
 0x57b   :  { %v5123_v61 = vadd.f32 %v5098_v36, %v16062_v46  ;;  %v11623_v33 = vpop.f32.mrb[101].mxu0  ;;  %11966 = vmatmul.mubr.msk.bf16.gmra.mrb[232].mxu1 %vm676_vm3, %v6782_v23  ;;  %v6774_v46 = vld [vmem:[#allocation2 + $0x51] sm:$0xff] }
 0x57c   :  { %v5101_v32 = vpop.f32.mrb[102].mxu0  ;;  %11969 = vmatprep.mubr.msk.bf16.mxu1 %vm12626_vm1, %v17919_v21  ;;  %v6783_v3 = vpack.c.bf16 %v6774_v46, %v6773_v54 }
 0x57d   :  { %v5124_v35 = vadd.f32 %v5101_v32, %v16068_v28  ;;  %v11624_v51 = vpop.f32.mrb[103].mxu0  ;;  %v16231_v55 = vadd.f32 %v16070_v19, %v5123_v61  ;;  %v16243_v19 = vld [vmem:[#allocation2 + $0x1a8] sm:$0xff] }
 0x57e   :  { %v16233_v56 = vpop.f32.mrb[128].mxu1  ;;  %v6168_v29 = vpack.c.bf16 %v16243_v19, %v16247_v52 }
 0x57f   :  { %v11719_v11 = vpop.f32.mrb[129].mxu1  ;;  %11874 = vmatmul.mubr.msk.bf16.gmra.mrb[208].mxu0 %vm676_vm3, %v6167_v12  ;;  %v16237_v58 = vadd.f32 %v16073_v41, %v5124_v35  ;;  %v6775_v35 = vld [vmem:[#allocation2 + $0x59] sm:$0xff] }
 0x580   :  { %v16239_v62 = vpop.f32.mrb[130].mxu1  ;;  %11877 = vmatprep.mubr.msk.bf16.mxu0 %vm12626_vm1, %v17919_v21 }
 0x581   :  { %v11720_v28 = vpop.f32.mrb[131].mxu1 }
 0x582   :  { %v5106_v18 = vpop.f32.mrb[104].mxu0  ;;  %v16271_v28 = vld [vmem:[#allocation2 + $0x1b0] sm:$0xff] }
 0x583   :  { %v5125_v59 = vadd.f32 %v5106_v18, %v16078_v48  ;;  %v11627_v10 = vpop.f32.mrb[105].mxu0  ;;  %11970 = vmatmul.mubr.msk.bf16.gmra.mrb[236].mxu1 %vm676_vm3, %v6783_v3  ;;  %v6776_v48 = vld [vmem:[#allocation2 + $0x61] sm:$0xff] }
 0x584   :  { %v5109_v49 = vpop.f32.mrb[106].mxu0  ;;  %11973 = vmatprep.mubr.msk.bf16.mxu1 %vm12626_vm1, %v17919_v21  ;;  %v6784_v51 = vpack.c.bf16 %v6776_v48, %v6775_v35 }
 0x585   :  { %v5126_v41 = vadd.f32 %v5109_v49, %v16084_v25  ;;  %v11628_v27 = vpop.f32.mrb[107].mxu0  ;;  %v16255_v23 = vadd.f32 %v16086_v34, %v5125_v59  ;;  %v16267_v34 = vld [vmem:[#allocation2 + $0x1b8] sm:$0xff] }
 0x586   :  { %v16257_v36 = vpop.f32.mrb[132].mxu1  ;;  %v6169_v18 = vpack.c.bf16 %v16267_v34, %v16271_v28 }
 0x587   :  { %v11723_v61 = vpop.f32.mrb[133].mxu1  ;;  %11878 = vmatmul.mubr.msk.bf16.gmra.mrb[212].mxu0 %vm676_vm3, %v6168_v29  ;;  %v16261_v33 = vadd.f32 %v16089_v53, %v5126_v41  ;;  %v6778_v29 = vld [vmem:[#allocation2 + $0x71] sm:$0xff] }
 0x588   :  { %v16263_v32 = vpop.f32.mrb[134].mxu1  ;;  %11881 = vmatprep.mubr.msk.bf16.mxu0 %vm12626_vm1, %v17919_v21 }
 0x589   :  { %v11724_v25 = vpop.f32.mrb[135].mxu1 }
 0x58a   :  { %v5380_v12 = vpop.f32.mrb[108].mxu0 }
 0x58b   :  { %v5435_v46 = vadd.f32 %v5380_v12, %v16099_v1  ;;  %v11667_v11 = vpop.f32.mrb[109].mxu0  ;;  %11974 = vmatmul.mubr.msk.bf16.gmra.mrb[240].mxu1 %vm676_vm3, %v6784_v51  ;;  %v6777_v1 = vld [vmem:[#allocation2 + $0x69] sm:$0xff] }
 0x58c   :  { %v5383_v54 = vpop.f32.mrb[110].mxu0  ;;  %11977 = vmatprep.mubr.msk.bf16.mxu1 %vm12626_vm1, %v17919_v21  ;;  %v6785_v48 = vpack.c.bf16 %v6778_v29, %v6777_v1  ;;  %v6606_v29 = vld [vmem:[#allocation2 + $0x88] sm:$0xff] }
 0x58d   :  { %v5436_v53 = vadd.f32 %v5383_v54, %v16107_v14  ;;  %v11668_v3 = vpop.f32.mrb[111].mxu0  ;;  %v16279_v59 = vadd.f32 %v16101_v17, %v5435_v46 }
 0x58e   :  { %v16281_v10 = vpop.f32.mrb[136].mxu1 }
 0x58f   :  { %v11763_v49 = vpop.f32.mrb[137].mxu1  ;;  %11882 = vmatmul.mubr.msk.bf16.gmra.mrb[216].mxu0 %vm676_vm3, %v6169_v18  ;;  %v16285_v41 = vadd.f32 %v16109_v5, %v5436_v53  ;;  %v12547_v5 = vld [vmem:[%s17753_s3 + $0x50] sm:$0xff]  }
 0x590   :  { %v16287_v27 = vpop.f32.mrb[138].mxu1  ;;  %11921 = vmatprep.mubr.msk.bf16.mxu0 %vm12626_vm1, %v17919_v21 }
 0x591   :  { %v11764_v14 = vpop.f32.mrb[139].mxu1 }
 0x592   :  { %v5388_v61 = vpop.f32.mrb[112].mxu0 }
 0x593   :  { %v5437_v17 = vadd.f32 %v5388_v61, %v16123_v31  ;;  %v11671_v35 = vpop.f32.mrb[113].mxu0  ;;  %11978 = vmatmul.mubr.msk.bf16.gmra.mrb[244].mxu1 %vm676_vm3, %v6785_v48 }
 0x594   :  { %v5391_v25 = vpop.f32.mrb[114].mxu0  ;;  %12017 = vmatprep.mubr.msk.bf16.mxu1 %vm12626_vm1, %v17919_v21 }
 0x595   :  { %v5438_v51 = vadd.f32 %v5391_v25, %v16130_v37  ;;  %v11672_v12 = vpop.f32.mrb[115].mxu0  ;;  %v16300_v46 = vadd.f32 %v16125_v43, %v5437_v17  ;;  %v12549_v43 = vld [vmem:[%s17753_s3 + $0x58] sm:$0xff]  }
 0x596   :  { %v16302_v11 = vpop.f32.mrb[140].mxu1  ;;  %v6609_v12 = vld [vmem:[#allocation2 + $0xa0] sm:$0xff] }
 0x597   :  { %v11767_v31 = vpop.f32.mrb[141].mxu1  ;;  %11922 = vmatmul.mubr.msk.bf16.vlgmr.msra.gmra.mrb[220].mxu0 %vm676_vm3, %v17981_v44  ;;  %v16307_v54 = vadd.f32 %v16132_v45, %v5438_v51  ;;  %v12550_v44 = vld [vmem:[%s17753_s3 + $0x80] sm:$0xff]   ;;  %v6607_v45 = vld [vmem:[#allocation2 + $0x90] sm:$0xff] }
 0x598   :  { %11982 = vmatpush3.bf16.msra.mxu0 %v12547_v5  ;;  %v16309_v53 = vpop.f32.mrb[142].mxu1  ;;  %11925 = vmatprep.mubr.msk.bf16.mxu0 %vm12626_vm1, %v17919_v21  ;;  %v6619_v61 = vpack.c.bf16 %v6607_v45, %v6606_v29 }
 0x599   :  { %v11768_v37 = vpop.f32.mrb[143].mxu1  ;;  %11983 = vmatprep.subr.bf16.mxu0 %v17919_v21 }
 0x59a   :  { %v5396_v3 = vpop.f32.mrb[116].mxu0 }
 0x59b   :  { %v5439_v18 = vadd.f32 %v5396_v3, %v16157_v6  ;;  %v11675_v1 = vpop.f32.mrb[117].mxu0  ;;  %12018 = vmatmul.mubr.msk.bf16.vlgmr.msra.gmra.mrb[248].mxu1 %vm676_vm3, %v17982_v63  ;;  %v12552_v6 = vld [vmem:[%s17753_s3 + $0x88] sm:$0xff]  }
 0x59c   :  { %v5399_v49 = vpop.f32.mrb[118].mxu0  ;;  %12021 = vmatprep.mubr.msk.bf16.mxu1 %vm12626_vm1, %v17919_v21  ;;  %11984 = vmatpush3.bf16.msra.mxu0 %v12549_v43 }
 0x59d   :  { %v5440_v14 = vadd.f32 %v5399_v49, %v16164_v2  ;;  %v11676_v48 = vpop.f32.mrb[119].mxu0  ;;  %12078 = vmatpush3.bf16.msra.mxu1 %v12550_v44  ;;  %12045 = vmatprep.subr.bf16.mxu0 %v17919_v21  ;;  %v16331_v17 = vadd.f32 %v16159_v13, %v5439_v18  ;;  %v7102_v13 = vpack.c.bf16 %v16175_v4, %v16143_v26 }
 0x59e   :  { %v16333_v63 = vpop.f32.mrb[144].mxu1  ;;  %12079 = vmatprep.subr.bf16.mxu1 %v17919_v21 }
 0x59f   :  { %v11771_v35 = vpop.f32.mrb[145].mxu1  ;;  %11926 = vmatmul.mubr.msk.bf16.gmra.mrb[224].mxu0 %vm676_vm3, %v6619_v61  ;;  %v16338_v2 = vadd.f32 %v16166_v47, %v5440_v14  ;;  %v6608_v47 = vld [vmem:[#allocation2 + $0x98] sm:$0xff] }
 0x5a0   :  { %v16340_v25 = vpop.f32.mrb[146].mxu1  ;;  %11929 = vmatprep.mubr.msk.bf16.mxu0 %vm12626_vm1, %v17919_v21  ;;  %v6620_v45 = vpack.c.bf16 %v6609_v12, %v6608_v47 }
 0x5a1   :  { %v11772_v5 = vpop.f32.mrb[147].mxu1  ;;  %12080 = vmatpush3.bf16.msra.mxu1 %v12552_v6  ;;  %v6610_v6 = vld [vmem:[#allocation2 + $0xa8] sm:$0xff] }
 0x5a2   :  { %v5404_v51 = vpop.f32.mrb[120].mxu0  ;;  %12145 = vmatprep.subr.bf16.mxu1 %v17919_v21 }
 0x5a3   :  { %v5441_v31 = vadd.f32 %v5404_v51, %v16183_v7  ;;  %v11679_v43 = vpop.f32.mrb[121].mxu0  ;;  %12022 = vmatmul.mubr.msk.bf16.gmra.mrb[252].mxu1 %vm676_vm3, %v7102_v13 }
 0x5a4   :  { %v5407_v37 = vpop.f32.mrb[122].mxu0  ;;  %12025 = vmatprep.mubr.msk.bf16.mxu1 %vm12626_vm1, %v17919_v21 }
 0x5a5   :  { %v5442_v44 = vadd.f32 %v5407_v37, %v16189_v16  ;;  %v11680_v3 = vpop.f32.mrb[123].mxu0  ;;  %v16352_v18 = vadd.f32 %v16185_v9, %v5441_v31  ;;  %v7103_v16 = vpack.c.bf16 %v16199_v40, %v16170_v57  ;;  %v6611_v9 = vld [vmem:[#allocation2 + $0xb0] sm:$0xff] }
 0x5a6   :  { %v16354_v26 = vpop.f32.mrb[148].mxu1  ;;  %v6621_v5 = vpack.c.bf16 %v6611_v9, %v6610_v6 }
 0x5a7   :  { %v11775_v4 = vpop.f32.mrb[149].mxu1  ;;  %11930 = vmatmul.mubr.msk.bf16.gmra.mrb[228].mxu0 %vm676_vm3, %v6620_v45  ;;  %v16358_v7 = vadd.f32 %v16191_v8, %v5442_v44  ;;  %v6612_v44 = vld [vmem:[#allocation2 + $0xb8] sm:$0xff] }
 0x5a8   :  { %v16360_v1 = vpop.f32.mrb[150].mxu1  ;;  %11933 = vmatprep.mubr.msk.bf16.mxu0 %vm12626_vm1, %v17919_v21 }
 0x5a9   :  { %v11776_v49 = vpop.f32.mrb[151].mxu1 }
 0x5aa   :  { %v5412_v29 = vpop.f32.mrb[124].mxu0 }
 0x5ab   :  { %v5443_v14 = vadd.f32 %v5412_v29, %v16207_v42  ;;  %v11683_v48 = vpop.f32.mrb[125].mxu0  ;;  %12026 = vmatmul.mubr.msk.bf16.gmra.mrb[0].mxu1 %vm676_vm3, %v7103_v16 }
 0x5ac   :  { %v5415_v61 = vpop.f32.mrb[126].mxu0  ;;  %12029 = vmatprep.mubr.msk.bf16.mxu1 %vm12626_vm1, %v17919_v21 }
 0x5ad   :  { %v5444_v8 = vadd.f32 %v5415_v61, %v16213_v0  ;;  %v11684_v35 = vpop.f32.mrb[127].mxu0  ;;  %v16372_v13 = vadd.f32 %v16209_v50, %v5443_v14  ;;  %v7104_v0 = vpack.c.bf16 %v16223_v15, %v16195_v24  ;;  %v6613_v50 = vld [vmem:[#allocation2 + $0xc0] sm:$0xff]  ;;  %v6614_v61 = vld [vmem:[#allocation2 + $0xc8] sm:$0xff] }
 0x5ae   :  { %v16374_v57 = vpop.f32.mrb[152].mxu1  ;;  %v6622_v45 = vpack.c.bf16 %v6613_v50, %v6612_v44 }
 0x5af   :  { %v11779_v40 = vpop.f32.mrb[153].mxu1  ;;  %11934 = vmatmul.mubr.msk.bf16.gmra.mrb[232].mxu0 %vm676_vm3, %v6621_v5  ;;  %v16378_v42 = vadd.f32 %v16215_v60, %v5444_v8 }
 0x5b0   :  { %v16380_v51 = vpop.f32.mrb[154].mxu1  ;;  %11937 = vmatprep.mubr.msk.bf16.mxu0 %vm12626_vm1, %v17919_v21 }
 0x5b1   :  { %v11780_v12 = vpop.f32.mrb[155].mxu1 }
 0x5b2   :  { %v5420_v31 = vpop.f32.mrb[128].mxu0 }
 0x5b3   :  { %v5445_v43 = vadd.f32 %v5420_v31, %v16231_v55  ;;  %v11687_v37 = vpop.f32.mrb[129].mxu0  ;;  %12030 = vmatmul.mubr.msk.bf16.gmra.mrb[4].mxu1 %vm676_vm3, %v7104_v0 }
 0x5b4   :  { %v5423_v47 = vpop.f32.mrb[130].mxu0  ;;  %12033 = vmatprep.mubr.msk.bf16.mxu1 %vm12626_vm1, %v17919_v21 }
 0x5b5   :  { %v5446_v60 = vadd.f32 %v5423_v47, %v16237_v58  ;;  %v11688_v3 = vpop.f32.mrb[131].mxu0  ;;  %v16392_v4 = vadd.f32 %v16233_v56, %v5445_v43  ;;  %v7105_v58 = vpack.c.bf16 %v16247_v52, %v16219_v30  ;;  %v6615_v56 = vld [vmem:[#allocation2 + $0xd0] sm:$0xff]  ;;  %v6616_v43 = vld [vmem:[#allocation2 + $0xd8] sm:$0xff] }
 0x5b6   :  { %v16394_v24 = vpop.f32.mrb[156].mxu1  ;;  %v6623_v8 = vpack.c.bf16 %v6615_v56, %v6614_v61 }
 0x5b7   :  { %v11783_v15 = vpop.f32.mrb[157].mxu1  ;;  %11938 = vmatmul.mubr.msk.bf16.gmra.mrb[236].mxu0 %vm676_vm3, %v6622_v45  ;;  %v16398_v55 = vadd.f32 %v16239_v62, %v5446_v60 }
 0x5b8   :  { %v16400_v49 = vpop.f32.mrb[158].mxu1  ;;  %11941 = vmatprep.mubr.msk.bf16.mxu0 %vm12626_vm1, %v17919_v21 }
 0x5b9   :  { %v11784_v16 = vpop.f32.mrb[159].mxu1 }
 0x5ba   :  { %v5428_v29 = vpop.f32.mrb[132].mxu0 }
 0x5bb   :  { %v5447_v9 = vadd.f32 %v5428_v29, %v16255_v23  ;;  %v11691_v14 = vpop.f32.mrb[133].mxu0  ;;  %12034 = vmatmul.mubr.msk.bf16.gmra.mrb[8].mxu1 %vm676_vm3, %v7105_v58 }
 0x5bc   :  { %v5431_v48 = vpop.f32.mrb[134].mxu0  ;;  %12037 = vmatprep.mubr.msk.bf16.mxu1 %vm12626_vm1, %v17919_v21 }
 0x5bd   :  { %v5448_v62 = vadd.f32 %v5431_v48, %v16261_v33  ;;  %v11692_v6 = vpop.f32.mrb[135].mxu0  ;;  %v16412_v35 = vadd.f32 %v16257_v36, %v5447_v9  ;;  %v7106_v33 = vpack.c.bf16 %v16271_v28, %v16243_v19  ;;  %v6617_v36 = vld [vmem:[#allocation2 + $0xe0] sm:$0xff] }
 0x5be   :  { %v16414_v30 = vpop.f32.mrb[160].mxu1  ;;  %v6624_v47 = vpack.c.bf16 %v6617_v36, %v6616_v43  ;;  %v7100_v28 = vld [vmem:[#allocation2 + $0x1c0] sm:$0xff] }
 0x5bf   :  { %v11787_v52 = vpop.f32.mrb[161].mxu1  ;;  %11942 = vmatmul.mubr.msk.bf16.gmra.mrb[240].mxu0 %vm676_vm3, %v6623_v8  ;;  %v16418_v23 = vadd.f32 %v16263_v32, %v5448_v62  ;;  %v7107_v45 = vpack.c.bf16 %v7100_v28, %v16267_v34  ;;  %v7410_v34 = vld [vmem:[#allocation2 + $0x161] sm:$0xff]  ;;  %v18003_v28 = vld [vmem:[#allocation119_spill] sm:$0xff] }
 0x5c0   :  { %v16420_v5 = vpop.f32.mrb[162].mxu1  ;;  %11945 = vmatprep.mubr.msk.bf16.mxu0 %vm12626_vm1, %v17919_v21 }
 0x5c1   :  { %v11788_v40 = vpop.f32.mrb[163].mxu1 }
 0x5c2   :  { %v5702_v12 = vpop.f32.mrb[136].mxu0  ;;  %v6928_v40 = vld [vmem:[#allocation2 + $0x89] sm:$0xff] }
 0x5c3   :  { %v5757_v0 = vadd.f32 %v5702_v12, %v16279_v59  ;;  %v11731_v31 = vpop.f32.mrb[137].mxu0  ;;  %12038 = vmatmul.mubr.msk.bf16.gmra.mrb[12].mxu1 %vm676_vm3, %v7106_v33 }
 0x5c4   :  { %v5705_v50 = vpop.f32.mrb[138].mxu0  ;;  %12041 = vmatprep.mubr.msk.bf16.mxu1 %vm12626_vm1, %v17919_v21 }
 0x5c5   :  { %v5758_v32 = vadd.f32 %v5705_v50, %v16285_v41  ;;  %v11732_v37 = vpop.f32.mrb[139].mxu0  ;;  %v16432_v44 = vadd.f32 %v16281_v10, %v5757_v0 }
 0x5c6   :  { %v16434_v19 = vpop.f32.mrb[164].mxu1 }
 0x5c7   :  { %v11827_v60 = vpop.f32.mrb[165].mxu1  ;;  %11946 = vmatmul.mubr.msk.bf16.gmra.mrb[244].mxu0 %vm676_vm3, %v6624_v47  ;;  %v16438_v59 = vadd.f32 %v16287_v27, %v5758_v32  ;;  %v12551_v27 = vld [vmem:[%s17753_s3 + $0x70] sm:$0xff]   ;;  %v6931_v32 = vld [vmem:[#allocation2 + $0xa1] sm:$0xff] }
 0x5c8   :  { %v16440_v3 = vpop.f32.mrb[166].mxu1  ;;  %11985 = vmatprep.mubr.msk.bf16.mxu0 %vm12626_vm1, %v17919_v21  ;;  %v18002_v47 = vld [vmem:[#allocation122_spill] sm:$0xff] }
 0x5c9   :  { %v11828_v41 = vpop.f32.mrb[167].mxu1  ;;  %v18004_v60 = vpack.c.bf16 %v18002_v47, %v18003_v28  ;;  %v6934_v47 = vld [vmem:[#allocation2 + $0xb9] sm:$0xff] }
 0x5ca   :  { %v5710_v15 = vpop.f32.mrb[140].mxu0 }
 0x5cb   :  { %v5759_v10 = vadd.f32 %v5710_v15, %v16300_v46  ;;  %v11735_v16 = vpop.f32.mrb[141].mxu0  ;;  %12042 = vmatmul.mubr.msk.bf16.gmra.mrb[16].mxu1 %vm676_vm3, %v7107_v45  ;;  %v6930_v45 = vld [vmem:[#allocation2 + $0x99] sm:$0xff] }
 0x5cc   :  { %v5713_v58 = vpop.f32.mrb[142].mxu0  ;;  %12081 = vmatprep.mubr.msk.bf16.mxu1 %vm12626_vm1, %v17919_v21 }
 0x5cd   :  { %v5760_v29 = vadd.f32 %v5713_v58, %v16307_v54  ;;  %v11736_v56 = vpop.f32.mrb[143].mxu0  ;;  %v16454_v9 = vadd.f32 %v16302_v11, %v5759_v10  ;;  %v12553_v11 = vld [vmem:[%s17753_s3 + $0x78] sm:$0xff]   ;;  %v7423_v54 = vpack.c.bf16 %v7410_v34, %v15989_v20  ;;  %v6942_v10 = vpack.c.bf16 %v6931_v32, %v6930_v45 }
 0x5ce   :  { %v16456_v14 = vpop.f32.mrb[168].mxu1  ;;  %v6933_v34 = vld [vmem:[#allocation2 + $0xb1] sm:$0xff] }
 0x5cf   :  { %v11831_v46 = vpop.f32.mrb[169].mxu1  ;;  %11986 = vmatmul.mubr.msk.bf16.vlgmr.msra.gmra.mrb[248].mxu0 %vm676_vm3, %v15053_v39  ;;  %v16461_v48 = vadd.f32 %v16309_v53, %v5760_v29  ;;  %v6929_v39 = vld [vmem:[#allocation2 + $0x91] sm:$0xff] }
 0x5d0   :  { %12046 = vmatpush3.bf16.msra.mxu0 %v12551_v27  ;;  %v16463_v61 = vpop.f32.mrb[170].mxu1  ;;  %11989 = vmatprep.mubr.msk.bf16.mxu0 %vm12626_vm1, %v17919_v21  ;;  %v6941_v20 = vpack.c.bf16 %v6929_v39, %v6928_v40  ;;  %v6932_v39 = vld [vmem:[#allocation2 + $0xa9] sm:$0xff]  ;;  %v18009_v32 = vld [vmem:[#allocation139_spill] sm:$0xff] }
 0x5d1   :  { %v11832_v62 = vpop.f32.mrb[171].mxu1  ;;  %12047 = vmatprep.subr.bf16.mxu0 %v17919_v21 }
 0x5d2   :  { %v5718_v6 = vpop.f32.mrb[144].mxu0 }
 0x5d3   :  { %v5761_v53 = vadd.f32 %v5718_v6, %v16331_v17  ;;  %v11739_v8 = vpop.f32.mrb[145].mxu0  ;;  %12082 = vmatmul.mubr.msk.bf16.vlgmr.msra.gmra.mrb[20].mxu1 %vm676_vm3, %v7423_v54  ;;  %v18006_v54 = vld [vmem:[#allocation135_spill] sm:$0xff] }
 0x5d4   :  { %v5721_v52 = vpop.f32.mrb[146].mxu0  ;;  %12085 = vmatprep.mubr.msk.bf16.mxu1 %vm12626_vm1, %v17919_v21  ;;  %12048 = vmatpush3.bf16.msra.mxu0 %v12553_v11  ;;  %v18005_v11 = vld [vmem:[#allocation136_spill] sm:$0xff]  ;;  %v6943_v8 = vpack.c.bf16 %v6933_v34, %v6932_v39  ;;  %v18012_v34 = vld [vmem:[#allocation143_spill] sm:$0xff] }
 0x5d5   :  { %v5762_v33 = vadd.f32 %v5721_v52, %v16338_v2  ;;  %v11740_v12 = vpop.f32.mrb[147].mxu0  ;;  %v16478_v36 = vadd.f32 %v16333_v63, %v5761_v53  ;;  %v18007_v62 = vpack.c.bf16 %v18005_v11, %v18006_v54  ;;  %v6936_v11 = vld [vmem:[#allocation2 + $0xc9] sm:$0xff]  ;;  %12109 = vmatprep.subr.bf16.mxu0 %v17919_v21 }
 0x5d6   :  { %v16480_v0 = vpop.f32.mrb[172].mxu1 }
 0x5d7   :  { %v11835_v31 = vpop.f32.mrb[173].mxu1  ;;  %11990 = vmatmul.mubr.msk.bf16.gmra.mrb[252].mxu0 %vm676_vm3, %v6941_v20  ;;  %v16484_v17 = vadd.f32 %v16340_v25, %v5762_v33 }
 0x5d8   :  { %v16486_v50 = vpop.f32.mrb[174].mxu1  ;;  %11993 = vmatprep.mubr.msk.bf16.mxu0 %vm12626_vm1, %v17919_v21  ;;  %v6935_v31 = vld [vmem:[#allocation2 + $0xc1] sm:$0xff] }
 0x5d9   :  { %v11836_v43 = vpop.f32.mrb[175].mxu1 }
 0x5da   :  { %v5726_v2 = vpop.f32.mrb[148].mxu0 }
 0x5db   :  { %v5763_v37 = vadd.f32 %v5726_v2, %v16352_v18  ;;  %v11743_v63 = vpop.f32.mrb[149].mxu0  ;;  %12086 = vmatmul.mubr.msk.bf16.gmra.mrb[24].mxu1 %vm676_vm3, %v18004_v60  ;;  %v18008_v2 = vld [vmem:[#allocation140_spill] sm:$0xff]  ;;  %v6944_v60 = vpack.c.bf16 %v6935_v31, %v6934_v47  ;;  %v18015_v31 = vld [vmem:[#allocation147_spill] sm:$0xff] }
 0x5dc   :  { %v5729_v41 = vpop.f32.mrb[150].mxu0  ;;  %12089 = vmatprep.mubr.msk.bf16.mxu1 %vm12626_vm1, %v17919_v21  ;;  %v6107_v47 = vld [vmem:[#allocation3] sm:$0xff] }
 0x5dd   :  { %v5764_v25 = vadd.f32 %v5729_v41, %v16358_v7  ;;  %v11744_v15 = vpop.f32.mrb[151].mxu0  ;;  %v16499_v16 = vadd.f32 %v16354_v26, %v5763_v37  ;;  %v18010_v37 = vpack.c.bf16 %v18008_v2, %v18009_v32  ;;  %v6938_v2 = vld [vmem:[#allocation2 + $0xd9] sm:$0xff] }
 0x5de   :  { %v16501_v58 = vpop.f32.mrb[176].mxu1 }
 0x5df   :  { %v11839_v18 = vpop.f32.mrb[177].mxu1  ;;  %11994 = vmatmul.mubr.msk.bf16.gmra.mrb[0].mxu0 %vm676_vm3, %v6942_v10  ;;  %v16505_v27 = vadd.f32 %v16360_v1, %v5764_v25 }
 0x5e0   :  { %v16507_v29 = vpop.f32.mrb[178].mxu1  ;;  %11997 = vmatprep.mubr.msk.bf16.mxu0 %vm12626_vm1, %v17919_v21  ;;  %v6937_v18 = vld [vmem:[#allocation2 + $0xd1] sm:$0xff] }
 0x5e1   :  { %v11840_v56 = vpop.f32.mrb[179].mxu1 }
 0x5e2   :  { %v5734_v7 = vpop.f32.mrb[152].mxu0 }
 0x5e3   :  { %v5765_v46 = vadd.f32 %v5734_v7, %v16372_v13  ;;  %v11747_v26 = vpop.f32.mrb[153].mxu0  ;;  %12090 = vmatmul.mubr.msk.bf16.gmra.mrb[28].mxu1 %vm676_vm3, %v18007_v62  ;;  %v18011_v7 = vld [vmem:[#allocation144_spill] sm:$0xff]  ;;  %v6945_v62 = vpack.c.bf16 %v6937_v18, %v6936_v11 }
 0x5e4   :  { %v5737_v6 = vpop.f32.mrb[154].mxu0  ;;  %12093 = vmatprep.mubr.msk.bf16.mxu1 %vm12626_vm1, %v17919_v21 }
 0x5e5   :  { %v5766_v1 = vadd.f32 %v5737_v6, %v16378_v42  ;;  %v11748_v53 = vpop.f32.mrb[155].mxu0  ;;  %v16520_v52 = vadd.f32 %v16374_v57, %v5765_v46  ;;  %v18013_v46 = vpack.c.bf16 %v18011_v7, %v18012_v34 }
 0x5e6   :  { %v16522_v40 = vpop.f32.mrb[180].mxu1 }
 0x5e7   :  { %v11843_v13 = vpop.f32.mrb[181].mxu1  ;;  %11998 = vmatmul.mubr.msk.bf16.gmra.mrb[4].mxu0 %vm676_vm3, %v6943_v8  ;;  %v16526_v33 = vadd.f32 %v16380_v51, %v5766_v1 }
 0x5e8   :  { %v16528_v12 = vpop.f32.mrb[182].mxu1  ;;  %12001 = vmatprep.mubr.msk.bf16.mxu0 %vm12626_vm1, %v17919_v21  ;;  %v6939_v13 = vld [vmem:[#allocation2 + $0xe1] sm:$0xff] }
 0x5e9   :  { %v11844_v20 = vpop.f32.mrb[183].mxu1 }
 0x5ea   :  { %v5742_v42 = vpop.f32.mrb[156].mxu0 }
 0x5eb   :  { %v5767_v43 = vadd.f32 %v5742_v42, %v16392_v4  ;;  %v11751_v57 = vpop.f32.mrb[157].mxu0  ;;  %12094 = vmatmul.mubr.msk.bf16.gmra.mrb[32].mxu1 %vm676_vm3, %v18010_v37  ;;  %v18014_v42 = vld [vmem:[#allocation148_spill] sm:$0xff] }
 0x5ec   :  { %v5745_v63 = vpop.f32.mrb[158].mxu0  ;;  %12097 = vmatprep.mubr.msk.bf16.mxu1 %vm12626_vm1, %v17919_v21 }
 0x5ed   :  { %v5768_v51 = vadd.f32 %v5745_v63, %v16398_v55  ;;  %v11752_v28 = vpop.f32.mrb[159].mxu0  ;;  %v16541_v41 = vadd.f32 %v16394_v24, %v5767_v43  ;;  %v18016_v43 = vpack.c.bf16 %v18014_v42, %v18015_v31  ;;  %v6946_v63 = vpack.c.bf16 %v6939_v13, %v6938_v2  ;;  %v7251_v42 = vld [vmem:[#allocation2 + $0x101] sm:$0xff]  ;;  %v7250_v2 = vld [vmem:[#allocation2 + $0xf9] sm:$0xff] }
 0x5ee   :  { %v16543_v45 = vpop.f32.mrb[184].mxu1  ;;  %v7422_v28 = vld [vmem:[#allocation2 + $0x1c1] sm:$0xff] }
 0x5ef   :  { %v11847_v4 = vpop.f32.mrb[185].mxu1  ;;  %12002 = vmatmul.mubr.msk.bf16.gmra.mrb[8].mxu0 %vm676_vm3, %v6944_v60  ;;  %v16547_v25 = vadd.f32 %v16400_v49, %v5768_v51 }
 0x5f0   :  { %v16549_v15 = vpop.f32.mrb[186].mxu1  ;;  %12005 = vmatprep.mubr.msk.bf16.mxu0 %vm12626_vm1, %v17919_v21 }
 0x5f1   :  { %v11848_v10 = vpop.f32.mrb[187].mxu1 }
 0x5f2   :  { %v5750_v55 = vpop.f32.mrb[160].mxu0 }
 0x5f3   :  { %v5769_v56 = vadd.f32 %v5750_v55, %v16412_v35  ;;  %v11755_v24 = vpop.f32.mrb[161].mxu0  ;;  %12098 = vmatmul.mubr.msk.bf16.gmra.mrb[36].mxu1 %vm676_vm3, %v18013_v46  ;;  %v6108_v55 = vld [vmem:[#allocation3 + $0x8] sm:$0xff] }
 0x5f4   :  { %v5753_v26 = vpop.f32.mrb[162].mxu0  ;;  %12101 = vmatprep.mubr.msk.bf16.mxu1 %vm12626_vm1, %v17919_v21  ;;  %v7429_v24 = vpack.c.bf16 %v7422_v28, %v16103_v22 }
 0x5f5   :  { %v5770_v49 = vadd.f32 %v5753_v26, %v16418_v23  ;;  %v11756_v54 = vpop.f32.mrb[163].mxu0  ;;  %v16562_v6 = vadd.f32 %v16414_v30, %v5769_v56 }
 0x5f6   :  { %v16564_v39 = vpop.f32.mrb[188].mxu1 }
 0x5f7   :  { %v11851_v35 = vpop.f32.mrb[189].mxu1  ;;  %12006 = vmatmul.mubr.msk.bf16.gmra.mrb[12].mxu0 %vm676_vm3, %v6945_v62  ;;  %v16568_v1 = vadd.f32 %v16420_v5, %v5770_v49  ;;  %v16584_v5 = vld [vmem:[%s17754_s4] ss:$0 sm:$0xff] }
 0x5f8   :  { %v16570_v53 = vpop.f32.mrb[190].mxu1  ;;  %12009 = vmatprep.mubr.msk.bf16.mxu0 %vm12626_vm1, %v17919_v21  ;;  %v6109_v62 = vld [vmem:[#allocation3 + $0x10] sm:$0xff] }
 0x5f9   :  { %v11852_v8 = vpop.f32.mrb[191].mxu1 }
 0x5fa   :  { %v6024_v23 = vpop.f32.mrb[164].mxu0 }
 0x5fb   :  { %v6079_v20 = vadd.f32 %v6024_v23, %v16432_v44  ;;  %v11795_v30 = vpop.f32.mrb[165].mxu0  ;;  %12102 = vmatmul.mubr.msk.bf16.gmra.mrb[40].mxu1 %vm676_vm3, %v18016_v43 }
 0x5fc   :  { %v6027_v57 = vpop.f32.mrb[166].mxu0  ;;  %12105 = vmatprep.mubr.msk.bf16.mxu1 %vm12626_vm1, %v17919_v21 }
 0x5fd   :  { %v6093_v32 = vadd.f32 %v16584_v5, %v6079_v20  ;;  %v6080_v44 = vadd.f32 %v6027_v57, %v16438_v59  ;;  %v11796_v37 = vpop.f32.mrb[167].mxu0 }
 0x5fe   :  { %v16588_v51 = vpop.f32.mrb[192].mxu1  ;;  %v7263_v37 = vpack.c.bf16 %v7251_v42, %v7250_v2  ;;  %v7255_v42 = vld [vmem:[#allocation2 + $0x121] sm:$0xff]  ;;  %v7254_v2 = vld [vmem:[#allocation2 + $0x119] sm:$0xff] }
 0x5ff   :  { %v6121_v60 = vmax.f32 %v6107_v47, %v6093_v32  ;;  %v6094_v4 = vadd.f32 %v16584_v5, %v6080_v44  ;;  %v11891_v10 = vpop.f32.mrb[193].mxu1  ;;  %12010 = vmatmul.mubr.msk.bf16.gmra.mrb[16].mxu0 %vm676_vm3, %v6946_v63  ;;  %v6111_v63 = vld [vmem:[#allocation3 + $0x20] sm:$0xff] }
 0x600   :  { %v16592_v18 = vpop.f32.mrb[194].mxu1  ;;  %12049 = vmatprep.mubr.msk.bf16.mxu0 %vm12626_vm1, %v17919_v21  ;;  %v6112_v10 = vld [vmem:[#allocation3 + $0x28] sm:$0xff] }
 0x601   :  { %6135 = vst.msk [vmem:[#allocation3] sm:$0xff] %vm3180_vm4, %v6121_v60  ;;  %v6122_v59 = vmax.f32 %v6108_v55, %v6094_v4  ;;  %v11892_v56 = vpop.f32.mrb[195].mxu1 }
 0x602   :  { %v6032_v7 = vpop.f32.mrb[168].mxu0  ;;  %v7253_v56 = vld [vmem:[#allocation2 + $0x111] sm:$0xff] }
 0x603   :  { %6136 = vst.msk [vmem:[#allocation3 + $0x8] sm:$0xff] %vm3180_vm4, %v6122_v59  ;;  %v6081_v34 = vadd.f32 %v6032_v7, %v16454_v9  ;;  %v11799_v46 = vpop.f32.mrb[169].mxu0  ;;  %12106 = vmatmul.mubr.msk.bf16.gmra.mrb[44].mxu1 %vm676_vm3, %v7429_v24  ;;  %v6110_v9 = vld [vmem:[#allocation3 + $0x18] sm:$0xff] }
 0x604   :  { %v6035_v26 = vpop.f32.mrb[170].mxu0  ;;  %v7252_v46 = vld [vmem:[#allocation2 + $0x109] sm:$0xff] }
 0x605   :  { %v6095_v11 = vadd.f32 %v16584_v5, %v6081_v34  ;;  %v6082_v49 = vadd.f32 %v6035_v26, %v16461_v48  ;;  %v11800_v54 = vpop.f32.mrb[171].mxu0 }
 0x606   :  { %v16603_v35 = vpop.f32.mrb[196].mxu1  ;;  %v7264_v54 = vpack.c.bf16 %v7253_v56, %v7252_v46  ;;  %v7257_v56 = vld [vmem:[#allocation2 + $0x131] sm:$0xff]  ;;  %v7256_v46 = vld [vmem:[#allocation2 + $0x129] sm:$0xff] }
 0x607   :  { %v6123_v8 = vmax.f32 %v6109_v62, %v6095_v11  ;;  %v6096_v22 = vadd.f32 %v16584_v5, %v6082_v49  ;;  %v11895_v23 = vpop.f32.mrb[197].mxu1  ;;  %12050 = vmatmul.mubr.msk.bf16.vlgmr.msra.gmra.mrb[20].mxu0 %vm676_vm3, %v18001_v38  ;;  %v6113_v62 = vld [vmem:[#allocation3 + $0x30] sm:$0xff] }
 0x608   :  { %v16608_v13 = vpop.f32.mrb[198].mxu1  ;;  %12053 = vmatprep.mubr.msk.bf16.mxu0 %vm12626_vm1, %v17919_v21 }
 0x609   :  { %6137 = vst.msk [vmem:[#allocation3 + $0x10] sm:$0xff] %vm3180_vm4, %v6123_v8  ;;  %v6124_v48 = vmax.f32 %v6110_v9, %v6096_v22  ;;  %v11896_v20 = vpop.f32.mrb[199].mxu1 }
 0x60a   :  { %v6040_v30 = vpop.f32.mrb[172].mxu0 }
 0x60b   :  { %6138 = vst.msk [vmem:[#allocation3 + $0x18] sm:$0xff] %vm3180_vm4, %v6124_v48  ;;  %v6083_v31 = vadd.f32 %v6040_v30, %v16478_v36  ;;  %v11803_v43 = vpop.f32.mrb[173].mxu0  ;;  %v6114_v48 = vld [vmem:[#allocation3 + $0x38] sm:$0xff] }
 0x60c   :  { %v6043_v57 = vpop.f32.mrb[174].mxu0 }
 0x60d   :  { %v6097_v38 = vadd.f32 %v16584_v5, %v6083_v31  ;;  %v6084_v32 = vadd.f32 %v6043_v57, %v16484_v17  ;;  %v11804_v44 = vpop.f32.mrb[175].mxu0 }
 0x60e   :  { %v16617_v47 = vpop.f32.mrb[200].mxu1 }
 0x60f   :  { %v6125_v28 = vmax.f32 %v6111_v63, %v6097_v38  ;;  %v6098_v60 = vadd.f32 %v16584_v5, %v6084_v32  ;;  %v11899_v4 = vpop.f32.mrb[201].mxu1  ;;  %12054 = vmatmul.mubr.msk.bf16.gmra.mrb[24].mxu0 %vm676_vm3, %v7263_v37  ;;  %v7265_v37 = vpack.c.bf16 %v7255_v42, %v7254_v2  ;;  %v6115_v63 = vld [vmem:[#allocation3 + $0x40] sm:$0xff]  ;;  %v7259_v42 = vld [vmem:[#allocation2 + $0x141] sm:$0xff]  ;;  %v7258_v2 = vld [vmem:[#allocation2 + $0x139] sm:$0xff] }
 0x610   :  { %v16621_v36 = vpop.f32.mrb[202].mxu1  ;;  %12057 = vmatprep.mubr.msk.bf16.mxu0 %vm12626_vm1, %v17919_v21 }
 0x611   :  { %6139 = vst.msk [vmem:[#allocation3 + $0x20] sm:$0xff] %vm3180_vm4, %v6125_v28  ;;  %v6126_v17 = vmax.f32 %v6112_v10, %v6098_v60  ;;  %v11900_v55 = vpop.f32.mrb[203].mxu1 }
 0x612   :  { %v6048_v59 = vpop.f32.mrb[176].mxu0 }
 0x613   :  { %6140 = vst.msk [vmem:[#allocation3 + $0x28] sm:$0xff] %vm3180_vm4, %v6126_v17  ;;  %v6085_v24 = vadd.f32 %v6048_v59, %v16499_v16  ;;  %v11807_v7 = vpop.f32.mrb[177].mxu0  ;;  %v6116_v17 = vld [vmem:[#allocation3 + $0x48] sm:$0xff] }
 0x614   :  { %v6051_v34 = vpop.f32.mrb[178].mxu0 }
 0x615   :  { %v6099_v26 = vadd.f32 %v16584_v5, %v6085_v24  ;;  %v6086_v11 = vadd.f32 %v6051_v34, %v16505_v27  ;;  %v11808_v49 = vpop.f32.mrb[179].mxu0 }
 0x616   :  { %v16630_v8 = vpop.f32.mrb[204].mxu1 }
 0x617   :  { %v6127_v22 = vmax.f32 %v6113_v62, %v6099_v26  ;;  %v6100_v23 = vadd.f32 %v16584_v5, %v6086_v11  ;;  %v11903_v9 = vpop.f32.mrb[205].mxu1  ;;  %12058 = vmatmul.mubr.msk.bf16.gmra.mrb[28].mxu0 %vm676_vm3, %v7264_v54  ;;  %v7266_v54 = vpack.c.bf16 %v7257_v56, %v7256_v46  ;;  %v6117_v62 = vld [vmem:[#allocation3 + $0x50] sm:$0xff]  ;;  %v7261_v56 = vld [vmem:[#allocation2 + $0x151] sm:$0xff]  ;;  %v7260_v46 = vld [vmem:[#allocation2 + $0x149] sm:$0xff] }
 0x618   :  { %v16634_v16 = vpop.f32.mrb[206].mxu1  ;;  %12061 = vmatprep.mubr.msk.bf16.mxu0 %vm12626_vm1, %v17919_v21 }
 0x619   :  { %6141 = vst.msk [vmem:[#allocation3 + $0x30] sm:$0xff] %vm3180_vm4, %v6127_v22  ;;  %v6128_v27 = vmax.f32 %v6114_v48, %v6100_v23  ;;  %v11904_v20 = vpop.f32.mrb[207].mxu1 }
 0x61a   :  { %v6056_v30 = vpop.f32.mrb[180].mxu0 }
 0x61b   :  { %6142 = vst.msk [vmem:[#allocation3 + $0x38] sm:$0xff] %vm3180_vm4, %v6128_v27  ;;  %v6087_v31 = vadd.f32 %v6056_v30, %v16520_v52  ;;  %v11811_v43 = vpop.f32.mrb[181].mxu0  ;;  %v6118_v27 = vld [vmem:[#allocation3 + $0x58] sm:$0xff] }
 0x61c   :  { %v6059_v57 = vpop.f32.mrb[182].mxu0 }
 0x61d   :  { %v6101_v38 = vadd.f32 %v16584_v5, %v6087_v31  ;;  %v6088_v32 = vadd.f32 %v6059_v57, %v16526_v33  ;;  %v11812_v44 = vpop.f32.mrb[183].mxu0 }
 0x61e   :  { %v16643_v28 = vpop.f32.mrb[208].mxu1 }
 0x61f   :  { %v6129_v60 = vmax.f32 %v6115_v63, %v6101_v38  ;;  %v6102_v4 = vadd.f32 %v16584_v5, %v6088_v32  ;;  %v11907_v10 = vpop.f32.mrb[209].mxu1  ;;  %12062 = vmatmul.mubr.msk.bf16.gmra.mrb[32].mxu0 %vm676_vm3, %v7265_v37  ;;  %v7267_v37 = vpack.c.bf16 %v7259_v42, %v7258_v2  ;;  %v6119_v63 = vld [vmem:[#allocation3 + $0x60] sm:$0xff] }
 0x620   :  { %v16647_v52 = vpop.f32.mrb[210].mxu1  ;;  %12065 = vmatprep.mubr.msk.bf16.mxu0 %vm12626_vm1, %v17919_v21 }
 0x621   :  { %6143 = vst.msk [vmem:[#allocation3 + $0x40] sm:$0xff] %vm3180_vm4, %v6129_v60  ;;  %v6130_v33 = vmax.f32 %v6116_v17, %v6102_v4  ;;  %v11908_v55 = vpop.f32.mrb[211].mxu1 }
 0x622   :  { %v6064_v59 = vpop.f32.mrb[184].mxu0 }
 0x623   :  { %6144 = vst.msk [vmem:[#allocation3 + $0x48] sm:$0xff] %vm3180_vm4, %v6130_v33  ;;  %v6089_v24 = vadd.f32 %v6064_v59, %v16541_v41  ;;  %v11815_v7 = vpop.f32.mrb[185].mxu0  ;;  %v6120_v33 = vld [vmem:[#allocation3 + $0x68] sm:$0xff] }
 0x624   :  { %v6067_v34 = vpop.f32.mrb[186].mxu0 }
 0x625   :  { %v6103_v26 = vadd.f32 %v16584_v5, %v6089_v24  ;;  %v6090_v11 = vadd.f32 %v6067_v34, %v16547_v25  ;;  %v11816_v49 = vpop.f32.mrb[187].mxu0 }
 0x626   :  { %v16656_v22 = vpop.f32.mrb[212].mxu1  ;;  %v7268_v49 = vpack.c.bf16 %v7261_v56, %v7260_v46 }
 0x627   :  { %v6131_v23 = vmax.f32 %v6117_v62, %v6103_v26  ;;  %v6104_v9 = vadd.f32 %v16584_v5, %v6090_v11  ;;  %v11911_v48 = vpop.f32.mrb[213].mxu1  ;;  %12066 = vmatmul.mubr.msk.bf16.gmra.mrb[36].mxu0 %vm676_vm3, %v7266_v54 }
 0x628   :  { %v16660_v41 = vpop.f32.mrb[214].mxu1  ;;  %12069 = vmatprep.mubr.msk.bf16.mxu0 %vm12626_vm1, %v17919_v21 }
 0x629   :  { %6145 = vst.msk [vmem:[#allocation3 + $0x50] sm:$0xff] %vm3180_vm4, %v6131_v23  ;;  %v6132_v25 = vmax.f32 %v6118_v27, %v6104_v9  ;;  %v11912_v20 = vpop.f32.mrb[215].mxu1 }
 0x62a   :  { %v6072_v30 = vpop.f32.mrb[188].mxu0 }
 0x62b   :  { %6146 = vst.msk [vmem:[#allocation3 + $0x58] sm:$0xff] %vm3180_vm4, %v6132_v25  ;;  %v6091_v31 = vadd.f32 %v6072_v30, %v16562_v6  ;;  %v11819_v43 = vpop.f32.mrb[189].mxu0 }
 0x62c   :  { %v6075_v57 = vpop.f32.mrb[190].mxu0 }
 0x62d   :  { %v6105_v38 = vadd.f32 %v16584_v5, %v6091_v31  ;;  %v6092_v32 = vadd.f32 %v6075_v57, %v16568_v1  ;;  %v11820_v44 = vpop.f32.mrb[191].mxu0 }
 0x62e   :  { %v16669_v60 = vpop.f32.mrb[216].mxu1 }
 0x62f   :  { %v6133_v4 = vmax.f32 %v6119_v63, %v6105_v38  ;;  %v6106_v10 = vadd.f32 %v16584_v5, %v6092_v32  ;;  %v11915_v17 = vpop.f32.mrb[217].mxu1  ;;  %12070 = vmatmul.mubr.msk.bf16.gmra.mrb[40].mxu0 %vm676_vm3, %v7267_v37 }
 0x630   :  { %v16673_v6 = vpop.f32.mrb[218].mxu1  ;;  %12073 = vmatprep.mubr.msk.bf16.mxu0 %vm12626_vm1, %v17919_v21 }
 0x631   :  { %6147 = vst.msk [vmem:[#allocation3 + $0x60] sm:$0xff] %vm3180_vm4, %v6133_v4  ;;  %v6134_v1 = vmax.f32 %v6120_v33, %v6106_v10  ;;  %v11916_v55 = vpop.f32.mrb[219].mxu1 }
 0x632   :  { %v6388_v59 = vpop.f32.mrb[192].mxu0 }
 0x633   :  { %6148 = vst.msk [vmem:[#allocation3 + $0x68] sm:$0xff] %vm3180_vm4, %v6134_v1  ;;  %v6389_v24 = vadd.f32 %v6388_v59, %v16434_v19  ;;  %v11859_v7 = vpop.f32.mrb[193].mxu0 }
 0x634   :  { %v6391_v34 = vpop.f32.mrb[194].mxu0 }
 0x635   :  { %v6392_v26 = vadd.f32 %v6391_v34, %v16440_v3  ;;  %v11860_v11 = vpop.f32.mrb[195].mxu0  ;;  %v16682_v54 = vadd.f32 %v16588_v51, %v6389_v24 }
 0x636   :  { %v16684_v62 = vpop.f32.mrb[220].mxu1 }
 0x637   :  { %v11955_v23 = vpop.f32.mrb[221].mxu1  ;;  %12074 = vmatmul.mubr.msk.bf16.gmra.mrb[44].mxu0 %vm676_vm3, %v7268_v49  ;;  %v16688_v9 = vadd.f32 %v16592_v18, %v6392_v26 }
 0x638   :  { %v16690_v48 = vpop.f32.mrb[222].mxu1 }
 0x639   :  { %v11956_v19 = vpop.f32.mrb[223].mxu1 }
 0x63a   :  { %v6396_v27 = vpop.f32.mrb[196].mxu0 }
 0x63b   :  { %v6397_v25 = vadd.f32 %v6396_v27, %v16456_v14  ;;  %v11863_v3 = vpop.f32.mrb[197].mxu0 }
 0x63c   :  { %v6399_v20 = vpop.f32.mrb[198].mxu0 }
 0x63d   :  { %v6400_v30 = vadd.f32 %v6399_v20, %v16463_v61  ;;  %v11864_v51 = vpop.f32.mrb[199].mxu0  ;;  %v16695_v42 = vadd.f32 %v16603_v35, %v6397_v25 }
 0x63e   :  { %v16697_v31 = vpop.f32.mrb[224].mxu1 }
 0x63f   :  { %v11959_v43 = vpop.f32.mrb[225].mxu1  ;;  %v16700_v18 = vadd.f32 %v16608_v13, %v6400_v30 }
 0x640   :  { %v16702_v57 = vpop.f32.mrb[226].mxu1 }
 0x641   :  { %v11960_v2 = vpop.f32.mrb[227].mxu1 }
 0x642   :  { %v6404_v38 = vpop.f32.mrb[200].mxu0 }
 0x643   :  { %v6405_v14 = vadd.f32 %v6404_v38, %v16480_v0  ;;  %v11867_v32 = vpop.f32.mrb[201].mxu0 }
 0x644   :  { %v6407_v44 = vpop.f32.mrb[202].mxu0 }
 0x645   :  { %v6408_v61 = vadd.f32 %v6407_v44, %v16486_v50  ;;  %v11868_v37 = vpop.f32.mrb[203].mxu0  ;;  %v16707_v35 = vadd.f32 %v16617_v47, %v6405_v14 }
 0x646   :  { %v16709_v63 = vpop.f32.mrb[228].mxu1 }
 0x647   :  { %v11963_v4 = vpop.f32.mrb[229].mxu1  ;;  %v16712_v13 = vadd.f32 %v16621_v36, %v6408_v61 }
 0x648   :  { %v16714_v10 = vpop.f32.mrb[230].mxu1 }
 0x649   :  { %v11964_v17 = vpop.f32.mrb[231].mxu1 }
 0x64a   :  { %v6412_v33 = vpop.f32.mrb[204].mxu0 }
 0x64b   :  { %v6413_v0 = vadd.f32 %v6412_v33, %v16501_v58  ;;  %v11871_v1 = vpop.f32.mrb[205].mxu0 }
 0x64c   :  { %v6415_v55 = vpop.f32.mrb[206].mxu0 }
 0x64d   :  { %v6416_v50 = vadd.f32 %v6415_v55, %v16507_v29  ;;  %v11872_v59 = vpop.f32.mrb[207].mxu0  ;;  %v16719_v47 = vadd.f32 %v16630_v8, %v6413_v0 }
 0x64e   :  { %v16721_v56 = vpop.f32.mrb[232].mxu1 }
 0x64f   :  { %v11967_v24 = vpop.f32.mrb[233].mxu1  ;;  %v16724_v36 = vadd.f32 %v16634_v16, %v6416_v50 }
 0x650   :  { %v16726_v7 = vpop.f32.mrb[234].mxu1 }
 0x651   :  { %v11968_v34 = vpop.f32.mrb[235].mxu1 }
 0x652   :  { %v6420_v46 = vpop.f32.mrb[208].mxu0 }
 0x653   :  { %v6421_v58 = vadd.f32 %v6420_v46, %v16522_v40  ;;  %v11875_v26 = vpop.f32.mrb[209].mxu0 }
 0x654   :  { %v6423_v11 = vpop.f32.mrb[210].mxu0 }
 0x655   :  { %v6424_v29 = vadd.f32 %v6423_v11, %v16528_v12  ;;  %v11876_v49 = vpop.f32.mrb[211].mxu0  ;;  %v16731_v8 = vadd.f32 %v16643_v28, %v6421_v58 }
 0x656   :  { %v16733_v23 = vpop.f32.mrb[236].mxu1 }
 0x657   :  { %v11971_v19 = vpop.f32.mrb[237].mxu1  ;;  %v16736_v16 = vadd.f32 %v16647_v52, %v6424_v29 }
 0x658   :  { %v16738_v27 = vpop.f32.mrb[238].mxu1 }
 0x659   :  { %v11972_v25 = vpop.f32.mrb[239].mxu1 }
 0x65a   :  { %v6428_v3 = vpop.f32.mrb[212].mxu0 }
 0x65b   :  { %v6429_v40 = vadd.f32 %v6428_v3, %v16543_v45  ;;  %v11879_v20 = vpop.f32.mrb[213].mxu0 }
 0x65c   :  { %v6431_v30 = vpop.f32.mrb[214].mxu0 }
 0x65d   :  { %v6432_v12 = vadd.f32 %v6431_v30, %v16549_v15  ;;  %v11880_v51 = vpop.f32.mrb[215].mxu0  ;;  %v16743_v28 = vadd.f32 %v16656_v22, %v6429_v40 }
 0x65e   :  { %v16745_v43 = vpop.f32.mrb[240].mxu1 }
 0x65f   :  { %v11975_v2 = vpop.f32.mrb[241].mxu1  ;;  %v16748_v52 = vadd.f32 %v16660_v41, %v6432_v12 }
 0x660   :  { %v16750_v38 = vpop.f32.mrb[242].mxu1 }
 0x661   :  { %v11976_v14 = vpop.f32.mrb[243].mxu1 }
 0x662   :  { %v6436_v32 = vpop.f32.mrb[216].mxu0 }
 0x663   :  { %v6437_v45 = vadd.f32 %v6436_v32, %v16564_v39  ;;  %v11883_v44 = vpop.f32.mrb[217].mxu0 }
 0x664   :  { %v6439_v61 = vpop.f32.mrb[218].mxu0 }
 0x665   :  { %v6440_v15 = vadd.f32 %v6439_v61, %v16570_v53  ;;  %v11884_v37 = vpop.f32.mrb[219].mxu0  ;;  %v16755_v22 = vadd.f32 %v16669_v60, %v6437_v45 }
 0x666   :  { %v16757_v4 = vpop.f32.mrb[244].mxu1 }
 0x667   :  { %v11979_v17 = vpop.f32.mrb[245].mxu1  ;;  %v16760_v41 = vadd.f32 %v16673_v6, %v6440_v15 }
 0x668   :  { %v16762_v33 = vpop.f32.mrb[246].mxu1 }
 0x669   :  { %v11980_v0 = vpop.f32.mrb[247].mxu1 }
 0x66a   :  { %v6696_v1 = vpop.f32.mrb[220].mxu0 }
 0x66b   :  { %v6751_v39 = vadd.f32 %v6696_v1, %v16682_v54  ;;  %v11923_v55 = vpop.f32.mrb[221].mxu0 }
 0x66c   :  { %v6699_v50 = vpop.f32.mrb[222].mxu0 }
 0x66d   :  { %v6752_v53 = vadd.f32 %v6699_v50, %v16688_v9  ;;  %v11924_v59 = vpop.f32.mrb[223].mxu0  ;;  %v16767_v60 = vadd.f32 %v16684_v62, %v6751_v39 }
 0x66e   :  { %v16769_v24 = vpop.f32.mrb[248].mxu1 }
 0x66f   :  { %v12019_v34 = vpop.f32.mrb[249].mxu1  ;;  %v16772_v6 = vadd.f32 %v16690_v48, %v6752_v53 }
 0x670   :  { %v16774_v46 = vpop.f32.mrb[250].mxu1 }
 0x671   :  { %v12020_v58 = vpop.f32.mrb[251].mxu1 }
 0x672   :  { %v6704_v26 = vpop.f32.mrb[224].mxu0 }
 0x673   :  { %v6753_v54 = vadd.f32 %v6704_v26, %v16695_v42  ;;  %v11927_v11 = vpop.f32.mrb[225].mxu0 }
 0x674   :  { %v6707_v29 = vpop.f32.mrb[226].mxu0 }
 0x675   :  { %v6754_v9 = vadd.f32 %v6707_v29, %v16700_v18  ;;  %v11928_v49 = vpop.f32.mrb[227].mxu0  ;;  %v16779_v62 = vadd.f32 %v16697_v31, %v6753_v54 }
 0x676   :  { %v16781_v19 = vpop.f32.mrb[252].mxu1 }
 0x677   :  { %v12023_v25 = vpop.f32.mrb[253].mxu1  ;;  %v16784_v48 = vadd.f32 %v16702_v57, %v6754_v9 }
 0x678   :  { %v16786_v3 = vpop.f32.mrb[254].mxu1 }
 0x679   :  { %v12024_v40 = vpop.f32.mrb[255].mxu1 }
 0x67a   :  { %v6712_v20 = vpop.f32.mrb[228].mxu0 }
 0x67b   :  { %v6755_v42 = vadd.f32 %v6712_v20, %v16707_v35  ;;  %v11931_v30 = vpop.f32.mrb[229].mxu0 }
 0x67c   :  { %v6715_v12 = vpop.f32.mrb[230].mxu0 }
 0x67d   :  { %v6756_v18 = vadd.f32 %v6715_v12, %v16712_v13  ;;  %v11932_v51 = vpop.f32.mrb[231].mxu0  ;;  %v16791_v31 = vadd.f32 %v16709_v63, %v6755_v42 }
 0x67e   :  { %v16793_v2 = vpop.f32.mrb[0].mxu1 }
 0x67f   :  { %v12027_v14 = vpop.f32.mrb[1].mxu1  ;;  %v16796_v57 = vadd.f32 %v16714_v10, %v6756_v18 }
 0x680   :  { %v16798_v32 = vpop.f32.mrb[2].mxu1 }
 0x681   :  { %v12028_v45 = vpop.f32.mrb[3].mxu1 }
 0x682   :  { %v6720_v44 = vpop.f32.mrb[232].mxu0 }
 0x683   :  { %v6757_v35 = vadd.f32 %v6720_v44, %v16719_v47  ;;  %v11935_v61 = vpop.f32.mrb[233].mxu0 }
 0x684   :  { %v6723_v15 = vpop.f32.mrb[234].mxu0 }
 0x685   :  { %v6758_v13 = vadd.f32 %v6723_v15, %v16724_v36  ;;  %v11936_v37 = vpop.f32.mrb[235].mxu0  ;;  %v16803_v63 = vadd.f32 %v16721_v56, %v6757_v35 }
 0x686   :  { %v16805_v17 = vpop.f32.mrb[4].mxu1 }
 0x687   :  { %v12031_v0 = vpop.f32.mrb[5].mxu1  ;;  %v16808_v10 = vadd.f32 %v16726_v7, %v6758_v13 }
 0x688   :  { %v16810_v1 = vpop.f32.mrb[6].mxu1 }
 0x689   :  { %v12032_v39 = vpop.f32.mrb[7].mxu1 }
 0x68a   :  { %v6728_v55 = vpop.f32.mrb[236].mxu0 }
 0x68b   :  { %v6759_v47 = vadd.f32 %v6728_v55, %v16731_v8  ;;  %v11939_v50 = vpop.f32.mrb[237].mxu0 }
 0x68c   :  { %v6731_v53 = vpop.f32.mrb[238].mxu0 }
 0x68d   :  { %v6760_v36 = vadd.f32 %v6731_v53, %v16736_v16  ;;  %v11940_v59 = vpop.f32.mrb[239].mxu0  ;;  %v16815_v56 = vadd.f32 %v16733_v23, %v6759_v47 }
 0x68e   :  { %v16817_v34 = vpop.f32.mrb[8].mxu1 }
 0x68f   :  { %v12035_v58 = vpop.f32.mrb[9].mxu1  ;;  %v16820_v7 = vadd.f32 %v16738_v27, %v6760_v36 }
 0x690   :  { %v16822_v26 = vpop.f32.mrb[10].mxu1 }
 0x691   :  { %v12036_v54 = vpop.f32.mrb[11].mxu1 }
 0x692   :  { %v6736_v11 = vpop.f32.mrb[240].mxu0 }
 0x693   :  { %v6761_v8 = vadd.f32 %v6736_v11, %v16743_v28  ;;  %v11943_v29 = vpop.f32.mrb[241].mxu0 }
 0x694   :  { %v6739_v9 = vpop.f32.mrb[242].mxu0 }
 0x695   :  { %v6762_v16 = vadd.f32 %v6739_v9, %v16748_v52  ;;  %v11944_v49 = vpop.f32.mrb[243].mxu0  ;;  %v16827_v23 = vadd.f32 %v16745_v43, %v6761_v8 }
 0x696   :  { %v16829_v25 = vpop.f32.mrb[12].mxu1 }
 0x697   :  { %v12039_v40 = vpop.f32.mrb[13].mxu1  ;;  %v16832_v27 = vadd.f32 %v16750_v38, %v6762_v16 }
 0x698   :  { %v16834_v20 = vpop.f32.mrb[14].mxu1 }
 0x699   :  { %v12040_v42 = vpop.f32.mrb[15].mxu1 }
 0x69a   :  { %v6744_v30 = vpop.f32.mrb[244].mxu0 }
 0x69b   :  { %v6763_v28 = vadd.f32 %v6744_v30, %v16755_v22  ;;  %v11947_v12 = vpop.f32.mrb[245].mxu0 }
 0x69c   :  { %v6747_v18 = vpop.f32.mrb[246].mxu0 }
 0x69d   :  { %v6764_v52 = vadd.f32 %v6747_v18, %v16760_v41  ;;  %v11948_v51 = vpop.f32.mrb[247].mxu0  ;;  %v16839_v43 = vadd.f32 %v16757_v4, %v6763_v28 }
 0x69e   :  { %v16841_v14 = vpop.f32.mrb[16].mxu1 }
 0x69f   :  { %v12043_v45 = vpop.f32.mrb[17].mxu1  ;;  %v16844_v38 = vadd.f32 %v16762_v33, %v6764_v52 }
 0x6a0   :  { %v16846_v44 = vpop.f32.mrb[18].mxu1 }
 0x6a1   :  { %v12044_v35 = vpop.f32.mrb[19].mxu1 }
 0x6a2   :  { %v7018_v61 = vpop.f32.mrb[248].mxu0 }
 0x6a3   :  { %v7073_v22 = vadd.f32 %v7018_v61, %v16767_v60  ;;  %v11987_v15 = vpop.f32.mrb[249].mxu0 }
 0x6a4   :  { %v7021_v13 = vpop.f32.mrb[250].mxu0 }
 0x6a5   :  { %v7074_v41 = vadd.f32 %v7021_v13, %v16772_v6  ;;  %v11988_v37 = vpop.f32.mrb[251].mxu0  ;;  %v16851_v4 = vadd.f32 %v16769_v24, %v7073_v22 }
 0x6a6   :  { %v16853_v0 = vpop.f32.mrb[20].mxu1 }
 0x6a7   :  { %v12083_v39 = vpop.f32.mrb[21].mxu1  ;;  %v16856_v33 = vadd.f32 %v16774_v46, %v7074_v41 }
 0x6a8   :  { %v16858_v55 = vpop.f32.mrb[22].mxu1 }
 0x6a9   :  { %v12084_v47 = vpop.f32.mrb[23].mxu1 }
 0x6aa   :  { %v7026_v50 = vpop.f32.mrb[252].mxu0 }
 0x6ab   :  { %v7075_v60 = vadd.f32 %v7026_v50, %v16779_v62  ;;  %v11991_v53 = vpop.f32.mrb[253].mxu0 }
 0x6ac   :  { %v7029_v36 = vpop.f32.mrb[254].mxu0 }
 0x6ad   :  { %v7076_v6 = vadd.f32 %v7029_v36, %v16784_v48  ;;  %v11992_v59 = vpop.f32.mrb[255].mxu0  ;;  %v16863_v24 = vadd.f32 %v16781_v19, %v7075_v60 }
 0x6ae   :  { %v16865_v58 = vpop.f32.mrb[24].mxu1 }
 0x6af   :  { %v12087_v54 = vpop.f32.mrb[25].mxu1  ;;  %v16868_v46 = vadd.f32 %v16786_v3, %v7076_v6 }
 0x6b0   :  { %v16870_v11 = vpop.f32.mrb[26].mxu1 }
 0x6b1   :  { %v12088_v8 = vpop.f32.mrb[27].mxu1 }
 0x6b2   :  { %v7034_v29 = vpop.f32.mrb[0].mxu0 }
 0x6b3   :  { %v7077_v62 = vadd.f32 %v7034_v29, %v16791_v31  ;;  %v11995_v9 = vpop.f32.mrb[1].mxu0 }
 0x6b4   :  { %v7037_v16 = vpop.f32.mrb[2].mxu0 }
 0x6b5   :  { %v7078_v48 = vadd.f32 %v7037_v16, %v16796_v57  ;;  %v11996_v49 = vpop.f32.mrb[3].mxu0  ;;  %v16875_v19 = vadd.f32 %v16793_v2, %v7077_v62 }
 0x6b6   :  { %v16877_v40 = vpop.f32.mrb[28].mxu1 }
 0x6b7   :  { %v12091_v42 = vpop.f32.mrb[29].mxu1  ;;  %v16880_v3 = vadd.f32 %v16798_v32, %v7078_v48 }
 0x6b8   :  { %v16882_v30 = vpop.f32.mrb[30].mxu1 }
 0x6b9   :  { %v12092_v28 = vpop.f32.mrb[31].mxu1 }
 0x6ba   :  { %v7042_v12 = vpop.f32.mrb[4].mxu0 }
 0x6bb   :  { %v7079_v31 = vadd.f32 %v7042_v12, %v16803_v63  ;;  %v11999_v18 = vpop.f32.mrb[5].mxu0 }
 0x6bc   :  { %v7045_v52 = vpop.f32.mrb[6].mxu0 }
 0x6bd   :  { %v7080_v57 = vadd.f32 %v7045_v52, %v16808_v10  ;;  %v12000_v51 = vpop.f32.mrb[7].mxu0  ;;  %v16887_v2 = vadd.f32 %v16805_v17, %v7079_v31 }
 0x6be   :  { %v16889_v45 = vpop.f32.mrb[32].mxu1 }
 0x6bf   :  { %v12095_v35 = vpop.f32.mrb[33].mxu1  ;;  %v16892_v32 = vadd.f32 %v16810_v1, %v7080_v57 }
 0x6c0   :  { %v16894_v61 = vpop.f32.mrb[34].mxu1 }
 0x6c1   :  { %v12096_v22 = vpop.f32.mrb[35].mxu1 }
 0x6c2   :  { %v7050_v15 = vpop.f32.mrb[8].mxu0 }
 0x6c3   :  { %v7081_v63 = vadd.f32 %v7050_v15, %v16815_v56  ;;  %v12003_v13 = vpop.f32.mrb[9].mxu0  ;;  %v7584_v15 = vld [vmem:[#allocation3] sm:$0xff] }
 0x6c4   :  { %v7053_v41 = vpop.f32.mrb[10].mxu0  ;;  %v7585_v13 = vld [vmem:[#allocation3 + $0x8] sm:$0xff] }
 0x6c5   :  { %v7082_v10 = vadd.f32 %v7053_v41, %v16820_v7  ;;  %v12004_v37 = vpop.f32.mrb[11].mxu0  ;;  %v16899_v17 = vadd.f32 %v16817_v34, %v7081_v63 }
 0x6c6   :  { %v16901_v39 = vpop.f32.mrb[36].mxu1 }
 0x6c7   :  { %v12099_v47 = vpop.f32.mrb[37].mxu1  ;;  %v16904_v1 = vadd.f32 %v16822_v26, %v7082_v10 }
 0x6c8   :  { %v16906_v50 = vpop.f32.mrb[38].mxu1 }
 0x6c9   :  { %v12100_v60 = vpop.f32.mrb[39].mxu1 }
 0x6ca   :  { %v7058_v53 = vpop.f32.mrb[12].mxu0 }
 0x6cb   :  { %v7083_v56 = vadd.f32 %v7058_v53, %v16827_v23  ;;  %v12007_v36 = vpop.f32.mrb[13].mxu0 }
 0x6cc   :  { %v7061_v6 = vpop.f32.mrb[14].mxu0 }
 0x6cd   :  { %v7084_v7 = vadd.f32 %v7061_v6, %v16832_v27  ;;  %v12008_v59 = vpop.f32.mrb[15].mxu0  ;;  %v16911_v34 = vadd.f32 %v16829_v25, %v7083_v56  ;;  %v7586_v56 = vld [vmem:[#allocation3 + $0x10] sm:$0xff] }
 0x6ce   :  { %v16913_v54 = vpop.f32.mrb[40].mxu1 }
 0x6cf   :  { %v12103_v8 = vpop.f32.mrb[41].mxu1  ;;  %v16916_v26 = vadd.f32 %v16834_v20, %v7084_v7  ;;  %v7587_v7 = vld [vmem:[#allocation3 + $0x18] sm:$0xff] }
 0x6d0   :  { %v16918_v29 = vpop.f32.mrb[42].mxu1 }
 0x6d1   :  { %v12104_v62 = vpop.f32.mrb[43].mxu1 }
 0x6d2   :  { %v7066_v9 = vpop.f32.mrb[16].mxu0 }
 0x6d3   :  { %v7085_v23 = vadd.f32 %v7066_v9, %v16839_v43  ;;  %v12011_v16 = vpop.f32.mrb[17].mxu0 }
 0x6d4   :  { %v7069_v48 = vpop.f32.mrb[18].mxu0 }
 0x6d5   :  { %v7086_v27 = vadd.f32 %v7069_v48, %v16844_v38  ;;  %v12012_v49 = vpop.f32.mrb[19].mxu0  ;;  %v16923_v25 = vadd.f32 %v16841_v14, %v7085_v23  ;;  %v7588_v48 = vld [vmem:[#allocation3 + $0x20] sm:$0xff] }
 0x6d6   :  { %v16925_v42 = vpop.f32.mrb[44].mxu1 }
 0x6d7   :  { %v12107_v28 = vpop.f32.mrb[45].mxu1  ;;  %v16928_v20 = vadd.f32 %v16846_v44, %v7086_v27 }
 0x6d8   :  { %v16930_v12 = vpop.f32.mrb[46].mxu1  ;;  %v7589_v28 = vld [vmem:[#allocation3 + $0x28] sm:$0xff] }
 0x6d9   :  { %v12108_v31 = vpop.f32.mrb[47].mxu1 }
 0x6da   :  { %v7340_v18 = vpop.f32.mrb[20].mxu0 }
 0x6db   :  { %v7395_v43 = vadd.f32 %v7340_v18, %v16851_v4  ;;  %v12051_v52 = vpop.f32.mrb[21].mxu0 }
 0x6dc   :  { %v7343_v57 = vpop.f32.mrb[22].mxu0 }
 0x6dd   :  { %v7556_v38 = vadd.f32 %v16853_v0, %v7395_v43  ;;  %v7396_v51 = vadd.f32 %v7343_v57, %v16856_v33  ;;  %v12052_v14 = vpop.f32.mrb[23].mxu0 }
 0x6df   :  { %v7570_v35 = vadd.f32 %v16584_v5, %v7556_v38  ;;  %v7557_v22 = vadd.f32 %v16858_v55, %v7396_v51  ;;  %v7590_v51 = vld [vmem:[#allocation3 + $0x30] sm:$0xff] }
 0x6e1   :  { %v7598_v44 = vmax.f32 %v7584_v15, %v7570_v35  ;;  %v7571_v63 = vadd.f32 %v16584_v5, %v7557_v22  ;;  %v7591_v22 = vld [vmem:[#allocation3 + $0x38] sm:$0xff] }
 0x6e2   :  { %v7348_v41 = vpop.f32.mrb[24].mxu0 }
 0x6e3   :  { %7612 = vst.msk [vmem:[#allocation3] sm:$0xff] %vm3180_vm4, %v7598_v44  ;;  %v7599_v4 = vmax.f32 %v7585_v13, %v7571_v63  ;;  %v7397_v10 = vadd.f32 %v7348_v41, %v16863_v24  ;;  %v12055_v37 = vpop.f32.mrb[25].mxu0 }
 0x6e4   :  { %v7351_v0 = vpop.f32.mrb[26].mxu0 }
 0x6e5   :  { %7613 = vst.msk [vmem:[#allocation3 + $0x8] sm:$0xff] %vm3180_vm4, %v7599_v4  ;;  %v7558_v33 = vadd.f32 %v16865_v58, %v7397_v10  ;;  %v7398_v47 = vadd.f32 %v7351_v0, %v16868_v46  ;;  %v12056_v55 = vpop.f32.mrb[27].mxu0  ;;  %v7592_v10 = vld [vmem:[#allocation3 + $0x40] sm:$0xff] }
 0x6e7   :  { %v7572_v60 = vadd.f32 %v16584_v5, %v7558_v33  ;;  %v7559_v53 = vadd.f32 %v16870_v11, %v7398_v47  ;;  %v7593_v33 = vld [vmem:[#allocation3 + $0x48] sm:$0xff] }
 0x6e9   :  { %v7600_v36 = vmax.f32 %v7586_v56, %v7572_v60  ;;  %v7573_v6 = vadd.f32 %v16584_v5, %v7559_v53 }
 0x6ea   :  { %v7356_v59 = vpop.f32.mrb[28].mxu0 }
 0x6eb   :  { %7614 = vst.msk [vmem:[#allocation3 + $0x10] sm:$0xff] %vm3180_vm4, %v7600_v36  ;;  %v7601_v24 = vmax.f32 %v7587_v7, %v7573_v6  ;;  %v7399_v8 = vadd.f32 %v7356_v59, %v16875_v19  ;;  %v12059_v62 = vpop.f32.mrb[29].mxu0  ;;  %v7594_v6 = vld [vmem:[#allocation3 + $0x50] sm:$0xff] }
 0x6ec   :  { %v7359_v58 = vpop.f32.mrb[30].mxu0 }
 0x6ed   :  { %7615 = vst.msk [vmem:[#allocation3 + $0x18] sm:$0xff] %vm3180_vm4, %v7601_v24  ;;  %v7560_v46 = vadd.f32 %v16877_v40, %v7399_v8  ;;  %v7400_v9 = vadd.f32 %v7359_v58, %v16880_v3  ;;  %v12060_v11 = vpop.f32.mrb[31].mxu0  ;;  %v7595_v24 = vld [vmem:[#allocation3 + $0x58] sm:$0xff] }
 0x6ef   :  { %v7574_v23 = vadd.f32 %v16584_v5, %v7560_v46  ;;  %v7561_v16 = vadd.f32 %v16882_v30, %v7400_v9 }
 0x6f1   :  { %v7602_v27 = vmax.f32 %v7588_v48, %v7574_v23  ;;  %v7575_v49 = vadd.f32 %v16584_v5, %v7561_v16  ;;  %v7596_v23 = vld [vmem:[#allocation3 + $0x60] sm:$0xff] }
 0x6f2   :  { %v7364_v31 = vpop.f32.mrb[32].mxu0 }
 0x6f3   :  { %7616 = vst.msk [vmem:[#allocation3 + $0x20] sm:$0xff] %vm3180_vm4, %v7602_v27  ;;  %v7603_v19 = vmax.f32 %v7589_v28, %v7575_v49  ;;  %v7401_v18 = vadd.f32 %v7364_v31, %v16887_v2  ;;  %v12063_v43 = vpop.f32.mrb[33].mxu0 }
 0x6f4   :  { %v7367_v40 = vpop.f32.mrb[34].mxu0 }
 0x6f5   :  { %7617 = vst.msk [vmem:[#allocation3 + $0x28] sm:$0xff] %vm3180_vm4, %v7603_v19  ;;  %v7562_v3 = vadd.f32 %v16889_v45, %v7401_v18  ;;  %v7402_v52 = vadd.f32 %v7367_v40, %v16892_v32  ;;  %v12064_v30 = vpop.f32.mrb[35].mxu0 }
 0x6f7   :  { %v7576_v57 = vadd.f32 %v16584_v5, %v7562_v3  ;;  %v7563_v38 = vadd.f32 %v16894_v61, %v7402_v52 }
 0x6f9   :  { %v7604_v14 = vmax.f32 %v7590_v51, %v7576_v57  ;;  %v7577_v35 = vadd.f32 %v16584_v5, %v7563_v38 }
 0x6fa   :  { %v7372_v15 = vpop.f32.mrb[36].mxu0 }
 0x6fb   :  { %7618 = vst.msk [vmem:[#allocation3 + $0x30] sm:$0xff] %vm3180_vm4, %v7604_v14  ;;  %v7605_v2 = vmax.f32 %v7591_v22, %v7577_v35  ;;  %v7403_v44 = vadd.f32 %v7372_v15, %v16899_v17  ;;  %v12067_v63 = vpop.f32.mrb[37].mxu0 }
 0x6fc   :  { %v7375_v45 = vpop.f32.mrb[38].mxu0 }
 0x6fd   :  { %7619 = vst.msk [vmem:[#allocation3 + $0x38] sm:$0xff] %vm3180_vm4, %v7605_v2  ;;  %v7564_v32 = vadd.f32 %v16901_v39, %v7403_v44  ;;  %v7404_v13 = vadd.f32 %v7375_v45, %v16904_v1  ;;  %v12068_v61 = vpop.f32.mrb[39].mxu0 }
 0x6ff   :  { %v7578_v41 = vadd.f32 %v16584_v5, %v7564_v32  ;;  %v7565_v4 = vadd.f32 %v16906_v50, %v7404_v13 }
 0x701   :  { %v7606_v37 = vmax.f32 %v7592_v10, %v7578_v41  ;;  %v7579_v0 = vadd.f32 %v16584_v5, %v7565_v4 }
 0x702   :  { %v7380_v47 = vpop.f32.mrb[40].mxu0 }
 0x703   :  { %7620 = vst.msk [vmem:[#allocation3 + $0x40] sm:$0xff] %vm3180_vm4, %v7606_v37  ;;  %v7607_v17 = vmax.f32 %v7593_v33, %v7579_v0  ;;  %v7405_v55 = vadd.f32 %v7380_v47, %v16911_v34  ;;  %v12071_v60 = vpop.f32.mrb[41].mxu0 }
 0x704   :  { %v7383_v39 = vpop.f32.mrb[42].mxu0 }
 0x705   :  { %7621 = vst.msk [vmem:[#allocation3 + $0x48] sm:$0xff] %vm3180_vm4, %v7607_v17  ;;  %v7566_v1 = vadd.f32 %v16913_v54, %v7405_v55  ;;  %v7406_v53 = vadd.f32 %v7383_v39, %v16916_v26  ;;  %v12072_v50 = vpop.f32.mrb[43].mxu0 }
 0x707   :  { %v7580_v56 = vadd.f32 %v16584_v5, %v7566_v1  ;;  %v7567_v36 = vadd.f32 %v16918_v29, %v7406_v53 }
 0x709   :  { %v7608_v7 = vmax.f32 %v7594_v6, %v7580_v56  ;;  %v7581_v59 = vadd.f32 %v16584_v5, %v7567_v36  ;;  %v12590_v5 = vld [vmem:[%s17754_s4] ss:$0 sm:$0xff] }
 0x70a   :  { %v7388_v8 = vpop.f32.mrb[44].mxu0 }
 0x70b   :  { %7622 = vst.msk [vmem:[#allocation3 + $0x50] sm:$0xff] %vm3180_vm4, %v7608_v7  ;;  %v7609_v34 = vmax.f32 %v7595_v24, %v7581_v59  ;;  %v7407_v62 = vadd.f32 %v7388_v8, %v16923_v25  ;;  %v12075_v58 = vpop.f32.mrb[45].mxu0  ;;  %v7597_v25 = vld [vmem:[#allocation3 + $0x68] sm:$0xff] }
 0x70c   :  { %v7391_v54 = vpop.f32.mrb[46].mxu0 }
 0x70d   :  { %7623 = vst.msk [vmem:[#allocation3 + $0x58] sm:$0xff] %vm3180_vm4, %v7609_v34  ;;  %v7568_v26 = vadd.f32 %v16925_v42, %v7407_v62  ;;  %v7408_v46 = vadd.f32 %v7391_v54, %v16928_v20  ;;  %v12076_v29 = vpop.f32.mrb[47].mxu0 }
 0x70f   :  { %v7582_v9 = vadd.f32 %v12590_v5, %v7568_v26  ;;  %v7569_v11 = vadd.f32 %v16930_v12, %v7408_v46 }
 0x711   :  { %v7610_v16 = vmax.f32 %v7596_v23, %v7582_v9  ;;  %v7583_v48 = vadd.f32 %v12590_v5, %v7569_v11 }
 0x713   :  { %7624 = vst.msk [vmem:[#allocation3 + $0x60] sm:$0xff] %vm3180_vm4, %v7610_v16  ;;  %v7611_v27 = vmax.f32 %v7597_v25, %v7583_v48 }
 0x715   :  { %7625 = vst.msk [vmem:[#allocation3 + $0x68] sm:$0xff] %vm3180_vm4, %v7611_v27 }
 0x716   :  { %12619 = dma.done.wait [#allocation8], 4608 }
 0x717   :  { %12620 = vsyncadd [#allocation8], 4294962688  ;;  %v18017_v42 = vld [vmem:[#allocation20_spill] sm:$0xff]  ;;  %12117 = vmatprep.mubr.msk.bf16.mxu0 %vm12626_vm1, %v17919_v21  ;;  %12153 = vmatprep.mubr.msk.bf16.mxu1 %vm12626_vm1, %v17919_v21  ;;  %v18019_v12 = vld [vmem:[#allocation21_spill] sm:$0xff]  ;;  %vm9005_vm5 = vcmask 516096   ;;  %vm9019_vm6 = vcmask 1040896  }
 0x718   :  { %12110 = vmatpush3.bf16.msra.mxu0 %v18017_v42  ;;  %v18018_v20 = vld [vmem:[#allocation16_spill] sm:$0xff]  ;;  %v18020_v49 = vld [vmem:[#allocation17_spill] sm:$0xff]  ;;  %v7660_v28 = vld [vmem:[#allocation3 + $0x1] sm:$0xff] }
 0x719   :  { %12146 = vmatpush3.bf16.msra.mxu1 %v18018_v20  ;;  %12111 = vmatprep.subr.bf16.mxu0 %v17919_v21  ;;  %v17003_v31 = vld [vmem:[#allocation3 + $0x9] sm:$0xff]  ;;  %v7635_v19 = vld [vmem:[#allocation3] sm:$0xff]  ;;  %v17005_v18 = vld [vmem:[#allocation3 + $0x11] sm:$0xff] }
 0x71a   :  { %12147 = vmatprep.subr.bf16.mxu1 %v17919_v21  ;;  %v18021_v43 = vld [vmem:[#allocation22_spill] sm:$0xff]  ;;  %v17009_v3 = vld [vmem:[#allocation3 + $0x8] sm:$0xff]  ;;  %v8220_v57 = vpack.c.bf16 %v17005_v18, %v17003_v31  ;;  %v17023_v14 = vld [vmem:[#allocation3 + $0x31] sm:$0xff]  ;;  %v7674_v35 = vpack.c.bf16 %v17003_v31, %v7660_v28 }
 0x71b   :  { %v18022_v40 = vld [vmem:[#allocation18_spill] sm:$0xff]  ;;  %v17021_v51 = vld [vmem:[#allocation3 + $0x29] sm:$0xff]  ;;  %v7649_v22 = vpack.c.bf16 %v17009_v3, %v7635_v19  ;;  %v18027_v0 = vld [vmem:[#allocation25_spill] sm:$0xff] }
 0x71c   :  { %12112 = vmatpush3.bf16.msra.mxu0 %v18019_v12  ;;  %v17011_v52 = vld [vmem:[#allocation3 + $0x19] sm:$0xff]  ;;  %v17013_v30 = vld [vmem:[#allocation3 + $0x21] sm:$0xff]  ;;  %v8222_v15 = vpack.c.bf16 %v17023_v14, %v17021_v51  ;;  %v18025_v32 = vld [vmem:[#allocation24_spill] sm:$0xff] }
 0x71d   :  { %12148 = vmatpush3.bf16.msra.mxu1 %v18020_v49  ;;  %12113 = vmatprep.subr.bf16.mxu0 %v17919_v21  ;;  %v8221_v38 = vpack.c.bf16 %v17013_v30, %v17011_v52  ;;  %v18023_v2 = vld [vmem:[#allocation23_spill] sm:$0xff]  ;;  %v17035_v63 = vld [vmem:[#allocation3 + $0x39] sm:$0xff]  ;;  %v17042_v13 = vld [vmem:[#allocation3 + $0x10] sm:$0xff]  ;;  %v17054_v10 = vpack.c.bf16 %v17011_v52, %v17005_v18  ;;  %v17088_v50 = vpack.c.bf16 %v17021_v51, %v17013_v30 }
 0x71e   :  { %12149 = vmatprep.subr.bf16.mxu1 %v17919_v21  ;;  %v18024_v44 = vld [vmem:[#allocation19_spill] sm:$0xff]  ;;  %v17044_v61 = vld [vmem:[#allocation3 + $0x18] sm:$0xff]  ;;  %v18026_v4 = vld [vmem:[#allocation28_spill] sm:$0xff]  ;;  %v17119_v62 = vpack.c.bf16 %v17035_v63, %v17023_v14  ;;  %v8070_v28 = vpack.c.bf16 %v17042_v13, %v17009_v3 }
 0x71f   :  { %v17037_v45 = vld [vmem:[#allocation3 + $0x41] sm:$0xff]  ;;  %v17058_v37 = vpack.c.bf16 %v17044_v61, %v17042_v13  ;;  %v18028_v33 = vld [vmem:[#allocation29_spill] sm:$0xff]  ;;  %v17068_v47 = vld [vmem:[#allocation3 + $0x49] sm:$0xff] }
 0x720   :  { %12114 = vmatpush3.bf16.msra.mxu0 %v18021_v43  ;;  %v8223_v41 = vpack.c.bf16 %v17037_v45, %v17035_v63  ;;  %v17070_v17 = vld [vmem:[#allocation3 + $0x51] sm:$0xff]  ;;  %v17076_v55 = vld [vmem:[#allocation3 + $0x20] sm:$0xff]  ;;  %v17078_v60 = vld [vmem:[#allocation3 + $0x28] sm:$0xff]  ;;  %v17139_v46 = vpack.c.bf16 %v17068_v47, %v17037_v45 }
 0x721   :  { %12150 = vmatpush3.bf16.msra.mxu1 %v18022_v40  ;;  %12115 = vmatprep.subr.bf16.mxu0 %v17919_v21  ;;  %v8224_v39 = vpack.c.bf16 %v17070_v17, %v17068_v47  ;;  %v18029_v1 = vld [vmem:[#allocation26_spill] sm:$0xff]  ;;  %v17092_v56 = vpack.c.bf16 %v17078_v60, %v17076_v55  ;;  %v18031_v36 = vld [vmem:[#allocation27_spill] sm:$0xff]  ;;  %v17110_v24 = vld [vmem:[#allocation3 + $0x30] sm:$0xff] }
 0x722   :  { %12151 = vmatprep.subr.bf16.mxu1 %v17919_v21  ;;  %v18030_v53 = vld [vmem:[#allocation30_spill] sm:$0xff]  ;;  %v18032_v6 = vld [vmem:[#allocation31_spill] sm:$0xff]  ;;  %v17153_v5 = vld [vmem:[#allocation3 + $0x50] sm:$0xff] }
 0x723   :  { %v17102_v7 = vld [vmem:[#allocation3 + $0x59] sm:$0xff]  ;;  %v17104_v59 = vld [vmem:[#allocation3 + $0x61] sm:$0xff]  ;;  %v17173_v16 = vld [vmem:[#allocation3 + $0x69] sm:$0xff] }
 0x724   :  { %12116 = vmatpush3.bf16.msra.mxu0 %v18023_v2  ;;  %v17112_v8 = vld [vmem:[#allocation3 + $0x38] sm:$0xff]  ;;  %v8225_v34 = vpack.c.bf16 %v17104_v59, %v17102_v7  ;;  %v17133_v54 = vld [vmem:[#allocation3 + $0x40] sm:$0xff]  ;;  %v17135_v26 = vld [vmem:[#allocation3 + $0x48] sm:$0xff]  ;;  %v17159_v11 = vpack.c.bf16 %v17102_v7, %v17070_v17  ;;  %v17181_v27 = vpack.c.bf16 %v17173_v16, %v17104_v59 }
 0x725   :  { %12152 = vmatpush3.bf16.msra.mxu1 %v18024_v44  ;;  %12181 = vmatprep.subr.bf16.mxu0 %v17919_v21  ;;  %v17123_v58 = vpack.c.bf16 %v17112_v8, %v17110_v24  ;;  %v17143_v29 = vpack.c.bf16 %v17135_v26, %v17133_v54  ;;  %v17155_v9 = vld [vmem:[#allocation3 + $0x58] sm:$0xff]  ;;  %v17175_v48 = vld [vmem:[#allocation3 + $0x60] sm:$0xff]  ;;  %v17177_v25 = vld [vmem:[#allocation3 + $0x68] sm:$0xff] }
 0x726   :  { %12217 = vmatprep.subr.bf16.mxu1 %v17919_v21  ;;  %v17163_v23 = vpack.c.bf16 %v17155_v9, %v17153_v5  ;;  %v17185_v42 = vpack.c.bf16 %v17177_v25, %v17175_v48  ;;  %v7906_v20 = vld [vmem:[#allocation3 + $0x2] sm:$0xff]  ;;  %v17193_v12 = vld [vmem:[#allocation3 + $0xa] sm:$0xff]  ;;  %v17205_v43 = vld [vmem:[#allocation3 + $0x12] sm:$0xff] }
 0x727   :  { %12118 = vmatmul.mubr.msk.bf16.vlgmr.msra.gmra.mrb[48].mxu0 %vm3180_vm4, %v7674_v35  ;;  %v7920_v49 = vpack.c.bf16 %v17193_v12, %v7906_v20  ;;  %v18033_v19 = vld [vmem:[#allocation32_spill] sm:$0xff]  ;;  %v17207_v40 = vld [vmem:[#allocation3 + $0x1a] sm:$0xff]  ;;  %v18035_v2 = vld [vmem:[#allocation33_spill] sm:$0xff] }
 0x728   :  { %12154 = vmatmul.mubr.msk.bf16.vlgmr.msra.gmra.mrb[48].mxu1 %vm3180_vm4, %v7649_v22  ;;  %12182 = vmatpush3.bf16.msra.mxu0 %v18025_v32  ;;  %v18034_v35 = vld [vmem:[#allocation36_spill] sm:$0xff]  ;;  %v17215_v3 = vpack.c.bf16 %v17207_v40, %v17205_v43  ;;  %v8071_v22 = vpack.c.bf16 %v17076_v55, %v17044_v61  ;;  %v18036_v44 = vld [vmem:[#allocation37_spill] sm:$0xff]  ;;  %v17228_v32 = vld [vmem:[#allocation3 + $0x22] sm:$0xff] }
 0x729   :  { %12121 = vmatprep.mubr.msk.bf16.mxu0 %vm12626_vm1, %v17919_v21  ;;  %12157 = vmatprep.mubr.msk.bf16.mxu1 %vm12626_vm1, %v17919_v21  ;;  %v17230_v13 = vld [vmem:[#allocation3 + $0x2a] sm:$0xff]  ;;  %v18037_v61 = vld [vmem:[#allocation34_spill] sm:$0xff]  ;;  %v18039_v55 = vld [vmem:[#allocation35_spill] sm:$0xff] }
 0x72a   :  { %12183 = vmatprep.subr.bf16.mxu0 %v17919_v21  ;;  %12218 = vmatpush3.bf16.msra.mxu1 %v18026_v4  ;;  %v18038_v4 = vld [vmem:[#allocation38_spill] sm:$0xff]  ;;  %v17271_v20 = vld [vmem:[#allocation3 + $0x4a] sm:$0xff]  ;;  %v18043_v31 = vld [vmem:[#allocation41_spill] sm:$0xff] }
 0x72b   :  { %12219 = vmatprep.subr.bf16.mxu1 %v17919_v21  ;;  %v18044_v18 = vld [vmem:[#allocation45_spill] sm:$0xff]  ;;  %v18047_v30 = vld [vmem:[#allocation43_spill] sm:$0xff]  ;;  %v18049_v47 = vld [vmem:[#allocation48_spill] sm:$0xff] }
 0x72c   :  { %12184 = vmatpush3.bf16.msra.mxu0 %v18027_v0  ;;  %v17240_v0 = vpack.c.bf16 %v17230_v13, %v17228_v32  ;;  %v17388_v63 = vld [vmem:[#allocation3 + $0x72] sm:$0xff] }
 0x72d   :  { %12185 = vmatprep.subr.bf16.mxu0 %v17919_v21  ;;  %v18050_v17 = vld [vmem:[#allocation49_spill] sm:$0xff] }
 0x72e   :  { %12220 = vmatpush3.bf16.msra.mxu1 %v18028_v33  ;;  %v8072_v33 = vpack.c.bf16 %v17110_v24, %v17078_v60  ;;  %v7914_v24 = vld [vmem:[#allocation3 + $0x42] sm:$0xff] }
 0x72f   :  { %12122 = vmatmul.mubr.msk.bf16.gmra.mrb[52].mxu0 %vm3180_vm4, %v17054_v10  ;;  %12221 = vmatprep.subr.bf16.mxu1 %v17919_v21 }
 0x730   :  { %12158 = vmatmul.mubr.msk.bf16.gmra.mrb[52].mxu1 %vm3180_vm4, %v17058_v37  ;;  %12125 = vmatprep.mubr.msk.bf16.mxu0 %vm12626_vm1, %v17919_v21 }
 0x731   :  { %12161 = vmatprep.mubr.msk.bf16.mxu1 %vm12626_vm1, %v17919_v21  ;;  %12186 = vmatpush3.bf16.msra.mxu0 %v18029_v1  ;;  %v18040_v1 = vld [vmem:[#allocation39_spill] sm:$0xff] }
 0x732   :  { %12187 = vmatprep.subr.bf16.mxu0 %v17919_v21  ;;  %12222 = vmatpush3.bf16.msra.mxu1 %v18030_v53  ;;  %v17253_v53 = vld [vmem:[#allocation3 + $0x32] sm:$0xff] }
 0x733   :  { %12223 = vmatprep.subr.bf16.mxu1 %v17919_v21  ;;  %v8372_v52 = vpack.c.bf16 %v17253_v53, %v17230_v13 }
 0x735   :  { %12188 = vmatpush3.bf16.msra.mxu0 %v18031_v36  ;;  %v17255_v36 = vld [vmem:[#allocation3 + $0x3a] sm:$0xff] }
 0x736   :  { %12224 = vmatpush3.bf16.msra.mxu1 %v18032_v6  ;;  %12253 = vmatprep.subr.bf16.mxu0 %v17919_v21  ;;  %v17262_v60 = vpack.c.bf16 %v17255_v36, %v17253_v53  ;;  %v8073_v6 = vpack.c.bf16 %v17133_v54, %v17112_v8  ;;  %v8074_v8 = vpack.c.bf16 %v17153_v5, %v17135_v26  ;;  %v7916_v54 = vld [vmem:[#allocation3 + $0x52] sm:$0xff]  ;;  %v7918_v26 = vld [vmem:[#allocation3 + $0x62] sm:$0xff]  ;;  %v7919_v5 = vld [vmem:[#allocation3 + $0x6a] sm:$0xff] }
 0x737   :  { %12126 = vmatmul.mubr.msk.bf16.gmra.mrb[56].mxu0 %vm3180_vm4, %v17088_v50  ;;  %12289 = vmatprep.subr.bf16.mxu1 %v17919_v21  ;;  %v8374_v51 = vpack.c.bf16 %v7916_v54, %v17271_v20 }
 0x738   :  { %12162 = vmatmul.mubr.msk.bf16.gmra.mrb[56].mxu1 %vm3180_vm4, %v17092_v56  ;;  %12129 = vmatprep.mubr.msk.bf16.mxu0 %vm12626_vm1, %v17919_v21 }
 0x739   :  { %12165 = vmatprep.mubr.msk.bf16.mxu1 %vm12626_vm1, %v17919_v21 }
 0x73f   :  { %12130 = vmatmul.mubr.msk.bf16.gmra.mrb[60].mxu0 %vm3180_vm4, %v17119_v62 }
 0x740   :  { %12166 = vmatmul.mubr.msk.bf16.gmra.mrb[60].mxu1 %vm3180_vm4, %v17123_v58  ;;  %12133 = vmatprep.mubr.msk.bf16.mxu0 %vm12626_vm1, %v17919_v21 }
 0x741   :  { %12169 = vmatprep.mubr.msk.bf16.mxu1 %vm12626_vm1, %v17919_v21 }
 0x747   :  { %12134 = vmatmul.mubr.msk.bf16.gmra.mrb[64].mxu0 %vm3180_vm4, %v17139_v46 }
 0x748   :  { %12170 = vmatmul.mubr.msk.bf16.gmra.mrb[64].mxu1 %vm3180_vm4, %v17143_v29  ;;  %12137 = vmatprep.mubr.msk.bf16.mxu0 %vm12626_vm1, %v17919_v21 }
 0x749   :  { %12173 = vmatprep.mubr.msk.bf16.mxu1 %vm12626_vm1, %v17919_v21 }
 0x74f   :  { %12138 = vmatmul.mubr.msk.bf16.gmra.mrb[68].mxu0 %vm3180_vm4, %v17159_v11 }
 0x750   :  { %12174 = vmatmul.mubr.msk.bf16.gmra.mrb[68].mxu1 %vm3180_vm4, %v17163_v23  ;;  %12141 = vmatprep.mubr.msk.bf16.mxu0 %vm12626_vm1, %v17919_v21 }
 0x751   :  { %12177 = vmatprep.mubr.msk.bf16.mxu1 %vm12626_vm1, %v17919_v21 }
 0x757   :  { %12142 = vmatmul.mubr.msk.bf16.gmra.mrb[72].mxu0 %vm3180_vm4, %v17181_v27 }
 0x758   :  { %12178 = vmatmul.mubr.msk.bf16.gmra.mrb[72].mxu1 %vm3180_vm4, %v17185_v42  ;;  %12189 = vmatprep.mubr.msk.bf16.mxu0 %vm12626_vm1, %v17919_v21 }
 0x759   :  { %12225 = vmatprep.mubr.msk.bf16.mxu1 %vm12626_vm1, %v17919_v21 }
 0x75f   :  { %12190 = vmatmul.mubr.msk.bf16.vlgmr.msra.gmra.mrb[76].mxu0 %vm3180_vm4, %v7920_v49  ;;  %v17276_v49 = vpack.c.bf16 %v17271_v20, %v7914_v24 }
 0x760   :  { %12226 = vmatmul.mubr.msk.bf16.vlgmr.msra.gmra.mrb[76].mxu1 %vm3180_vm4, %v8070_v28  ;;  %12254 = vmatpush3.bf16.msra.mxu0 %v18033_v19  ;;  %v7917_v28 = vld [vmem:[#allocation3 + $0x5a] sm:$0xff] }
 0x761   :  { %12193 = vmatprep.mubr.msk.bf16.mxu0 %vm12626_vm1, %v17919_v21  ;;  %12229 = vmatprep.mubr.msk.bf16.mxu1 %vm12626_vm1, %v17919_v21  ;;  %v17287_v19 = vpack.c.bf16 %v7917_v28, %v7916_v54  ;;  %v8375_v14 = vpack.c.bf16 %v7918_v26, %v7917_v28 }
 0x762   :  { %12255 = vmatprep.subr.bf16.mxu0 %v17919_v21  ;;  %12290 = vmatpush3.bf16.msra.mxu1 %v18034_v35  ;;  %v8075_v35 = vpack.c.bf16 %v17175_v48, %v17155_v9  ;;  %v8370_v48 = vpack.c.bf16 %v17205_v43, %v17193_v12  ;;  %v8371_v12 = vpack.c.bf16 %v17228_v32, %v17207_v40  ;;  %v18046_v43 = vld [vmem:[#allocation46_spill] sm:$0xff] }
 0x763   :  { %12291 = vmatprep.subr.bf16.mxu1 %v17919_v21  ;;  %v8373_v40 = vpack.c.bf16 %v7914_v24, %v17255_v36 }
 0x764   :  { %12256 = vmatpush3.bf16.msra.mxu0 %v18035_v2  ;;  %v17300_v2 = vpack.c.bf16 %v7919_v5, %v7918_v26 }
 0x765   :  { %12257 = vmatprep.subr.bf16.mxu0 %v17919_v21 }
 0x766   :  { %12292 = vmatpush3.bf16.msra.mxu1 %v18036_v44  ;;  %v18042_v44 = vld [vmem:[#allocation44_spill] sm:$0xff] }
 0x767   :  { %12194 = vmatmul.mubr.msk.bf16.gmra.mrb[80].mxu0 %vm3180_vm4, %v17215_v3  ;;  %12293 = vmatprep.subr.bf16.mxu1 %v17919_v21 }
 0x768   :  { %12230 = vmatmul.mubr.msk.bf16.gmra.mrb[80].mxu1 %vm3180_vm4, %v8071_v22  ;;  %12197 = vmatprep.mubr.msk.bf16.mxu0 %vm12626_vm1, %v17919_v21  ;;  %v17298_v22 = vld [vmem:[#allocation3 + $0x70] sm:$0xff] }
 0x769   :  { %12233 = vmatprep.mubr.msk.bf16.mxu1 %vm12626_vm1, %v17919_v21  ;;  %12258 = vmatpush3.bf16.msra.mxu0 %v18037_v61  ;;  %v8076_v9 = vpack.c.bf16 %v17298_v22, %v17177_v25  ;;  %v18041_v25 = vld [vmem:[#allocation40_spill] sm:$0xff] }
 0x76a   :  { %12259 = vmatprep.subr.bf16.mxu0 %v17919_v21  ;;  %12294 = vmatpush3.bf16.msra.mxu1 %v18038_v4 }
 0x76b   :  { %12295 = vmatprep.subr.bf16.mxu1 %v17919_v21 }
 0x76d   :  { %12260 = vmatpush3.bf16.msra.mxu0 %v18039_v55 }
 0x76e   :  { %12296 = vmatpush3.bf16.msra.mxu1 %v18040_v1  ;;  %12325 = vmatprep.subr.bf16.mxu0 %v17919_v21 }
 0x76f   :  { %12198 = vmatmul.mubr.msk.bf16.gmra.mrb[84].mxu0 %vm3180_vm4, %v17240_v0  ;;  %12361 = vmatprep.subr.bf16.mxu1 %v17919_v21 }
 0x770   :  { %12234 = vmatmul.mubr.msk.bf16.gmra.mrb[84].mxu1 %vm3180_vm4, %v8072_v33  ;;  %12201 = vmatprep.mubr.msk.bf16.mxu0 %vm12626_vm1, %v17919_v21 }
 0x771   :  { %12237 = vmatprep.mubr.msk.bf16.mxu1 %vm12626_vm1, %v17919_v21 }
 0x777   :  { %12202 = vmatmul.mubr.msk.bf16.gmra.mrb[88].mxu0 %vm3180_vm4, %v17262_v60 }
 0x778   :  { %12238 = vmatmul.mubr.msk.bf16.gmra.mrb[88].mxu1 %vm3180_vm4, %v8073_v6  ;;  %12205 = vmatprep.mubr.msk.bf16.mxu0 %vm12626_vm1, %v17919_v21 }
 0x779   :  { %12241 = vmatprep.mubr.msk.bf16.mxu1 %vm12626_vm1, %v17919_v21 }
 0x77f   :  { %12206 = vmatmul.mubr.msk.bf16.gmra.mrb[92].mxu0 %vm3180_vm4, %v17276_v49 }
 0x780   :  { %12242 = vmatmul.mubr.msk.bf16.gmra.mrb[92].mxu1 %vm3180_vm4, %v8074_v8  ;;  %12209 = vmatprep.mubr.msk.bf16.mxu0 %vm12626_vm1, %v17919_v21 }
 0x781   :  { %12245 = vmatprep.mubr.msk.bf16.mxu1 %vm12626_vm1, %v17919_v21 }
 0x787   :  { %12210 = vmatmul.mubr.msk.bf16.gmra.mrb[96].mxu0 %vm3180_vm4, %v17287_v19 }
 0x788   :  { %12246 = vmatmul.mubr.msk.bf16.gmra.mrb[96].mxu1 %vm3180_vm4, %v8075_v35  ;;  %12213 = vmatprep.mubr.msk.bf16.mxu0 %vm12626_vm1, %v17919_v21 }
 0x789   :  { %12249 = vmatprep.mubr.msk.bf16.mxu1 %vm12626_vm1, %v17919_v21 }
 0x78f   :  { %12214 = vmatmul.mubr.msk.bf16.gmra.mrb[100].mxu0 %vm3180_vm4, %v17300_v2 }
 0x790   :  { %12250 = vmatmul.mubr.msk.bf16.gmra.mrb[100].mxu1 %vm3180_vm4, %v8076_v9  ;;  %12261 = vmatprep.mubr.msk.bf16.mxu0 %vm12626_vm1, %v17919_v21 }
 0x791   :  { %12297 = vmatprep.mubr.msk.bf16.mxu1 %vm12626_vm1, %v17919_v21 }
 0x797   :  { %12262 = vmatmul.mubr.msk.bf16.vlgmr.msra.gmra.mrb[104].mxu0 %vm3180_vm4, %v8220_v57  ;;  %v18045_v57 = vld [vmem:[#allocation42_spill] sm:$0xff] }
 0x798   :  { %12298 = vmatmul.mubr.msk.bf16.vlgmr.msra.gmra.mrb[104].mxu1 %vm3180_vm4, %v8370_v48  ;;  %12326 = vmatpush3.bf16.msra.mxu0 %v18041_v25 }
 0x799   :  { %12265 = vmatprep.mubr.msk.bf16.mxu0 %vm12626_vm1, %v17919_v21  ;;  %12301 = vmatprep.mubr.msk.bf16.mxu1 %vm12626_vm1, %v17919_v21 }
 0x79a   :  { %12327 = vmatprep.subr.bf16.mxu0 %v17919_v21  ;;  %12362 = vmatpush3.bf16.msra.mxu1 %v18042_v44 }
 0x79b   :  { %12363 = vmatprep.subr.bf16.mxu1 %v17919_v21 }
 0x79c   :  { %12328 = vmatpush3.bf16.msra.mxu0 %v18043_v31 }
 0x79d   :  { %12329 = vmatprep.subr.bf16.mxu0 %v17919_v21 }
 0x79e   :  { %12364 = vmatpush3.bf16.msra.mxu1 %v18044_v18 }
 0x79f   :  { %12266 = vmatmul.mubr.msk.bf16.gmra.mrb[108].mxu0 %vm3180_vm4, %v8221_v38  ;;  %12365 = vmatprep.subr.bf16.mxu1 %v17919_v21  ;;  %v18048_v38 = vld [vmem:[#allocation47_spill] sm:$0xff] }
 0x7a0   :  { %12302 = vmatmul.mubr.msk.bf16.gmra.mrb[108].mxu1 %vm3180_vm4, %v8371_v12  ;;  %12269 = vmatprep.mubr.msk.bf16.mxu0 %vm12626_vm1, %v17919_v21 }
 0x7a1   :  { %12305 = vmatprep.mubr.msk.bf16.mxu1 %vm12626_vm1, %v17919_v21  ;;  %12330 = vmatpush3.bf16.msra.mxu0 %v18045_v57 }
 0x7a2   :  { %12331 = vmatprep.subr.bf16.mxu0 %v17919_v21  ;;  %12366 = vmatpush3.bf16.msra.mxu1 %v18046_v43 }
 0x7a3   :  { %12367 = vmatprep.subr.bf16.mxu1 %v17919_v21 }
 0x7a5   :  { %12332 = vmatpush3.bf16.msra.mxu0 %v18047_v30 }
 0x7a6   :  { %12368 = vmatpush3.bf16.msra.mxu1 %v18048_v38  ;;  %12397 = vmatprep.subr.bf16.mxu0 %v17919_v21 }
 0x7a7   :  { %12270 = vmatmul.mubr.msk.bf16.gmra.mrb[112].mxu0 %vm3180_vm4, %v8222_v15  ;;  %v8219_v15 = vld [vmem:[#allocation3 + $0x71] sm:$0xff] }
 0x7a8   :  { %12306 = vmatmul.mubr.msk.bf16.gmra.mrb[112].mxu1 %vm3180_vm4, %v8372_v52  ;;  %12273 = vmatprep.mubr.msk.bf16.mxu0 %vm12626_vm1, %v17919_v21  ;;  %v8226_v45 = vpack.c.bf16 %v8219_v15, %v17173_v16 }
 0x7a9   :  { %12309 = vmatprep.mubr.msk.bf16.mxu1 %vm12626_vm1, %v17919_v21 }
 0x7af   :  { %12274 = vmatmul.mubr.msk.bf16.gmra.mrb[116].mxu0 %vm3180_vm4, %v8223_v41  ;;  %v8376_v41 = vpack.c.bf16 %v17388_v63, %v7919_v5 }
 0x7b0   :  { %12310 = vmatmul.mubr.msk.bf16.gmra.mrb[116].mxu1 %vm3180_vm4, %v8373_v40  ;;  %12277 = vmatprep.mubr.msk.bf16.mxu0 %vm12626_vm1, %v17919_v21 }
 0x7b1   :  { %12313 = vmatprep.mubr.msk.bf16.mxu1 %vm12626_vm1, %v17919_v21 }
 0x7b7   :  { %12278 = vmatmul.mubr.msk.bf16.gmra.mrb[120].mxu0 %vm3180_vm4, %v8224_v39  ;;  %v8519_v39 = vld [vmem:[#allocation3 + $0x78] sm:$0xff] }
 0x7b8   :  { %12314 = vmatmul.mubr.msk.bf16.gmra.mrb[120].mxu1 %vm3180_vm4, %v8374_v51  ;;  %12281 = vmatprep.mubr.msk.bf16.mxu0 %vm12626_vm1, %v17919_v21 }
 0x7b9   :  { %12317 = vmatprep.mubr.msk.bf16.mxu1 %vm12626_vm1, %v17919_v21 }
 0x7bf   :  { %12282 = vmatmul.mubr.msk.bf16.gmra.mrb[124].mxu0 %vm3180_vm4, %v8225_v34 }
 0x7c0   :  { %12318 = vmatmul.mubr.msk.bf16.gmra.mrb[124].mxu1 %vm3180_vm4, %v8375_v14  ;;  %12285 = vmatprep.mubr.msk.bf16.mxu0 %vm12626_vm1, %v17919_v21 }
 0x7c1   :  { %12321 = vmatprep.mubr.msk.bf16.mxu1 %vm12626_vm1, %v17919_v21 }
 0x7c7   :  { %12286 = vmatmul.mubr.msk.bf16.gmra.mrb[128].mxu0 %vm3180_vm4, %v8226_v45 }
 0x7c8   :  { %12322 = vmatmul.mubr.msk.bf16.gmra.mrb[128].mxu1 %vm3180_vm4, %v8376_v41  ;;  %12333 = vmatprep.mubr.msk.bf16.mxu0 %vm12626_vm1, %v17919_v21 }
 0x7c9   :  { %12369 = vmatprep.mubr.msk.bf16.mxu1 %vm12626_vm1, %v17919_v21 }
 0x7cf   :  { %12334 = vmatmul.mubr.msk.bf16.vlgmr.msra.gmra.mrb[132].mxu0 %vm3180_vm4, %v17058_v37  ;;  %v18052_v37 = vld [vmem:[#allocation51_spill] sm:$0xff] }
 0x7d0   :  { %12370 = vmatmul.mubr.msk.bf16.vlgmr.msra.gmra.mrb[132].mxu1 %vm3180_vm4, %v17054_v10  ;;  %12398 = vmatpush3.bf16.msra.mxu0 %v18049_v47  ;;  %v18051_v10 = vld [vmem:[#allocation50_spill] sm:$0xff] }
 0x7d1   :  { %12337 = vmatprep.mubr.msk.bf16.mxu0 %vm12626_vm1, %v17919_v21  ;;  %12373 = vmatprep.mubr.msk.bf16.mxu1 %vm12626_vm1, %v17919_v21 }
 0x7d2   :  { %12399 = vmatprep.subr.bf16.mxu0 %v17919_v21 }
 0x7d4   :  { %12400 = vmatpush3.bf16.msra.mxu0 %v18050_v17 }
 0x7d5   :  { %12401 = vmatprep.subr.bf16.mxu0 %v17919_v21 }
 0x7d7   :  { %12338 = vmatmul.mubr.msk.bf16.gmra.mrb[136].mxu0 %vm3180_vm4, %v17092_v56 }
 0x7d8   :  { %12374 = vmatmul.mubr.msk.bf16.gmra.mrb[136].mxu1 %vm3180_vm4, %v17088_v50  ;;  %12341 = vmatprep.mubr.msk.bf16.mxu0 %vm12626_vm1, %v17919_v21  ;;  %v8669_v50 = vld [vmem:[#allocation3 + $0x79] sm:$0xff] }
 0x7d9   :  { %12377 = vmatprep.mubr.msk.bf16.mxu1 %vm12626_vm1, %v17919_v21  ;;  %12402 = vmatpush3.bf16.msra.mxu0 %v18051_v10 }
 0x7da   :  { %12403 = vmatprep.subr.bf16.mxu0 %v17919_v21 }
 0x7dd   :  { %12404 = vmatpush3.bf16.msra.mxu0 %v18052_v37 }
 0x7df   :  { %12342 = vmatmul.mubr.msk.bf16.gmra.mrb[140].mxu0 %vm3180_vm4, %v17123_v58  ;;  %v8526_v58 = vpack.c.bf16 %v8519_v39, %v17298_v22 }
 0x7e0   :  { %12378 = vmatmul.mubr.msk.bf16.gmra.mrb[140].mxu1 %vm3180_vm4, %v17119_v62  ;;  %12345 = vmatprep.mubr.msk.bf16.mxu0 %vm12626_vm1, %v17919_v21 }
 0x7e1   :  { %12381 = vmatprep.mubr.msk.bf16.mxu1 %vm12626_vm1, %v17919_v21 }
 0x7e7   :  { %12346 = vmatmul.mubr.msk.bf16.gmra.mrb[144].mxu0 %vm3180_vm4, %v17143_v29 }
 0x7e8   :  { %12382 = vmatmul.mubr.msk.bf16.gmra.mrb[144].mxu1 %vm3180_vm4, %v17139_v46  ;;  %12349 = vmatprep.mubr.msk.bf16.mxu0 %vm12626_vm1, %v17919_v21  ;;  %v8676_v46 = vpack.c.bf16 %v8669_v50, %v8219_v15 }
 0x7e9   :  { %12385 = vmatprep.mubr.msk.bf16.mxu1 %vm12626_vm1, %v17919_v21 }
 0x7ef   :  { %12350 = vmatmul.mubr.msk.bf16.gmra.mrb[148].mxu0 %vm3180_vm4, %v17163_v23 }
 0x7f0   :  { %12386 = vmatmul.mubr.msk.bf16.gmra.mrb[148].mxu1 %vm3180_vm4, %v17159_v11  ;;  %12353 = vmatprep.mubr.msk.bf16.mxu0 %vm12626_vm1, %v17919_v21 }
 0x7f1   :  { %12389 = vmatprep.mubr.msk.bf16.mxu1 %vm12626_vm1, %v17919_v21 }
 0x7f7   :  { %12354 = vmatmul.mubr.msk.bf16.gmra.mrb[152].mxu0 %vm3180_vm4, %v17185_v42 }
 0x7f8   :  { %12390 = vmatmul.mubr.msk.bf16.gmra.mrb[152].mxu1 %vm3180_vm4, %v17181_v27  ;;  %12357 = vmatprep.mubr.msk.bf16.mxu0 %vm12626_vm1, %v17919_v21 }
 0x7f9   :  { %12393 = vmatprep.mubr.msk.bf16.mxu1 %vm12626_vm1, %v17919_v21 }
 0x7fa   :  { %v7741_v56 = vpop.f32.mrb[48].mxu0 }
 0x7fb   :  { %v7851_v7 = vpop.f32.mrb[48].mxu1  ;;  %v12119_v34 = vpop.f32.mrb[49].mxu0 }
 0x7fc   :  { %v17453_v59 = vadd.f32 %v7851_v7, %v7741_v56  ;;  %v12155_v62 = vpop.f32.mrb[49].mxu1  ;;  %v7744_v29 = vpop.f32.mrb[50].mxu0 }
 0x7fd   :  { %v7854_v11 = vpop.f32.mrb[50].mxu1  ;;  %v12120_v16 = vpop.f32.mrb[51].mxu0 }
 0x7fe   :  { %v17456_v23 = vadd.f32 %v7854_v11, %v7744_v29  ;;  %v12156_v27 = vpop.f32.mrb[51].mxu1  ;;  %v8819_v29 = vld [vmem:[#allocation3 + $0x7a] sm:$0xff] }
 0x7ff   :  { %12358 = vmatmul.mubr.msk.bf16.gmra.mrb[156].mxu0 %vm3180_vm4, %v8526_v58 }
 0x800   :  { %12394 = vmatmul.mubr.msk.bf16.gmra.mrb[156].mxu1 %vm3180_vm4, %v8676_v46  ;;  %12405 = vmatprep.mubr.msk.bf16.mxu0 %vm12626_vm1, %v17919_v21 }
 0x802   :  { %v7749_v42 = vpop.f32.mrb[52].mxu0 }
 0x803   :  { %v7859_v32 = vpop.f32.mrb[52].mxu1  ;;  %v12123_v61 = vpop.f32.mrb[53].mxu0 }
 0x804   :  { %v17462_v13 = vadd.f32 %v7859_v32, %v7749_v42  ;;  %v12159_v4 = vpop.f32.mrb[53].mxu1  ;;  %v7752_v33 = vpop.f32.mrb[54].mxu0  ;;  %v8826_v32 = vpack.c.bf16 %v8819_v29, %v17388_v63 }
 0x805   :  { %v7862_v55 = vpop.f32.mrb[54].mxu1  ;;  %v12124_v53 = vpop.f32.mrb[55].mxu0 }
 0x806   :  { %v17464_v1 = vadd.f32 %v7862_v55, %v7752_v33  ;;  %v12160_v36 = vpop.f32.mrb[55].mxu1 }
 0x807   :  { %12406 = vmatmul.mubr.msk.bf16.vlgmr.msra.gmra.mrb[160].mxu0 %vm3180_vm4, %v17215_v3 }
 0x808   :  { %12409 = vmatprep.mubr.msk.bf16.mxu0 %vm12626_vm1, %v17919_v21 }
 0x80a   :  { %v7757_v6 = vpop.f32.mrb[56].mxu0 }
 0x80b   :  { %v7867_v24 = vpop.f32.mrb[56].mxu1  ;;  %v12127_v20 = vpop.f32.mrb[57].mxu0 }
 0x80c   :  { %v12163_v8 = vpop.f32.mrb[57].mxu1  ;;  %v7760_v54 = vpop.f32.mrb[58].mxu0 }
 0x80d   :  { %v7870_v28 = vpop.f32.mrb[58].mxu1  ;;  %v12128_v35 = vpop.f32.mrb[59].mxu0 }
 0x80e   :  { %v12164_v26 = vpop.f32.mrb[59].mxu1 }
 0x80f   :  { %12410 = vmatmul.mubr.msk.bf16.gmra.mrb[164].mxu0 %vm3180_vm4, %v17240_v0 }
 0x810   :  { %12413 = vmatprep.mubr.msk.bf16.mxu0 %vm12626_vm1, %v17919_v21 }
 0x812   :  { %v7765_v5 = vpop.f32.mrb[60].mxu0 }
 0x813   :  { %v7875_v22 = vpop.f32.mrb[60].mxu1  ;;  %v12131_v3 = vpop.f32.mrb[61].mxu0 }
 0x814   :  { %v12167_v9 = vpop.f32.mrb[61].mxu1  ;;  %v7768_v48 = vpop.f32.mrb[62].mxu0 }
 0x815   :  { %v7878_v25 = vpop.f32.mrb[62].mxu1  ;;  %v12132_v12 = vpop.f32.mrb[63].mxu0 }
 0x816   :  { %v17474_v44 = vadd.f32 %v7878_v25, %v7768_v48  ;;  %v12168_v31 = vpop.f32.mrb[63].mxu1 }
 0x817   :  { %12414 = vmatmul.mubr.msk.bf16.gmra.mrb[168].mxu0 %vm3180_vm4, %v17262_v60 }
 0x818   :  { %12417 = vmatprep.mubr.msk.bf16.mxu0 %vm12626_vm1, %v17919_v21 }
 0x81a   :  { %v7773_v0 = vpop.f32.mrb[64].mxu0 }
 0x81b   :  { %v7883_v18 = vpop.f32.mrb[64].mxu1  ;;  %v12135_v43 = vpop.f32.mrb[65].mxu0 }
 0x81c   :  { %v17480_v57 = vadd.f32 %v7883_v18, %v7773_v0  ;;  %v12171_v52 = vpop.f32.mrb[65].mxu1  ;;  %v7776_v30 = vpop.f32.mrb[66].mxu0 }
 0x81d   :  { %v7886_v38 = vpop.f32.mrb[66].mxu1  ;;  %v12136_v51 = vpop.f32.mrb[67].mxu0 }
 0x81e   :  { %v17482_v40 = vadd.f32 %v7886_v38, %v7776_v30  ;;  %v12172_v14 = vpop.f32.mrb[67].mxu1 }
 0x81f   :  { %12418 = vmatmul.mubr.msk.bf16.gmra.mrb[172].mxu0 %vm3180_vm4, %v17276_v49 }
 0x820   :  { %12421 = vmatprep.mubr.msk.bf16.mxu0 %vm12626_vm1, %v17919_v21 }
 0x822   :  { %v7781_v60 = vpop.f32.mrb[68].mxu0 }
 0x823   :  { %v7891_v15 = vpop.f32.mrb[68].mxu1  ;;  %v12139_v41 = vpop.f32.mrb[69].mxu0 }
 0x824   :  { %v17488_v45 = vadd.f32 %v7891_v15, %v7781_v60  ;;  %v12175_v47 = vpop.f32.mrb[69].mxu1  ;;  %v7784_v17 = vpop.f32.mrb[70].mxu0 }
 0x825   :  { %v7894_v10 = vpop.f32.mrb[70].mxu1  ;;  %v12140_v37 = vpop.f32.mrb[71].mxu0 }
 0x826   :  { %v12176_v39 = vpop.f32.mrb[71].mxu1 }
 0x827   :  { %12422 = vmatmul.mubr.msk.bf16.gmra.mrb[176].mxu0 %vm3180_vm4, %v17287_v19 }
 0x828   :  { %12425 = vmatprep.mubr.msk.bf16.mxu0 %vm12626_vm1, %v17919_v21 }
 0x82a   :  { %v7789_v49 = vpop.f32.mrb[72].mxu0 }
 0x82b   :  { %v7899_v50 = vpop.f32.mrb[72].mxu1  ;;  %v12143_v56 = vpop.f32.mrb[73].mxu0 }
 0x82c   :  { %v12179_v7 = vpop.f32.mrb[73].mxu1  ;;  %v7792_v34 = vpop.f32.mrb[74].mxu0 }
 0x82d   :  { %v7902_v62 = vpop.f32.mrb[74].mxu1  ;;  %v12144_v58 = vpop.f32.mrb[75].mxu0 }
 0x82e   :  { %v12180_v46 = vpop.f32.mrb[75].mxu1 }
 0x82f   :  { %12426 = vmatmul.mubr.msk.bf16.gmra.mrb[180].mxu0 %vm3180_vm4, %v17300_v2 }
 0x830   :  { %12429 = vmatprep.mubr.msk.bf16.mxu0 %vm12626_vm1, %v17919_v21 }
 0x832   :  { %v7987_v11 = vpop.f32.mrb[76].mxu0 }
 0x833   :  { %v8137_v19 = vpop.f32.mrb[76].mxu1  ;;  %v8042_v16 = vadd.f32 %v7987_v11, %v17453_v59  ;;  %v12191_v27 = vpop.f32.mrb[77].mxu0 }
 0x834   :  { %v12227_v42 = vpop.f32.mrb[77].mxu1  ;;  %v7990_v61 = vpop.f32.mrb[78].mxu0 }
 0x835   :  { %v8140_v4 = vpop.f32.mrb[78].mxu1  ;;  %v8043_v33 = vadd.f32 %v7990_v61, %v17456_v23  ;;  %v17501_v55 = vadd.f32 %v8137_v19, %v8042_v16  ;;  %v12192_v53 = vpop.f32.mrb[79].mxu0 }
 0x836   :  { %v12228_v2 = vpop.f32.mrb[79].mxu1 }
 0x837   :  { %v17503_v36 = vadd.f32 %v8140_v4, %v8043_v33  ;;  %12430 = vmatmul.mubr.msk.bf16.gmra.mrb[184].mxu0 %vm3180_vm4, %v8826_v32 }
 0x83a   :  { %v7995_v6 = vpop.f32.mrb[80].mxu0 }
 0x83b   :  { %v8145_v24 = vpop.f32.mrb[80].mxu1  ;;  %v8044_v59 = vadd.f32 %v7995_v6, %v17462_v13  ;;  %v12195_v20 = vpop.f32.mrb[81].mxu0 }
 0x83c   :  { %v12231_v8 = vpop.f32.mrb[81].mxu1  ;;  %v7998_v54 = vpop.f32.mrb[82].mxu0 }
 0x83d   :  { %v8148_v63 = vpop.f32.mrb[82].mxu1  ;;  %v8045_v28 = vadd.f32 %v7998_v54, %v17464_v1  ;;  %v17508_v35 = vadd.f32 %v8145_v24, %v8044_v59  ;;  %v12196_v23 = vpop.f32.mrb[83].mxu0 }
 0x83e   :  { %v12232_v26 = vpop.f32.mrb[83].mxu1 }
 0x83f   :  { %v17510_v5 = vadd.f32 %v8148_v63, %v8045_v28 }
 0x842   :  { %v8003_v22 = vpop.f32.mrb[84].mxu0 }
 0x843   :  { %v8153_v3 = vpop.f32.mrb[84].mxu1  ;;  %v12199_v9 = vpop.f32.mrb[85].mxu0 }
 0x844   :  { %v12235_v48 = vpop.f32.mrb[85].mxu1  ;;  %v8006_v25 = vpop.f32.mrb[86].mxu0 }
 0x845   :  { %v8156_v12 = vpop.f32.mrb[86].mxu1  ;;  %v12200_v31 = vpop.f32.mrb[87].mxu0 }
 0x846   :  { %v12236_v13 = vpop.f32.mrb[87].mxu1 }
 0x84a   :  { %v8011_v0 = vpop.f32.mrb[88].mxu0 }
 0x84b   :  { %v8161_v18 = vpop.f32.mrb[88].mxu1  ;;  %v12203_v43 = vpop.f32.mrb[89].mxu0 }
 0x84c   :  { %v12239_v52 = vpop.f32.mrb[89].mxu1  ;;  %v8014_v30 = vpop.f32.mrb[90].mxu0 }
 0x84d   :  { %v8164_v1 = vpop.f32.mrb[90].mxu1  ;;  %v8049_v38 = vadd.f32 %v8014_v30, %v17474_v44  ;;  %v12204_v51 = vpop.f32.mrb[91].mxu0 }
 0x84e   :  { %v12240_v14 = vpop.f32.mrb[91].mxu1 }
 0x84f   :  { %v17513_v60 = vadd.f32 %v8164_v1, %v8049_v38 }
 0x852   :  { %v8019_v15 = vpop.f32.mrb[92].mxu0 }
 0x853   :  { %v8169_v41 = vpop.f32.mrb[92].mxu1  ;;  %v8050_v47 = vadd.f32 %v8019_v15, %v17480_v57  ;;  %v12207_v17 = vpop.f32.mrb[93].mxu0 }
 0x854   :  { %v12243_v10 = vpop.f32.mrb[93].mxu1  ;;  %v8022_v37 = vpop.f32.mrb[94].mxu0 }
 0x855   :  { %v8172_v39 = vpop.f32.mrb[94].mxu1  ;;  %v8051_v49 = vadd.f32 %v8022_v37, %v17482_v40  ;;  %v17517_v50 = vadd.f32 %v8169_v41, %v8050_v47  ;;  %v12208_v56 = vpop.f32.mrb[95].mxu0 }
 0x856   :  { %v12244_v7 = vpop.f32.mrb[95].mxu1 }
 0x857   :  { %v17519_v34 = vadd.f32 %v8172_v39, %v8051_v49 }
 0x85a   :  { %v8027_v44 = vpop.f32.mrb[96].mxu0 }
 0x85b   :  { %v8177_v62 = vpop.f32.mrb[96].mxu1  ;;  %v8052_v58 = vadd.f32 %v8027_v44, %v17488_v45  ;;  %v12211_v46 = vpop.f32.mrb[97].mxu0 }
 0x85c   :  { %v12247_v29 = vpop.f32.mrb[97].mxu1  ;;  %v8030_v11 = vpop.f32.mrb[98].mxu0 }
 0x85d   :  { %v8180_v57 = vpop.f32.mrb[98].mxu1  ;;  %v17522_v19 = vadd.f32 %v8177_v62, %v8052_v58  ;;  %v12212_v16 = vpop.f32.mrb[99].mxu0 }
 0x85e   :  { %v12248_v27 = vpop.f32.mrb[99].mxu1 }
 0x862   :  { %v8035_v42 = vpop.f32.mrb[100].mxu0 }
 0x863   :  { %v8185_v40 = vpop.f32.mrb[100].mxu1  ;;  %v12215_v32 = vpop.f32.mrb[101].mxu0 }
 0x864   :  { %v12251_v61 = vpop.f32.mrb[101].mxu1  ;;  %v8038_v4 = vpop.f32.mrb[102].mxu0 }
 0x865   :  { %v8188_v33 = vpop.f32.mrb[102].mxu1  ;;  %v12216_v53 = vpop.f32.mrb[103].mxu0 }
 0x866   :  { %v12252_v2 = vpop.f32.mrb[103].mxu1 }
 0x86a   :  { %v8287_v6 = vpop.f32.mrb[104].mxu0 }
 0x86b   :  { %v8437_v24 = vpop.f32.mrb[104].mxu1  ;;  %v8342_v45 = vadd.f32 %v8287_v6, %v17501_v55  ;;  %v12263_v59 = vpop.f32.mrb[105].mxu0 }
 0x86c   :  { %v12299_v20 = vpop.f32.mrb[105].mxu1  ;;  %v8290_v8 = vpop.f32.mrb[106].mxu0 }
 0x86d   :  { %v8440_v54 = vpop.f32.mrb[106].mxu1  ;;  %v8343_v63 = vadd.f32 %v8290_v8, %v17503_v36  ;;  %v17526_v28 = vadd.f32 %v8437_v24, %v8342_v45  ;;  %v12264_v23 = vpop.f32.mrb[107].mxu0 }
 0x86e   :  { %v12300_v26 = vpop.f32.mrb[107].mxu1 }
 0x86f   :  { %v17528_v22 = vadd.f32 %v8440_v54, %v8343_v63 }
 0x872   :  { %v8295_v3 = vpop.f32.mrb[108].mxu0 }
 0x873   :  { %v8445_v9 = vpop.f32.mrb[108].mxu1  ;;  %v8344_v48 = vadd.f32 %v8295_v3, %v17508_v35  ;;  %v12267_v25 = vpop.f32.mrb[109].mxu0 }
 0x874   :  { %v12303_v12 = vpop.f32.mrb[109].mxu1  ;;  %v8298_v31 = vpop.f32.mrb[110].mxu0 }
 0x875   :  { %v8448_v55 = vpop.f32.mrb[110].mxu1  ;;  %v8345_v13 = vadd.f32 %v8298_v31, %v17510_v5  ;;  %v17532_v0 = vadd.f32 %v8445_v9, %v8344_v48  ;;  %v12268_v18 = vpop.f32.mrb[111].mxu0 }
 0x876   :  { %v12304_v36 = vpop.f32.mrb[111].mxu1 }
 0x877   :  { %v17534_v43 = vadd.f32 %v8448_v55, %v8345_v13 }
 0x87a   :  { %v8303_v52 = vpop.f32.mrb[112].mxu0 }
 0x87b   :  { %v8453_v30 = vpop.f32.mrb[112].mxu1  ;;  %v12271_v1 = vpop.f32.mrb[113].mxu0 }
 0x87c   :  { %v12307_v38 = vpop.f32.mrb[113].mxu1  ;;  %v8306_v51 = vpop.f32.mrb[114].mxu0 }
 0x87d   :  { %v8456_v14 = vpop.f32.mrb[114].mxu1  ;;  %v12272_v15 = vpop.f32.mrb[115].mxu0 }
 0x87e   :  { %v12308_v35 = vpop.f32.mrb[115].mxu1 }
 0x882   :  { %v8311_v41 = vpop.f32.mrb[116].mxu0 }
 0x883   :  { %v8461_v47 = vpop.f32.mrb[116].mxu1  ;;  %v12275_v17 = vpop.f32.mrb[117].mxu0 }
 0x884   :  { %v12311_v10 = vpop.f32.mrb[117].mxu1  ;;  %v8314_v37 = vpop.f32.mrb[118].mxu0 }
 0x885   :  { %v8464_v5 = vpop.f32.mrb[118].mxu1  ;;  %v8349_v39 = vadd.f32 %v8314_v37, %v17513_v60  ;;  %v12276_v49 = vpop.f32.mrb[119].mxu0 }
 0x886   :  { %v12312_v56 = vpop.f32.mrb[119].mxu1 }
 0x887   :  { %v17537_v7 = vadd.f32 %v8464_v5, %v8349_v39 }
 0x88a   :  { %v8319_v44 = vpop.f32.mrb[120].mxu0 }
 0x88b   :  { %v8469_v62 = vpop.f32.mrb[120].mxu1  ;;  %v8350_v58 = vadd.f32 %v8319_v44, %v17517_v50  ;;  %v12279_v46 = vpop.f32.mrb[121].mxu0 }
 0x88c   :  { %v12315_v29 = vpop.f32.mrb[121].mxu1  ;;  %v8322_v11 = vpop.f32.mrb[122].mxu0 }
 0x88d   :  { %v8472_v57 = vpop.f32.mrb[122].mxu1  ;;  %v8351_v16 = vadd.f32 %v8322_v11, %v17519_v34  ;;  %v17541_v27 = vadd.f32 %v8469_v62, %v8350_v58  ;;  %v12280_v42 = vpop.f32.mrb[123].mxu0 }
 0x88e   :  { %v12316_v40 = vpop.f32.mrb[123].mxu1 }
 0x88f   :  { %v17543_v32 = vadd.f32 %v8472_v57, %v8351_v16 }
 0x892   :  { %v8327_v60 = vpop.f32.mrb[124].mxu0 }
 0x893   :  { %v8477_v61 = vpop.f32.mrb[124].mxu1  ;;  %v8352_v4 = vadd.f32 %v8327_v60, %v17522_v19  ;;  %v12283_v33 = vpop.f32.mrb[125].mxu0 }
 0x894   :  { %v12319_v53 = vpop.f32.mrb[125].mxu1  ;;  %v8330_v2 = vpop.f32.mrb[126].mxu0 }
 0x895   :  { %v8480_v50 = vpop.f32.mrb[126].mxu1  ;;  %v17546_v6 = vadd.f32 %v8477_v61, %v8352_v4  ;;  %v12284_v24 = vpop.f32.mrb[127].mxu0 }
 0x896   :  { %v12320_v45 = vpop.f32.mrb[127].mxu1 }
 0x89a   :  { %v8335_v59 = vpop.f32.mrb[128].mxu0 }
 0x89b   :  { %v8485_v34 = vpop.f32.mrb[128].mxu1  ;;  %v12287_v20 = vpop.f32.mrb[129].mxu0 }
 0x89c   :  { %v12323_v8 = vpop.f32.mrb[129].mxu1  ;;  %v8338_v54 = vpop.f32.mrb[130].mxu0 }
 0x89d   :  { %v8488_v63 = vpop.f32.mrb[130].mxu1  ;;  %v12288_v23 = vpop.f32.mrb[131].mxu0 }
 0x89e   :  { %v12324_v26 = vpop.f32.mrb[131].mxu1 }
 0x8a2   :  { %v8587_v3 = vpop.f32.mrb[132].mxu0 }
 0x8a3   :  { %v8737_v9 = vpop.f32.mrb[132].mxu1  ;;  %v8642_v19 = vadd.f32 %v8587_v3, %v17526_v28  ;;  %v12335_v48 = vpop.f32.mrb[133].mxu0 }
 0x8a4   :  { %v12371_v25 = vpop.f32.mrb[133].mxu1  ;;  %v8590_v12 = vpop.f32.mrb[134].mxu0 }
 0x8a5   :  { %v8740_v31 = vpop.f32.mrb[134].mxu1  ;;  %v8643_v55 = vadd.f32 %v8590_v12, %v17528_v22  ;;  %v17550_v13 = vadd.f32 %v8737_v9, %v8642_v19  ;;  %v12336_v18 = vpop.f32.mrb[135].mxu0 }
 0x8a6   :  { %v12372_v36 = vpop.f32.mrb[135].mxu1 }
 0x8a7   :  { %v17552_v52 = vadd.f32 %v8740_v31, %v8643_v55 }
 0x8aa   :  { %v8595_v30 = vpop.f32.mrb[136].mxu0 }
 0x8ab   :  { %v8745_v1 = vpop.f32.mrb[136].mxu1  ;;  %v8644_v38 = vadd.f32 %v8595_v30, %v17532_v0  ;;  %v12339_v51 = vpop.f32.mrb[137].mxu0 }
 0x8ac   :  { %v12375_v14 = vpop.f32.mrb[137].mxu1  ;;  %v8598_v15 = vpop.f32.mrb[138].mxu0 }
 0x8ad   :  { %v8748_v28 = vpop.f32.mrb[138].mxu1  ;;  %v8645_v35 = vadd.f32 %v8598_v15, %v17534_v43  ;;  %v17556_v41 = vadd.f32 %v8745_v1, %v8644_v38  ;;  %v12340_v47 = vpop.f32.mrb[139].mxu0 }
 0x8ae   :  { %v12376_v22 = vpop.f32.mrb[139].mxu1 }
 0x8af   :  { %v17558_v17 = vadd.f32 %v8748_v28, %v8645_v35 }
 0x8b2   :  { %v8603_v10 = vpop.f32.mrb[140].mxu0 }
 0x8b3   :  { %v8753_v37 = vpop.f32.mrb[140].mxu1  ;;  %v12343_v5 = vpop.f32.mrb[141].mxu0 }
 0x8b4   :  { %v12379_v39 = vpop.f32.mrb[141].mxu1  ;;  %v8606_v49 = vpop.f32.mrb[142].mxu0 }
 0x8b5   :  { %v8756_v56 = vpop.f32.mrb[142].mxu1  ;;  %v12344_v44 = vpop.f32.mrb[143].mxu0 }
 0x8b6   :  { %v12380_v0 = vpop.f32.mrb[143].mxu1 }
 0x8ba   :  { %v8611_v62 = vpop.f32.mrb[144].mxu0 }
 0x8bb   :  { %v8761_v58 = vpop.f32.mrb[144].mxu1  ;;  %v12347_v46 = vpop.f32.mrb[145].mxu0 }
 0x8bc   :  { %v12383_v29 = vpop.f32.mrb[145].mxu1  ;;  %v8614_v11 = vpop.f32.mrb[146].mxu0 }
 0x8bd   :  { %v8764_v43 = vpop.f32.mrb[146].mxu1  ;;  %v8649_v57 = vadd.f32 %v8614_v11, %v17537_v7  ;;  %v12348_v16 = vpop.f32.mrb[147].mxu0 }
 0x8be   :  { %v12384_v42 = vpop.f32.mrb[147].mxu1 }
 0x8bf   :  { %v17561_v40 = vadd.f32 %v8764_v43, %v8649_v57 }
 0x8c2   :  { %v8619_v60 = vpop.f32.mrb[148].mxu0 }
 0x8c3   :  { %v8769_v61 = vpop.f32.mrb[148].mxu1  ;;  %v8650_v4 = vadd.f32 %v8619_v60, %v17541_v27  ;;  %v12351_v33 = vpop.f32.mrb[149].mxu0 }
 0x8c4   :  { %v12387_v53 = vpop.f32.mrb[149].mxu1  ;;  %v8622_v2 = vpop.f32.mrb[150].mxu0 }
 0x8c5   :  { %v8772_v50 = vpop.f32.mrb[150].mxu1  ;;  %v8651_v24 = vadd.f32 %v8622_v2, %v17543_v32  ;;  %v17565_v45 = vadd.f32 %v8769_v61, %v8650_v4  ;;  %v12352_v59 = vpop.f32.mrb[151].mxu0 }
 0x8c6   :  { %v12388_v34 = vpop.f32.mrb[151].mxu1 }
 0x8c7   :  { %v17567_v20 = vadd.f32 %v8772_v50, %v8651_v24 }
 0x8ca   :  { %v8627_v7 = vpop.f32.mrb[152].mxu0 }
 0x8cb   :  { %v8777_v8 = vpop.f32.mrb[152].mxu1  ;;  %v8652_v54 = vadd.f32 %v8627_v7, %v17546_v6  ;;  %v12355_v63 = vpop.f32.mrb[153].mxu0  ;;  %v17575_v6 = vld [vmem:[%s17756_s6] ss:$0 sm:$0xff] }
 0x8cc   :  { %v12391_v23 = vpop.f32.mrb[153].mxu1  ;;  %v8630_v26 = vpop.f32.mrb[154].mxu0 }
 0x8cd   :  { %v8780_v27 = vpop.f32.mrb[154].mxu1  ;;  %v17570_v3 = vadd.f32 %v8777_v8, %v8652_v54  ;;  %v12356_v9 = vpop.f32.mrb[155].mxu0 }
 0x8ce   :  { %v12392_v19 = vpop.f32.mrb[155].mxu1 }
 0x8d2   :  { %v8635_v48 = vpop.f32.mrb[156].mxu0 }
 0x8d3   :  { %v8785_v32 = vpop.f32.mrb[156].mxu1  ;;  %v12359_v25 = vpop.f32.mrb[157].mxu0 }
 0x8d4   :  { %v12395_v12 = vpop.f32.mrb[157].mxu1  ;;  %v8638_v31 = vpop.f32.mrb[158].mxu0 }
 0x8d5   :  { %v8788_v55 = vpop.f32.mrb[158].mxu1  ;;  %v12360_v18 = vpop.f32.mrb[159].mxu0 }
 0x8d6   :  { %v12396_v36 = vpop.f32.mrb[159].mxu1 }
 0x8da   :  { %v8887_v30 = vpop.f32.mrb[160].mxu0 }
 0x8db   :  { %v8942_v1 = vadd.f32 %v8887_v30, %v17550_v13  ;;  %v12407_v38 = vpop.f32.mrb[161].mxu0 }
 0x8dc   :  { %v8890_v51 = vpop.f32.mrb[162].mxu0 }
 0x8dd   :  { %v8962_v14 = vadd.f32 %v17575_v6, %v8942_v1  ;;  %v8943_v15 = vadd.f32 %v8890_v51, %v17552_v52  ;;  %v12408_v28 = vpop.f32.mrb[163].mxu0 }
 0x8df   :  { %v8976_v35 = vmax.f32 %v8962_v14, 0.0  ;;  %v8963_v47 = vadd.f32 %v17575_v6, %v8943_v15 }
 0x8e1   :  { %8990 = vst.msk [vmem:[#allocation4] sm:$0xff] %vm3180_vm4, %v8976_v35  ;;  %v8977_v22 = vmax.f32 %v8963_v47, 0.0 }
 0x8e2   :  { %v8895_v10 = vpop.f32.mrb[164].mxu0 }
 0x8e3   :  { %8991 = vst.msk [vmem:[#allocation4 + $0x8] sm:$0xff] %vm3180_vm4, %v8977_v22  ;;  %v8944_v37 = vadd.f32 %v8895_v10, %v17556_v41  ;;  %v12411_v5 = vpop.f32.mrb[165].mxu0 }
 0x8e4   :  { %v8898_v13 = vpop.f32.mrb[166].mxu0 }
 0x8e5   :  { %v8964_v39 = vadd.f32 %v17575_v6, %v8944_v37  ;;  %v8945_v49 = vadd.f32 %v8898_v13, %v17558_v17  ;;  %v12412_v56 = vpop.f32.mrb[167].mxu0 }
 0x8e7   :  { %v8978_v52 = vmax.f32 %v8964_v39, 0.0  ;;  %v8965_v44 = vadd.f32 %v17575_v6, %v8945_v49 }
 0x8e8   :  { %v10240_v0 = vld.sshfl [vmem:[#allocation4 + $0x1] sm:$0x1 pattern:$0x76325410]  ;;  %v9004_v62 = vld [vmem:[#allocation4] sm:$0x1] }
 0x8e9   :  { %8992 = vst.msk [vmem:[#allocation4 + $0x10] sm:$0xff] %vm3180_vm4, %v8978_v52  ;;  %v8979_v58 = vmax.f32 %v8965_v44, 0.0  ;;  %9016 = vrot.lane.b32.xlu0 %v10240_v0, %s12628_s19  ;;  %v10241_v17 = vld.sshfl [vmem:[#allocation4 + $0x3] sm:$0x1 pattern:$0x76325410] }
 0x8ea   :  { %9006 = vst.msk [vmem:[#allocation5] sm:$0x1] %vm9005_vm5, %v9004_v62  ;;  %v8903_v41 = vpop.f32.mrb[168].mxu0  ;;  %v9036_v43 = vld [vmem:[#allocation4 + $0x8] sm:$0x1] }
 0x8eb   :  { %v10242_v46 = vld.sshfl [vmem:[#allocation4 + $0x9] sm:$0x1 pattern:$0x76325410]  ;;  %8993 = vst.msk [vmem:[#allocation4 + $0x18] sm:$0xff] %vm3180_vm4, %v8979_v58  ;;  %v12415_v29 = vpop.f32.mrb[169].mxu0 }
 0x8ec   :  { %9047 = vrot.lane.b32.xlu1 %v10242_v46, %s12628_s19  ;;  %v8906_v11 = vpop.f32.mrb[170].mxu0  ;;  %v9021_v57 = vld [vmem:[#allocation4 + $0x2] sm:$0x1]  ;;  %9037 = vst.msk [vmem:[#allocation5 + $0x4] sm:$0x1] %vm9005_vm5, %v9036_v43 }
 0x8ed   :  { %v12416_v16 = vpop.f32.mrb[171].mxu0  ;;  %9032 = vrot.lane.b32.xlu0 %v10241_v17, %s12628_s19  ;;  %9022 = vst.msk [vmem:[#allocation5 + $0x2] sm:$0x1] %vm9005_vm5, %v9021_v57  ;;  %v9051_v42 = vld [vmem:[#allocation4 + $0xa] sm:$0x1] }
 0x8ee   :  { %v10243_v60 = vld.sshfl [vmem:[#allocation4 + $0xb] sm:$0x1 pattern:$0x76325410]  ;;  %9052 = vst.msk [vmem:[#allocation5 + $0x6] sm:$0x1] %vm9005_vm5, %v9051_v42 }
 0x8f0   :  { %9062 = vrot.lane.b32.xlu1 %v10243_v60, %s12628_s19  ;;  %v10244_v61 = vld.sshfl [vmem:[#allocation4 + $0x11] sm:$0x1 pattern:$0x76325410]  ;;  %v9066_v4 = vld [vmem:[#allocation4 + $0x10] sm:$0x1] }
 0x8f1   :  { %9077 = vrot.lane.b32.xlu0 %v10244_v61, %s12628_s19  ;;  %9067 = vst.msk [vmem:[#allocation5 + $0x8] sm:$0x1] %vm9005_vm5, %v9066_v4  ;;  %v10245_v53 = vld.sshfl [vmem:[#allocation4 + $0x13] sm:$0x1 pattern:$0x76325410] }
 0x8f2   :  { %v8911_v33 = vpop.f32.mrb[172].mxu0  ;;  %v10246_v50 = vld.sshfl [vmem:[#allocation4 + $0x19] sm:$0x1 pattern:$0x76325410] }
 0x8f3   :  { %v12419_v2 = vpop.f32.mrb[173].mxu0  ;;  %v9081_v59 = vld [vmem:[#allocation4 + $0x12] sm:$0x1]  ;;  %v9096_v34 = vld [vmem:[#allocation4 + $0x18] sm:$0x1] }
 0x8f4   :  { %9092 = vrot.lane.b32.xlu1 %v10245_v53, %s12628_s19  ;;  %v8914_v24 = vpop.f32.mrb[174].mxu0  ;;  %9082 = vst.msk [vmem:[#allocation5 + $0xa] sm:$0x1] %vm9005_vm5, %v9081_v59  ;;  %9097 = vst.msk [vmem:[#allocation5 + $0xc] sm:$0x1] %vm9005_vm5, %v9096_v34 }
 0x8f5   :  { %v8949_v7 = vadd.f32 %v8914_v24, %v17561_v40  ;;  %v12420_v8 = vpop.f32.mrb[175].mxu0  ;;  %9107 = vrot.lane.b32.xlu0 %v10246_v50, %s12628_s19  ;;  %v9111_v54 = vld [vmem:[#allocation4 + $0x1a] sm:$0x1]  ;;  %v18053_v50 = vld [vmem:[#allocation60_spill] sm:$0xff] }
 0x8f6   :  { %v10247_v63 = vld.sshfl [vmem:[#allocation4 + $0x1b] sm:$0x1 pattern:$0x76325410]  ;;  %9112 = vst.msk [vmem:[#allocation5 + $0xe] sm:$0x1] %vm9005_vm5, %v9111_v54  ;;  %10728 = vmatprep.subr.bf16.mxu1 %v18053_v50 }
 0x8f7   :  { %v8969_v23 = vadd.f32 %v17575_v6, %v8949_v7 }
 0x8f8   :  { %9122 = vrot.lane.b32.xlu1 %v10247_v63, %s12628_s19 }
 0x8f9   :  { %v8983_v26 = vmax.f32 %v8969_v23, 0.0 }
 0x8fa   :  { %v8919_v27 = vpop.f32.mrb[176].mxu0 }
 0x8fb   :  { %8997 = vst.msk [vmem:[#allocation4 + $0x38] sm:$0xff] %vm3180_vm4, %v8983_v26  ;;  %v8950_v40 = vadd.f32 %v8919_v27, %v17565_v45  ;;  %v12423_v9 = vpop.f32.mrb[177].mxu0 }
 0x8fc   :  { %v8922_v19 = vpop.f32.mrb[178].mxu0 }
 0x8fd   :  { %v8970_v48 = vadd.f32 %v17575_v6, %v8950_v40  ;;  %v8951_v32 = vadd.f32 %v8922_v19, %v17567_v20  ;;  %v12424_v25 = vpop.f32.mrb[179].mxu0 }
 0x8ff   :  { %v8984_v12 = vmax.f32 %v8970_v48, 0.0  ;;  %v8971_v31 = vadd.f32 %v17575_v6, %v8951_v32 }
 0x901   :  { %8998 = vst.msk [vmem:[#allocation4 + $0x40] sm:$0xff] %vm3180_vm4, %v8984_v12  ;;  %v8985_v55 = vmax.f32 %v8971_v31, 0.0 }
 0x902   :  { %v8927_v18 = vpop.f32.mrb[180].mxu0  ;;  %v10249_v36 = vld.sshfl [vmem:[#allocation4 + $0x3b] sm:$0x1 pattern:$0x76325410] }
 0x903   :  { %8999 = vst.msk [vmem:[#allocation4 + $0x48] sm:$0xff] %vm3180_vm4, %v8985_v55  ;;  %v8952_v30 = vadd.f32 %v8927_v18, %v17570_v3  ;;  %v12427_v45 = vpop.f32.mrb[181].mxu0  ;;  %9152 = vrot.lane.b32.xlu1 %v10249_v36, %s12628_s19  ;;  %v10248_v1 = vld.sshfl [vmem:[#allocation4 + $0x39] sm:$0x1 pattern:$0x76325410] }
 0x904   :  { %9137 = vrot.lane.b32.xlu0 %v10248_v1, %s12628_s19  ;;  %v8930_v20 = vpop.f32.mrb[182].mxu0  ;;  %v9141_v38 = vld [vmem:[#allocation4 + $0x3a] sm:$0x1]  ;;  %v9126_v51 = vld [vmem:[#allocation4 + $0x38] sm:$0x1] }
 0x905   :  { %v8972_v14 = vadd.f32 %v17575_v6, %v8952_v30  ;;  %v12428_v15 = vpop.f32.mrb[183].mxu0  ;;  %9142 = vst.msk [vmem:[#allocation5 + $0x3] sm:$0x1] %vm9005_vm5, %v9141_v38  ;;  %9127 = vst.msk [vmem:[#allocation5 + $0x1] sm:$0x1] %vm9005_vm5, %v9126_v51 }
 0x907   :  { %v8986_v28 = vmax.f32 %v8972_v14, 0.0 }
 0x908   :  { %v10251_v35 = vld.sshfl [vmem:[#allocation4 + $0x43] sm:$0x1 pattern:$0x76325410]  ;;  %v9171_v47 = vld [vmem:[#allocation4 + $0x42] sm:$0x1] }
 0x909   :  { %9000 = vst.msk [vmem:[#allocation4 + $0x50] sm:$0xff] %vm3180_vm4, %v8986_v28  ;;  %9182 = vrot.lane.b32.xlu1 %v10251_v35, %s12628_s19  ;;  %v10250_v3 = vld.sshfl [vmem:[#allocation4 + $0x41] sm:$0x1 pattern:$0x76325410] }
 0x90a   :  { %9172 = vst.msk [vmem:[#allocation5 + $0x7] sm:$0x1] %vm9005_vm5, %v9171_v47  ;;  %9167 = vrot.lane.b32.xlu0 %v10250_v3, %s12628_s19  ;;  %v8935_v22 = vpop.f32.mrb[184].mxu0  ;;  %v9156_v13 = vld [vmem:[#allocation4 + $0x40] sm:$0x1] }
 0x90b   :  { %v10253_v10 = vld.sshfl [vmem:[#allocation4 + $0x4b] sm:$0x1 pattern:$0x76325410]  ;;  %v12431_v6 = vpop.f32.mrb[185].mxu0 }
 0x90c   :  { %v10252_v37 = vld.sshfl [vmem:[#allocation4 + $0x49] sm:$0x1 pattern:$0x76325410]  ;;  %v8938_v5 = vpop.f32.mrb[186].mxu0 }
 0x90d   :  { %v9201_v39 = vld [vmem:[#allocation4 + $0x4a] sm:$0x1]  ;;  %9212 = vrot.lane.b32.xlu1 %v10253_v10, %s12628_s19  ;;  %9157 = vst.msk [vmem:[#allocation5 + $0x5] sm:$0x1] %vm9005_vm5, %v9156_v13  ;;  %v12432_v49 = vpop.f32.mrb[187].mxu0 }
 0x90e   :  { %9202 = vst.msk [vmem:[#allocation5 + $0xb] sm:$0x1] %vm9005_vm5, %v9201_v39  ;;  %v9186_v56 = vld [vmem:[#allocation4 + $0x48] sm:$0x1]  ;;  %9197 = vrot.lane.b32.xlu0 %v10252_v37, %s12628_s19 }
 0x90f   :  { %9187 = vst.msk [vmem:[#allocation5 + $0x9] sm:$0x1] %vm9005_vm5, %v9186_v56 }
 0x910   :  { %v10255_v52 = vld.sshfl [vmem:[#allocation4 + $0x53] sm:$0x1 pattern:$0x76325410]  ;;  %v9231_v44 = vld [vmem:[#allocation4 + $0x52] sm:$0x1] }
 0x911   :  { %9242 = vrot.lane.b32.xlu1 %v10255_v52, %s12628_s19  ;;  %v10254_v0 = vld.sshfl [vmem:[#allocation4 + $0x51] sm:$0x1 pattern:$0x76325410]  ;;  %9232 = vst.msk [vmem:[#allocation5 + $0xf] sm:$0x1] %vm9005_vm5, %v9231_v44 }
 0x912   :  { %9227 = vrot.lane.b32.xlu0 %v10254_v0, %s12628_s19  ;;  %v9216_v62 = vld [vmem:[#allocation4 + $0x50] sm:$0x1] }
 0x913   :  { %9217 = vst.msk [vmem:[#allocation5 + $0xd] sm:$0x1] %vm9005_vm5, %v9216_v62 }
 0x95b   :  { %v9017_v58 = vpop.permute.xlu0 %9016 }
 0x95c   :  { %9020 = vst.msk [vmem:[#allocation5] sm:$0x1] %vm9019_vm6, %v9017_v58 }
 0x95e   :  { %v9048_v41 = vpop.permute.xlu1 %9047 }
 0x95f   :  { %9050 = vst.msk [vmem:[#allocation5 + $0x4] sm:$0x1] %vm9019_vm6, %v9048_v41  ;;  %v9033_v46 = vpop.permute.xlu0 %9032 }
 0x960   :  { %9035 = vst.msk [vmem:[#allocation5 + $0x2] sm:$0x1] %vm9019_vm6, %v9033_v46 }
 0x962   :  { %v9063_v29 = vpop.permute.xlu1 %9062 }
 0x963   :  { %9065 = vst.msk [vmem:[#allocation5 + $0x6] sm:$0x1] %vm9019_vm6, %v9063_v29  ;;  %v9078_v17 = vpop.permute.xlu0 %9077 }
 0x964   :  { %9080 = vst.msk [vmem:[#allocation5 + $0x8] sm:$0x1] %vm9019_vm6, %v9078_v17 }
 0x966   :  { %v9093_v11 = vpop.permute.xlu1 %9092 }
 0x967   :  { %9095 = vst.msk [vmem:[#allocation5 + $0xa] sm:$0x1] %vm9019_vm6, %v9093_v11  ;;  %v9108_v43 = vpop.permute.xlu0 %9107 }
 0x968   :  { %9110 = vst.msk [vmem:[#allocation5 + $0xc] sm:$0x1] %vm9019_vm6, %v9108_v43 }
 0x96a   :  { %v9123_v57 = vpop.permute.xlu1 %9122 }
 0x96b   :  { %9125 = vst.msk [vmem:[#allocation5 + $0xe] sm:$0x1] %vm9019_vm6, %v9123_v57 }
 0x975   :  { %v9153_v16 = vpop.permute.xlu1 %9152 }
 0x976   :  { %9155 = vst.msk [vmem:[#allocation5 + $0x3] sm:$0x1] %vm9019_vm6, %v9153_v16  ;;  %v9138_v42 = vpop.permute.xlu0 %9137 }
 0x977   :  { %9140 = vst.msk [vmem:[#allocation5 + $0x1] sm:$0x1] %vm9019_vm6, %v9138_v42 }
 0x97b   :  { %v9183_v60 = vpop.permute.xlu1 %9182 }
 0x97c   :  { %9185 = vst.msk [vmem:[#allocation5 + $0x7] sm:$0x1] %vm9019_vm6, %v9183_v60  ;;  %v9168_v61 = vpop.permute.xlu0 %9167 }
 0x97d   :  { %9170 = vst.msk [vmem:[#allocation5 + $0x5] sm:$0x1] %vm9019_vm6, %v9168_v61 }
 0x97f   :  { %v9213_v4 = vpop.permute.xlu1 %9212 }
 0x980   :  { %9215 = vst.msk [vmem:[#allocation5 + $0xb] sm:$0x1] %vm9019_vm6, %v9213_v4  ;;  %v9198_v33 = vpop.permute.xlu0 %9197 }
 0x981   :  { %9200 = vst.msk [vmem:[#allocation5 + $0x9] sm:$0x1] %vm9019_vm6, %v9198_v33 }
 0x983   :  { %v9243_v53 = vpop.permute.xlu1 %9242 }
 0x984   :  { %9245 = vst.msk [vmem:[#allocation5 + $0xf] sm:$0x1] %vm9019_vm6, %v9243_v53  ;;  %v9228_v2 = vpop.permute.xlu0 %9227 }
 0x985   :  { %9230 = vst.msk [vmem:[#allocation5 + $0xd] sm:$0x1] %vm9019_vm6, %v9228_v2 }
 0x986   :  { %12621 = dma.done.wait [#allocation8 + $0x1], 8192 }
 0x987   :  { %12622 = vsyncadd [#allocation8 + $0x1], 4294959104  ;;  %v9258_v24 = vlaneseq  ;;  %v18054_v59 = vld [vmem:[#allocation92_spill] sm:$0xff]  ;;  %v12629_v7 = vmov 1983009808   ;;  %v18057_v63 = vld [vmem:[#allocation61_spill] sm:$0xff] }
 0x988   :  { %10772 = vmatprep.subr.bf16.mxu0 %v18054_v59  ;;  %v18055_v34 = vld [vmem:[#allocation52_spill] sm:$0xff]  ;;  %v9256_v8 = vunpack.c.l.s4 %v12629_v7  ;;  %v18058_v26 = vld [vmem:[#allocation93_spill] sm:$0xff]  ;;  %v18061_v48 = vld [vmem:[#allocation62_spill] sm:$0xff]  ;;  %vm9618_vm7 = vcmask 74752  }
 0x989   :  { %10729 = vmatpush3.bf16.msra.mxu1 %v18055_v34  ;;  %v18056_v54 = vld [vmem:[#allocation84_spill] sm:$0xff]  ;;  %v9259_v23 = vshrl.u32 %v9258_v24, 7  ;;  %v18059_v40 = vld [vmem:[#allocation53_spill] sm:$0xff]  ;;  %v18062_v32 = vld [vmem:[#allocation94_spill] sm:$0xff] }
 0x98a   :  { %10773 = vmatpush3.bf16.msra.mxu0 %v18056_v54  ;;  %10730 = vmatprep.subr.bf16.mxu1 %v18057_v63  ;;  %v9257_v27 = vunpack.c.0.s8 %v9256_v8  ;;  %v18060_v19 = vld [vmem:[#allocation85_spill] sm:$0xff]  ;;  %v18063_v18 = vld [vmem:[#allocation54_spill] sm:$0xff]  ;;  %v18065_v30 = vld [vmem:[#allocation63_spill] sm:$0xff] }
 0x98b   :  { %10774 = vmatprep.subr.bf16.mxu0 %v18058_v26  ;;  %v9250_v25 = vld [vmem:[#allocation5] sm:$0xff]  ;;  %v18066_v1 = vld [vmem:[#allocation95_spill] sm:$0xff]  ;;  %v18069_v28 = vld [vmem:[#allocation64_spill] sm:$0xff] }
 0x98c   :  { %v9260_v9 = vsub.s32 %v9257_v27, %v9259_v23  ;;  %v9251_v12 = vld [vmem:[#allocation5 + $0x8] sm:$0xff]  ;;  %v18070_v35 = vld [vmem:[#allocation96_spill] sm:$0xff]  ;;  %v9254_v3 = vcombine.high %v9250_v25, %v9250_v25  ;;  %v18073_v10 = vld [vmem:[#allocation65_spill] sm:$0xff] }
 0x98d   :  { %10731 = vmatpush3.bf16.msra.mxu1 %v18059_v40  ;;  %v18064_v36 = vld [vmem:[#allocation86_spill] sm:$0xff]  ;;  %v18067_v51 = vld [vmem:[#allocation55_spill] sm:$0xff]  ;;  %v18071_v47 = vld [vmem:[#allocation56_spill] sm:$0xff]  ;;  %v9271_v2 = vcombine.high %v9251_v12, %v9251_v12 }
 0x98e   :  { %10775 = vmatpush3.bf16.msra.mxu0 %v18060_v19  ;;  %10732 = vmatprep.subr.bf16.mxu1 %v18061_v48  ;;  %v9261_v31 = vrot.slane %v9250_v25, %v9260_v9  ;;  %v9278_v55 = vrot.slane %v9251_v12, %v9260_v9  ;;  %v18068_v14 = vld [vmem:[#allocation87_spill] sm:$0xff]  ;;  %v18072_v22 = vld [vmem:[#allocation88_spill] sm:$0xff]  ;;  %v18074_v6 = vld [vmem:[#allocation97_spill] sm:$0xff]  ;;  %v9268_v13 = vrot.slane %v9254_v3, %v9260_v9 }
 0x98f   :  { %10776 = vmatprep.subr.bf16.mxu0 %v18062_v32  ;;  %v18075_v37 = vld [vmem:[#allocation57_spill] sm:$0xff]  ;;  %v18077_v39 = vld [vmem:[#allocation66_spill] sm:$0xff]  ;;  %v18081_v0 = vld [vmem:[#allocation67_spill] sm:$0xff]  ;;  %v9285_v59 = vrot.slane %v9271_v2, %v9260_v9 }
 0x990   :  { %v9269_v45 = vcombine.high %v9261_v31, %v9261_v31  ;;  %v9286_v20 = vcombine.high %v9278_v55, %v9278_v55  ;;  %v18076_v5 = vld [vmem:[#allocation89_spill] sm:$0xff]  ;;  %v18078_v49 = vld [vmem:[#allocation98_spill] sm:$0xff]  ;;  %v9270_v44 = vcombine.high %v9268_v13, %v9268_v13  ;;  %v18082_v62 = vld [vmem:[#allocation99_spill] sm:$0xff]  ;;  %v9296_v58 = vpack.c.bf16 %v9261_v31, %v9261_v31 }
 0x991   :  { %10733 = vmatpush3.bf16.msra.mxu1 %v18063_v18  ;;  %v18079_v56 = vld [vmem:[#allocation58_spill] sm:$0xff]  ;;  %v9300_v41 = vpack.c.bf16 %v9278_v55, %v9278_v55  ;;  %v18083_v46 = vld [vmem:[#allocation59_spill] sm:$0xff]  ;;  %v18085_v11 = vld [vmem:[#allocation76_spill] sm:$0xff]  ;;  %v9287_v8 = vcombine.high %v9285_v59, %v9285_v59  ;;  %v9298_v63 = vpack.c.bf16 %v9268_v13, %v9268_v13 }
 0x992   :  { %10777 = vmatpush3.bf16.msra.mxu0 %v18064_v36  ;;  %10734 = vmatprep.subr.bf16.mxu1 %v18065_v30  ;;  %v9297_v38 = vpack.c.bf16 %v9269_v45, %v9269_v45  ;;  %v9301_v15 = vpack.c.bf16 %v9286_v20, %v9286_v20  ;;  %v18080_v52 = vld [vmem:[#allocation90_spill] sm:$0xff]  ;;  %v9299_v29 = vpack.c.bf16 %v9270_v44, %v9270_v44  ;;  %v18084_v17 = vld [vmem:[#allocation91_spill] sm:$0xff]  ;;  %v18086_v43 = vld [vmem:[#allocation68_spill] sm:$0xff] }
 0x993   :  { %10778 = vmatprep.subr.bf16.mxu0 %v18066_v1  ;;  %v18087_v57 = vld [vmem:[#allocation77_spill] sm:$0xff]  ;;  %v18089_v42 = vld [vmem:[#allocation78_spill] sm:$0xff]  ;;  %v18091_v61 = vld [vmem:[#allocation79_spill] sm:$0xff]  ;;  %v9303_v26 = vpack.c.bf16 %v9287_v8, %v9287_v8  ;;  %v9302_v20 = vpack.c.bf16 %v9285_v59, %v9285_v59 }
 0x994   :  { %9407 = vmatprep.mubr.bf16.mxu1 %v9297_v38  ;;  %9487 = vmatprep.mubr.bf16.mxu0 %v9301_v15  ;;  %v18088_v16 = vld [vmem:[#allocation69_spill] sm:$0xff]  ;;  %v18090_v60 = vld [vmem:[#allocation70_spill] sm:$0xff]  ;;  %v18092_v4 = vld [vmem:[#allocation71_spill] sm:$0xff] }
 0x995   :  { %10735 = vmatpush3.bf16.msra.mxu1 %v18067_v51  ;;  %v18093_v33 = vld [vmem:[#allocation80_spill] sm:$0xff]  ;;  %v18095_v50 = vld [vmem:[#allocation81_spill] sm:$0xff]  ;;  %v18097_v34 = vld [vmem:[#allocation82_spill] sm:$0xff] }
 0x996   :  { %10779 = vmatpush3.bf16.msra.mxu0 %v18068_v14  ;;  %10736 = vmatprep.subr.bf16.mxu1 %v18069_v28  ;;  %v18094_v53 = vld [vmem:[#allocation72_spill] sm:$0xff]  ;;  %v18096_v24 = vld [vmem:[#allocation73_spill] sm:$0xff]  ;;  %v18098_v7 = vld [vmem:[#allocation74_spill] sm:$0xff] }
 0x997   :  { %10780 = vmatprep.subr.bf16.mxu0 %v18070_v35  ;;  %v18099_v54 = vld [vmem:[#allocation83_spill] sm:$0xff]  ;;  %v18101_v27 = vld [vmem:[#allocation108_spill] sm:$0xff]  ;;  %v18103_v19 = vld [vmem:[#allocation109_spill] sm:$0xff] }
 0x998   :  { %v18100_v23 = vld [vmem:[#allocation75_spill] sm:$0xff]  ;;  %v18102_v40 = vld [vmem:[#allocation100_spill] sm:$0xff]  ;;  %v18104_v9 = vld [vmem:[#allocation101_spill] sm:$0xff] }
 0x999   :  { %10737 = vmatpush3.bf16.msra.mxu1 %v18071_v47  ;;  %v18105_v48 = vld [vmem:[#allocation110_spill] sm:$0xff]  ;;  %v18107_v25 = vld [vmem:[#allocation111_spill] sm:$0xff]  ;;  %v18109_v31 = vld [vmem:[#allocation112_spill] sm:$0xff] }
 0x99a   :  { %10781 = vmatpush3.bf16.msra.mxu0 %v18072_v22  ;;  %10738 = vmatprep.subr.bf16.mxu1 %v18073_v10  ;;  %v18106_v32 = vld [vmem:[#allocation102_spill] sm:$0xff]  ;;  %v18108_v12 = vld [vmem:[#allocation103_spill] sm:$0xff]  ;;  %v18110_v55 = vld [vmem:[#allocation104_spill] sm:$0xff] }
 0x99b   :  { %10782 = vmatprep.subr.bf16.mxu0 %v18074_v6  ;;  %v18111_v18 = vld [vmem:[#allocation113_spill] sm:$0xff]  ;;  %v18113_v30 = vld [vmem:[#allocation114_spill] sm:$0xff]  ;;  %v18115_v1 = vld [vmem:[#allocation115_spill] sm:$0xff] }
 0x99c   :  { %v18112_v36 = vld [vmem:[#allocation105_spill] sm:$0xff]  ;;  %v18114_v45 = vld [vmem:[#allocation106_spill] sm:$0xff]  ;;  %v18116_v38 = vld [vmem:[#allocation107_spill] sm:$0xff] }
 0x99d   :  { %10739 = vmatpush3.bf16.msra.mxu1 %v18075_v37  ;;  %v12593_v51 = vld [vmem:[%s17759_s9] sm:$0xff]   ;;  %v12594_v14 = vld [vmem:[%s17759_s9 + $0x8] sm:$0xff]   ;;  %v12595_v15 = vld [vmem:[%s17759_s9 + $0x10] sm:$0xff]  }
 0x99e   :  { %10783 = vmatpush3.bf16.msra.mxu0 %v18076_v5  ;;  %10740 = vmatprep.subr.bf16.mxu1 %v18077_v39  ;;  %v12596_v28 = vld [vmem:[%s17759_s9 + $0x18] sm:$0xff]  }
 0x99f   :  { %10784 = vmatprep.subr.bf16.mxu0 %v18078_v49  ;;  %v10256_v49 = vld [vmem:[%s17758_s8] ss:$0 sm:$0xff]  ;;  %s12630_s8 = smov [#allocation9]  }
 0x9a0   :  { %s9626_s22 = sshll.u32 %s12630_s8, 4  ;;  %s9627_s22 = int_to_ptr.vmem [resolvable:$true] %s9626_s22 }
 0x9a1   :  { %10741 = vmatpush3.bf16.msra.mxu1 %v18079_v56  ;;  %s12597_s23 = scalar_lea.vmem %s9627_s22, 32  ;;  %p12602_p1 = scmp.lt.s32.totalorder %s9627_s22, %s9627_s22 }
 0x9a2   :  { %10785 = vmatpush3.bf16.msra.mxu0 %v18080_v52  ;;  %10742 = vmatprep.subr.bf16.mxu1 %v18081_v0  ;;  %p12598_p0 = scmp.ne.s32.totalorder %s9627_s22, %s12597_s23  ;;  %p12603_p2 = scmp.lt.s32.totalorder %s12597_s23, %s12597_s23 }
 0x9a3   :  { %10786 = vmatprep.subr.bf16.mxu0 %v18082_v62 }
 0x9a4   :  { %p12604_p3 = por %p12603_p2, %p12602_p1 }
 0x9a5   :  { %10743 = vmatpush3.bf16.msra.mxu1 %v18083_v46 }
 0x9a6   :  { %10787 = vmatpush3.bf16.msra.mxu0 %v18084_v17  ;;  %10750 = vmatprep.subr.bf16.mxu1 %v18085_v11  ;;  %p12605_p4 = pnand %p12604_p3, %p12598_p0 }
 0x9a7   :  { %12433 = vmatprep.subr.bf16.mxu0 %v17919_v21 }
 0x9a8   :  { %9408 = vmatmul.mubr.bf16.vlgmr.msra.gmra.mrb[160].mxu1 %v9296_v58 }
 0x9a9   :  { %9488 = vmatmul.mubr.bf16.vlgmr.msra.gmra.mrb[188].mxu0 %v9300_v41  ;;  %10751 = vmatpush3.bf16.msra.mxu1 %v18086_v43 }
 0x9aa   :  { %9447 = vmatprep.mubr.bf16.mxu1 %v9299_v29  ;;  %10752 = vmatprep.subr.bf16.mxu1 %v18087_v57 }
 0x9ab   :  { %12441 = vmatprep.mubr.msk.bf16.mxu0 %vm12626_vm1, %v17919_v21  ;;  %12434 = vmatpush3.bf16.msra.mxu0 %v12593_v51 }
 0x9ac   :  { %12435 = vmatprep.subr.bf16.mxu0 %v17919_v21 }
 0x9ad   :  { %10753 = vmatpush3.bf16.msra.mxu1 %v18088_v16 }
 0x9ae   :  { %10754 = vmatprep.subr.bf16.mxu1 %v18089_v42  ;;  %v10257_v42 = vld [vmem:[%s17760_s10] ss:$0 sm:$0xff] }
 0x9af   :  { %12436 = vmatpush3.bf16.msra.mxu0 %v12594_v14 }
 0x9b0   :  { %12437 = vmatprep.subr.bf16.mxu0 %v17919_v21 }
 0x9b1   :  { %10755 = vmatpush3.bf16.msra.mxu1 %v18090_v60 }
 0x9b2   :  { %10756 = vmatprep.subr.bf16.mxu1 %v18091_v61 }
 0x9b3   :  { %12438 = vmatpush3.bf16.msra.mxu0 %v12595_v15 }
 0x9b4   :  { %12439 = vmatprep.subr.bf16.mxu0 %v17919_v21 }
 0x9b5   :  { %10757 = vmatpush3.bf16.msra.mxu1 %v18092_v4 }
 0x9b6   :  { %10758 = vmatprep.subr.bf16.mxu1 %v18093_v33 }
 0x9b7   :  { %12440 = vmatpush3.bf16.msra.mxu0 %v12596_v28 }
 0x9b9   :  { %10759 = vmatpush3.bf16.msra.mxu1 %v18094_v53 }
 0x9ba   :  { %10760 = vmatprep.subr.bf16.mxu1 %v18095_v50 }
 0x9bd   :  { %10761 = vmatpush3.bf16.msra.mxu1 %v18096_v24 }
 0x9be   :  { %10762 = vmatprep.subr.bf16.mxu1 %v18097_v34 }
 0x9c1   :  { %10763 = vmatpush3.bf16.msra.mxu1 %v18098_v7 }
 0x9c2   :  { %10764 = vmatprep.subr.bf16.mxu1 %v18099_v54 }
 0x9c5   :  { %10765 = vmatpush3.bf16.msra.mxu1 %v18100_v23 }
 0x9c6   :  { %10794 = vmatprep.subr.bf16.mxu1 %v18101_v27 }
 0x9c8   :  { %9448 = vmatmul.mubr.bf16.vlgmr.msra.gmra.mrb[164].mxu1 %v9298_v63 }
 0x9c9   :  { %10795 = vmatpush3.bf16.msra.mxu1 %v18102_v40  ;;  %9527 = vmatprep.mubr.bf16.mxu1 %v9303_v26 }
 0x9ca   :  { %10796 = vmatprep.subr.bf16.mxu1 %v18103_v19 }
 0x9cd   :  { %10797 = vmatpush3.bf16.msra.mxu1 %v18104_v9 }
 0x9ce   :  { %10798 = vmatprep.subr.bf16.mxu1 %v18105_v48 }
 0x9d1   :  { %10799 = vmatpush3.bf16.msra.mxu1 %v18106_v32 }
 0x9d2   :  { %10800 = vmatprep.subr.bf16.mxu1 %v18107_v25 }
 0x9d5   :  { %10801 = vmatpush3.bf16.msra.mxu1 %v18108_v12 }
 0x9d6   :  { %10802 = vmatprep.subr.bf16.mxu1 %v18109_v31 }
 0x9d9   :  { %10803 = vmatpush3.bf16.msra.mxu1 %v18110_v55 }
 0x9da   :  { %10804 = vmatprep.subr.bf16.mxu1 %v18111_v18 }
 0x9dd   :  { %10805 = vmatpush3.bf16.msra.mxu1 %v18112_v36 }
 0x9de   :  { %10806 = vmatprep.subr.bf16.mxu1 %v18113_v30 }
 0x9e1   :  { %10807 = vmatpush3.bf16.msra.mxu1 %v18114_v45 }
 0x9e2   :  { %10808 = vmatprep.subr.bf16.mxu1 %v18115_v1 }
 0x9e5   :  { %10809 = vmatpush3.bf16.msra.mxu1 %v18116_v38 }
 0x9e8   :  { %9528 = vmatmul.mubr.bf16.vlgmr.msra.gmra.mrb[168].mxu1 %v9302_v20 }
 0xa7b   :  { %v10744_v35 = vpop.f32.mrb[160].mxu1 }
 0xa7c   :  { %v10788_v47 = vpop.f32.mrb[188].mxu0  ;;  %v10745_v3 = vpop.f32.mrb[161].mxu1 }
 0xa7d   :  { %v10789_v22 = vpop.f32.mrb[189].mxu0  ;;  %v10746_v10 = vadd.f32 %v10745_v3, %v10744_v35  ;;  %v10747_v6 = vpop.f32.mrb[162].mxu1 }
 0xa7e   :  { %v10790_v37 = vadd.f32 %v10789_v22, %v10788_v47  ;;  %v10791_v5 = vpop.f32.mrb[190].mxu0  ;;  %v10748_v13 = vpop.f32.mrb[163].mxu1 }
 0xa7f   :  { %v10792_v39 = vpop.f32.mrb[191].mxu0  ;;  %v9410_v52 = vadd.f32 %v10746_v10, %v10256_v49 }
 0xa9b   :  { %v10766_v21 = vpop.f32.mrb[164].mxu1 }
 0xa9c   :  { %v10767_v56 = vpop.f32.mrb[165].mxu1 }
 0xa9d   :  { %v10768_v44 = vadd.f32 %v10767_v56, %v10766_v21  ;;  %v10769_v0 = vpop.f32.mrb[166].mxu1 }
 0xa9e   :  { %v10770_v62 = vpop.f32.mrb[167].mxu1 }
 0xa9f   :  { %v9450_v58 = vadd.f32 %v10768_v44, %v9410_v52 }
 0xaa1   :  { %v9490_v41 = vadd.f32 %v10790_v37, %v9450_v58 }
 0xabb   :  { %v10810_v46 = vpop.f32.mrb[168].mxu1 }
 0xabc   :  { %v10811_v29 = vpop.f32.mrb[169].mxu1 }
 0xabd   :  { %v10812_v17 = vadd.f32 %v10811_v29, %v10810_v46  ;;  %v10813_v11 = vpop.f32.mrb[170].mxu1 }
 0xabe   :  { %v10814_v43 = vpop.f32.mrb[171].mxu1 }
 0xabf   :  { %v9530_v57 = vadd.f32 %v10812_v17, %v9490_v41 }
 0xac1   :  { %v9535_v16 = vpack.c.bf16 %v9530_v57, %v9530_v57 }
 0xac3   :  { %12442 = vmatmul.mubr.msk.bf16.vlgmr.msra.gmra.mrb[192].mxu0 %vm3180_vm4, %v9535_v16 }
 0xb96   :  { %v9612_v60 = vpop.f32.mrb[192].mxu0 }
 0xb97   :  { %v9613_v61 = vadd.f32 %v10257_v42, %v9612_v60  ;;  %v12443_v4 = vpop.f32.mrb[193].mxu0 }
 0xb98   :  { %v9615_v33 = vpop.f32.mrb[194].mxu0 }
 0xb99   :  { %v12444_v53 = vpop.f32.mrb[195].mxu0  ;;  %9619 = vst.msk [vmem:[#allocation9] sm:$0x3] %vm9618_vm7, %v9613_v61 }
 0xb9a   :  { %12608 = shalt.err (!%p12605_p4)
}
 0xb9b   :  { %s12609_s10 = scalar_lea.hbm %s17761_s11, 32 }
 0xb9c   :  { %p12610_p5 = scmp.ne.s32.totalorder %s17761_s11, %s12609_s10  ;;  %p12613_p6 = scmp.lt.u32.totalorder %s12609_s10, %s17761_s11 }
 0xb9e   :  { %p12615_p7 = pnand %p12613_p6, %p12610_p5 }
 0xba0   :  { %12618 = shalt.err (!%p12615_p7)
}
 0xba1   :  { %9629 = dma.vmem_to_hbm [thread:$0]  %s9627_s22, 32, %s17761_s11, [#allocation10]  }
 0xba2   :  { %12623 = dma.done.wait [#allocation10], 32  }
 0xba3   :  { %12624 = vsyncadd [#allocation10], 4294967264 }
 0xba4   :  { %9633 = vsyncpa [#allocation10], 1 }
 0xba5   :  { %9634 = vsyncmov [#allocation8] }
 0xba8   :  { %s9635_s3 = vpop.sfrf %9634 }
 0xba9   :  { %p10263_p8 = scmp.ne.s32.totalorder %s9635_s3, 0 }
 0xbab   :  { %9639 = shalt.err (%p10263_p8)  }
 0xbac   :  { %9641 = vsyncmov [#allocation8 + $0x1] }
 0xbaf   :  { %s9642_s29 = vpop.sfrf %9641 }
 0xbb0   :  { %p10264_p9 = scmp.ne.s32.totalorder %s9642_s29, 0 }
 0xbb2   :  { %9646 = shalt.err (%p10264_p9)  }

</bundles_post_ra>
